<compile_context>
chip_gen: v7x
topology: tpu7x:2x2x1
jax: 0.10.0
libtpu: 0.0.40
codegen_flags: <defaults>
</compile_context>

<pallas_src>
import math

import jax
import jax.numpy as jnp
from jax.experimental import pallas as pl
from jax.experimental.pallas import tpu as pltpu

# ----------------------------- static configuration ------------------------
EC = 64                       # ec: embed channels
CT = 128                      # ct: text channels
NH = 8                        # heads
HC = EC // NH                 # head channels
KPOOL = 3                     # AdaptiveMaxPool2d output -> k*k patches/level
CH = (16, 32, 64)             # per-level input channels
SPATIAL = ((16, 16), (8, 8), (4, 4))
NF = len(CH)
NUM_TOKENS = NF * KPOOL * KPOOL          # 27 image tokens
BS = 2                        # batch
LTXT = 8                      # text sequence length
LN_EPS = 1e-5
SCALE = 1.0                   # module default scale=False -> 1.0
HIGHEST = jax.lax.Precision.HIGHEST


def _adaptive_bounds(size, k):
    """Static region boundaries matching torch.nn.AdaptiveMaxPool2d."""
    return [(int(math.floor(i * size / k)), int(math.ceil((i + 1) * size / k)))
            for i in range(k)]


# --------------------------------- kernel ----------------------------------
def ipa_kernel(x0_ref, x1_ref, x2_ref, text_ref,
               wc0_ref, bc0_ref, wc1_ref, bc1_ref, wc2_ref, bc2_ref,
               gq_ref, bq_ln_ref, wq_ref, bq_ref,
               gk_ref, bk_ln_ref, wk_ref, bk_ref,
               gv_ref, bv_ln_ref, wv_ref, bv_ref,
               wp_ref, bp_ref,
               o_ref):
    x_refs = (x0_ref, x1_ref, x2_ref)
    wc_refs = (wc0_ref, wc1_ref, wc2_ref)
    bc_refs = (bc0_ref, bc1_ref, bc2_ref)

    # ---- per-level 1x1 conv projection (+bias) and adaptive max pool ------
    pooled_rows = []                                    # NF*k*k tiles of (1, EC)
    for lvl in range(NF):
        H, W = SPATIAL[lvl]
        C = CH[lvl]
        x2d = x_refs[lvl][0].reshape(H * W, C)          # collapse leading dims
        y = jnp.dot(x2d, wc_refs[lvl][...], precision=HIGHEST,
                    preferred_element_type=jnp.float32) + bc_refs[lvl][...]
        y3 = y.reshape(H, W, EC)                        # split leading dim back
        for (h0, h1) in _adaptive_bounds(H, KPOOL):
            for (w0, w1) in _adaptive_bounds(W, KPOOL):
                slab = y3[h0:h1, w0:w1, :]              # static slice
                m = jnp.max(jnp.max(slab, axis=0), axis=0, keepdims=True)
                pooled_rows.append(m)                   # (1, EC)
    xfeat = jnp.concatenate(pooled_rows, axis=0)        # (NUM_TOKENS, EC)

    # ---- key / value: shared LN statistics, per-branch affine + linear ----
    mu = jnp.mean(xfeat, axis=-1, keepdims=True)
    cent = xfeat - mu
    inv = jax.lax.rsqrt(jnp.mean(cent * cent, axis=-1, keepdims=True) + LN_EPS)
    xnorm = cent * inv
    k_in = xnorm * gk_ref[...] + bk_ln_ref[...]
    v_in = xnorm * gv_ref[...] + bv_ln_ref[...]
    k = jnp.dot(k_in, wk_ref[...], precision=HIGHEST,
                preferred_element_type=jnp.float32) + bk_ref[...]   # (T, EC)
    v = jnp.dot(v_in, wv_ref[...], precision=HIGHEST,
                preferred_element_type=jnp.float32) + bv_ref[...]   # (T, EC)

    # ---- query: LayerNorm(ct) + Linear(ct -> ec) ---------------------------
    t = text_ref[0]                                      # (L, CT) raw text
    tmu = jnp.mean(t, axis=-1, keepdims=True)
    tc = t - tmu
    tinv = jax.lax.rsqrt(jnp.mean(tc * tc, axis=-1, keepdims=True) + LN_EPS)
    q_in = tc * tinv * gq_ref[...] + bq_ln_ref[...]
    q = jnp.dot(q_in, wq_ref[...], precision=HIGHEST,
                preferred_element_type=jnp.float32) + bq_ref[...]   # (L, EC)

    # ---- multi-head attention over the image tokens (static head loop) ----
    inv_sqrt = 1.0 / math.sqrt(HC)
    head_outs = []
    for h in range(NH):
        lo, hi = h * HC, (h + 1) * HC
        qm = q[:, lo:hi]                                 # (L, HC)
        km = k[:, lo:hi]                                 # (T, HC)
        vm = v[:, lo:hi]                                 # (T, HC)
        s = jax.lax.dot_general(qm, km, (((1,), (1,)), ((), ())),
                                precision=HIGHEST,
                                preferred_element_type=jnp.float32) * inv_sqrt
        s = s - jnp.max(s, axis=-1, keepdims=True)
        e = jnp.exp(s)
        p = e / jnp.sum(e, axis=-1, keepdims=True)       # softmax over tokens
        head_outs.append(jnp.dot(p, vm, precision=HIGHEST,
                                 preferred_element_type=jnp.float32))  # (L, HC)
    attn = jnp.concatenate(head_outs, axis=-1)           # (L, EC)

    # ---- output projection + residual (scale = 1.0) ------------------------
    out = jnp.dot(attn, wp_ref[...], precision=HIGHEST,
                  preferred_element_type=jnp.float32) + bp_ref[...]  # (L, CT)
    o_ref[0] = (out * SCALE + t).astype(o_ref.dtype)


# --------------------------------- wrapper ---------------------------------
def image_pooling_attn_pallas(xs_nchw, text, params):
    """xs_nchw: list of NF arrays (BS, CH[i], H_i, W_i); text: (BS, LTXT, CT)."""
    bs, L, ct = text.shape
    assert ct == CT and L == LTXT

    # Channels-last for lane-dense in-kernel layout.
    # TODO(synk): if the surrounding model already runs NHWC, drop these transposes.
    xs_nhwc = [jnp.transpose(x, (0, 2, 3, 1)) for x in xs_nchw]

    row = lambda a: a.reshape(1, -1)

    args = []
    in_specs = []
    for lvl in range(NF):
        H, W = SPATIAL[lvl]
        C = CH[lvl]
        args.append(xs_nhwc[lvl])
        in_specs.append(pl.BlockSpec((1, H, W, C), lambda b: (b, 0, 0, 0)))
    args.append(text)
    in_specs.append(pl.BlockSpec((1, LTXT, CT), lambda b: (b, 0, 0)))

    def add_const(a):
        args.append(a)
        nd = a.ndim
        in_specs.append(pl.BlockSpec(a.shape, lambda b, nd=nd: (0,) * nd))

    # conv projections (transposed to (Cin, EC) so kernel does x @ W)
    for lvl in range(NF):
        add_const(params["proj_w"][lvl].T)               # (CH[lvl], EC)
        add_const(row(params["proj_b"][lvl]))            # (1, EC)
    # query branch
    add_const(row(params["q_ln_g"])); add_const(row(params["q_ln_b"]))
    add_const(params["q_w"].T);       add_const(row(params["q_b"]))   # (CT,EC),(1,EC)
    # key branch
    add_const(row(params["k_ln_g"])); add_const(row(params["k_ln_b"]))
    add_const(params["k_w"].T);       add_const(row(params["k_b"]))   # (EC,EC),(1,EC)
    # value branch
    add_const(row(params["v_ln_g"])); add_const(row(params["v_ln_b"]))
    add_const(params["v_w"].T);       add_const(row(params["v_b"]))   # (EC,EC),(1,EC)
    # output projection
    add_const(params["p_w"].T);       add_const(row(params["p_b"]))   # (EC,CT),(1,CT)

    out = pl.pallas_call(
        ipa_kernel,
        out_shape=jax.ShapeDtypeStruct((bs, LTXT, CT), jnp.float32),
        grid_spec=pltpu.PrefetchScalarGridSpec(
            num_scalar_prefetch=0,
            grid=(bs,),                                  # one batch image-set/step
            in_specs=in_specs,
            out_specs=pl.BlockSpec((1, LTXT, CT), lambda b: (b, 0, 0)),
        ),
        compiler_params=pltpu.CompilerParams(
            dimension_semantics=("parallel",)),          # megacore across batch
    )(*args)
    return out


# ---------------- parameter init (deterministic, synthetic) ----------------
def init_params(key):
    keys = jax.random.split(key, 32)
    it = iter(keys)

    def rnd(shape, scl):
        return scl * jax.random.normal(next(it), shape, jnp.float32)

    params = {"proj_w": [], "proj_b": []}
    for C in CH:
        params["proj_w"].append(rnd((EC, C), 1.0 / math.sqrt(C)))
        params["proj_b"].append(rnd((EC,), 0.05))
    for nm, din, dout in (("q", CT, EC), ("k", EC, EC), ("v", EC, EC)):
        params[f"{nm}_ln_g"] = 1.0 + rnd((din,), 0.1)
        params[f"{nm}_ln_b"] = rnd((din,), 0.1)
        params[f"{nm}_w"] = rnd((dout, din), 1.0 / math.sqrt(din))
        params[f"{nm}_b"] = rnd((dout,), 0.05)
    params["p_w"] = rnd((CT, EC), 1.0 / math.sqrt(EC))
    params["p_b"] = rnd((CT,), 0.05)
    return params


# ---------------- plain-JAX reference (mirrors the PyTorch forward) --------
def _ln_ref(x, g, b):
    m = jnp.mean(x, axis=-1, keepdims=True)
    v = jnp.mean((x - m) ** 2, axis=-1, keepdims=True)
    return (x - m) / jnp.sqrt(v + LN_EPS) * g + b


def _linear_ref(x, w, b):                                # torch.nn.Linear
    return jnp.einsum("...i,oi->...o", x, w, precision=HIGHEST) + b


def image_pooling_attn_ref(xs_nchw, text, params):
    bs = text.shape[0]
    feats = []
    for lvl in range(NF):
        x = xs_nchw[lvl]
        w, b = params["proj_w"][lvl], params["proj_b"][lvl]
        y = jnp.einsum("nchw,ec->nehw", x, w, precision=HIGHEST) \
            + b[None, :, None, None]
        H, W = y.shape[2], y.shape[3]
        rows = []
        for (h0, h1) in _adaptive_bounds(H, KPOOL):
            cols = []
            for (w0, w1) in _adaptive_bounds(W, KPOOL):
                cols.append(jnp.max(y[:, :, h0:h1, w0:w1], axis=(2, 3)))
            rows.append(jnp.stack(cols, axis=-1))
        pooled = jnp.stack(rows, axis=-2)                # (bs, EC, k, k)
        feats.append(pooled.reshape(bs, EC, KPOOL * KPOOL))
    xf = jnp.concatenate(feats, axis=-1).transpose(0, 2, 1)   # (bs, T, EC)

    q = _linear_ref(_ln_ref(text, params["q_ln_g"], params["q_ln_b"]),
                    params["q_w"], params["q_b"])
    k = _linear_ref(_ln_ref(xf, params["k_ln_g"], params["k_ln_b"]),
                    params["k_w"], params["k_b"])
    v = _linear_ref(_ln_ref(xf, params["v_ln_g"], params["v_ln_b"]),
                    params["v_w"], params["v_b"])

    L = text.shape[1]
    q = q.reshape(bs, L, NH, HC)
    k = k.reshape(bs, NUM_TOKENS, NH, HC)
    v = v.reshape(bs, NUM_TOKENS, NH, HC)
    aw = jnp.einsum("bnmc,bkmc->bmnk", q, k, precision=HIGHEST) / math.sqrt(HC)
    aw = jax.nn.softmax(aw, axis=-1)
    o = jnp.einsum("bmnk,bkmc->bnmc", aw, v, precision=HIGHEST).reshape(bs, L, EC)
    o = _linear_ref(o, params["p_w"], params["p_b"])
    return o * SCALE + text


if __name__ == "__main__":
    key = jax.random.PRNGKey(0)
    kx0, kx1, kx2, kt, kp = jax.random.split(key, 5)
    xs = [jax.random.normal(kx, (BS, C, H, W), jnp.float32)
          for kx, C, (H, W) in zip((kx0, kx1, kx2), CH, SPATIAL)]
    text = jax.random.normal(kt, (BS, LTXT, CT), jnp.float32)
    params = init_params(kp)

    out = image_pooling_attn_pallas(xs, text, params)
    out = jax.block_until_ready(out)

    ref = image_pooling_attn_ref(xs, text, params)
    assert out.shape == (BS, LTXT, CT), out.shape
    max_err = float(jnp.max(jnp.abs(out - ref)))
    assert jnp.allclose(out, ref, atol=1e-3, rtol=1e-3), max_err

    print("KERNEL_OK")
</pallas_src>

<mosaic_0001>
module attributes {stable_mosaic.version = 11 : i64} {
  func.func @ipa_kernel(%arg0: i32, %arg1: memref<1x16x16x16xf32, #tpu.memory_space<vmem>>, %arg2: memref<1x8x8x32xf32, #tpu.memory_space<vmem>>, %arg3: memref<1x4x4x64xf32, #tpu.memory_space<vmem>>, %arg4: memref<1x8x128xf32, #tpu.memory_space<vmem>>, %arg5: memref<16x64xf32, #tpu.memory_space<vmem>>, %arg6: memref<1x64xf32, #tpu.memory_space<vmem>>, %arg7: memref<32x64xf32, #tpu.memory_space<vmem>>, %arg8: memref<1x64xf32, #tpu.memory_space<vmem>>, %arg9: memref<64x64xf32, #tpu.memory_space<vmem>>, %arg10: memref<1x64xf32, #tpu.memory_space<vmem>>, %arg11: memref<1x128xf32, #tpu.memory_space<vmem>>, %arg12: memref<1x128xf32, #tpu.memory_space<vmem>>, %arg13: memref<128x64xf32, #tpu.memory_space<vmem>>, %arg14: memref<1x64xf32, #tpu.memory_space<vmem>>, %arg15: memref<1x64xf32, #tpu.memory_space<vmem>>, %arg16: memref<1x64xf32, #tpu.memory_space<vmem>>, %arg17: memref<64x64xf32, #tpu.memory_space<vmem>>, %arg18: memref<1x64xf32, #tpu.memory_space<vmem>>, %arg19: memref<1x64xf32, #tpu.memory_space<vmem>>, %arg20: memref<1x64xf32, #tpu.memory_space<vmem>>, %arg21: memref<64x64xf32, #tpu.memory_space<vmem>>, %arg22: memref<1x64xf32, #tpu.memory_space<vmem>>, %arg23: memref<64x128xf32, #tpu.memory_space<vmem>>, %arg24: memref<1x128xf32, #tpu.memory_space<vmem>>, %arg25: memref<1x8x128xf32, #tpu.memory_space<vmem>>) attributes {dimension_semantics = [#tpu.dimension_semantics<parallel>], iteration_bounds = array<i64: 2>, scalar_prefetch = 0 : i64, scratch_operands = 0 : i64, tpu.core_type = #tpu.core_type<tc>, window_params = [{transform_indices = @transform_0, window_bounds = array<i64: 1, 16, 16, 16>}, {transform_indices = @transform_1, window_bounds = array<i64: 1, 8, 8, 32>}, {transform_indices = @transform_2, window_bounds = array<i64: 1, 4, 4, 64>}, {transform_indices = @transform_3, window_bounds = array<i64: 1, 8, 128>}, {pipeline_mode = #tpu.pipeline_mode<synchronous>, transform_indices = @transform_4, window_bounds = array<i64: 16, 64>}, {pipeline_mode = #tpu.pipeline_mode<synchronous>, transform_indices = @transform_5, window_bounds = array<i64: 1, 64>}, {pipeline_mode = #tpu.pipeline_mode<synchronous>, transform_indices = @transform_6, window_bounds = array<i64: 32, 64>}, {pipeline_mode = #tpu.pipeline_mode<synchronous>, transform_indices = @transform_7, window_bounds = array<i64: 1, 64>}, {pipeline_mode = #tpu.pipeline_mode<synchronous>, transform_indices = @transform_8, window_bounds = array<i64: 64, 64>}, {pipeline_mode = #tpu.pipeline_mode<synchronous>, transform_indices = @transform_9, window_bounds = array<i64: 1, 64>}, {pipeline_mode = #tpu.pipeline_mode<synchronous>, transform_indices = @transform_10, window_bounds = array<i64: 1, 128>}, {pipeline_mode = #tpu.pipeline_mode<synchronous>, transform_indices = @transform_11, window_bounds = array<i64: 1, 128>}, {pipeline_mode = #tpu.pipeline_mode<synchronous>, transform_indices = @transform_12, window_bounds = array<i64: 128, 64>}, {pipeline_mode = #tpu.pipeline_mode<synchronous>, transform_indices = @transform_13, window_bounds = array<i64: 1, 64>}, {pipeline_mode = #tpu.pipeline_mode<synchronous>, transform_indices = @transform_14, window_bounds = array<i64: 1, 64>}, {pipeline_mode = #tpu.pipeline_mode<synchronous>, transform_indices = @transform_15, window_bounds = array<i64: 1, 64>}, {pipeline_mode = #tpu.pipeline_mode<synchronous>, transform_indices = @transform_16, window_bounds = array<i64: 64, 64>}, {pipeline_mode = #tpu.pipeline_mode<synchronous>, transform_indices = @transform_17, window_bounds = array<i64: 1, 64>}, {pipeline_mode = #tpu.pipeline_mode<synchronous>, transform_indices = @transform_18, window_bounds = array<i64: 1, 64>}, {pipeline_mode = #tpu.pipeline_mode<synchronous>, transform_indices = @transform_19, window_bounds = array<i64: 1, 64>}, {pipeline_mode = #tpu.pipeline_mode<synchronous>, transform_indices = @transform_20, window_bounds = array<i64: 64, 64>}, {pipeline_mode = #tpu.pipeline_mode<synchronous>, transform_indices = @transform_21, window_bounds = array<i64: 1, 64>}, {pipeline_mode = #tpu.pipeline_mode<synchronous>, transform_indices = @transform_22, window_bounds = array<i64: 64, 128>}, {pipeline_mode = #tpu.pipeline_mode<synchronous>, transform_indices = @transform_23, window_bounds = array<i64: 1, 128>}, {transform_indices = @transform_24, window_bounds = array<i64: 1, 8, 128>}]} {
    %c0 = arith.constant 0 : index
    %c0_0 = arith.constant 0 : index
    %c0_1 = arith.constant 0 : index
    %c0_2 = arith.constant 0 : index
    %0 = vector.load %arg1[%c0, %c0_0, %c0_1, %c0_2] : memref<1x16x16x16xf32, #tpu.memory_space<vmem>>, vector<1x16x16x16xf32>
    %1 = vector.shape_cast %0 : vector<1x16x16x16xf32> to vector<16x16x16xf32>
    %2 = vector.shape_cast %1 : vector<16x16x16xf32> to vector<256x16xf32>
    %c0_3 = arith.constant 0 : index
    %c0_4 = arith.constant 0 : index
    %3 = vector.load %arg5[%c0_3, %c0_4] : memref<16x64xf32, #tpu.memory_space<vmem>>, vector<16x64xf32>
    %cst = arith.constant dense<0.000000e+00> : vector<256x64xf32>
    %4 = tpu.matmul %2, %3, %cst {dimension_numbers = #tpu.dot_dimension_numbers<[1], [0], [0], [1], [0, 0, 1, 1], [], []>, precision = #tpu.contract_precision<fp32>} : vector<256x16xf32>, vector<16x64xf32>, vector<256x64xf32> -> vector<256x64xf32>
    %c0_5 = arith.constant 0 : index
    %c0_6 = arith.constant 0 : index
    %5 = vector.load %arg6[%c0_5, %c0_6] : memref<1x64xf32, #tpu.memory_space<vmem>>, vector<1x64xf32>
    %6 = vector.broadcast %5 : vector<1x64xf32> to vector<256x64xf32>
    %7 = arith.addf %4, %6 : vector<256x64xf32>
    %8 = vector.shape_cast %7 : vector<256x64xf32> to vector<16x16x64xf32>
    %9 = vector.extract_strided_slice %8 {offsets = [0, 0, 0], sizes = [6, 6, 64], strides = [1, 1, 1]} : vector<16x16x64xf32> to vector<6x6x64xf32>
    %cst_7 = arith.constant dense<0xFF800000> : vector<6x64xf32>
    %10 = vector.multi_reduction <maximumf>, %9, %cst_7 [0] : vector<6x6x64xf32> to vector<6x64xf32>
    %cst_8 = arith.constant dense<0xFF800000> : vector<64xf32>
    %11 = vector.multi_reduction <maximumf>, %10, %cst_8 [0] : vector<6x64xf32> to vector<64xf32>
    %12 = vector.shape_cast %11 : vector<64xf32> to vector<1x64xf32>
    %13 = vector.extract_strided_slice %8 {offsets = [0, 5, 0], sizes = [6, 6, 64], strides = [1, 1, 1]} : vector<16x16x64xf32> to vector<6x6x64xf32>
    %cst_9 = arith.constant dense<0xFF800000> : vector<6x64xf32>
    %14 = vector.multi_reduction <maximumf>, %13, %cst_9 [0] : vector<6x6x64xf32> to vector<6x64xf32>
    %cst_10 = arith.constant dense<0xFF800000> : vector<64xf32>
    %15 = vector.multi_reduction <maximumf>, %14, %cst_10 [0] : vector<6x64xf32> to vector<64xf32>
    %16 = vector.shape_cast %15 : vector<64xf32> to vector<1x64xf32>
    %17 = vector.extract_strided_slice %8 {offsets = [0, 10, 0], sizes = [6, 6, 64], strides = [1, 1, 1]} : vector<16x16x64xf32> to vector<6x6x64xf32>
    %cst_11 = arith.constant dense<0xFF800000> : vector<6x64xf32>
    %18 = vector.multi_reduction <maximumf>, %17, %cst_11 [0] : vector<6x6x64xf32> to vector<6x64xf32>
    %cst_12 = arith.constant dense<0xFF800000> : vector<64xf32>
    %19 = vector.multi_reduction <maximumf>, %18, %cst_12 [0] : vector<6x64xf32> to vector<64xf32>
    %20 = vector.shape_cast %19 : vector<64xf32> to vector<1x64xf32>
    %21 = vector.extract_strided_slice %8 {offsets = [5, 0, 0], sizes = [6, 6, 64], strides = [1, 1, 1]} : vector<16x16x64xf32> to vector<6x6x64xf32>
    %cst_13 = arith.constant dense<0xFF800000> : vector<6x64xf32>
    %22 = vector.multi_reduction <maximumf>, %21, %cst_13 [0] : vector<6x6x64xf32> to vector<6x64xf32>
    %cst_14 = arith.constant dense<0xFF800000> : vector<64xf32>
    %23 = vector.multi_reduction <maximumf>, %22, %cst_14 [0] : vector<6x64xf32> to vector<64xf32>
    %24 = vector.shape_cast %23 : vector<64xf32> to vector<1x64xf32>
    %25 = vector.extract_strided_slice %8 {offsets = [5, 5, 0], sizes = [6, 6, 64], strides = [1, 1, 1]} : vector<16x16x64xf32> to vector<6x6x64xf32>
    %cst_15 = arith.constant dense<0xFF800000> : vector<6x64xf32>
    %26 = vector.multi_reduction <maximumf>, %25, %cst_15 [0] : vector<6x6x64xf32> to vector<6x64xf32>
    %cst_16 = arith.constant dense<0xFF800000> : vector<64xf32>
    %27 = vector.multi_reduction <maximumf>, %26, %cst_16 [0] : vector<6x64xf32> to vector<64xf32>
    %28 = vector.shape_cast %27 : vector<64xf32> to vector<1x64xf32>
    %29 = vector.extract_strided_slice %8 {offsets = [5, 10, 0], sizes = [6, 6, 64], strides = [1, 1, 1]} : vector<16x16x64xf32> to vector<6x6x64xf32>
    %cst_17 = arith.constant dense<0xFF800000> : vector<6x64xf32>
    %30 = vector.multi_reduction <maximumf>, %29, %cst_17 [0] : vector<6x6x64xf32> to vector<6x64xf32>
    %cst_18 = arith.constant dense<0xFF800000> : vector<64xf32>
    %31 = vector.multi_reduction <maximumf>, %30, %cst_18 [0] : vector<6x64xf32> to vector<64xf32>
    %32 = vector.shape_cast %31 : vector<64xf32> to vector<1x64xf32>
    %33 = vector.extract_strided_slice %8 {offsets = [10, 0, 0], sizes = [6, 6, 64], strides = [1, 1, 1]} : vector<16x16x64xf32> to vector<6x6x64xf32>
    %cst_19 = arith.constant dense<0xFF800000> : vector<6x64xf32>
    %34 = vector.multi_reduction <maximumf>, %33, %cst_19 [0] : vector<6x6x64xf32> to vector<6x64xf32>
    %cst_20 = arith.constant dense<0xFF800000> : vector<64xf32>
    %35 = vector.multi_reduction <maximumf>, %34, %cst_20 [0] : vector<6x64xf32> to vector<64xf32>
    %36 = vector.shape_cast %35 : vector<64xf32> to vector<1x64xf32>
    %37 = vector.extract_strided_slice %8 {offsets = [10, 5, 0], sizes = [6, 6, 64], strides = [1, 1, 1]} : vector<16x16x64xf32> to vector<6x6x64xf32>
    %cst_21 = arith.constant dense<0xFF800000> : vector<6x64xf32>
    %38 = vector.multi_reduction <maximumf>, %37, %cst_21 [0] : vector<6x6x64xf32> to vector<6x64xf32>
    %cst_22 = arith.constant dense<0xFF800000> : vector<64xf32>
    %39 = vector.multi_reduction <maximumf>, %38, %cst_22 [0] : vector<6x64xf32> to vector<64xf32>
    %40 = vector.shape_cast %39 : vector<64xf32> to vector<1x64xf32>
    %41 = vector.extract_strided_slice %8 {offsets = [10, 10, 0], sizes = [6, 6, 64], strides = [1, 1, 1]} : vector<16x16x64xf32> to vector<6x6x64xf32>
    %cst_23 = arith.constant dense<0xFF800000> : vector<6x64xf32>
    %42 = vector.multi_reduction <maximumf>, %41, %cst_23 [0] : vector<6x6x64xf32> to vector<6x64xf32>
    %cst_24 = arith.constant dense<0xFF800000> : vector<64xf32>
    %43 = vector.multi_reduction <maximumf>, %42, %cst_24 [0] : vector<6x64xf32> to vector<64xf32>
    %44 = vector.shape_cast %43 : vector<64xf32> to vector<1x64xf32>
    %c0_25 = arith.constant 0 : index
    %c0_26 = arith.constant 0 : index
    %c0_27 = arith.constant 0 : index
    %c0_28 = arith.constant 0 : index
    %45 = vector.load %arg2[%c0_25, %c0_26, %c0_27, %c0_28] : memref<1x8x8x32xf32, #tpu.memory_space<vmem>>, vector<1x8x8x32xf32>
    %46 = vector.shape_cast %45 : vector<1x8x8x32xf32> to vector<8x8x32xf32>
    %47 = vector.shape_cast %46 : vector<8x8x32xf32> to vector<64x32xf32>
    %c0_29 = arith.constant 0 : index
    %c0_30 = arith.constant 0 : index
    %48 = vector.load %arg7[%c0_29, %c0_30] : memref<32x64xf32, #tpu.memory_space<vmem>>, vector<32x64xf32>
    %cst_31 = arith.constant dense<0.000000e+00> : vector<64x64xf32>
    %49 = tpu.matmul %47, %48, %cst_31 {dimension_numbers = #tpu.dot_dimension_numbers<[1], [0], [0], [1], [0, 0, 1, 1], [], []>, precision = #tpu.contract_precision<fp32>} : vector<64x32xf32>, vector<32x64xf32>, vector<64x64xf32> -> vector<64x64xf32>
    %c0_32 = arith.constant 0 : index
    %c0_33 = arith.constant 0 : index
    %50 = vector.load %arg8[%c0_32, %c0_33] : memref<1x64xf32, #tpu.memory_space<vmem>>, vector<1x64xf32>
    %51 = vector.broadcast %50 : vector<1x64xf32> to vector<64x64xf32>
    %52 = arith.addf %49, %51 : vector<64x64xf32>
    %53 = vector.shape_cast %52 : vector<64x64xf32> to vector<8x8x64xf32>
    %54 = vector.extract_strided_slice %53 {offsets = [0, 0, 0], sizes = [3, 3, 64], strides = [1, 1, 1]} : vector<8x8x64xf32> to vector<3x3x64xf32>
    %cst_34 = arith.constant dense<0xFF800000> : vector<3x64xf32>
    %55 = vector.multi_reduction <maximumf>, %54, %cst_34 [0] : vector<3x3x64xf32> to vector<3x64xf32>
    %cst_35 = arith.constant dense<0xFF800000> : vector<64xf32>
    %56 = vector.multi_reduction <maximumf>, %55, %cst_35 [0] : vector<3x64xf32> to vector<64xf32>
    %57 = vector.shape_cast %56 : vector<64xf32> to vector<1x64xf32>
    %58 = vector.extract_strided_slice %53 {offsets = [0, 2, 0], sizes = [3, 4, 64], strides = [1, 1, 1]} : vector<8x8x64xf32> to vector<3x4x64xf32>
    %cst_36 = arith.constant dense<0xFF800000> : vector<4x64xf32>
    %59 = vector.multi_reduction <maximumf>, %58, %cst_36 [0] : vector<3x4x64xf32> to vector<4x64xf32>
    %cst_37 = arith.constant dense<0xFF800000> : vector<64xf32>
    %60 = vector.multi_reduction <maximumf>, %59, %cst_37 [0] : vector<4x64xf32> to vector<64xf32>
    %61 = vector.shape_cast %60 : vector<64xf32> to vector<1x64xf32>
    %62 = vector.extract_strided_slice %53 {offsets = [0, 5, 0], sizes = [3, 3, 64], strides = [1, 1, 1]} : vector<8x8x64xf32> to vector<3x3x64xf32>
    %cst_38 = arith.constant dense<0xFF800000> : vector<3x64xf32>
    %63 = vector.multi_reduction <maximumf>, %62, %cst_38 [0] : vector<3x3x64xf32> to vector<3x64xf32>
    %cst_39 = arith.constant dense<0xFF800000> : vector<64xf32>
    %64 = vector.multi_reduction <maximumf>, %63, %cst_39 [0] : vector<3x64xf32> to vector<64xf32>
    %65 = vector.shape_cast %64 : vector<64xf32> to vector<1x64xf32>
    %66 = vector.extract_strided_slice %53 {offsets = [2, 0, 0], sizes = [4, 3, 64], strides = [1, 1, 1]} : vector<8x8x64xf32> to vector<4x3x64xf32>
    %cst_40 = arith.constant dense<0xFF800000> : vector<3x64xf32>
    %67 = vector.multi_reduction <maximumf>, %66, %cst_40 [0] : vector<4x3x64xf32> to vector<3x64xf32>
    %cst_41 = arith.constant dense<0xFF800000> : vector<64xf32>
    %68 = vector.multi_reduction <maximumf>, %67, %cst_41 [0] : vector<3x64xf32> to vector<64xf32>
    %69 = vector.shape_cast %68 : vector<64xf32> to vector<1x64xf32>
    %70 = vector.extract_strided_slice %53 {offsets = [2, 2, 0], sizes = [4, 4, 64], strides = [1, 1, 1]} : vector<8x8x64xf32> to vector<4x4x64xf32>
    %cst_42 = arith.constant dense<0xFF800000> : vector<4x64xf32>
    %71 = vector.multi_reduction <maximumf>, %70, %cst_42 [0] : vector<4x4x64xf32> to vector<4x64xf32>
    %cst_43 = arith.constant dense<0xFF800000> : vector<64xf32>
    %72 = vector.multi_reduction <maximumf>, %71, %cst_43 [0] : vector<4x64xf32> to vector<64xf32>
    %73 = vector.shape_cast %72 : vector<64xf32> to vector<1x64xf32>
    %74 = vector.extract_strided_slice %53 {offsets = [2, 5, 0], sizes = [4, 3, 64], strides = [1, 1, 1]} : vector<8x8x64xf32> to vector<4x3x64xf32>
    %cst_44 = arith.constant dense<0xFF800000> : vector<3x64xf32>
    %75 = vector.multi_reduction <maximumf>, %74, %cst_44 [0] : vector<4x3x64xf32> to vector<3x64xf32>
    %cst_45 = arith.constant dense<0xFF800000> : vector<64xf32>
    %76 = vector.multi_reduction <maximumf>, %75, %cst_45 [0] : vector<3x64xf32> to vector<64xf32>
    %77 = vector.shape_cast %76 : vector<64xf32> to vector<1x64xf32>
    %78 = vector.extract_strided_slice %53 {offsets = [5, 0, 0], sizes = [3, 3, 64], strides = [1, 1, 1]} : vector<8x8x64xf32> to vector<3x3x64xf32>
    %cst_46 = arith.constant dense<0xFF800000> : vector<3x64xf32>
    %79 = vector.multi_reduction <maximumf>, %78, %cst_46 [0] : vector<3x3x64xf32> to vector<3x64xf32>
    %cst_47 = arith.constant dense<0xFF800000> : vector<64xf32>
    %80 = vector.multi_reduction <maximumf>, %79, %cst_47 [0] : vector<3x64xf32> to vector<64xf32>
    %81 = vector.shape_cast %80 : vector<64xf32> to vector<1x64xf32>
    %82 = vector.extract_strided_slice %53 {offsets = [5, 2, 0], sizes = [3, 4, 64], strides = [1, 1, 1]} : vector<8x8x64xf32> to vector<3x4x64xf32>
    %cst_48 = arith.constant dense<0xFF800000> : vector<4x64xf32>
    %83 = vector.multi_reduction <maximumf>, %82, %cst_48 [0] : vector<3x4x64xf32> to vector<4x64xf32>
    %cst_49 = arith.constant dense<0xFF800000> : vector<64xf32>
    %84 = vector.multi_reduction <maximumf>, %83, %cst_49 [0] : vector<4x64xf32> to vector<64xf32>
    %85 = vector.shape_cast %84 : vector<64xf32> to vector<1x64xf32>
    %86 = vector.extract_strided_slice %53 {offsets = [5, 5, 0], sizes = [3, 3, 64], strides = [1, 1, 1]} : vector<8x8x64xf32> to vector<3x3x64xf32>
    %cst_50 = arith.constant dense<0xFF800000> : vector<3x64xf32>
    %87 = vector.multi_reduction <maximumf>, %86, %cst_50 [0] : vector<3x3x64xf32> to vector<3x64xf32>
    %cst_51 = arith.constant dense<0xFF800000> : vector<64xf32>
    %88 = vector.multi_reduction <maximumf>, %87, %cst_51 [0] : vector<3x64xf32> to vector<64xf32>
    %89 = vector.shape_cast %88 : vector<64xf32> to vector<1x64xf32>
    %c0_52 = arith.constant 0 : index
    %c0_53 = arith.constant 0 : index
    %c0_54 = arith.constant 0 : index
    %c0_55 = arith.constant 0 : index
    %90 = vector.load %arg3[%c0_52, %c0_53, %c0_54, %c0_55] : memref<1x4x4x64xf32, #tpu.memory_space<vmem>>, vector<1x4x4x64xf32>
    %91 = vector.shape_cast %90 : vector<1x4x4x64xf32> to vector<4x4x64xf32>
    %92 = vector.shape_cast %91 : vector<4x4x64xf32> to vector<16x64xf32>
    %c0_56 = arith.constant 0 : index
    %c0_57 = arith.constant 0 : index
    %93 = vector.load %arg9[%c0_56, %c0_57] : memref<64x64xf32, #tpu.memory_space<vmem>>, vector<64x64xf32>
    %cst_58 = arith.constant dense<0.000000e+00> : vector<16x64xf32>
    %94 = tpu.matmul %92, %93, %cst_58 {dimension_numbers = #tpu.dot_dimension_numbers<[1], [0], [0], [1], [0, 0, 1, 1], [], []>, precision = #tpu.contract_precision<fp32>} : vector<16x64xf32>, vector<64x64xf32>, vector<16x64xf32> -> vector<16x64xf32>
    %c0_59 = arith.constant 0 : index
    %c0_60 = arith.constant 0 : index
    %95 = vector.load %arg10[%c0_59, %c0_60] : memref<1x64xf32, #tpu.memory_space<vmem>>, vector<1x64xf32>
    %96 = vector.broadcast %95 : vector<1x64xf32> to vector<16x64xf32>
    %97 = arith.addf %94, %96 : vector<16x64xf32>
    %98 = vector.shape_cast %97 : vector<16x64xf32> to vector<4x4x64xf32>
    %99 = vector.extract_strided_slice %98 {offsets = [0, 0, 0], sizes = [2, 2, 64], strides = [1, 1, 1]} : vector<4x4x64xf32> to vector<2x2x64xf32>
    %cst_61 = arith.constant dense<0xFF800000> : vector<2x64xf32>
    %100 = vector.multi_reduction <maximumf>, %99, %cst_61 [0] : vector<2x2x64xf32> to vector<2x64xf32>
    %cst_62 = arith.constant dense<0xFF800000> : vector<64xf32>
    %101 = vector.multi_reduction <maximumf>, %100, %cst_62 [0] : vector<2x64xf32> to vector<64xf32>
    %102 = vector.shape_cast %101 : vector<64xf32> to vector<1x64xf32>
    %103 = vector.extract_strided_slice %98 {offsets = [0, 1, 0], sizes = [2, 2, 64], strides = [1, 1, 1]} : vector<4x4x64xf32> to vector<2x2x64xf32>
    %cst_63 = arith.constant dense<0xFF800000> : vector<2x64xf32>
    %104 = vector.multi_reduction <maximumf>, %103, %cst_63 [0] : vector<2x2x64xf32> to vector<2x64xf32>
    %cst_64 = arith.constant dense<0xFF800000> : vector<64xf32>
    %105 = vector.multi_reduction <maximumf>, %104, %cst_64 [0] : vector<2x64xf32> to vector<64xf32>
    %106 = vector.shape_cast %105 : vector<64xf32> to vector<1x64xf32>
    %107 = vector.extract_strided_slice %98 {offsets = [0, 2, 0], sizes = [2, 2, 64], strides = [1, 1, 1]} : vector<4x4x64xf32> to vector<2x2x64xf32>
    %cst_65 = arith.constant dense<0xFF800000> : vector<2x64xf32>
    %108 = vector.multi_reduction <maximumf>, %107, %cst_65 [0] : vector<2x2x64xf32> to vector<2x64xf32>
    %cst_66 = arith.constant dense<0xFF800000> : vector<64xf32>
    %109 = vector.multi_reduction <maximumf>, %108, %cst_66 [0] : vector<2x64xf32> to vector<64xf32>
    %110 = vector.shape_cast %109 : vector<64xf32> to vector<1x64xf32>
    %111 = vector.extract_strided_slice %98 {offsets = [1, 0, 0], sizes = [2, 2, 64], strides = [1, 1, 1]} : vector<4x4x64xf32> to vector<2x2x64xf32>
    %cst_67 = arith.constant dense<0xFF800000> : vector<2x64xf32>
    %112 = vector.multi_reduction <maximumf>, %111, %cst_67 [0] : vector<2x2x64xf32> to vector<2x64xf32>
    %cst_68 = arith.constant dense<0xFF800000> : vector<64xf32>
    %113 = vector.multi_reduction <maximumf>, %112, %cst_68 [0] : vector<2x64xf32> to vector<64xf32>
    %114 = vector.shape_cast %113 : vector<64xf32> to vector<1x64xf32>
    %115 = vector.extract_strided_slice %98 {offsets = [1, 1, 0], sizes = [2, 2, 64], strides = [1, 1, 1]} : vector<4x4x64xf32> to vector<2x2x64xf32>
    %cst_69 = arith.constant dense<0xFF800000> : vector<2x64xf32>
    %116 = vector.multi_reduction <maximumf>, %115, %cst_69 [0] : vector<2x2x64xf32> to vector<2x64xf32>
    %cst_70 = arith.constant dense<0xFF800000> : vector<64xf32>
    %117 = vector.multi_reduction <maximumf>, %116, %cst_70 [0] : vector<2x64xf32> to vector<64xf32>
    %118 = vector.shape_cast %117 : vector<64xf32> to vector<1x64xf32>
    %119 = vector.extract_strided_slice %98 {offsets = [1, 2, 0], sizes = [2, 2, 64], strides = [1, 1, 1]} : vector<4x4x64xf32> to vector<2x2x64xf32>
    %cst_71 = arith.constant dense<0xFF800000> : vector<2x64xf32>
    %120 = vector.multi_reduction <maximumf>, %119, %cst_71 [0] : vector<2x2x64xf32> to vector<2x64xf32>
    %cst_72 = arith.constant dense<0xFF800000> : vector<64xf32>
    %121 = vector.multi_reduction <maximumf>, %120, %cst_72 [0] : vector<2x64xf32> to vector<64xf32>
    %122 = vector.shape_cast %121 : vector<64xf32> to vector<1x64xf32>
    %123 = vector.extract_strided_slice %98 {offsets = [2, 0, 0], sizes = [2, 2, 64], strides = [1, 1, 1]} : vector<4x4x64xf32> to vector<2x2x64xf32>
    %cst_73 = arith.constant dense<0xFF800000> : vector<2x64xf32>
    %124 = vector.multi_reduction <maximumf>, %123, %cst_73 [0] : vector<2x2x64xf32> to vector<2x64xf32>
    %cst_74 = arith.constant dense<0xFF800000> : vector<64xf32>
    %125 = vector.multi_reduction <maximumf>, %124, %cst_74 [0] : vector<2x64xf32> to vector<64xf32>
    %126 = vector.shape_cast %125 : vector<64xf32> to vector<1x64xf32>
    %127 = vector.extract_strided_slice %98 {offsets = [2, 1, 0], sizes = [2, 2, 64], strides = [1, 1, 1]} : vector<4x4x64xf32> to vector<2x2x64xf32>
    %cst_75 = arith.constant dense<0xFF800000> : vector<2x64xf32>
    %128 = vector.multi_reduction <maximumf>, %127, %cst_75 [0] : vector<2x2x64xf32> to vector<2x64xf32>
    %cst_76 = arith.constant dense<0xFF800000> : vector<64xf32>
    %129 = vector.multi_reduction <maximumf>, %128, %cst_76 [0] : vector<2x64xf32> to vector<64xf32>
    %130 = vector.shape_cast %129 : vector<64xf32> to vector<1x64xf32>
    %131 = vector.extract_strided_slice %98 {offsets = [2, 2, 0], sizes = [2, 2, 64], strides = [1, 1, 1]} : vector<4x4x64xf32> to vector<2x2x64xf32>
    %cst_77 = arith.constant dense<0xFF800000> : vector<2x64xf32>
    %132 = vector.multi_reduction <maximumf>, %131, %cst_77 [0] : vector<2x2x64xf32> to vector<2x64xf32>
    %cst_78 = arith.constant dense<0xFF800000> : vector<64xf32>
    %133 = vector.multi_reduction <maximumf>, %132, %cst_78 [0] : vector<2x64xf32> to vector<64xf32>
    %134 = vector.shape_cast %133 : vector<64xf32> to vector<1x64xf32>
    %135 = tpu.concatenate %12, %16, %20, %24, %28, %32, %36, %40, %44, %57, %61, %65, %69, %73, %77, %81 in 0 : vector<1x64xf32>, vector<1x64xf32>, vector<1x64xf32>, vector<1x64xf32>, vector<1x64xf32>, vector<1x64xf32>, vector<1x64xf32>, vector<1x64xf32>, vector<1x64xf32>, vector<1x64xf32>, vector<1x64xf32>, vector<1x64xf32>, vector<1x64xf32>, vector<1x64xf32>, vector<1x64xf32>, vector<1x64xf32> -> vector<16x64xf32>
    %136 = tpu.concatenate %85, %89, %102, %106, %110, %114, %118, %122, %126, %130, %134 in 0 : vector<1x64xf32>, vector<1x64xf32>, vector<1x64xf32>, vector<1x64xf32>, vector<1x64xf32>, vector<1x64xf32>, vector<1x64xf32>, vector<1x64xf32>, vector<1x64xf32>, vector<1x64xf32>, vector<1x64xf32> -> vector<11x64xf32>
    %137 = tpu.concatenate %135, %136 in 0 : vector<16x64xf32>, vector<11x64xf32> -> vector<27x64xf32>
    %cst_79 = arith.constant dense<0.000000e+00> : vector<27xf32>
    %138 = vector.multi_reduction <add>, %137, %cst_79 [1] : vector<27x64xf32> to vector<27xf32>
    %139 = vector.shape_cast %138 : vector<27xf32> to vector<27x1xf32>
    %cst_80 = arith.constant 6.400000e+01 : f32
    %140 = vector.broadcast %cst_80 : f32 to vector<27x1xf32>
    %141 = arith.divf %139, %140 : vector<27x1xf32>
    %142 = vector.broadcast %141 : vector<27x1xf32> to vector<27x64xf32>
    %143 = arith.subf %137, %142 : vector<27x64xf32>
    %144 = arith.mulf %143, %143 : vector<27x64xf32>
    %cst_81 = arith.constant dense<0.000000e+00> : vector<27xf32>
    %145 = vector.multi_reduction <add>, %144, %cst_81 [1] : vector<27x64xf32> to vector<27xf32>
    %146 = vector.shape_cast %145 : vector<27xf32> to vector<27x1xf32>
    %cst_82 = arith.constant 6.400000e+01 : f32
    %147 = vector.broadcast %cst_82 : f32 to vector<27x1xf32>
    %148 = arith.divf %146, %147 : vector<27x1xf32>
    %cst_83 = arith.constant 9.99999974E-6 : f32
    %149 = vector.broadcast %cst_83 : f32 to vector<27x1xf32>
    %150 = arith.addf %148, %149 : vector<27x1xf32>
    %151 = math.rsqrt %150 : vector<27x1xf32>
    %152 = vector.broadcast %151 : vector<27x1xf32> to vector<27x64xf32>
    %153 = arith.mulf %143, %152 : vector<27x64xf32>
    %c0_84 = arith.constant 0 : index
    %c0_85 = arith.constant 0 : index
    %154 = vector.load %arg15[%c0_84, %c0_85] : memref<1x64xf32, #tpu.memory_space<vmem>>, vector<1x64xf32>
    %155 = vector.broadcast %154 : vector<1x64xf32> to vector<27x64xf32>
    %156 = arith.mulf %153, %155 : vector<27x64xf32>
    %c0_86 = arith.constant 0 : index
    %c0_87 = arith.constant 0 : index
    %157 = vector.load %arg16[%c0_86, %c0_87] : memref<1x64xf32, #tpu.memory_space<vmem>>, vector<1x64xf32>
    %158 = vector.broadcast %157 : vector<1x64xf32> to vector<27x64xf32>
    %159 = arith.addf %156, %158 : vector<27x64xf32>
    %c0_88 = arith.constant 0 : index
    %c0_89 = arith.constant 0 : index
    %160 = vector.load %arg19[%c0_88, %c0_89] : memref<1x64xf32, #tpu.memory_space<vmem>>, vector<1x64xf32>
    %161 = vector.broadcast %160 : vector<1x64xf32> to vector<27x64xf32>
    %162 = arith.mulf %153, %161 : vector<27x64xf32>
    %c0_90 = arith.constant 0 : index
    %c0_91 = arith.constant 0 : index
    %163 = vector.load %arg20[%c0_90, %c0_91] : memref<1x64xf32, #tpu.memory_space<vmem>>, vector<1x64xf32>
    %164 = vector.broadcast %163 : vector<1x64xf32> to vector<27x64xf32>
    %165 = arith.addf %162, %164 : vector<27x64xf32>
    %c0_92 = arith.constant 0 : index
    %c0_93 = arith.constant 0 : index
    %166 = vector.load %arg17[%c0_92, %c0_93] : memref<64x64xf32, #tpu.memory_space<vmem>>, vector<64x64xf32>
    %cst_94 = arith.constant dense<0.000000e+00> : vector<27x64xf32>
    %167 = tpu.matmul %159, %166, %cst_94 {dimension_numbers = #tpu.dot_dimension_numbers<[1], [0], [0], [1], [0, 0, 1, 1], [], []>, precision = #tpu.contract_precision<fp32>} : vector<27x64xf32>, vector<64x64xf32>, vector<27x64xf32> -> vector<27x64xf32>
    %c0_95 = arith.constant 0 : index
    %c0_96 = arith.constant 0 : index
    %168 = vector.load %arg18[%c0_95, %c0_96] : memref<1x64xf32, #tpu.memory_space<vmem>>, vector<1x64xf32>
    %169 = vector.broadcast %168 : vector<1x64xf32> to vector<27x64xf32>
    %170 = arith.addf %167, %169 : vector<27x64xf32>
    %c0_97 = arith.constant 0 : index
    %c0_98 = arith.constant 0 : index
    %171 = vector.load %arg21[%c0_97, %c0_98] : memref<64x64xf32, #tpu.memory_space<vmem>>, vector<64x64xf32>
    %cst_99 = arith.constant dense<0.000000e+00> : vector<27x64xf32>
    %172 = tpu.matmul %165, %171, %cst_99 {dimension_numbers = #tpu.dot_dimension_numbers<[1], [0], [0], [1], [0, 0, 1, 1], [], []>, precision = #tpu.contract_precision<fp32>} : vector<27x64xf32>, vector<64x64xf32>, vector<27x64xf32> -> vector<27x64xf32>
    %c0_100 = arith.constant 0 : index
    %c0_101 = arith.constant 0 : index
    %173 = vector.load %arg22[%c0_100, %c0_101] : memref<1x64xf32, #tpu.memory_space<vmem>>, vector<1x64xf32>
    %174 = vector.broadcast %173 : vector<1x64xf32> to vector<27x64xf32>
    %175 = arith.addf %172, %174 : vector<27x64xf32>
    %c0_102 = arith.constant 0 : index
    %c0_103 = arith.constant 0 : index
    %c0_104 = arith.constant 0 : index
    %176 = vector.load %arg4[%c0_102, %c0_103, %c0_104] : memref<1x8x128xf32, #tpu.memory_space<vmem>>, vector<1x8x128xf32>
    %177 = vector.shape_cast %176 : vector<1x8x128xf32> to vector<8x128xf32>
    %cst_105 = arith.constant dense<0.000000e+00> : vector<8xf32>
    %178 = vector.multi_reduction <add>, %177, %cst_105 [1] : vector<8x128xf32> to vector<8xf32>
    %179 = vector.shape_cast %178 : vector<8xf32> to vector<8x1xf32>
    %cst_106 = arith.constant 1.280000e+02 : f32
    %180 = vector.broadcast %cst_106 : f32 to vector<8x1xf32>
    %181 = arith.divf %179, %180 : vector<8x1xf32>
    %182 = vector.broadcast %181 : vector<8x1xf32> to vector<8x128xf32>
    %183 = arith.subf %177, %182 : vector<8x128xf32>
    %184 = arith.mulf %183, %183 : vector<8x128xf32>
    %cst_107 = arith.constant dense<0.000000e+00> : vector<8xf32>
    %185 = vector.multi_reduction <add>, %184, %cst_107 [1] : vector<8x128xf32> to vector<8xf32>
    %186 = vector.shape_cast %185 : vector<8xf32> to vector<8x1xf32>
    %cst_108 = arith.constant 1.280000e+02 : f32
    %187 = vector.broadcast %cst_108 : f32 to vector<8x1xf32>
    %188 = arith.divf %186, %187 : vector<8x1xf32>
    %cst_109 = arith.constant 9.99999974E-6 : f32
    %189 = vector.broadcast %cst_109 : f32 to vector<8x1xf32>
    %190 = arith.addf %188, %189 : vector<8x1xf32>
    %191 = math.rsqrt %190 : vector<8x1xf32>
    %192 = vector.broadcast %191 : vector<8x1xf32> to vector<8x128xf32>
    %193 = arith.mulf %183, %192 : vector<8x128xf32>
    %c0_110 = arith.constant 0 : index
    %c0_111 = arith.constant 0 : index
    %194 = vector.load %arg11[%c0_110, %c0_111] : memref<1x128xf32, #tpu.memory_space<vmem>>, vector<1x128xf32>
    %195 = vector.broadcast %194 : vector<1x128xf32> to vector<8x128xf32>
    %196 = arith.mulf %193, %195 : vector<8x128xf32>
    %c0_112 = arith.constant 0 : index
    %c0_113 = arith.constant 0 : index
    %197 = vector.load %arg12[%c0_112, %c0_113] : memref<1x128xf32, #tpu.memory_space<vmem>>, vector<1x128xf32>
    %198 = vector.broadcast %197 : vector<1x128xf32> to vector<8x128xf32>
    %199 = arith.addf %196, %198 : vector<8x128xf32>
    %c0_114 = arith.constant 0 : index
    %c0_115 = arith.constant 0 : index
    %200 = vector.load %arg13[%c0_114, %c0_115] : memref<128x64xf32, #tpu.memory_space<vmem>>, vector<128x64xf32>
    %cst_116 = arith.constant dense<0.000000e+00> : vector<8x64xf32>
    %201 = tpu.matmul %199, %200, %cst_116 {dimension_numbers = #tpu.dot_dimension_numbers<[1], [0], [0], [1], [0, 0, 1, 1], [], []>, precision = #tpu.contract_precision<fp32>} : vector<8x128xf32>, vector<128x64xf32>, vector<8x64xf32> -> vector<8x64xf32>
    %c0_117 = arith.constant 0 : index
    %c0_118 = arith.constant 0 : index
    %202 = vector.load %arg14[%c0_117, %c0_118] : memref<1x64xf32, #tpu.memory_space<vmem>>, vector<1x64xf32>
    %203 = vector.broadcast %202 : vector<1x64xf32> to vector<8x64xf32>
    %204 = arith.addf %201, %203 : vector<8x64xf32>
    %205 = vector.extract_strided_slice %204 {offsets = [0, 0], sizes = [8, 8], strides = [1, 1]} : vector<8x64xf32> to vector<8x8xf32>
    %206 = vector.extract_strided_slice %170 {offsets = [0, 0], sizes = [27, 8], strides = [1, 1]} : vector<27x64xf32> to vector<27x8xf32>
    %207 = vector.extract_strided_slice %175 {offsets = [0, 0], sizes = [27, 8], strides = [1, 1]} : vector<27x64xf32> to vector<27x8xf32>
    %cst_119 = arith.constant dense<0.000000e+00> : vector<8x27xf32>
    %208 = tpu.matmul %205, %206, %cst_119 {dimension_numbers = #tpu.dot_dimension_numbers<[1], [1], [0], [0], [0, 0, 1, 0], [], []>, precision = #tpu.contract_precision<fp32>} : vector<8x8xf32>, vector<27x8xf32>, vector<8x27xf32> -> vector<8x27xf32>
    %cst_120 = arith.constant 0.353553385 : f32
    %209 = vector.broadcast %cst_120 : f32 to vector<8x27xf32>
    %210 = arith.mulf %208, %209 : vector<8x27xf32>
    %cst_121 = arith.constant dense<0xFF800000> : vector<8xf32>
    %211 = vector.multi_reduction <maximumf>, %210, %cst_121 [1] : vector<8x27xf32> to vector<8xf32>
    %212 = vector.shape_cast %211 : vector<8xf32> to vector<8x1xf32>
    %213 = vector.broadcast %212 : vector<8x1xf32> to vector<8x27xf32>
    %214 = arith.subf %210, %213 : vector<8x27xf32>
    %215 = math.exp %214 : vector<8x27xf32>
    %cst_122 = arith.constant dense<0.000000e+00> : vector<8xf32>
    %216 = vector.multi_reduction <add>, %215, %cst_122 [1] : vector<8x27xf32> to vector<8xf32>
    %217 = vector.shape_cast %216 : vector<8xf32> to vector<8x1xf32>
    %218 = vector.broadcast %217 : vector<8x1xf32> to vector<8x27xf32>
    %219 = arith.divf %215, %218 : vector<8x27xf32>
    %cst_123 = arith.constant dense<0.000000e+00> : vector<8x8xf32>
    %220 = tpu.matmul %219, %207, %cst_123 {dimension_numbers = #tpu.dot_dimension_numbers<[1], [0], [0], [1], [0, 0, 1, 1], [], []>, precision = #tpu.contract_precision<fp32>} : vector<8x27xf32>, vector<27x8xf32>, vector<8x8xf32> -> vector<8x8xf32>
    %221 = vector.extract_strided_slice %204 {offsets = [0, 8], sizes = [8, 8], strides = [1, 1]} : vector<8x64xf32> to vector<8x8xf32>
    %222 = vector.extract_strided_slice %170 {offsets = [0, 8], sizes = [27, 8], strides = [1, 1]} : vector<27x64xf32> to vector<27x8xf32>
    %223 = vector.extract_strided_slice %175 {offsets = [0, 8], sizes = [27, 8], strides = [1, 1]} : vector<27x64xf32> to vector<27x8xf32>
    %cst_124 = arith.constant dense<0.000000e+00> : vector<8x27xf32>
    %224 = tpu.matmul %221, %222, %cst_124 {dimension_numbers = #tpu.dot_dimension_numbers<[1], [1], [0], [0], [0, 0, 1, 0], [], []>, precision = #tpu.contract_precision<fp32>} : vector<8x8xf32>, vector<27x8xf32>, vector<8x27xf32> -> vector<8x27xf32>
    %cst_125 = arith.constant 0.353553385 : f32
    %225 = vector.broadcast %cst_125 : f32 to vector<8x27xf32>
    %226 = arith.mulf %224, %225 : vector<8x27xf32>
    %cst_126 = arith.constant dense<0xFF800000> : vector<8xf32>
    %227 = vector.multi_reduction <maximumf>, %226, %cst_126 [1] : vector<8x27xf32> to vector<8xf32>
    %228 = vector.shape_cast %227 : vector<8xf32> to vector<8x1xf32>
    %229 = vector.broadcast %228 : vector<8x1xf32> to vector<8x27xf32>
    %230 = arith.subf %226, %229 : vector<8x27xf32>
    %231 = math.exp %230 : vector<8x27xf32>
    %cst_127 = arith.constant dense<0.000000e+00> : vector<8xf32>
    %232 = vector.multi_reduction <add>, %231, %cst_127 [1] : vector<8x27xf32> to vector<8xf32>
    %233 = vector.shape_cast %232 : vector<8xf32> to vector<8x1xf32>
    %234 = vector.broadcast %233 : vector<8x1xf32> to vector<8x27xf32>
    %235 = arith.divf %231, %234 : vector<8x27xf32>
    %cst_128 = arith.constant dense<0.000000e+00> : vector<8x8xf32>
    %236 = tpu.matmul %235, %223, %cst_128 {dimension_numbers = #tpu.dot_dimension_numbers<[1], [0], [0], [1], [0, 0, 1, 1], [], []>, precision = #tpu.contract_precision<fp32>} : vector<8x27xf32>, vector<27x8xf32>, vector<8x8xf32> -> vector<8x8xf32>
    %237 = vector.extract_strided_slice %204 {offsets = [0, 16], sizes = [8, 8], strides = [1, 1]} : vector<8x64xf32> to vector<8x8xf32>
    %238 = vector.extract_strided_slice %170 {offsets = [0, 16], sizes = [27, 8], strides = [1, 1]} : vector<27x64xf32> to vector<27x8xf32>
    %239 = vector.extract_strided_slice %175 {offsets = [0, 16], sizes = [27, 8], strides = [1, 1]} : vector<27x64xf32> to vector<27x8xf32>
    %cst_129 = arith.constant dense<0.000000e+00> : vector<8x27xf32>
    %240 = tpu.matmul %237, %238, %cst_129 {dimension_numbers = #tpu.dot_dimension_numbers<[1], [1], [0], [0], [0, 0, 1, 0], [], []>, precision = #tpu.contract_precision<fp32>} : vector<8x8xf32>, vector<27x8xf32>, vector<8x27xf32> -> vector<8x27xf32>
    %cst_130 = arith.constant 0.353553385 : f32
    %241 = vector.broadcast %cst_130 : f32 to vector<8x27xf32>
    %242 = arith.mulf %240, %241 : vector<8x27xf32>
    %cst_131 = arith.constant dense<0xFF800000> : vector<8xf32>
    %243 = vector.multi_reduction <maximumf>, %242, %cst_131 [1] : vector<8x27xf32> to vector<8xf32>
    %244 = vector.shape_cast %243 : vector<8xf32> to vector<8x1xf32>
    %245 = vector.broadcast %244 : vector<8x1xf32> to vector<8x27xf32>
    %246 = arith.subf %242, %245 : vector<8x27xf32>
    %247 = math.exp %246 : vector<8x27xf32>
    %cst_132 = arith.constant dense<0.000000e+00> : vector<8xf32>
    %248 = vector.multi_reduction <add>, %247, %cst_132 [1] : vector<8x27xf32> to vector<8xf32>
    %249 = vector.shape_cast %248 : vector<8xf32> to vector<8x1xf32>
    %250 = vector.broadcast %249 : vector<8x1xf32> to vector<8x27xf32>
    %251 = arith.divf %247, %250 : vector<8x27xf32>
    %cst_133 = arith.constant dense<0.000000e+00> : vector<8x8xf32>
    %252 = tpu.matmul %251, %239, %cst_133 {dimension_numbers = #tpu.dot_dimension_numbers<[1], [0], [0], [1], [0, 0, 1, 1], [], []>, precision = #tpu.contract_precision<fp32>} : vector<8x27xf32>, vector<27x8xf32>, vector<8x8xf32> -> vector<8x8xf32>
    %253 = vector.extract_strided_slice %204 {offsets = [0, 24], sizes = [8, 8], strides = [1, 1]} : vector<8x64xf32> to vector<8x8xf32>
    %254 = vector.extract_strided_slice %170 {offsets = [0, 24], sizes = [27, 8], strides = [1, 1]} : vector<27x64xf32> to vector<27x8xf32>
    %255 = vector.extract_strided_slice %175 {offsets = [0, 24], sizes = [27, 8], strides = [1, 1]} : vector<27x64xf32> to vector<27x8xf32>
    %cst_134 = arith.constant dense<0.000000e+00> : vector<8x27xf32>
    %256 = tpu.matmul %253, %254, %cst_134 {dimension_numbers = #tpu.dot_dimension_numbers<[1], [1], [0], [0], [0, 0, 1, 0], [], []>, precision = #tpu.contract_precision<fp32>} : vector<8x8xf32>, vector<27x8xf32>, vector<8x27xf32> -> vector<8x27xf32>
    %cst_135 = arith.constant 0.353553385 : f32
    %257 = vector.broadcast %cst_135 : f32 to vector<8x27xf32>
    %258 = arith.mulf %256, %257 : vector<8x27xf32>
    %cst_136 = arith.constant dense<0xFF800000> : vector<8xf32>
    %259 = vector.multi_reduction <maximumf>, %258, %cst_136 [1] : vector<8x27xf32> to vector<8xf32>
    %260 = vector.shape_cast %259 : vector<8xf32> to vector<8x1xf32>
    %261 = vector.broadcast %260 : vector<8x1xf32> to vector<8x27xf32>
    %262 = arith.subf %258, %261 : vector<8x27xf32>
    %263 = math.exp %262 : vector<8x27xf32>
    %cst_137 = arith.constant dense<0.000000e+00> : vector<8xf32>
    %264 = vector.multi_reduction <add>, %263, %cst_137 [1] : vector<8x27xf32> to vector<8xf32>
    %265 = vector.shape_cast %264 : vector<8xf32> to vector<8x1xf32>
    %266 = vector.broadcast %265 : vector<8x1xf32> to vector<8x27xf32>
    %267 = arith.divf %263, %266 : vector<8x27xf32>
    %cst_138 = arith.constant dense<0.000000e+00> : vector<8x8xf32>
    %268 = tpu.matmul %267, %255, %cst_138 {dimension_numbers = #tpu.dot_dimension_numbers<[1], [0], [0], [1], [0, 0, 1, 1], [], []>, precision = #tpu.contract_precision<fp32>} : vector<8x27xf32>, vector<27x8xf32>, vector<8x8xf32> -> vector<8x8xf32>
    %269 = vector.extract_strided_slice %204 {offsets = [0, 32], sizes = [8, 8], strides = [1, 1]} : vector<8x64xf32> to vector<8x8xf32>
    %270 = vector.extract_strided_slice %170 {offsets = [0, 32], sizes = [27, 8], strides = [1, 1]} : vector<27x64xf32> to vector<27x8xf32>
    %271 = vector.extract_strided_slice %175 {offsets = [0, 32], sizes = [27, 8], strides = [1, 1]} : vector<27x64xf32> to vector<27x8xf32>
    %cst_139 = arith.constant dense<0.000000e+00> : vector<8x27xf32>
    %272 = tpu.matmul %269, %270, %cst_139 {dimension_numbers = #tpu.dot_dimension_numbers<[1], [1], [0], [0], [0, 0, 1, 0], [], []>, precision = #tpu.contract_precision<fp32>} : vector<8x8xf32>, vector<27x8xf32>, vector<8x27xf32> -> vector<8x27xf32>
    %cst_140 = arith.constant 0.353553385 : f32
    %273 = vector.broadcast %cst_140 : f32 to vector<8x27xf32>
    %274 = arith.mulf %272, %273 : vector<8x27xf32>
    %cst_141 = arith.constant dense<0xFF800000> : vector<8xf32>
    %275 = vector.multi_reduction <maximumf>, %274, %cst_141 [1] : vector<8x27xf32> to vector<8xf32>
    %276 = vector.shape_cast %275 : vector<8xf32> to vector<8x1xf32>
    %277 = vector.broadcast %276 : vector<8x1xf32> to vector<8x27xf32>
    %278 = arith.subf %274, %277 : vector<8x27xf32>
    %279 = math.exp %278 : vector<8x27xf32>
    %cst_142 = arith.constant dense<0.000000e+00> : vector<8xf32>
    %280 = vector.multi_reduction <add>, %279, %cst_142 [1] : vector<8x27xf32> to vector<8xf32>
    %281 = vector.shape_cast %280 : vector<8xf32> to vector<8x1xf32>
    %282 = vector.broadcast %281 : vector<8x1xf32> to vector<8x27xf32>
    %283 = arith.divf %279, %282 : vector<8x27xf32>
    %cst_143 = arith.constant dense<0.000000e+00> : vector<8x8xf32>
    %284 = tpu.matmul %283, %271, %cst_143 {dimension_numbers = #tpu.dot_dimension_numbers<[1], [0], [0], [1], [0, 0, 1, 1], [], []>, precision = #tpu.contract_precision<fp32>} : vector<8x27xf32>, vector<27x8xf32>, vector<8x8xf32> -> vector<8x8xf32>
    %285 = vector.extract_strided_slice %204 {offsets = [0, 40], sizes = [8, 8], strides = [1, 1]} : vector<8x64xf32> to vector<8x8xf32>
    %286 = vector.extract_strided_slice %170 {offsets = [0, 40], sizes = [27, 8], strides = [1, 1]} : vector<27x64xf32> to vector<27x8xf32>
    %287 = vector.extract_strided_slice %175 {offsets = [0, 40], sizes = [27, 8], strides = [1, 1]} : vector<27x64xf32> to vector<27x8xf32>
    %cst_144 = arith.constant dense<0.000000e+00> : vector<8x27xf32>
    %288 = tpu.matmul %285, %286, %cst_144 {dimension_numbers = #tpu.dot_dimension_numbers<[1], [1], [0], [0], [0, 0, 1, 0], [], []>, precision = #tpu.contract_precision<fp32>} : vector<8x8xf32>, vector<27x8xf32>, vector<8x27xf32> -> vector<8x27xf32>
    %cst_145 = arith.constant 0.353553385 : f32
    %289 = vector.broadcast %cst_145 : f32 to vector<8x27xf32>
    %290 = arith.mulf %288, %289 : vector<8x27xf32>
    %cst_146 = arith.constant dense<0xFF800000> : vector<8xf32>
    %291 = vector.multi_reduction <maximumf>, %290, %cst_146 [1] : vector<8x27xf32> to vector<8xf32>
    %292 = vector.shape_cast %291 : vector<8xf32> to vector<8x1xf32>
    %293 = vector.broadcast %292 : vector<8x1xf32> to vector<8x27xf32>
    %294 = arith.subf %290, %293 : vector<8x27xf32>
    %295 = math.exp %294 : vector<8x27xf32>
    %cst_147 = arith.constant dense<0.000000e+00> : vector<8xf32>
    %296 = vector.multi_reduction <add>, %295, %cst_147 [1] : vector<8x27xf32> to vector<8xf32>
    %297 = vector.shape_cast %296 : vector<8xf32> to vector<8x1xf32>
    %298 = vector.broadcast %297 : vector<8x1xf32> to vector<8x27xf32>
    %299 = arith.divf %295, %298 : vector<8x27xf32>
    %cst_148 = arith.constant dense<0.000000e+00> : vector<8x8xf32>
    %300 = tpu.matmul %299, %287, %cst_148 {dimension_numbers = #tpu.dot_dimension_numbers<[1], [0], [0], [1], [0, 0, 1, 1], [], []>, precision = #tpu.contract_precision<fp32>} : vector<8x27xf32>, vector<27x8xf32>, vector<8x8xf32> -> vector<8x8xf32>
    %301 = vector.extract_strided_slice %204 {offsets = [0, 48], sizes = [8, 8], strides = [1, 1]} : vector<8x64xf32> to vector<8x8xf32>
    %302 = vector.extract_strided_slice %170 {offsets = [0, 48], sizes = [27, 8], strides = [1, 1]} : vector<27x64xf32> to vector<27x8xf32>
    %303 = vector.extract_strided_slice %175 {offsets = [0, 48], sizes = [27, 8], strides = [1, 1]} : vector<27x64xf32> to vector<27x8xf32>
    %cst_149 = arith.constant dense<0.000000e+00> : vector<8x27xf32>
    %304 = tpu.matmul %301, %302, %cst_149 {dimension_numbers = #tpu.dot_dimension_numbers<[1], [1], [0], [0], [0, 0, 1, 0], [], []>, precision = #tpu.contract_precision<fp32>} : vector<8x8xf32>, vector<27x8xf32>, vector<8x27xf32> -> vector<8x27xf32>
    %cst_150 = arith.constant 0.353553385 : f32
    %305 = vector.broadcast %cst_150 : f32 to vector<8x27xf32>
    %306 = arith.mulf %304, %305 : vector<8x27xf32>
    %cst_151 = arith.constant dense<0xFF800000> : vector<8xf32>
    %307 = vector.multi_reduction <maximumf>, %306, %cst_151 [1] : vector<8x27xf32> to vector<8xf32>
    %308 = vector.shape_cast %307 : vector<8xf32> to vector<8x1xf32>
    %309 = vector.broadcast %308 : vector<8x1xf32> to vector<8x27xf32>
    %310 = arith.subf %306, %309 : vector<8x27xf32>
    %311 = math.exp %310 : vector<8x27xf32>
    %cst_152 = arith.constant dense<0.000000e+00> : vector<8xf32>
    %312 = vector.multi_reduction <add>, %311, %cst_152 [1] : vector<8x27xf32> to vector<8xf32>
    %313 = vector.shape_cast %312 : vector<8xf32> to vector<8x1xf32>
    %314 = vector.broadcast %313 : vector<8x1xf32> to vector<8x27xf32>
    %315 = arith.divf %311, %314 : vector<8x27xf32>
    %cst_153 = arith.constant dense<0.000000e+00> : vector<8x8xf32>
    %316 = tpu.matmul %315, %303, %cst_153 {dimension_numbers = #tpu.dot_dimension_numbers<[1], [0], [0], [1], [0, 0, 1, 1], [], []>, precision = #tpu.contract_precision<fp32>} : vector<8x27xf32>, vector<27x8xf32>, vector<8x8xf32> -> vector<8x8xf32>
    %317 = vector.extract_strided_slice %204 {offsets = [0, 56], sizes = [8, 8], strides = [1, 1]} : vector<8x64xf32> to vector<8x8xf32>
    %318 = vector.extract_strided_slice %170 {offsets = [0, 56], sizes = [27, 8], strides = [1, 1]} : vector<27x64xf32> to vector<27x8xf32>
    %319 = vector.extract_strided_slice %175 {offsets = [0, 56], sizes = [27, 8], strides = [1, 1]} : vector<27x64xf32> to vector<27x8xf32>
    %cst_154 = arith.constant dense<0.000000e+00> : vector<8x27xf32>
    %320 = tpu.matmul %317, %318, %cst_154 {dimension_numbers = #tpu.dot_dimension_numbers<[1], [1], [0], [0], [0, 0, 1, 0], [], []>, precision = #tpu.contract_precision<fp32>} : vector<8x8xf32>, vector<27x8xf32>, vector<8x27xf32> -> vector<8x27xf32>
    %cst_155 = arith.constant 0.353553385 : f32
    %321 = vector.broadcast %cst_155 : f32 to vector<8x27xf32>
    %322 = arith.mulf %320, %321 : vector<8x27xf32>
    %cst_156 = arith.constant dense<0xFF800000> : vector<8xf32>
    %323 = vector.multi_reduction <maximumf>, %322, %cst_156 [1] : vector<8x27xf32> to vector<8xf32>
    %324 = vector.shape_cast %323 : vector<8xf32> to vector<8x1xf32>
    %325 = vector.broadcast %324 : vector<8x1xf32> to vector<8x27xf32>
    %326 = arith.subf %322, %325 : vector<8x27xf32>
    %327 = math.exp %326 : vector<8x27xf32>
    %cst_157 = arith.constant dense<0.000000e+00> : vector<8xf32>
    %328 = vector.multi_reduction <add>, %327, %cst_157 [1] : vector<8x27xf32> to vector<8xf32>
    %329 = vector.shape_cast %328 : vector<8xf32> to vector<8x1xf32>
    %330 = vector.broadcast %329 : vector<8x1xf32> to vector<8x27xf32>
    %331 = arith.divf %327, %330 : vector<8x27xf32>
    %cst_158 = arith.constant dense<0.000000e+00> : vector<8x8xf32>
    %332 = tpu.matmul %331, %319, %cst_158 {dimension_numbers = #tpu.dot_dimension_numbers<[1], [0], [0], [1], [0, 0, 1, 1], [], []>, precision = #tpu.contract_precision<fp32>} : vector<8x27xf32>, vector<27x8xf32>, vector<8x8xf32> -> vector<8x8xf32>
    %333 = tpu.concatenate %220, %236, %252, %268, %284, %300, %316, %332 in 1 : vector<8x8xf32>, vector<8x8xf32>, vector<8x8xf32>, vector<8x8xf32>, vector<8x8xf32>, vector<8x8xf32>, vector<8x8xf32>, vector<8x8xf32> -> vector<8x64xf32>
    %c0_159 = arith.constant 0 : index
    %c0_160 = arith.constant 0 : index
    %334 = vector.load %arg23[%c0_159, %c0_160] : memref<64x128xf32, #tpu.memory_space<vmem>>, vector<64x128xf32>
    %cst_161 = arith.constant dense<0.000000e+00> : vector<8x128xf32>
    %335 = tpu.matmul %333, %334, %cst_161 {dimension_numbers = #tpu.dot_dimension_numbers<[1], [0], [0], [1], [0, 0, 1, 1], [], []>, precision = #tpu.contract_precision<fp32>} : vector<8x64xf32>, vector<64x128xf32>, vector<8x128xf32> -> vector<8x128xf32>
    %c0_162 = arith.constant 0 : index
    %c0_163 = arith.constant 0 : index
    %336 = vector.load %arg24[%c0_162, %c0_163] : memref<1x128xf32, #tpu.memory_space<vmem>>, vector<1x128xf32>
    %337 = vector.broadcast %336 : vector<1x128xf32> to vector<8x128xf32>
    %338 = arith.addf %335, %337 : vector<8x128xf32>
    %cst_164 = arith.constant 1.000000e+00 : f32
    %339 = vector.broadcast %cst_164 : f32 to vector<8x128xf32>
    %340 = arith.mulf %338, %339 : vector<8x128xf32>
    %341 = arith.addf %340, %177 : vector<8x128xf32>
    %c0_165 = arith.constant 0 : index
    %c0_166 = arith.constant 0 : index
    %c0_167 = arith.constant 0 : index
    %342 = vector.load %arg25[%c0_165, %c0_166, %c0_167] : memref<1x8x128xf32, #tpu.memory_space<vmem>>, vector<1x8x128xf32>
    %343 = vector.shape_cast %342 : vector<1x8x128xf32> to vector<8x128xf32>
    %344 = vector.shape_cast %341 : vector<8x128xf32> to vector<1x8x128xf32>
    tpu.vector_store %arg25[%c0_165, %c0_166, %c0_167], %344 {strides = array<i32>} : memref<1x8x128xf32, #tpu.memory_space<vmem>>, vector<1x8x128xf32>,
    return
  }
  func.func @transform_0(%arg0: i32) -> (i32, i32, i32, i32) {
    %c0_i32 = arith.constant 0 : i32
    %c0_i32_0 = arith.constant 0 : i32
    %c0_i32_1 = arith.constant 0 : i32
    %c0_i32_2 = arith.constant 0 : i32
    return %arg0, %c0_i32, %c0_i32_0, %c0_i32_1 : i32, i32, i32, i32
  }
  func.func @transform_1(%arg0: i32) -> (i32, i32, i32, i32) {
    %c0_i32 = arith.constant 0 : i32
    %c0_i32_0 = arith.constant 0 : i32
    %c0_i32_1 = arith.constant 0 : i32
    %c0_i32_2 = arith.constant 0 : i32
    return %arg0, %c0_i32, %c0_i32_0, %c0_i32_1 : i32, i32, i32, i32
  }
  func.func @transform_2(%arg0: i32) -> (i32, i32, i32, i32) {
    %c0_i32 = arith.constant 0 : i32
    %c0_i32_0 = arith.constant 0 : i32
    %c0_i32_1 = arith.constant 0 : i32
    %c0_i32_2 = arith.constant 0 : i32
    return %arg0, %c0_i32, %c0_i32_0, %c0_i32_1 : i32, i32, i32, i32
  }
  func.func @transform_3(%arg0: i32) -> (i32, i32, i32) {
    %c0_i32 = arith.constant 0 : i32
    %c0_i32_0 = arith.constant 0 : i32
    %c0_i32_1 = arith.constant 0 : i32
    return %arg0, %c0_i32, %c0_i32_0 : i32, i32, i32
  }
  func.func @transform_4(%arg0: i32) -> (i32, i32) {
    %c0_i32 = arith.constant 0 : i32
    %c0_i32_0 = arith.constant 0 : i32
    %c0_i32_1 = arith.constant 0 : i32
    return %c0_i32, %c0_i32_0 : i32, i32
  }
  func.func @transform_5(%arg0: i32) -> (i32, i32) {
    %c0_i32 = arith.constant 0 : i32
    %c0_i32_0 = arith.constant 0 : i32
    %c0_i32_1 = arith.constant 0 : i32
    return %c0_i32, %c0_i32_0 : i32, i32
  }
  func.func @transform_6(%arg0: i32) -> (i32, i32) {
    %c0_i32 = arith.constant 0 : i32
    %c0_i32_0 = arith.constant 0 : i32
    %c0_i32_1 = arith.constant 0 : i32
    return %c0_i32, %c0_i32_0 : i32, i32
  }
  func.func @transform_7(%arg0: i32) -> (i32, i32) {
    %c0_i32 = arith.constant 0 : i32
    %c0_i32_0 = arith.constant 0 : i32
    %c0_i32_1 = arith.constant 0 : i32
    return %c0_i32, %c0_i32_0 : i32, i32
  }
  func.func @transform_8(%arg0: i32) -> (i32, i32) {
    %c0_i32 = arith.constant 0 : i32
    %c0_i32_0 = arith.constant 0 : i32
    %c0_i32_1 = arith.constant 0 : i32
    return %c0_i32, %c0_i32_0 : i32, i32
  }
  func.func @transform_9(%arg0: i32) -> (i32, i32) {
    %c0_i32 = arith.constant 0 : i32
    %c0_i32_0 = arith.constant 0 : i32
    %c0_i32_1 = arith.constant 0 : i32
    return %c0_i32, %c0_i32_0 : i32, i32
  }
  func.func @transform_10(%arg0: i32) -> (i32, i32) {
    %c0_i32 = arith.constant 0 : i32
    %c0_i32_0 = arith.constant 0 : i32
    %c0_i32_1 = arith.constant 0 : i32
    return %c0_i32, %c0_i32_0 : i32, i32
  }
  func.func @transform_11(%arg0: i32) -> (i32, i32) {
    %c0_i32 = arith.constant 0 : i32
    %c0_i32_0 = arith.constant 0 : i32
    %c0_i32_1 = arith.constant 0 : i32
    return %c0_i32, %c0_i32_0 : i32, i32
  }
  func.func @transform_12(%arg0: i32) -> (i32, i32) {
    %c0_i32 = arith.constant 0 : i32
    %c0_i32_0 = arith.constant 0 : i32
    %c0_i32_1 = arith.constant 0 : i32
    return %c0_i32, %c0_i32_0 : i32, i32
  }
  func.func @transform_13(%arg0: i32) -> (i32, i32) {
    %c0_i32 = arith.constant 0 : i32
    %c0_i32_0 = arith.constant 0 : i32
    %c0_i32_1 = arith.constant 0 : i32
    return %c0_i32, %c0_i32_0 : i32, i32
  }
  func.func @transform_14(%arg0: i32) -> (i32, i32) {
    %c0_i32 = arith.constant 0 : i32
    %c0_i32_0 = arith.constant 0 : i32
    %c0_i32_1 = arith.constant 0 : i32
    return %c0_i32, %c0_i32_0 : i32, i32
  }
  func.func @transform_15(%arg0: i32) -> (i32, i32) {
    %c0_i32 = arith.constant 0 : i32
    %c0_i32_0 = arith.constant 0 : i32
    %c0_i32_1 = arith.constant 0 : i32
    return %c0_i32, %c0_i32_0 : i32, i32
  }
  func.func @transform_16(%arg0: i32) -> (i32, i32) {
    %c0_i32 = arith.constant 0 : i32
    %c0_i32_0 = arith.constant 0 : i32
    %c0_i32_1 = arith.constant 0 : i32
    return %c0_i32, %c0_i32_0 : i32, i32
  }
  func.func @transform_17(%arg0: i32) -> (i32, i32) {
    %c0_i32 = arith.constant 0 : i32
    %c0_i32_0 = arith.constant 0 : i32
    %c0_i32_1 = arith.constant 0 : i32
    return %c0_i32, %c0_i32_0 : i32, i32
  }
  func.func @transform_18(%arg0: i32) -> (i32, i32) {
    %c0_i32 = arith.constant 0 : i32
    %c0_i32_0 = arith.constant 0 : i32
    %c0_i32_1 = arith.constant 0 : i32
    return %c0_i32, %c0_i32_0 : i32, i32
  }
  func.func @transform_19(%arg0: i32) -> (i32, i32) {
    %c0_i32 = arith.constant 0 : i32
    %c0_i32_0 = arith.constant 0 : i32
    %c0_i32_1 = arith.constant 0 : i32
    return %c0_i32, %c0_i32_0 : i32, i32
  }
  func.func @transform_20(%arg0: i32) -> (i32, i32) {
    %c0_i32 = arith.constant 0 : i32
    %c0_i32_0 = arith.constant 0 : i32
    %c0_i32_1 = arith.constant 0 : i32
    return %c0_i32, %c0_i32_0 : i32, i32
  }
  func.func @transform_21(%arg0: i32) -> (i32, i32) {
    %c0_i32 = arith.constant 0 : i32
    %c0_i32_0 = arith.constant 0 : i32
    %c0_i32_1 = arith.constant 0 : i32
    return %c0_i32, %c0_i32_0 : i32, i32
  }
  func.func @transform_22(%arg0: i32) -> (i32, i32) {
    %c0_i32 = arith.constant 0 : i32
    %c0_i32_0 = arith.constant 0 : i32
    %c0_i32_1 = arith.constant 0 : i32
    return %c0_i32, %c0_i32_0 : i32, i32
  }
  func.func @transform_23(%arg0: i32) -> (i32, i32) {
    %c0_i32 = arith.constant 0 : i32
    %c0_i32_0 = arith.constant 0 : i32
    %c0_i32_1 = arith.constant 0 : i32
    return %c0_i32, %c0_i32_0 : i32, i32
  }
  func.func @transform_24(%arg0: i32) -> (i32, i32, i32) {
    %c0_i32 = arith.constant 0 : i32
    %c0_i32_0 = arith.constant 0 : i32
    %c0_i32_1 = arith.constant 0 : i32
    return %arg0, %c0_i32, %c0_i32_0 : i32, i32, i32
  }
}

</mosaic_0001>

<bundles_post_ra>
// kernel: tpu_custom_call.1
= control target key start
LH: loop header
LB: loop body
LE: loop exit
PB: predicated region body
PF: predicated region fallthrough
CT: control target
= control target key end

     0   :  { %s25548_s0 = inlined_call_operand.hbm [shape: f32[2,16,16,16], index: 0, kind: input, shape index: {}]   ;;  %s25549_s1 = inlined_call_operand.vmem [shape: f32[2,8,8,32], index: 1, kind: input, shape index: {}]   ;;  %s25550_s2 = inlined_call_operand.hbm [shape: f32[2,4,4,64], index: 2, kind: input, shape index: {}]   ;;  %s25551_s3 = inlined_call_operand.hbm [shape: f32[2,8,128], index: 3, kind: input, shape index: {}]   ;;  %s25552_s4 = inlined_call_operand.hbm [shape: f32[16,64], index: 4, kind: input, shape index: {}]   ;;  %s25553_s5 = inlined_call_operand.hbm [shape: f32[1,64], index: 5, kind: input, shape index: {}]   ;;  %s25554_s6 = inlined_call_operand.hbm [shape: f32[32,64], index: 6, kind: input, shape index: {}]   ;;  %s25555_s7 = inlined_call_operand.hbm [shape: f32[1,64], index: 7, kind: input, shape index: {}]   ;;  %s25556_s8 = inlined_call_operand.vmem [shape: f32[64,64], index: 8, kind: input, shape index: {}]   ;;  %s25557_s9 = inlined_call_operand.hbm [shape: f32[1,64], index: 9, kind: input, shape index: {}]   ;;  %s25558_s10 = inlined_call_operand.hbm [shape: f32[1,128], index: 10, kind: input, shape index: {}]   ;;  %s25559_s11 = inlined_call_operand.hbm [shape: f32[1,128], index: 11, kind: input, shape index: {}]   ;;  %s25560_s12 = inlined_call_operand.vmem [shape: f32[128,64], index: 12, kind: input, shape index: {}]   ;;  %s25561_s13 = inlined_call_operand.hbm [shape: f32[1,64], index: 13, kind: input, shape index: {}]   ;;  %s25562_s14 = inlined_call_operand.hbm [shape: f32[1,64], index: 14, kind: input, shape index: {}]   ;;  %s25563_s15 = inlined_call_operand.hbm [shape: f32[1,64], index: 15, kind: input, shape index: {}]   ;;  %s25564_s16 = inlined_call_operand.hbm [shape: f32[64,64], index: 16, kind: input, shape index: {}]   ;;  %s25565_s17 = inlined_call_operand.hbm [shape: f32[1,64], index: 17, kind: input, shape index: {}]   ;;  %s25566_s18 = inlined_call_operand.vmem [shape: f32[1,64], index: 18, kind: input, shape index: {}]   ;;  %s25567_s19 = inlined_call_operand.vmem [shape: f32[1,64], index: 19, kind: input, shape index: {}]   ;;  %s25568_s20 = inlined_call_operand.vmem [shape: f32[64,64], index: 20, kind: input, shape index: {}]   ;;  %s25569_s21 = inlined_call_operand.vmem [shape: f32[1,64], index: 21, kind: input, shape index: {}]   ;;  %s25570_s22 = inlined_call_operand.hbm [shape: f32[64,128], index: 22, kind: input, shape index: {}]   ;;  %s25571_s23 = inlined_call_operand.vmem [shape: f32[1,128], index: 23, kind: input, shape index: {}]   ;;  %s25572_s24 = inlined_call_operand.hbm [shape: f32[2,8,128], index: 24, kind: output, shape index: {}]  }
   0x1   :  { %25786 = sst [smem:[#allocation97_spill]] %s25548_s0 }
   0x2   :  { %25787 = sst [smem:[#allocation98_spill]] %s25549_s1 }
   0x3   :  { %25788 = sst [smem:[#allocation99_spill]] %s25550_s2 }
   0x4   :  { %25789 = sst [smem:[#allocation100_spill]] %s25551_s3 }
   0x5   :  { %25790 = sst [smem:[#allocation101_spill]] %s25552_s4 }
   0x6   :  { %25791 = sst [smem:[#allocation102_spill]] %s25553_s5 }
   0x7   :  { %25792 = sst [smem:[#allocation103_spill]] %s25554_s6 }
   0x8   :  { %25793 = sst [smem:[#allocation104_spill]] %s25555_s7 }
   0x9   :  { %25794 = sst [smem:[#allocation105_spill]] %s25556_s8 }
   0xa   :  { %25795 = sst [smem:[#allocation106_spill]] %s25557_s9 }
   0xb   :  { %25796 = sst [smem:[#allocation107_spill]] %s25558_s10 }
   0xc   :  { %25797 = sst [smem:[#allocation108_spill]] %s25559_s11 }
   0xd   :  { %25798 = sst [smem:[#allocation109_spill]] %s25560_s12 }
   0xe   :  { %25799 = sst [smem:[#allocation110_spill]] %s25562_s14 }
   0xf   :  { %25800 = sst [smem:[#allocation111_spill]] %s25564_s16 }
  0x10   :  { %25801 = sst [smem:[#allocation112_spill]] %s25566_s18 }
  0x11   :  { %25802 = sst [smem:[#allocation113_spill]] %s25567_s19 }
  0x12   :  { %25803 = sst [smem:[#allocation114_spill]] %s25568_s20 }
  0x13   :  { %25804 = sst [smem:[#allocation115_spill]] %s25569_s21 }
  0x14   :  { %25805 = sst [smem:[#allocation116_spill]] %s25570_s22 }
  0x15   :  { %25806 = sst [smem:[#allocation117_spill]] %s25571_s23 }
  0x16   :  { %25807 = sst [smem:[#allocation118_spill]] %s25572_s24 }
  0x17   :  { %29 = vsyncpa [#allocation3], 0 }
  0x18   :  { %31 = vsyncpa [#allocation3 + $0x1], 0 }
  0x19   :  { %32 = vsyncpa [#allocation6], 0 }
  0x1a   :  { %34 = vsyncpa [#allocation6 + $0x1], 0 }
  0x1b   :  { %35 = vsyncpa [#allocation9], 0 }
  0x1c   :  { %36 = vsyncpa [#allocation12], 0 }
  0x1d   :  { %37 = vsyncpa [#allocation15], 0 }
  0x1e   :  { %38 = vsyncpa [#allocation18], 0 }
  0x1f   :  { %39 = vsyncpa [#allocation21], 0 }
  0x20   :  { %40 = vsyncpa [#allocation24], 0 }
  0x21   :  { %41 = vsyncpa [#allocation27], 0 }
  0x22   :  { %42 = vsyncpa [#allocation4], 0 }
  0x23   :  { %44 = vsyncpa [#allocation4 + $0x1], 0  ;;  %s21955_s5 = smov 0   ;;  %s21957_s26 = smov 0  }
  0x24   :  { %s21959_s27 = smov 0   ;;  %s21961_s28 = smov 0  }
  0x25 LB: > { %25808 = sst [smem:[#allocation39_spill]] %s21778_s5  ;;  %s21792_s6 = smov [#allocation8]   ;;  %s21790_s28 = sphi %s21961_s28, %s26092_s28   ;;  %s21786_s27 = sphi %s21959_s27, %s26094_s27   ;;  %s21782_s26 = sphi %s21957_s26, %s26096_s26   ;;  %s21778_s5 = sphi %s21955_s5, %s26095_s5  }
  0x26   : > { %25809 = sst [smem:[#allocation40_spill]] %s21786_s27  ;;  %s617_s2 = sshll.u32 %s21792_s6, 4  ;;  %s21981_s2 = int_to_ptr.vmem [resolvable:$true] %s617_s2 }
  0x27   : > { %s21976_s29 = sadd.s32 4294967295, %s21790_s28   ;;  %p15990_p0 = scmp.ge.s32.totalorder %s21790_s28, 1 }
  0x28   : > { %p25588_p1 = scmp.eq.s32.totalorder %s21976_s29, 0  ;;  %p605_p2 = scmp.lt.s32.totalorder %s21790_s28, 3 }
  0x29   : > { %s21793_s7 = smov [#allocation11]   ;;  %s21794_s25 = smov [#allocation14]  }
  0x2a   : > { %p21983_p3 = pnand %p15990_p0, %p605_p2  ;;  %s641_s30 = sshll.u32 %s21793_s7, 4  ;;  %s21996_s30 = int_to_ptr.vmem [resolvable:$true] %s641_s30 }
  0x2b   : > { %s669_s8 = sshll.u32 %s21794_s25, 4  ;;  %s25813_s6 = sld [smem:[#allocation101_spill]]  ;;  %s21998_s8 = int_to_ptr.vmem [resolvable:$true] %s669_s8 }
  0x2c   : > { %s25810_s0 = scalar_select %p21983_p3, 1, 0 }
  0x2d   : > { %p21044_p5 = pneg %p21983_p3 }
  0x2e   : > { %25811 = sst [smem:[#allocation41_spill]] %s25810_s0 }
  0x2f   : > { %p21992_p6 = pnand %p21044_p5, %p25588_p1 }
  0x31   : > { %s25812_s3 = scalar_select %p21992_p6, 1, 0 }
  0x32   : > { %s21238_s24 = scalar_lea.hbm %s25813_s6, 256  ;;  %p22008_p8 = pneg %p21992_p6 }
  0x33   : > { %p21239_p7 = scmp.ne.s32.totalorder %s25813_s6, %s21238_s24  ;;  %p21245_p11 = scmp.lt.u32.totalorder %s21238_s24, %s25813_s6 }
  0x34   : > { %s25814_s7 = scalar_select %p22008_p8, 1, 0 }
  0x35   : > { %p21241_p9 = pnand %p22008_p8, %p21239_p7 }
  0x37   : > { %p21242_p10 = pneg %p21241_p9 }
  0x39   : > { %p21247_p12 = pnand %p21245_p11, %p21242_p10 }
  0x3b   : > { %21250 = shalt.err (!%p21247_p12)
}
  0x3c   : > { %s21251_s21 = scalar_lea.vmem %s21981_s2, 256  ;;  %p21259_p5 = scmp.lt.s32.totalorder %s21981_s2, %s21981_s2 }
  0x3d   : > { %p21252_p13 = scmp.ne.s32.totalorder %s21981_s2, %s21251_s21  ;;  %p21260_p4 = scmp.lt.s32.totalorder %s21251_s21, %s21251_s21 }
  0x3f   : > { %p21254_p0 = pnand %p21252_p13, %p22008_p8  ;;  %p21261_p7 = por %p21260_p4, %p21259_p5 }
  0x41   : > { %p21255_p2 = pneg %p21254_p0 }
  0x43   : > { %p21262_p9 = pnand %p21261_p7, %p21255_p2 }
  0x45   : > { %21265 = shalt.err (!%p21262_p9)
}
  0x46   : > { %s25586_s23 = smov 128   ;;  %s25590_s20 = smov 8  }
  0x47   : > { %21047 = dma.hbm_to_vmem [thread:$0]  (!%p21992_p6), %s25813_s6, 256, %s21981_s2, [#allocation9], %s25586_s23, %s25586_s23, %s25590_s20  }
  0x48   : > { %s25815_s19 = sld [smem:[#allocation103_spill]] }
  0x4e   : > { %s21266_s21 = scalar_lea.hbm %s25815_s19, 512 }
  0x4f   : > { %p21267_p4 = scmp.ne.s32.totalorder %s25815_s19, %s21266_s21  ;;  %p21273_p12 = scmp.lt.u32.totalorder %s21266_s21, %s25815_s19 }
  0x51   : > { %p21269_p10 = pnand %p21267_p4, %p22008_p8 }
  0x53   : > { %p21270_p11 = pneg %p21269_p10 }
  0x55   : > { %p21275_p13 = pnand %p21273_p12, %p21270_p11 }
  0x57   : > { %21278 = shalt.err (!%p21275_p13)
}
  0x58   : > { %s21279_s2 = scalar_lea.vmem %s21996_s30, 512  ;;  %p21287_p7 = scmp.lt.s32.totalorder %s21996_s30, %s21996_s30 }
  0x59   : > { %p21280_p0 = scmp.ne.s32.totalorder %s21996_s30, %s21279_s2  ;;  %p21288_p9 = scmp.lt.s32.totalorder %s21279_s2, %s21279_s2 }
  0x5b   : > { %p21282_p2 = pnand %p21280_p0, %p22008_p8  ;;  %p21289_p4 = por %p21288_p9, %p21287_p7 }
  0x5d   : > { %p21283_p5 = pneg %p21282_p2 }
  0x5f   : > { %p21290_p10 = pnand %p21289_p4, %p21283_p5 }
  0x61   : > { %21293 = shalt.err (!%p21290_p10)
}
  0x62   : > { %21053 = dma.hbm_to_vmem [thread:$0]  (!%p21992_p6), %s25815_s19, 512, %s21996_s30, [#allocation12], %s25586_s23, %s25586_s23, %s25590_s20  }
  0x63   : > { %s25816_s9 = sld [smem:[#allocation106_spill]] }
  0x69   : > { %s21294_s24 = scalar_lea.hbm %s25816_s9, 16 }
  0x6a   : > { %p21295_p11 = scmp.ne.s32.totalorder %s25816_s9, %s21294_s24  ;;  %p21301_p0 = scmp.lt.u32.totalorder %s21294_s24, %s25816_s9 }
  0x6c   : > { %p21297_p12 = pnand %p21295_p11, %p22008_p8 }
  0x6e   : > { %p21298_p13 = pneg %p21297_p12 }
  0x70   : > { %p21303_p2 = pnand %p21301_p0, %p21298_p13 }
  0x72   : > { %21306 = shalt.err (!%p21303_p2)
}
  0x73   : > { %s21307_s30 = scalar_lea.vmem %s21998_s8, 16  ;;  %s21314_s2 = scalar_lea.vmem %s21998_s8, 32 }
  0x74   : > { %p21308_p5 = scmp.ne.s32.totalorder %s21998_s8, %s21307_s30  ;;  %p21315_p4 = scmp.lt.s32.totalorder %s21998_s8, %s21998_s8 }
  0x75   : > { %p21316_p10 = scmp.lt.s32.totalorder %s21314_s2, %s21307_s30 }
  0x76   : > { %p21310_p7 = pnand %p21308_p5, %p22008_p8 }
  0x77   : > { %p21317_p11 = por %p21316_p10, %p21315_p4 }
  0x78   : > { %p21311_p9 = pneg %p21310_p7 }
  0x7a   : > { %p21318_p12 = pnand %p21317_p11, %p21311_p9 }
  0x7c   : > { %21321 = shalt.err (!%p21318_p12)
}
  0x7d   : > { %21059 = dma.hbm_to_vmem [thread:$0]  (!%p21992_p6), %s25816_s9, 16, %s21998_s8, [#allocation15]  }
  0x7e   : > { %s21797_s22 = smov [#allocation17]   ;;  %s21798_s24 = smov [#allocation20]  }
  0x7f   : > { %s691_s0 = sshll.u32 %s21797_s22, 4  ;;  %s716_s4 = sshll.u32 %s21798_s24, 4  ;;  %s692_s0 = int_to_ptr.vmem [resolvable:$true] %s691_s0  ;;  %s717_s4 = int_to_ptr.vmem [resolvable:$true] %s716_s4 }
  0x80   : > { %s25817_s11 = sld [smem:[#allocation108_spill]] }
  0x86   : > { %s21322_s21 = scalar_lea.hbm %s25817_s11, 16 }
  0x87   : > { %p21323_p13 = scmp.ne.s32.totalorder %s25817_s11, %s21322_s21  ;;  %p21329_p5 = scmp.lt.u32.totalorder %s21322_s21, %s25817_s11 }
  0x89   : > { %p21325_p0 = pnand %p21323_p13, %p22008_p8 }
  0x8b   : > { %p21326_p2 = pneg %p21325_p0 }
  0x8d   : > { %p21331_p7 = pnand %p21329_p5, %p21326_p2 }
  0x8f   : > { %21334 = shalt.err (!%p21331_p7)
}
  0x90   : > { %s21335_s8 = scalar_lea.vmem %s692_s0, 16  ;;  %s21342_s18 = scalar_lea.vmem %s692_s0, 32 }
  0x91   : > { %p21336_p9 = scmp.ne.s32.totalorder %s692_s0, %s21335_s8  ;;  %p21343_p11 = scmp.lt.s32.totalorder %s692_s0, %s692_s0 }
  0x92   : > { %p21344_p12 = scmp.lt.s32.totalorder %s21342_s18, %s21335_s8 }
  0x93   : > { %p21338_p4 = pnand %p21336_p9, %p22008_p8 }
  0x94   : > { %p21345_p1 = por %p21344_p12, %p21343_p11 }
  0x95   : > { %p21339_p10 = pneg %p21338_p4 }
  0x97   : > { %p21346_p3 = pnand %p21345_p1, %p21339_p10 }
  0x99   : > { %21349 = shalt.err (!%p21346_p3)
}
  0x9a   : > { %21065 = dma.hbm_to_vmem [thread:$0]  (!%p21992_p6), %s25817_s11, 16, %s692_s0, [#allocation18]  }
  0x9b   : > { %s25818_s14 = sld [smem:[#allocation110_spill]] }
  0xa1   : > { %s21350_s25 = scalar_lea.hbm %s25818_s14, 16 }
  0xa2   : > { %p21351_p13 = scmp.ne.s32.totalorder %s25818_s14, %s21350_s25  ;;  %p21357_p3 = scmp.lt.u32.totalorder %s21350_s25, %s25818_s14 }
  0xa4   : > { %p21353_p0 = pnand %p21351_p13, %p22008_p8 }
  0xa6   : > { %p21354_p1 = pneg %p21353_p0 }
  0xa8   : > { %p21359_p2 = pnand %p21357_p3, %p21354_p1 }
  0xaa   : > { %21362 = shalt.err (!%p21359_p2)
}
  0xab   : > { %s21363_s8 = scalar_lea.vmem %s717_s4, 16  ;;  %s21370_s0 = scalar_lea.vmem %s717_s4, 32 }
  0xac   : > { %p21364_p5 = scmp.ne.s32.totalorder %s717_s4, %s21363_s8  ;;  %p21371_p4 = scmp.lt.s32.totalorder %s717_s4, %s717_s4 }
  0xad   : > { %p21372_p10 = scmp.lt.s32.totalorder %s21370_s0, %s21363_s8 }
  0xae   : > { %p21366_p7 = pnand %p21364_p5, %p22008_p8 }
  0xaf   : > { %p21373_p11 = por %p21372_p10, %p21371_p4 }
  0xb0   : > { %p21367_p9 = pneg %p21366_p7 }
  0xb2   : > { %p21374_p12 = pnand %p21373_p11, %p21367_p9 }
  0xb4   : > { %21377 = shalt.err (!%p21374_p12)
}
  0xb5   : > { %21071 = dma.hbm_to_vmem [thread:$0]  (!%p21992_p6), %s25818_s14, 16, %s717_s4, [#allocation21]  }
  0xb6   : > { %s21799_s24 = smov [#allocation23]   ;;  %s25819_s16 = sld [smem:[#allocation111_spill]] }
  0xb7   : > { %s737_s23 = sshll.u32 %s21799_s24, 4  ;;  %s738_s23 = int_to_ptr.vmem [resolvable:$true] %s737_s23 }
  0xbc   : > { %s21378_s21 = scalar_lea.hbm %s25819_s16, 1024 }
  0xbd   : > { %p21379_p13 = scmp.ne.s32.totalorder %s25819_s16, %s21378_s21  ;;  %p21385_p3 = scmp.lt.u32.totalorder %s21378_s21, %s25819_s16 }
  0xbf   : > { %p21381_p0 = pnand %p21379_p13, %p22008_p8 }
  0xc1   : > { %p21382_p1 = pneg %p21381_p0 }
  0xc3   : > { %p21387_p2 = pnand %p21385_p3, %p21382_p1 }
  0xc5   : > { %21390 = shalt.err (!%p21387_p2)
}
  0xc6   : > { %s21391_s4 = scalar_lea.vmem %s738_s23, 1024  ;;  %p21399_p4 = scmp.lt.s32.totalorder %s738_s23, %s738_s23 }
  0xc7   : > { %p21392_p5 = scmp.ne.s32.totalorder %s738_s23, %s21391_s4  ;;  %p21400_p10 = scmp.lt.s32.totalorder %s21391_s4, %s21391_s4 }
  0xc9   : > { %p21394_p7 = pnand %p21392_p5, %p22008_p8  ;;  %p21401_p11 = por %p21400_p10, %p21399_p4 }
  0xcb   : > { %p21395_p9 = pneg %p21394_p7 }
  0xcd   : > { %p21402_p12 = pnand %p21401_p11, %p21395_p9 }
  0xcf   : > { %21405 = shalt.err (!%p21402_p12)
}
  0xd0   : > { %s25820_s0 = smov 128   ;;  %s15989_s24 = sadd.s32 4294967294, %s21790_s28  }
  0xd1   : > { %21077 = dma.hbm_to_vmem [thread:$0]  (!%p21992_p6), %s25819_s16, 1024, %s738_s23, [#allocation24], %s25820_s0, %s25820_s0, %s25590_s20  }
  0xd2   : > { %s22141_s1 = sadd.s32 1, %s21790_s28   ;;  %s57_s21 = sadd.s32 1, %s21786_s27 }
  0xd3   : > { %25821 = sst [smem:[#allocation42_spill]] %s22141_s1  ;;  %s54_s25 = ssub.s32 %s21790_s28, %s22141_s1 }
  0xd4   : > { %p55_p13 = scmp.eq.s32.totalorder %s54_s25, 0  ;;  %p64_p0 = scmp.ne.s32.totalorder %s21786_s27, %s21782_s26 }
  0xd5   : > { %p65_p1 = scmp.eq.s32.totalorder %s21790_s28, 0  ;;  %p70_p3 = scmp.ne.s32.totalorder %s21782_s26, %s21778_s5 }
  0xd6   : > { %s22152_s30 = scalar_select %p55_p13, %s21786_s27, %s57_s21  }
  0xd7   : > { %p66_p2 = por %p65_p1, %p64_p0  ;;  %p25823_p5 = scmp.eq.s32.totalorder %s21976_s29, 0 }
  0xd8   : > { %25822 = sst [smem:[#allocation43_spill]] %s22152_s30  ;;  %p592_p9 = scmp.eq.s32.totalorder %s21976_s29, 1 }
  0xd9   : > { %p22156_p7 = por %p25823_p5, %p70_p3  ;;  %p598_p4 = scmp.eq.s32.totalorder %s15989_s24, 1 }
  0xda   : > { %p21111_p10 = scmp.lt.s32.totalorder %s21790_s28, 2  ;;  %s22163_s23 = sand.u32 1, %s21786_s27  }
  0xdb   : > { %s25824_s2 = scalar_select %p22156_p7, 1, 0 }
  0xdc   : > { %p22165_p11 = por %p592_p9, %p64_p0  ;;  %p22169_p12 = por %p598_p4, %p70_p3 }
  0xdd   : > { %p22173_p13 = pnand %p21111_p10, %p66_p2  ;;  %s819_s18 = sand.u32 1, %s21790_s28  }
  0xde   : > { %s25825_s12 = scalar_select %p22165_p11, 1, 0 }
  0xdf   : > { %s25826_s8 = scalar_select %p22169_p12, 1, 0 }
  0xe0   : > { %s25828_s4 = scalar_select %p22173_p13, 1, 0 }
  0xe1   : > { %25827 = sst [smem:[#allocation44_spill]] %s25826_s8  ;;  %s16008_s22 = sshll.u32 %s22163_s23, 4 }
  0xe2   : > { %s16051_s24 = sshll.u32 %s21790_s28, 8  ;;  %s823_s25 = scalar_lea.vmem [#allocation5], %s16008_s22 }
  0xe3   : > { %s830_s21 = sshll.u32 %s823_s25, 4  ;;  %s25829_s9 = sld [smem:[#allocation99_spill]]  ;;  %s22185_s21 = int_to_ptr.vmem [resolvable:$true] %s830_s21 }
  0xe4   : > { %s22187_s14 = scalar_lea.sflag [#allocation6], %s819_s18  ;;  %p22193_p1 = pneg %p22173_p13 }
  0xe6   : > { %s25830_s19 = scalar_select %p22193_p1, 1, 0 }
  0xe9   : > { %s22183_s11 = scalar_lea.hbm %s25829_s9, %s16051_s24  ;;  %s21411_s22 = scalar_lea.hbm %s25829_s9, 512 }
  0xea   : > { %s21406_s16 = scalar_lea.hbm %s22183_s11, 256  ;;  %p21412_p5 = scmp.lt.u32.totalorder %s22183_s11, %s25829_s9 }
  0xeb   : > { %p21407_p0 = scmp.ne.s32.totalorder %s22183_s11, %s21406_s16  ;;  %p21413_p9 = scmp.lt.u32.totalorder %s21411_s22, %s21406_s16 }
  0xec   : > { %p21415_p10 = scmp.lt.u32.totalorder %s21406_s16, %s22183_s11 }
  0xed   : > { %p21409_p3 = pnand %p22193_p1, %p21407_p0  ;;  %p21414_p4 = por %p21413_p9, %p21412_p5 }
  0xef   : > { %p21410_p2 = pneg %p21409_p3  ;;  %p21416_p12 = por %p21415_p10, %p21414_p4 }
  0xf1   : > { %p21417_p11 = pnand %p21416_p12, %p21410_p2 }
  0xf3   : > { %21420 = shalt.err (!%p21417_p11)
}
  0xf4   : > { %s21421_s18 = scalar_lea.vmem %s22185_s21, 256  ;;  %s21800_s6 = smov [#allocation5]  }
  0xf5   : > { %p21422_p0 = scmp.ne.s32.totalorder %s22185_s21, %s21421_s18  ;;  %s21426_s20 = sshll.u32 %s21800_s6, 4  ;;  %s21427_s20 = int_to_ptr.vmem [resolvable:$false] %s21426_s20 }
  0xf6   : > { %s21428_s24 = scalar_lea.vmem %s21427_s20, 512  ;;  %p21429_p6 = scmp.lt.s32.totalorder %s22185_s21, %s21427_s20 }
  0xf7   : > { %p21424_p3 = pnand %p21422_p0, %p22193_p1  ;;  %p21430_p8 = scmp.lt.s32.totalorder %s21428_s24, %s21421_s18 }
  0xf9   : > { %p21425_p7 = pneg %p21424_p3  ;;  %p21431_p5 = por %p21430_p8, %p21429_p6 }
  0xfb   : > { %p21432_p9 = pnand %p21431_p5, %p21425_p7 }
  0xfd   : > { %21435 = shalt.err (!%p21432_p9)
}
  0xfe   : > { %s21801_s16 = smov 64   ;;  %s21802_s22 = smov 4  }
  0xff   : > { %21090 = dma.hbm_to_vmem [thread:$0]  (!%p22173_p13), %s22183_s11, 256, %s22185_s21, %s22187_s14, %s21801_s16, %s21801_s16, %s21802_s22  }
 0x100   : > { %s21803_s25 = smov [#allocation10]   ;;  %s21804_s30 = smov [#allocation13]  }
 0x101   : > { %s631_s9 = sshll.u32 %s21803_s25, 4  ;;  %s655_s6 = sshll.u32 %s21804_s30, 4  ;;  %s632_s9 = int_to_ptr.vmem [resolvable:$true] %s631_s9  ;;  %s22217_s6 = int_to_ptr.vmem [resolvable:$true] %s655_s6 }
 0x102   : > { %s25831_s24 = sld [smem:[#allocation102_spill]]  ;;  %p25832_p8 = scmp.ne.s32.totalorder %s25814_s7, 0 }
 0x108   : > { %s21436_s27 = scalar_lea.hbm %s25831_s24, 16 }
 0x109   : > { %p21437_p6 = scmp.ne.s32.totalorder %s25831_s24, %s21436_s27  ;;  %p21443_p12 = scmp.lt.u32.totalorder %s21436_s27, %s25831_s24 }
 0x10b   : > { %p21439_p7 = pnand %p21437_p6, %p25832_p8 }
 0x10d   : > { %p21440_p11 = pneg %p21439_p7 }
 0x10f   : > { %p21445_p2 = pnand %p21443_p12, %p21440_p11 }
 0x111   : > { %21448 = shalt.err (!%p21445_p2)
}
 0x112   : > { %s21449_s30 = scalar_lea.vmem %s632_s9, 16  ;;  %s21456_s21 = scalar_lea.vmem %s632_s9, 32 }
 0x113   : > { %p21450_p4 = scmp.ne.s32.totalorder %s632_s9, %s21449_s30  ;;  %p21457_p3 = scmp.lt.s32.totalorder %s632_s9, %s632_s9 }
 0x114   : > { %p21458_p5 = scmp.lt.s32.totalorder %s21456_s21, %s21449_s30 }
 0x115   : > { %p21452_p10 = pnand %p21450_p4, %p25832_p8 }
 0x116   : > { %p21459_p9 = por %p21458_p5, %p21457_p3 }
 0x117   : > { %p21453_p0 = pneg %p21452_p10 }
 0x119   : > { %p21460_p13 = pnand %p21459_p9, %p21453_p0 }
 0x11b   : > { %21463 = shalt.err (!%p21460_p13)
}
 0x11c   : > { %p25833_p6 = scmp.ne.s32.totalorder %s25812_s3, 0  ;;  %s25834_s16 = sld [smem:[#allocation104_spill]] }
 0x11e   : > { %21050 = dma.hbm_to_vmem [thread:$0]  (!%p25833_p6), %s25831_s24, 16, %s632_s9, [#allocation9]  }
 0x122   : > { %s21464_s22 = scalar_lea.hbm %s25834_s16, 16 }
 0x123   : > { %p21465_p7 = scmp.ne.s32.totalorder %s25834_s16, %s21464_s22  ;;  %p21471_p13 = scmp.lt.u32.totalorder %s21464_s22, %s25834_s16 }
 0x125   : > { %p21467_p11 = pnand %p21465_p7, %p25832_p8 }
 0x127   : > { %p21468_p12 = pneg %p21467_p11 }
 0x129   : > { %p21473_p2 = pnand %p21471_p13, %p21468_p12 }
 0x12b   : > { %21476 = shalt.err (!%p21473_p2)
}
 0x12c   : > { %s21477_s9 = scalar_lea.vmem %s22217_s6, 16  ;;  %s21484_s30 = scalar_lea.vmem %s22217_s6, 32 }
 0x12d   : > { %p21478_p4 = scmp.ne.s32.totalorder %s22217_s6, %s21477_s9  ;;  %p21485_p3 = scmp.lt.s32.totalorder %s22217_s6, %s22217_s6 }
 0x12e   : > { %p21486_p5 = scmp.lt.s32.totalorder %s21484_s30, %s21477_s9 }
 0x12f   : > { %p21480_p10 = pnand %p21478_p4, %p25832_p8 }
 0x130   : > { %p21487_p9 = por %p21486_p5, %p21485_p3 }
 0x131   : > { %p21481_p0 = pneg %p21480_p10 }
 0x133   : > { %p21488_p7 = pnand %p21487_p9, %p21481_p0 }
 0x135   : > { %21491 = shalt.err (!%p21488_p7)
}
 0x136   : > { %21056 = dma.hbm_to_vmem [thread:$0]  (!%p25833_p6), %s25834_s16, 16, %s22217_s6, [#allocation12]  }
 0x137   : > { %s21805_s8 = smov [#allocation16]   ;;  %s21806_s27 = smov [#allocation19]  }
 0x138   : > { %s680_s5 = sshll.u32 %s21805_s8, 4  ;;  %s705_s22 = sshll.u32 %s21806_s27, 4  ;;  %s681_s5 = int_to_ptr.vmem [resolvable:$true] %s680_s5  ;;  %s22261_s22 = int_to_ptr.vmem [resolvable:$true] %s705_s22 }
 0x139   : > { %s25835_s10 = sld [smem:[#allocation107_spill]] }
 0x13f   : > { %s21492_s20 = scalar_lea.hbm %s25835_s10, 16 }
 0x140   : > { %p21493_p11 = scmp.ne.s32.totalorder %s25835_s10, %s21492_s20  ;;  %p21499_p2 = scmp.lt.u32.totalorder %s21492_s20, %s25835_s10 }
 0x142   : > { %p21495_p12 = pnand %p21493_p11, %p25832_p8 }
 0x144   : > { %p21496_p13 = pneg %p21495_p12 }
 0x146   : > { %p21501_p4 = pnand %p21499_p2, %p21496_p13 }
 0x148   : > { %21504 = shalt.err (!%p21501_p4)
}
 0x149   : > { %s21505_s21 = scalar_lea.vmem %s681_s5, 16  ;;  %s21512_s1 = scalar_lea.vmem %s681_s5, 32 }
 0x14a   : > { %p21506_p10 = scmp.ne.s32.totalorder %s681_s5, %s21505_s21  ;;  %p21513_p5 = scmp.lt.s32.totalorder %s681_s5, %s681_s5 }
 0x14b   : > { %p21514_p9 = scmp.lt.s32.totalorder %s21512_s1, %s21505_s21 }
 0x14c   : > { %p21508_p0 = pnand %p21506_p10, %p25832_p8 }
 0x14d   : > { %p21515_p7 = por %p21514_p9, %p21513_p5 }
 0x14e   : > { %p21509_p3 = pneg %p21508_p0 }
 0x150   : > { %p21516_p1 = pnand %p21515_p7, %p21509_p3 }
 0x152   : > { %21519 = shalt.err (!%p21516_p1)
}
 0x153   : > { %21062 = dma.hbm_to_vmem [thread:$0]  (!%p25833_p6), %s25835_s10, 16, %s681_s5, [#allocation15]  }
 0x154   : > { %s21520_s20 = scalar_lea.hbm %s25561_s13, 16 }
 0x155   : > { %p21521_p11 = scmp.ne.s32.totalorder %s25561_s13, %s21520_s20  ;;  %p21527_p1 = scmp.lt.u32.totalorder %s21520_s20, %s25561_s13 }
 0x157   : > { %p21523_p12 = pnand %p21521_p11, %p25832_p8 }
 0x159   : > { %p21524_p13 = pneg %p21523_p12 }
 0x15b   : > { %p21529_p2 = pnand %p21527_p1, %p21524_p13 }
 0x15d   : > { %21532 = shalt.err (!%p21529_p2)
}
 0x15e   : > { %s21533_s5 = scalar_lea.vmem %s22261_s22, 16  ;;  %s21540_s21 = scalar_lea.vmem %s22261_s22, 32 }
 0x15f   : > { %p21534_p4 = scmp.ne.s32.totalorder %s22261_s22, %s21533_s5  ;;  %p21541_p3 = scmp.lt.s32.totalorder %s22261_s22, %s22261_s22 }
 0x160   : > { %p21542_p5 = scmp.lt.s32.totalorder %s21540_s21, %s21533_s5 }
 0x161   : > { %p21536_p10 = pnand %p21534_p4, %p25832_p8 }
 0x162   : > { %p21543_p9 = por %p21542_p5, %p21541_p3 }
 0x163   : > { %p21537_p0 = pneg %p21536_p10 }
 0x165   : > { %p21544_p7 = pnand %p21543_p9, %p21537_p0 }
 0x167   : > { %21547 = shalt.err (!%p21544_p7)
}
 0x168   : > { %21068 = dma.hbm_to_vmem [thread:$0]  (!%p25833_p6), %s25561_s13, 16, %s22261_s22, [#allocation18]  }
 0x169   : > { %s21807_s27 = smov [#allocation22]   ;;  %s21808_s18 = smov [#allocation25]  }
 0x16a   : > { %s727_s25 = sshll.u32 %s21807_s27, 4  ;;  %s751_s20 = sshll.u32 %s21808_s18, 4  ;;  %s728_s25 = int_to_ptr.vmem [resolvable:$true] %s727_s25  ;;  %s22305_s20 = int_to_ptr.vmem [resolvable:$true] %s751_s20 }
 0x16b   : > { %s21548_s30 = scalar_lea.hbm %s25563_s15, 16 }
 0x16c   : > { %p21549_p11 = scmp.ne.s32.totalorder %s25563_s15, %s21548_s30  ;;  %p21555_p1 = scmp.lt.u32.totalorder %s21548_s30, %s25563_s15 }
 0x16e   : > { %p21551_p12 = pnand %p21549_p11, %p25832_p8 }
 0x170   : > { %p21552_p13 = pneg %p21551_p12 }
 0x172   : > { %p21557_p2 = pnand %p21555_p1, %p21552_p13 }
 0x174   : > { %21560 = shalt.err (!%p21557_p2)
}
 0x175   : > { %s21561_s1 = scalar_lea.vmem %s728_s25, 16  ;;  %s21568_s8 = scalar_lea.vmem %s728_s25, 32 }
 0x176   : > { %p21562_p4 = scmp.ne.s32.totalorder %s728_s25, %s21561_s1  ;;  %p21569_p3 = scmp.lt.s32.totalorder %s728_s25, %s728_s25 }
 0x177   : > { %p21570_p5 = scmp.lt.s32.totalorder %s21568_s8, %s21561_s1 }
 0x178   : > { %p21564_p10 = pnand %p21562_p4, %p25832_p8 }
 0x179   : > { %p21571_p9 = por %p21570_p5, %p21569_p3 }
 0x17a   : > { %p21565_p0 = pneg %p21564_p10 }
 0x17c   : > { %p21572_p7 = pnand %p21571_p9, %p21565_p0 }
 0x17e   : > { %21575 = shalt.err (!%p21572_p7)
}
 0x17f   : > { %21074 = dma.hbm_to_vmem [thread:$0]  (!%p25833_p6), %s25563_s15, 16, %s728_s25, [#allocation21]  }
 0x180   : > { %s21576_s30 = scalar_lea.hbm %s25565_s17, 16 }
 0x181   : > { %p21577_p11 = scmp.ne.s32.totalorder %s25565_s17, %s21576_s30  ;;  %p21583_p1 = scmp.lt.u32.totalorder %s21576_s30, %s25565_s17 }
 0x183   : > { %p21579_p12 = pnand %p21577_p11, %p25832_p8 }
 0x185   : > { %p21580_p13 = pneg %p21579_p12 }
 0x187   : > { %p21585_p2 = pnand %p21583_p1, %p21580_p13 }
 0x189   : > { %21588 = shalt.err (!%p21585_p2)
}
 0x18a   : > { %s21589_s25 = scalar_lea.vmem %s22305_s20, 16  ;;  %s21596_s1 = scalar_lea.vmem %s22305_s20, 32 }
 0x18b   : > { %p21590_p4 = scmp.ne.s32.totalorder %s22305_s20, %s21589_s25  ;;  %p21597_p3 = scmp.lt.s32.totalorder %s22305_s20, %s22305_s20 }
 0x18c   : > { %p21598_p5 = scmp.lt.s32.totalorder %s21596_s1, %s21589_s25 }
 0x18d   : > { %p21592_p10 = pnand %p21590_p4, %p25832_p8 }
 0x18e   : > { %p21599_p9 = por %p21598_p5, %p21597_p3 }
 0x18f   : > { %p21593_p0 = pneg %p21592_p10 }
 0x191   : > { %p21600_p7 = pnand %p21599_p9, %p21593_p0 }
 0x193   : > { %21603 = shalt.err (!%p21600_p7)
}
 0x194   : > { %21080 = dma.hbm_to_vmem [thread:$0]  (!%p25833_p6), %s25565_s17, 16, %s22305_s20, [#allocation24]  }
 0x195   : > { %s21809_s18 = smov [#allocation26]   ;;  %s16005_s9 = sshll.u32 %s22163_s23, 8 }
 0x196   : > { %s773_s11 = sshll.u32 %s21809_s18, 4  ;;  %s25836_s5 = sld [smem:[#allocation116_spill]]  ;;  %s774_s11 = int_to_ptr.vmem [resolvable:$true] %s773_s11 }
 0x19c   : > { %s25837_s21 = smov %s25836_s5  ;;  %s21604_s22 = scalar_lea.hbm %s25836_s5, 1024 }
 0x19d   : > { %p21605_p11 = scmp.ne.s32.totalorder %s25837_s21, %s21604_s22  ;;  %p21611_p1 = scmp.lt.u32.totalorder %s21604_s22, %s25837_s21 }
 0x19f   : > { %p21607_p12 = pnand %p21605_p11, %p25832_p8 }
 0x1a1   : > { %p21608_p13 = pneg %p21607_p12 }
 0x1a3   : > { %p21613_p2 = pnand %p21611_p1, %p21608_p13 }
 0x1a5   : > { %21616 = shalt.err (!%p21613_p2)
}
 0x1a6   : > { %s21617_s20 = scalar_lea.vmem %s774_s11, 1024  ;;  %p21625_p3 = scmp.lt.s32.totalorder %s774_s11, %s774_s11 }
 0x1a7   : > { %p21618_p4 = scmp.ne.s32.totalorder %s774_s11, %s21617_s20  ;;  %p21626_p5 = scmp.lt.s32.totalorder %s21617_s20, %s21617_s20 }
 0x1a9   : > { %p21620_p10 = pnand %p21618_p4, %p25832_p8  ;;  %p21627_p9 = por %p21626_p5, %p21625_p3 }
 0x1ab   : > { %p21621_p0 = pneg %p21620_p10 }
 0x1ad   : > { %p21628_p7 = pnand %p21627_p9, %p21621_p0 }
 0x1af   : > { %21631 = shalt.err (!%p21628_p7)
}
 0x1b0   : > { %s25838_s27 = smov 8   ;;  %s16050_s7 = sshll.u32 %s21790_s28, 12 }
 0x1b1   : > { %21083 = dma.hbm_to_vmem [thread:$0]  (!%p25833_p6), %s25837_s21, 1024, %s774_s11, [#allocation27], %s25820_s0, %s25820_s0, %s25838_s27  }
 0x1b2   : > { %s794_s30 = scalar_lea.vmem [#allocation2], %s16005_s9  ;;  %s25839_s25 = sld [smem:[#allocation97_spill]] }
 0x1b3   : > { %s801_s6 = sshll.u32 %s794_s30, 4  ;;  %s791_s3 = scalar_lea.sflag [#allocation3], %s22163_s23  ;;  %s22377_s6 = int_to_ptr.vmem [resolvable:$true] %s801_s6 }
 0x1b4   : > { %p25840_p11 = scmp.ne.s32.totalorder %s25830_s19, 0 }
 0x1b8   : > { %s22375_s1 = scalar_lea.hbm %s25839_s25, %s16050_s7  ;;  %s21637_s20 = scalar_lea.hbm %s25839_s25, 8192 }
 0x1b9   : > { %s21632_s8 = scalar_lea.hbm %s22375_s1, 4096  ;;  %p21638_p13 = scmp.lt.u32.totalorder %s22375_s1, %s25839_s25 }
 0x1ba   : > { %p21633_p8 = scmp.ne.s32.totalorder %s22375_s1, %s21632_s8  ;;  %p21639_p1 = scmp.lt.u32.totalorder %s21637_s20, %s21632_s8 }
 0x1bb   : > { %p21641_p4 = scmp.lt.u32.totalorder %s21632_s8, %s22375_s1 }
 0x1bc   : > { %p21635_p12 = pnand %p21633_p8, %p25840_p11  ;;  %p21640_p2 = por %p21639_p1, %p21638_p13 }
 0x1be   : > { %p21636_p6 = pneg %p21635_p12  ;;  %p21642_p10 = por %p21641_p4, %p21640_p2 }
 0x1c0   : > { %p21643_p0 = pnand %p21642_p10, %p21636_p6 }
 0x1c2   : > { %21646 = shalt.err (!%p21643_p0)
}
 0x1c3   : > { %s21647_s7 = scalar_lea.vmem %s22377_s6, 4096  ;;  %s21810_s30 = smov [#allocation2]  }
 0x1c4   : > { %p21648_p3 = scmp.ne.s32.totalorder %s22377_s6, %s21647_s7  ;;  %s21652_s5 = sshll.u32 %s21810_s30, 4  ;;  %s21653_s5 = int_to_ptr.vmem [resolvable:$false] %s21652_s5 }
 0x1c5   : > { %s21654_s22 = scalar_lea.vmem %s21653_s5, 8192  ;;  %p21655_p7 = scmp.lt.s32.totalorder %s22377_s6, %s21653_s5 }
 0x1c6   : > { %p21650_p5 = pnand %p21648_p3, %p25840_p11  ;;  %p21656_p8 = scmp.lt.s32.totalorder %s21654_s22, %s21647_s7 }
 0x1c8   : > { %p21651_p9 = pneg %p21650_p5  ;;  %p21657_p12 = por %p21656_p8, %p21655_p7 }
 0x1ca   : > { %p21658_p13 = pnand %p21657_p12, %p21651_p9 }
 0x1cc   : > { %21661 = shalt.err (!%p21658_p13)
}
 0x1cd   : > { %p25841_p6 = scmp.ne.s32.totalorder %s25828_s4, 0  ;;  %s16011_s8 = sshll.u32 %s22163_s23, 3 }
 0x1ce   : > { %s16012_s11 = sshll.u32 %s21790_s28, 7  ;;  %s25842_s10 = sld [smem:[#allocation100_spill]] }
 0x1cf   : > { %21087 = dma.hbm_to_vmem [thread:$0]  (!%p25841_p6), %s22375_s1, 4096, %s22377_s6, %s791_s3, %s25820_s0, %s25820_s0, %s25838_s27  }
 0x1d0   : > { %s844_s7 = scalar_lea.vmem [#allocation7], %s16011_s8 }
 0x1d1   : > { %s851_s30 = sshll.u32 %s844_s7, 4  ;;  %s852_s30 = int_to_ptr.vmem [resolvable:$true] %s851_s30 }
 0x1d4   : > { %s22411_s18 = scalar_lea.hbm %s25842_s10, %s16012_s11  ;;  %s21667_s27 = scalar_lea.hbm %s25842_s10, 256 }
 0x1d5   : > { %s21662_s5 = scalar_lea.hbm %s22411_s18, 128  ;;  %p21668_p10 = scmp.lt.u32.totalorder %s22411_s18, %s25842_s10 }
 0x1d6   : > { %p21663_p1 = scmp.ne.s32.totalorder %s22411_s18, %s21662_s5  ;;  %p21669_p0 = scmp.lt.u32.totalorder %s21667_s27, %s21662_s5 }
 0x1d7   : > { %p21671_p5 = scmp.lt.u32.totalorder %s21662_s5, %s22411_s18 }
 0x1d8   : > { %p21665_p2 = pnand %p21663_p1, %p25840_p11  ;;  %p21670_p3 = por %p21669_p0, %p21668_p10 }
 0x1da   : > { %p21666_p4 = pneg %p21665_p2  ;;  %p21672_p9 = por %p21671_p5, %p21670_p3 }
 0x1dc   : > { %p21673_p7 = pnand %p21672_p9, %p21666_p4 }
 0x1de   : > { %21676 = shalt.err (!%p21673_p7)
}
 0x1df   : > { %s21677_s3 = scalar_lea.vmem %s852_s30, 128  ;;  %s21811_s22 = smov [#allocation7]  }
 0x1e0   : > { %p21678_p8 = scmp.ne.s32.totalorder %s852_s30, %s21677_s3  ;;  %s21682_s8 = sshll.u32 %s21811_s22, 4  ;;  %s21683_s8 = int_to_ptr.vmem [resolvable:$false] %s21682_s8 }
 0x1e1   : > { %s21684_s11 = scalar_lea.vmem %s21683_s8, 256  ;;  %p21685_p1 = scmp.lt.s32.totalorder %s852_s30, %s21683_s8 }
 0x1e2   : > { %p21680_p12 = pnand %p21678_p8, %p25840_p11  ;;  %p21686_p2 = scmp.lt.s32.totalorder %s21684_s11, %s21677_s3 }
 0x1e4   : > { %p21681_p13 = pneg %p21680_p12  ;;  %p21687_p6 = por %p21686_p2, %p21685_p1 }
 0x1e6   : > { %p21688_p0 = pnand %p21687_p6, %p21681_p13 }
 0x1e8   : > { %21691 = shalt.err (!%p21688_p0)
}
 0x1e9   : > { %p25843_p10 = scmp.ne.s32.totalorder %s25828_s4, 0  ;;  %s25844_s9 = sld [smem:[#allocation41_spill]] }
 0x1eb   : > { %21093 = dma.hbm_to_vmem [thread:$0]  (!%p25843_p10), %s22411_s18, 128, %s852_s30, %s22187_s14  }
 0x1ef   : > { %p25845_p4 = scmp.ne.s32.totalorder %s25844_s9, 0 }
 0x1f1   : > { %860 = sbr.rel (%p25845_p4) target bundleno = 7848 (0x1ea8), region = 116 }
 0x1f8   : > { %s22434_s19 = sand.u32 1, %s21782_s26   ;;  %p25846_p11 = scmp.ne.s32.totalorder %s25824_s2, 0 }
 0x1f9   : > { %s16014_s20 = sshll.u32 %s22434_s19, 8  ;;  %s863_s7 = scalar_lea.sflag [#allocation3], %s22434_s19 }
 0x1fa   : > { %s22438_s5 = scalar_lea.vmem [#allocation2], %s16014_s20 }
 0x1fb   : > { %21737 = dma.done.wait (%p25846_p11), %s863_s7, 4096  }
 0x1fc   : > { %21739 = vsyncadd (%p25846_p11), %s863_s7, 4294963200  ;;  %s871_s14 = sand.u32 1, %s21976_s29   ;;  %s16015_s4 = sshll.u32 %s22434_s19, 4 }
 0x1fd   : > { %s872_s18 = scalar_lea.sflag [#allocation6], %s871_s14  ;;  %s22446_s30 = scalar_lea.vmem [#allocation5], %s16015_s4 }
 0x1fe   : > { %21741 = dma.done.wait (%p25846_p11), %s872_s18, 384  }
 0x1ff   : > { %21743 = vsyncadd (%p25846_p11), %s872_s18, 4294966912  ;;  %s16016_s0 = sshll.u32 %s22434_s19, 3  ;;  %p25847_p6 = scmp.eq.s32.totalorder %s21976_s29, 0 }
 0x200   : > { %s22455_s23 = scalar_lea.vmem [#allocation7], %s16016_s0 }
 0x201   : > { %21745 = dma.done.wait (%p25847_p6), [#allocation9], 272   ;;  %p25848_p3 = pmov %p25847_p6 }
 0x203   : > { %21747 = vsyncadd (%p25848_p3), [#allocation9], 4294967024  ;;  %p25849_p5 = pmov %p25848_p3 }
 0x204   : > { %p25850_p9 = pmov %p25848_p3 }
 0x205   : > { %21749 = dma.done.wait (%p25849_p5), [#allocation12], 528  }
 0x206   : > { %21751 = vsyncadd (%p25850_p9), [#allocation12], 4294966768  ;;  %p25851_p7 = pmov %p25848_p3 }
 0x207   : > { %p25852_p8 = pmov %p25848_p3 }
 0x208   : > { %21753 = dma.done.wait (%p25851_p7), [#allocation15], 32  }
 0x209   : > { %21755 = vsyncadd (%p25852_p8), [#allocation15], 4294967264  ;;  %p25853_p12 = pmov %p25848_p3 }
 0x20a   : > { %p25854_p13 = pmov %p25848_p3 }
 0x20b   : > { %21757 = dma.done.wait (%p25853_p12), [#allocation18], 32  }
 0x20c   : > { %21759 = vsyncadd (%p25854_p13), [#allocation18], 4294967264  ;;  %p25855_p1 = pmov %p25848_p3 }
 0x20e   : > { %21761 = dma.done.wait (%p25855_p1), [#allocation21], 32   ;;  %p25856_p2 = pmov %p25855_p1 }
 0x20f   : > { %p25857_p0 = pmov %p25855_p1 }
 0x210   : > { %21763 = vsyncadd (%p25856_p2), [#allocation21], 4294967264 }
 0x211   : > { %21765 = dma.done.wait (%p25857_p0), [#allocation24], 1040   ;;  %p25858_p10 = pmov %p25857_p0 }
 0x212   : > { %p25859_p4 = pmov %p25857_p0 }
 0x213   : > { %21767 = vsyncadd (%p25858_p10), [#allocation24], 4294966256 }
 0x214   : > { %21769 = dma.done.wait (%p25859_p4), [#allocation27], 1024   ;;  %p25860_p11 = pmov %p25857_p0 }
 0x215   : > { %vm25763_vm0 = vcmask 130048   ;;  %v1053_v0 = vld [vmem:[#allocation8] sm:$0xff]  ;;  %v1054_v1 = vld [vmem:[#allocation8 + $0x8] sm:$0xff]  ;;  %v1021_v2 = vld [vmem:[%s22438_s5] sm:$0xff]  ;;  %p1016_p6 = scmp.lt.s32.totalorder %s21976_s29, 1  ;;  %vm25762_vm1 = vcmask 261120  }
 0x216   : > { %21771 = vsyncadd (%p25860_p11), [#allocation27], 4294966272  ;;  %v1160_v3 = vand.u32 4294901760, %v1053_v0  ;;  %v1163_v4 = vand.u32 4294901760, %v1054_v1  ;;  %v1064_v5 = vsel %vm25763_vm0, %v1021_v2, 0  ;;  %v1022_v6 = vld [vmem:[%s22438_s5 + $0x8] sm:$0xff] }
 0x217   : > { %v1023_v7 = vld [vmem:[%s22438_s5 + $0x10] sm:$0xff]  ;;  %v1024_v8 = vld [vmem:[%s22438_s5 + $0x18] sm:$0xff]  ;;  %v22490_v9 = vand.u32 4294901760, %v1064_v5  ;;  %v1067_v10 = vsel %vm25763_vm0, %v1022_v6, 0  ;;  %v1025_v13 = vld [vmem:[%s22438_s5 + $0x20] sm:$0xff]  ;;  %s22665_s2 = scalar_select %p1016_p6, %s21976_s29, 1 }
 0x218   : > { %v1070_v11 = vsel %vm25763_vm0, %v1023_v7, 0  ;;  %v1073_v12 = vsel %vm25763_vm0, %v1024_v8, 0  ;;  %v22496_v14 = vpack.c.bf16 %v1163_v4, %v1160_v3  ;;  %v22498_v15 = vand.u32 4294901760, %v1067_v10  ;;  %v1026_v18 = vld [vmem:[%s22438_s5 + $0x28] sm:$0xff]  ;;  %v1027_v39 = vld [vmem:[%s22438_s5 + $0x30] sm:$0xff]  ;;  %v1028_v48 = vld [vmem:[%s22438_s5 + $0x38] sm:$0xff] }
 0x219   : > { %v22500_v16 = vsub.f32 %v1053_v0, %v1160_v3  ;;  %v22502_v17 = vsub.f32 %v1054_v1, %v1163_v4  ;;  %v22506_v19 = vsub.f32 %v1064_v5, %v22490_v9  ;;  %v22508_v20 = vand.u32 4294901760, %v1070_v11  ;;  %v1029_v49 = vld [vmem:[%s22438_s5 + $0x40] sm:$0xff]  ;;  %v1030_v50 = vld [vmem:[%s22438_s5 + $0x48] sm:$0xff]  ;;  %v1031_v55 = vld [vmem:[%s22438_s5 + $0x50] sm:$0xff]  ;;  %s16052_s27 = sshll.u32 %s22665_s2, 6  ;;  %s25890_s3 = sld [smem:[#allocation98_spill]] }
 0x21a   : > { %v22510_v21 = vand.u32 4294901760, %v1073_v12  ;;  %v1076_v22 = vsel %vm25763_vm0, %v1025_v13, 0  ;;  %19360 = vmatprep.subr.bf16.mxu0 %v22496_v14  ;;  %v22515_v23 = vsub.f32 %v1067_v10, %v22498_v15  ;;  %20511 = vmatprep.subr.bf16.mxu1 %v22496_v14  ;;  %v1079_v30 = vsel %vm25763_vm0, %v1026_v18, 0  ;;  %v1032_v60 = vld [vmem:[%s22438_s5 + $0x58] sm:$0xff]  ;;  %v1033_v61 = vld [vmem:[%s22438_s5 + $0x60] sm:$0xff]  ;;  %s25935_s9 = sld [smem:[#allocation105_spill]] }
 0x21b   : > { %25861 = vst [vmem:[#allocation45_spill] sm:$0xff] %v22506_v19  ;;  %v25626_v24 = vand.u32 4294901760, %v22500_v16  ;;  %v25625_v25 = vand.u32 4294901760, %v22502_v17  ;;  %v22519_v26 = vand.u32 4294901760, %v1076_v22  ;;  %19362 = vmatpush3.bf16.msra.mxu0 %v22496_v14  ;;  %v25624_v27 = vand.u32 4294901760, %v22506_v19  ;;  %20512 = vmatpush3.bf16.msra.mxu1 %v22496_v14  ;;  %s26049_s7 = sld [smem:[#allocation109_spill]] }
 0x21c   : > { %25862 = vst [vmem:[#allocation46_spill] sm:$0xff] %v22515_v23  ;;  %v22525_v28 = vsub.f32 %v1070_v11, %v22508_v20  ;;  %v22528_v29 = vsub.f32 %v1073_v12, %v22510_v21  ;;  %v25622_v31 = vand.u32 4294901760, %v22515_v23  ;;  %v22547_v38 = vand.u32 4294901760, %v1079_v30  ;;  %v1034_v11 = vld [vmem:[%s22438_s5 + $0x68] sm:$0xff]  ;;  %s26080_s6 = sld [smem:[#allocation113_spill]]  ;;  %s21815_s14 = smov 120  }
 0x21d   : > { %v1550_v32 = vsub.f32 %v22500_v16, %v25626_v24  ;;  %v1557_v33 = vsub.f32 %v22502_v17, %v25625_v25  ;;  %v22540_v34 = vsub.f32 %v1076_v22, %v22519_v26  ;;  %v1229_v35 = vsub.f32 %v22506_v19, %v25624_v27  ;;  %v1038_v27 = vld [vmem:[%s22438_s5 + $0x88] sm:$0xff]  ;;  %s21816_s4 = smov 112   ;;  %s21817_s18 = smov 104  }
 0x21e   : > { %25863 = vst [vmem:[#allocation47_spill] sm:$0xff] %v22525_v28  ;;  %25864 = vst [vmem:[#allocation48_spill] sm:$0xff] %v22528_v29  ;;  %v25621_v36 = vand.u32 4294901760, %v22525_v28  ;;  %v25620_v37 = vand.u32 4294901760, %v22528_v29  ;;  %v1239_v40 = vsub.f32 %v22515_v23, %v25622_v31  ;;  %v22561_v47 = vsub.f32 %v1079_v30, %v22547_v38  ;;  %v22721_v31 = vld [vmem:[#allocation11 + $0x18] sm:$0xff]  ;;  %s21819_s2 = smov 88  }
 0x21f   : > { %25865 = vst [vmem:[#allocation49_spill] sm:$0xff] %v22540_v34  ;;  %v1551_v41 = vand.u32 4294901760, %v1550_v32  ;;  %v1558_v42 = vand.u32 4294901760, %v1557_v33  ;;  %v25619_v43 = vand.u32 4294901760, %v22540_v34  ;;  %v1230_v44 = vand.u32 4294901760, %v1229_v35  ;;  %s22726_s22 = scalar_lea.vmem %s25890_s3, %s16052_s27  ;;  %s21820_s27 = smov 80  }
 0x220   : > { %v1249_v45 = vsub.f32 %v22525_v28, %v25621_v36  ;;  %v1259_v46 = vsub.f32 %v22528_v29, %v25620_v37  ;;  %25866 = vst [vmem:[#allocation50_spill] sm:$0xff] %v22561_v47  ;;  %v1240_v51 = vand.u32 4294901760, %v1239_v40  ;;  %v1082_v54 = vsel %vm25763_vm0, %v1027_v39, 0  ;;  %s21822_s1 = smov 8   ;;  %s21823_s3 = smov 24  }
 0x221   : > { %v19363_v52 = vpack.c.bf16 %v1558_v42, %v1551_v41  ;;  %v1269_v53 = vsub.f32 %v22540_v34, %v25619_v43  ;;  %17173 = vmatprep.mubr.f32.mxu0 %v1230_v44  ;;  %v25618_v58 = vand.u32 4294901760, %v22561_v47  ;;  %v22572_v59 = vand.u32 4294901760, %v1082_v54  ;;  %v22700_v43 = vld [vmem:[#allocation11 + $0x10] sm:$0xff]  ;;  %s21824_s8 = smov 40   ;;  %s21825_s11 = smov 16  }
 0x222   : > { %v1250_v56 = vand.u32 4294901760, %v1249_v45  ;;  %v1260_v57 = vand.u32 4294901760, %v1259_v46  ;;  %17174 = vmatmul.mubr.f32.vlgmr.msra.gmra.mrb[0].mxu0 %v1240_v51  ;;  %v1085_v63 = vsel %vm25763_vm0, %v1028_v48, 0  ;;  %v1088_v0 = vsel %vm25763_vm0, %v1029_v49, 0  ;;  %v1049_v49 = vld [vmem:[%s22438_s5 + $0xe0] sm:$0xff]  ;;  %s21826_s20 = smov 32  }
 0x223   : > { %19364 = vmatprep.subr.bf16.mxu0 %v19363_v52  ;;  %v1270_v62 = vand.u32 4294901760, %v1269_v53  ;;  %v1091_v1 = vsel %vm25763_vm0, %v1030_v50, 0  ;;  %v1279_v2 = vsub.f32 %v22561_v47, %v25618_v58  ;;  %v22583_v3 = vsub.f32 %v1082_v54, %v22572_v59  ;;  %v1035_v54 = vld [vmem:[%s22438_s5 + $0x70] sm:$0xff]  ;;  %v1052_v58 = vld [vmem:[%s22438_s5 + $0xf8] sm:$0xff]  ;;  %p26087_p5 = scmp.ne.s32.totalorder %s25825_s12, 0 }
 0x224   : > { %19366 = vmatpush3.bf16.msra.mxu0 %v19363_v52  ;;  %17176 = vmatprep.mubr.f32.mxu0 %v1250_v56  ;;  %v22585_v4 = vand.u32 4294901760, %v1085_v63  ;;  %v22587_v5 = vand.u32 4294901760, %v1088_v0  ;;  %v22589_v6 = vand.u32 4294901760, %v1091_v1  ;;  %v1094_v7 = vsel %vm25763_vm0, %v1031_v55, 0  ;;  %v1043_v47 = vld [vmem:[%s22438_s5 + $0xb0] sm:$0xff] }
 0x225   : > { %25867 = vst [vmem:[#allocation51_spill] sm:$0xff] %v22583_v3  ;;  %v1097_v8 = vsel %vm25763_vm0, %v1032_v60, 0  ;;  %v1100_v10 = vsel %vm25763_vm0, %v1033_v61, 0  ;;  %v1280_v12 = vand.u32 4294901760, %v1279_v2  ;;  %v25617_v13 = vand.u32 4294901760, %v22583_v3  ;;  %v1050_v61 = vld [vmem:[%s22438_s5 + $0xe8] sm:$0xff] }
 0x226   : > { %25868 = vst [vmem:[#allocation52_spill] sm:$0xff] %v22589_v6  ;;  %v22597_v18 = vsub.f32 %v1085_v63, %v22585_v4  ;;  %v22600_v22 = vsub.f32 %v1088_v0, %v22587_v5  ;;  %17177 = vmatmul.mubr.f32.gmra.mrb[2].mxu0 %v1260_v57  ;;  %v22603_v30 = vsub.f32 %v1091_v1, %v22589_v6  ;;  %v22605_v32 = vand.u32 4294901760, %v1094_v7 }
 0x227   : > { %v22607_v33 = vand.u32 4294901760, %v1097_v8  ;;  %v22609_v35 = vand.u32 4294901760, %v1100_v10  ;;  %17179 = vmatprep.mubr.f32.mxu0 %v1270_v62  ;;  %v1289_v39 = vsub.f32 %v22583_v3, %v25617_v13  ;;  %v1103_v42 = vsel %vm25763_vm0, %v1034_v11, 0  ;;  %v22658_v11 = vld [vmem:[#allocation11] sm:$0xff] }
 0x228   : > { %25869 = vst [vmem:[#allocation53_spill] sm:$0xff] %v22597_v18  ;;  %25870 = vst [vmem:[#allocation54_spill] sm:$0xff] %v22600_v22  ;;  %v25615_v40 = vand.u32 4294901760, %v22597_v18  ;;  %v25614_v41 = vand.u32 4294901760, %v22600_v22  ;;  %v25613_v44 = vand.u32 4294901760, %v22603_v30  ;;  %v22620_v45 = vsub.f32 %v1094_v7, %v22605_v32 }
 0x229   : > { %25871 = vst [vmem:[#allocation55_spill] sm:$0xff] %v22603_v30  ;;  %25872 = vst [vmem:[#allocation56_spill] sm:$0xff] %v22605_v32  ;;  %v22623_v46 = vsub.f32 %v1097_v8, %v22607_v33  ;;  %v22626_v48 = vsub.f32 %v1100_v10, %v22609_v35  ;;  %v1290_v50 = vand.u32 4294901760, %v1289_v39  ;;  %v22635_v53 = vand.u32 4294901760, %v1103_v42 }
 0x22a   : > { %25873 = vst [vmem:[#allocation57_spill] sm:$0xff] %v22607_v33  ;;  %25874 = vst [vmem:[#allocation58_spill] sm:$0xff] %v22609_v35  ;;  %v1299_v51 = vsub.f32 %v22597_v18, %v25615_v40  ;;  %v1309_v52 = vsub.f32 %v22600_v22, %v25614_v41  ;;  %17180 = vmatmul.mubr.f32.gmra.mrb[4].mxu0 %v1280_v12  ;;  %v1319_v55 = vsub.f32 %v22603_v30, %v25613_v44  ;;  %v22660_v12 = vld [vmem:[#allocation11 + $0x8] sm:$0xff]  ;;  %v1037_v41 = vld [vmem:[%s22438_s5 + $0x80] sm:$0xff]  ;;  %vm4112_vm2 = vcmask 523264  }
 0x22b   : > { %25875 = vst [vmem:[#allocation59_spill] sm:$0xff] %v22620_v45  ;;  %25876 = vst [vmem:[#allocation60_spill] sm:$0xff] %v22623_v46  ;;  %v25612_v56 = vand.u32 4294901760, %v22620_v45  ;;  %v25611_v57 = vand.u32 4294901760, %v22623_v46  ;;  %v25610_v60 = vand.u32 4294901760, %v22626_v48  ;;  %17182 = vmatprep.mubr.f32.mxu0 %v1290_v50  ;;  %v22646_v0 = vsub.f32 %v1103_v42, %v22635_v53 }
 0x22c   : > { %25877 = vst [vmem:[#allocation61_spill] sm:$0xff] %v22626_v48  ;;  %25878 = vst [vmem:[#allocation62_spill] sm:$0xff] %v22635_v53  ;;  %v1300_v62 = vand.u32 4294901760, %v1299_v51  ;;  %v1310_v63 = vand.u32 4294901760, %v1309_v52  ;;  %v1148_v1 = vsel %vm25763_vm0, %v1049_v49, 0  ;;  %v1320_v2 = vand.u32 4294901760, %v1319_v55 }
 0x22d   : > { %25879 = vst [vmem:[#allocation63_spill] sm:$0xff] %v22646_v0  ;;  %v1329_v7 = vsub.f32 %v22620_v45, %v25612_v56  ;;  %v1339_v8 = vsub.f32 %v22623_v46, %v25611_v57  ;;  %v1349_v10 = vsub.f32 %v22626_v48, %v25610_v60  ;;  %v25616_v39 = vand.u32 4294901760, %v22646_v0  ;;  %v1036_v51 = vld [vmem:[%s22438_s5 + $0x78] sm:$0xff]  ;;  %v1051_v52 = vld [vmem:[%s22438_s5 + $0xf0] sm:$0xff]  ;;  %v1042_v45 = vld [vmem:[%s22438_s5 + $0xa8] sm:$0xff] }
 0x22e   : > { %v22668_v42 = vand.u32 4294901760, %v1148_v1  ;;  %v1106_v49 = vsel %vm25763_vm0, %v1035_v54, 0  ;;  %v1151_v50 = vsel %vm25763_vm0, %v1050_v61, 0  ;;  %17183 = vmatmul.mubr.f32.gmra.mrb[6].mxu0 %v1300_v62  ;;  %v25629_v62 = vand.u32 4294901760, %v22658_v11 }
 0x22f   : > { %v1330_v55 = vand.u32 4294901760, %v1329_v7  ;;  %v1340_v60 = vand.u32 4294901760, %v1339_v8  ;;  %v1350_v57 = vand.u32 4294901760, %v1349_v10  ;;  %v22674_v56 = vand.u32 4294901760, %v1106_v49  ;;  %17185 = vmatprep.mubr.f32.mxu0 %v1310_v63 }
 0x230   : > { %25880 = vst [vmem:[#allocation64_spill] sm:$0xff] %v22668_v42  ;;  %v1359_v44 = vsub.f32 %v22646_v0, %v25616_v39  ;;  %v22680_v54 = vsub.f32 %v1148_v1, %v22668_v42  ;;  %v22682_v61 = vand.u32 4294901760, %v1151_v50  ;;  %v25627_v8 = vand.u32 4294901760, %v22660_v12 }
 0x231   : > { %25881 = vst [vmem:[#allocation65_spill] sm:$0xff] %v22674_v56  ;;  %v22687_v7 = vsub.f32 %v1106_v49, %v22674_v56  ;;  %v1109_v10 = vsel %vm25763_vm0, %v1036_v51, 0  ;;  %v1154_v63 = vsel %vm25763_vm0, %v1051_v52, 0  ;;  %v1127_v3 = vsel %vm25763_vm0, %v1042_v45, 0 }
 0x232   : > { %25882 = vst [vmem:[#allocation66_spill] sm:$0xff] %v22680_v54  ;;  %25883 = vst [vmem:[#allocation67_spill] sm:$0xff] %v22682_v61  ;;  %v1360_v40 = vand.u32 4294901760, %v1359_v44  ;;  %v25623_v39 = vand.u32 4294901760, %v22680_v54  ;;  %v22695_v1 = vsub.f32 %v1151_v50, %v22682_v61  ;;  %v22697_v13 = vand.u32 4294901760, %v1109_v10  ;;  %17186 = vmatmul.mubr.f32.gmra.mrb[8].mxu0 %v1320_v2 }
 0x233   : > { %25884 = vst [vmem:[#allocation68_spill] sm:$0xff] %v22687_v7  ;;  %v25628_v49 = vand.u32 4294901760, %v22687_v7  ;;  %v22707_v51 = vpack.c.bf16 %v25627_v8, %v25629_v62  ;;  %v22709_v44 = vand.u32 4294901760, %v1154_v63  ;;  %v1112_v50 = vsel %vm25763_vm0, %v1037_v41, 0  ;;  %17188 = vmatprep.mubr.f32.mxu0 %v1330_v55 }
 0x234   : > { %25885 = vst [vmem:[#allocation69_spill] sm:$0xff] %v22695_v1  ;;  %25886 = vst [vmem:[#allocation70_spill] sm:$0xff] %v22697_v13  ;;  %v1509_v52 = vsub.f32 %v22680_v54, %v25623_v39  ;;  %v25632_v2 = vand.u32 4294901760, %v22695_v1  ;;  %v22717_v37 = vsub.f32 %v1109_v10, %v22697_v13  ;;  %v22719_v36 = vand.u32 4294901760, %v1112_v50  ;;  %v1039_v54 = vld [vmem:[%s22438_s5 + $0x90] sm:$0xff] }
 0x235   : > { %25887 = vst [vmem:[#allocation71_spill] sm:$0xff] %v22709_v44  ;;  %v1369_v41 = vsub.f32 %v22687_v7, %v25628_v49  ;;  %19384 = vmatprep.subr.bf16.mxu1 %v22707_v51  ;;  %v22733_v55 = vsub.f32 %v1154_v63, %v22709_v44  ;;  %v1157_v10 = vsel %vm25763_vm0, %v1052_v58, 0  ;;  %v25895_v39 = vand.u32 4294901760, %v22700_v43 }
 0x236   : > { %25888 = vst [vmem:[#allocation72_spill] sm:$0xff] %v22717_v37  ;;  %25889 = vst [vmem:[#allocation73_spill] sm:$0xff] %v22719_v36  ;;  %v1510_v25 = vand.u32 4294901760, %v1509_v52  ;;  %v1519_v24 = vsub.f32 %v22695_v1, %v25632_v2  ;;  %v25637_v8 = vand.u32 4294901760, %v22717_v37  ;;  %v22743_v49 = vsub.f32 %v1112_v50, %v22719_v36  ;;  %17189 = vmatmul.mubr.f32.gmra.mrb[10].mxu0 %v1340_v60  ;;  %v3148_v52 = vld [vmem:[%s22726_s22] sm:$0xff]  ;;  %v1040_v60 = vld [vmem:[%s22438_s5 + $0x98] sm:$0xff] }
 0x237   : > { %25891 = vst [vmem:[#allocation74_spill] sm:$0xff] %v22733_v55  ;;  %v1370_v62 = vand.u32 4294901760, %v1369_v41  ;;  %v25640_v63 = vand.u32 4294901760, %v22733_v55  ;;  %v22746_v58 = vand.u32 4294901760, %v1157_v10  ;;  %17191 = vmatprep.mubr.f32.mxu0 %v1350_v57  ;;  %v1115_v41 = vsel %vm25763_vm0, %v1038_v27, 0 }
 0x238   : > { %25892 = vst [vmem:[#allocation75_spill] sm:$0xff] %v22743_v49  ;;  %17215 = vmatprep.mubr.f32.mxu1 %v1510_v25  ;;  %v1520_v2 = vand.u32 4294901760, %v1519_v24  ;;  %v1379_v50 = vsub.f32 %v22717_v37, %v25637_v8  ;;  %v25896_v25 = vand.u32 4294901760, %v22721_v31  ;;  %v22768_v57 = vand.u32 4294901760, %v1115_v41  ;;  %v3149_v8 = vld [vmem:[%s22726_s22 + $0x8] sm:$0xff] }
 0x239   : > { %25893 = vst [vmem:[#allocation76_spill] sm:$0xff] %v22746_v58  ;;  %v1529_v1 = vsub.f32 %v22733_v55, %v25640_v63  ;;  %v22760_v7 = vsub.f32 %v1157_v10, %v22746_v58  ;;  %v25898_v37 = vand.u32 4294901760, %v22743_v49  ;;  %v3169_v10 = vsel %vm25762_vm1, %v3148_v52, 0 }
 0x23a   : > { %v22766_v24 = vpack.c.bf16 %v25896_v25, %v25895_v39  ;;  %25897 = vst [vmem:[#allocation78_spill] sm:$0xff] %v22768_v57  ;;  %17216 = vmatmul.mubr.f32.vlgmr.msra.gmra.mrb[0].mxu1 %v1520_v2  ;;  %v1380_v27 = vand.u32 4294901760, %v1379_v50  ;;  %v1118_v55 = vsel %vm25763_vm0, %v1039_v54, 0  ;;  %17192 = vmatmul.mubr.f32.gmra.mrb[12].mxu0 %v1360_v40  ;;  %v22780_v0 = vsub.f32 %v1115_v41, %v22768_v57  ;;  %v3150_v2 = vld [vmem:[%s22726_s22 + $0x10] sm:$0xff]  ;;  %v1041_v50 = vld [vmem:[%s22438_s5 + $0xa0] sm:$0xff] }
 0x23b   : > { %25894 = vst [vmem:[#allocation77_spill] sm:$0xff] %v22760_v7  ;;  %v1389_v63 = vsub.f32 %v22743_v49, %v25898_v37  ;;  %19386 = vmatpush3.bf16.msra.mxu1 %v22707_v51  ;;  %v1530_v39 = vand.u32 4294901760, %v1529_v1  ;;  %v25651_v25 = vand.u32 4294901760, %v22760_v7  ;;  %v22782_v48 = vand.u32 4294901760, %v3169_v10  ;;  %17194 = vmatprep.mubr.f32.mxu0 %v1370_v62 }
 0x23c   : > { %25899 = vst [vmem:[#allocation79_spill] sm:$0xff] %v22780_v0  ;;  %19388 = vmatprep.subr.bf16.mxu1 %v22766_v24  ;;  %v22787_v52 = vand.u32 4294901760, %v1118_v55  ;;  %v3172_v40 = vsel %vm25762_vm1, %v3149_v8, 0  ;;  %v1121_v54 = vsel %vm25763_vm0, %v1040_v60, 0  ;;  %v25656_v41 = vand.u32 4294901760, %v22780_v0 }
 0x23d   : > { %v1390_v37 = vand.u32 4294901760, %v1389_v63  ;;  %17218 = vmatprep.mubr.f32.mxu1 %v1530_v39  ;;  %v1539_v1 = vsub.f32 %v22760_v7, %v25651_v25  ;;  %v22796_v49 = vsub.f32 %v3169_v10, %v22782_v48  ;;  %v22798_v62 = vand.u32 4294901760, %v3172_v40  ;;  %v3151_v39 = vld [vmem:[%s22726_s22 + $0x18] sm:$0xff] }
 0x23e   : > { %25900 = vst [vmem:[#allocation80_spill] sm:$0xff] %v22787_v52  ;;  %v22801_v63 = vsub.f32 %v1118_v55, %v22787_v52  ;;  %v22803_v46 = vand.u32 4294901760, %v1121_v54  ;;  %v3175_v8 = vsel %vm25762_vm1, %v3150_v2, 0  ;;  %v1124_v60 = vsel %vm25763_vm0, %v1041_v50, 0  ;;  %17195 = vmatmul.mubr.f32.gmra.mrb[14].mxu0 %v1380_v27 }
 0x23f   : > { %v1540_v25 = vand.u32 4294901760, %v1539_v1  ;;  %v1399_v10 = vsub.f32 %v22780_v0, %v25656_v41  ;;  %19390 = vmatpush3.bf16.msra.mxu1 %v22766_v24  ;;  %v25663_v7 = vand.u32 4294901760, %v22796_v49  ;;  %v22814_v55 = vsub.f32 %v3172_v40, %v22798_v62  ;;  %17197 = vmatprep.mubr.f32.mxu0 %v1390_v37 }
 0x240   : > { %25901 = vst [vmem:[#allocation81_spill] sm:$0xff] %v22801_v63  ;;  %25902 = vst [vmem:[#allocation82_spill] sm:$0xff] %v22803_v46  ;;  %v25668_v2 = vand.u32 4294901760, %v22801_v63  ;;  %v22818_v50 = vsub.f32 %v1121_v54, %v22803_v46  ;;  %v22820_v27 = vand.u32 4294901760, %v3175_v8  ;;  %v22822_v1 = vand.u32 4294901760, %v1124_v60 }
 0x241   : > { %17219 = vmatmul.mubr.f32.gmra.mrb[2].mxu1 %v1540_v25  ;;  %v1400_v41 = vand.u32 4294901760, %v1399_v10  ;;  %v3264_v0 = vsub.f32 %v22796_v49, %v25663_v7  ;;  %v25673_v40 = vand.u32 4294901760, %v22814_v55  ;;  %v3178_v37 = vsel %vm25762_vm1, %v3151_v39, 0  ;;  %v3152_v10 = vld [vmem:[%s22726_s22 + $0x20] sm:$0xff] }
 0x242   : > { %25903 = vst [vmem:[#allocation83_spill] sm:$0xff] %v22818_v50  ;;  %25904 = vst [vmem:[#allocation84_spill] sm:$0xff] %v22822_v1  ;;  %v1409_v54 = vsub.f32 %v22801_v63, %v25668_v2  ;;  %v25676_v30 = vand.u32 4294901760, %v22818_v50  ;;  %v22835_v22 = vsub.f32 %v3175_v8, %v22820_v27  ;;  %v22838_v25 = vsub.f32 %v1124_v60, %v22822_v1 }
 0x243   : > { %17198 = vmatmul.mubr.f32.gmra.mrb[16].mxu0 %v1400_v41  ;;  %v3265_v7 = vand.u32 4294901760, %v3264_v0  ;;  %v3274_v39 = vsub.f32 %v22814_v55, %v25673_v40  ;;  %v22844_v18 = vand.u32 4294901760, %v3178_v37  ;;  %v3153_v41 = vld [vmem:[%s22726_s22 + $0x28] sm:$0xff]  ;;  %v22857_v34 = vand.u32 4294901760, %v1127_v3 }
 0x244   : > { %25905 = vst [vmem:[#allocation85_spill] sm:$0xff] %v22838_v25  ;;  %v1410_v2 = vand.u32 4294901760, %v1409_v54  ;;  %v1419_v8 = vsub.f32 %v22818_v50, %v25676_v30  ;;  %v25681_v63 = vand.u32 4294901760, %v22835_v22  ;;  %v25684_v60 = vand.u32 4294901760, %v22838_v25 }
 0x245   : > { %17489 = vmatprep.mubr.f32.mxu1 %v3265_v7  ;;  %v3275_v0 = vand.u32 4294901760, %v3274_v39  ;;  %v22855_v40 = vsub.f32 %v3178_v37, %v22844_v18  ;;  %25906 = vst [vmem:[#allocation86_spill] sm:$0xff] %v22857_v34  ;;  %v3181_v45 = vsel %vm25762_vm1, %v3152_v10, 0  ;;  %v22870_v37 = vsub.f32 %v1127_v3, %v22857_v34  ;;  %v1044_v39 = vld [vmem:[%s22438_s5 + $0xb8] sm:$0xff]  ;;  %v3154_v3 = vld [vmem:[%s22726_s22 + $0x30] sm:$0xff] }
 0x246   : > { %17200 = vmatprep.mubr.f32.mxu0 %v1410_v2  ;;  %v1420_v54 = vand.u32 4294901760, %v1419_v8  ;;  %v3284_v30 = vsub.f32 %v22835_v22, %v25681_v63  ;;  %v1429_v50 = vsub.f32 %v22838_v25, %v25684_v60  ;;  %v22866_v29 = vand.u32 4294901760, %v3181_v45 }
 0x247   : > { %17490 = vmatmul.mubr.f32.vlgmr.msra.gmra.mrb[4].mxu1 %v3275_v0  ;;  %v25687_v7 = vand.u32 4294901760, %v22855_v40  ;;  %25907 = vst [vmem:[#allocation87_spill] sm:$0xff] %v22870_v37  ;;  %v1130_v10 = vsel %vm25763_vm0, %v1043_v47, 0  ;;  %v3184_v2 = vsel %vm25762_vm1, %v3153_v41, 0  ;;  %v25909_v47 = vand.u32 4294901760, %v22658_v11 }
 0x248   : > { %17201 = vmatmul.mubr.f32.gmra.mrb[18].mxu0 %v1420_v54  ;;  %v3285_v8 = vand.u32 4294901760, %v3284_v30  ;;  %v1430_v63 = vand.u32 4294901760, %v1429_v50  ;;  %v22876_v28 = vsub.f32 %v3181_v45, %v22866_v29  ;;  %v22878_v60 = vand.u32 4294901760, %v1130_v10 }
 0x249   : > { %v3294_v0 = vsub.f32 %v22855_v40, %v25687_v7  ;;  %v22884_v25 = vand.u32 4294901760, %v3184_v2  ;;  %v22889_v41 = vsub.f32 %v22658_v11, %v25909_v47  ;;  %v25911_v45 = vand.u32 4294901760, %v22660_v12 }
 0x24a   : > { %25908 = vst [vmem:[#allocation88_spill] sm:$0xff] %v22878_v60  ;;  %17492 = vmatprep.mubr.f32.mxu1 %v3285_v8  ;;  %17203 = vmatprep.mubr.f32.mxu0 %v1430_v63  ;;  %v25696_v30 = vand.u32 4294901760, %v22876_v28  ;;  %v22893_v50 = vsub.f32 %v1130_v10, %v22878_v60  ;;  %v1133_v7 = vsel %vm25763_vm0, %v1044_v39, 0  ;;  %v25912_v11 = vand.u32 4294901760, %v22870_v37 }
 0x24b   : > { %v22898_v54 = vsub.f32 %v22660_v12, %v25911_v45  ;;  %v3295_v23 = vand.u32 4294901760, %v3294_v0  ;;  %v22906_v63 = vsub.f32 %v3184_v2, %v22884_v25  ;;  %v25699_v10 = vand.u32 4294901760, %v22889_v41  ;;  %v1045_v0 = vld [vmem:[%s22438_s5 + $0xc0] sm:$0xff] }
 0x24c   : > { %25910 = vst [vmem:[#allocation89_spill] sm:$0xff] %v22893_v50  ;;  %v1439_v47 = vsub.f32 %v22870_v37, %v25912_v11  ;;  %v3304_v8 = vsub.f32 %v22876_v28, %v25696_v30  ;;  %v25702_v12 = vand.u32 4294901760, %v22893_v50  ;;  %v22914_v45 = vand.u32 4294901760, %v1133_v7 }
 0x24d   : > { %v25705_v39 = vand.u32 4294901760, %v22898_v54  ;;  %17493 = vmatmul.mubr.f32.gmra.mrb[6].mxu1 %v3295_v23  ;;  %v25710_v11 = vand.u32 4294901760, %v22906_v63  ;;  %v3345_v2 = vsub.f32 %v22889_v41, %v25699_v10  ;;  %v3187_v37 = vsel %vm25762_vm1, %v3154_v3, 0 }
 0x24e   : > { %25913 = vst [vmem:[#allocation90_spill] sm:$0xff] %v22914_v45  ;;  %v1440_v19 = vand.u32 4294901760, %v1439_v47  ;;  %v3305_v58 = vand.u32 4294901760, %v3304_v8  ;;  %v1449_v30 = vsub.f32 %v22893_v50, %v25702_v12  ;;  %v22929_v23 = vsub.f32 %v1133_v7, %v22914_v45  ;;  %v3155_v47 = vld [vmem:[%s22726_s22 + $0x38] sm:$0xff]  ;;  %v1046_v7 = vld [vmem:[%s22438_s5 + $0xc8] sm:$0xff]  ;;  %s26081_s22 = sld [smem:[#allocation114_spill]] }
 0x24f   : > { %v3352_v44 = vsub.f32 %v22898_v54, %v25705_v39  ;;  %v3314_v10 = vsub.f32 %v22906_v63, %v25710_v11  ;;  %v3346_v3 = vand.u32 4294901760, %v3345_v2  ;;  %v22935_v61 = vand.u32 4294901760, %v3187_v37 }
 0x250   : > { %25914 = vst [vmem:[#allocation91_spill] sm:$0xff] %v22929_v23  ;;  %17204 = vmatmul.mubr.f32.gmra.mrb[20].mxu0 %v1440_v19  ;;  %v1136_v8 = vsel %vm25763_vm0, %v1045_v0, 0  ;;  %17495 = vmatprep.mubr.f32.mxu1 %v3305_v58  ;;  %v1450_v12 = vand.u32 4294901760, %v1449_v30  ;;  %v25713_v39 = vand.u32 4294901760, %v22929_v23  ;;  %v3190_v11 = vsel %vm25762_vm1, %v3155_v47, 0 }
 0x251   : > { %v3353_v50 = vand.u32 4294901760, %v3352_v44  ;;  %v22939_v42 = vand.u32 4294901760, %v1136_v8  ;;  %v3315_v45 = vand.u32 4294901760, %v3314_v10  ;;  %v22943_v19 = vsub.f32 %v3187_v37, %v22935_v61  ;;  %v1047_v37 = vld [vmem:[%s22438_s5 + $0xd0] sm:$0xff] }
 0x252   : > { %v25916_v2 = vand.u32 4294901760, %v22700_v43  ;;  %17206 = vmatprep.mubr.f32.mxu0 %v1450_v12  ;;  %v1459_v44 = vsub.f32 %v22929_v23, %v25713_v39  ;;  %v22957_v10 = vand.u32 4294901760, %v3190_v11  ;;  %vm2970_vm3 = vcmask 523269  }
 0x253   : > { %25915 = vst [vmem:[#allocation92_spill] sm:$0xff] %v22939_v42  ;;  %v19391_v58 = vpack.c.bf16 %v3353_v50, %v3346_v3  ;;  %v22955_v30 = vsub.f32 %v1136_v8, %v22939_v42  ;;  %17496 = vmatmul.mubr.f32.gmra.mrb[8].mxu1 %v3315_v45  ;;  %v25718_v0 = vand.u32 4294901760, %v22943_v19  ;;  %v1139_v50 = vsel %vm25763_vm0, %v1046_v7, 0  ;;  %v1048_v45 = vld [vmem:[%s22438_s5 + $0xd8] sm:$0xff]  ;;  %s26082_s5 = sld [smem:[#allocation115_spill]] }
 0x254   : > { %v22949_v60 = vsub.f32 %v22700_v43, %v25916_v2  ;;  %v25918_v43 = vand.u32 4294901760, %v22721_v31  ;;  %v1460_v3 = vand.u32 4294901760, %v1459_v44  ;;  %v22970_v2 = vsub.f32 %v3190_v11, %v22957_v10 }
 0x255   : > { %25917 = vst [vmem:[#allocation93_spill] sm:$0xff] %v22955_v30  ;;  %19392 = vmatprep.subr.bf16.mxu1 %v19391_v58  ;;  %v25721_v8 = vand.u32 4294901760, %v22955_v30  ;;  %v22972_v39 = vand.u32 4294901760, %v1139_v50  ;;  %v3324_v47 = vsub.f32 %v22943_v19, %v25718_v0  ;;  %v1142_v44 = vsel %vm25763_vm0, %v1047_v37, 0 }
 0x256   : > { %v22965_v12 = vsub.f32 %v22721_v31, %v25918_v43  ;;  %19394 = vmatpush3.bf16.msra.mxu1 %v19391_v58  ;;  %v25920_v31 = vand.u32 4294901760, %v22949_v60  ;;  %17207 = vmatmul.mubr.f32.gmra.mrb[22].mxu0 %v1460_v3  ;;  %v25727_v23 = vand.u32 4294901760, %v22970_v2  ;;  %v22990_v42 = vand.u32 4294901760, %v1142_v44 }
 0x257   : > { %25919 = vst [vmem:[#allocation94_spill] sm:$0xff] %v22972_v39  ;;  %v1469_v11 = vsub.f32 %v22955_v30, %v25721_v8  ;;  %v22988_v58 = vsub.f32 %v1139_v50, %v22972_v39  ;;  %v3325_v0 = vand.u32 4294901760, %v3324_v47  ;;  %v1145_v37 = vsel %vm25763_vm0, %v1048_v45, 0 }
 0x258   : > { %v3359_v43 = vsub.f32 %v22949_v60, %v25920_v31  ;;  %v25726_v7 = vand.u32 4294901760, %v22965_v12  ;;  %25921 = vst [vmem:[#allocation95_spill] sm:$0xff] %v22990_v42  ;;  %v3334_v8 = vsub.f32 %v22970_v2, %v25727_v23  ;;  %v23001_v50 = vsub.f32 %v1142_v44, %v22990_v42 }
 0x259   : > { %v1470_v3 = vand.u32 4294901760, %v1469_v11  ;;  %v25732_v30 = vand.u32 4294901760, %v22988_v58  ;;  %17498 = vmatprep.mubr.f32.mxu1 %v3325_v0  ;;  %v23003_v47 = vand.u32 4294901760, %v1145_v37  ;;  %v19399_v0 = vpack.c.bf16 %v22898_v54, %v22889_v41 }
 0x25a   : > { %v3360_v34 = vand.u32 4294901760, %v3359_v43  ;;  %v3366_v31 = vsub.f32 %v22965_v12, %v25726_v7  ;;  %v19367_v43 = vpack.c.bf16 %v22502_v17, %v22500_v16  ;;  %v3335_v7 = vand.u32 4294901760, %v3334_v8 }
 0x25b   : > { %25922 = vst [vmem:[#allocation96_spill] sm:$0xff] %v23003_v47  ;;  %17209 = vmatprep.mubr.f32.mxu0 %v1470_v3  ;;  %v1479_v45 = vsub.f32 %v22988_v58, %v25732_v30  ;;  %v25731_v11 = vand.u32 4294901760, %v23001_v50  ;;  %v23012_v1 = vsub.f32 %v1145_v37, %v23003_v47  ;;  %v25924_v3 = vand.u32 4294901760, %v22898_v54 }
 0x25c   : > { %v3367_v39 = vand.u32 4294901760, %v3366_v31  ;;  %19368 = vmatprep.subr.bf16.mxu0 %v19367_v43  ;;  %17499 = vmatmul.mubr.f32.gmra.mrb[10].mxu1 %v3335_v7  ;;  %v19403_v7 = vpack.c.bf16 %v22965_v12, %v22949_v60  ;;  %v25926_v54 = vand.u32 4294901760, %v22949_v60  ;;  %v25931_v60 = vand.u32 4294901760, %v22876_v28 }
 0x25d   : > { %v1480_v44 = vand.u32 4294901760, %v1479_v45  ;;  %v1489_v8 = vsub.f32 %v23001_v50, %v25731_v11  ;;  %17509 = vmatprep.mubr.f32.mxu1 %v22782_v48  ;;  %v25730_v31 = vand.u32 4294901760, %v23012_v1  ;;  %v25927_v45 = vand.u32 4294901760, %v22965_v12  ;;  %v4092_v12 = vld [vmem:[%s25935_s9 + $0x8] sm:$0xff]  ;;  %v25943_v11 = vld [vmem:[#allocation67_spill] sm:$0xff] }
 0x25e   : > { %v19395_v23 = vpack.c.bf16 %v3367_v39, %v3360_v34  ;;  %vm2982_vm4 = vcmask 518144   ;;  %vm3990_vm5 = vcmask 521218   ;;  %vm4790_vm6 = vcmask 1040384  }
 0x25f   : > { %17210 = vmatmul.mubr.f32.gmra.mrb[24].mxu0 %v1480_v44  ;;  %v1490_v34 = vand.u32 4294901760, %v1489_v8  ;;  %v1499_v39 = vsub.f32 %v23012_v1, %v25730_v31  ;;  %v25928_v44 = vand.u32 4294901760, %v22814_v55  ;;  %v25929_v8 = vand.u32 4294901760, %v22835_v22 }
 0x260   : > { %19396 = vmatprep.subr.bf16.mxu1 %v19395_v23  ;;  %vm4703_vm7 = vcmask 517120   ;;  %vm4714_vm8 = vcmask 518145   ;;  %vm4725_vm9 = vcmask 519170   ;;  %vm4792_vm10 = vcmask 1041408  }
 0x261   : > { %19398 = vmatpush3.bf16.msra.mxu1 %v19395_v23  ;;  %17212 = vmatprep.mubr.f32.mxu0 %v1490_v34  ;;  %v1500_v37 = vand.u32 4294901760, %v1499_v39  ;;  %v25923_v23 = vand.u32 4294901760, %v22889_v41  ;;  %v25925_v41 = vand.u32 4294901760, %v22796_v49  ;;  %v25936_v34 = vand.u32 4294901760, %v22970_v2 }
 0x262   : > { %19400 = vmatprep.subr.bf16.mxu1 %v19399_v0  ;;  %v4121_v39 = vand.u32 4294901760, %v4092_v12  ;;  %vm4794_vm11 = vcmask 1042432   ;;  %vm4796_vm12 = vcmask 1043456   ;;  %vm4798_vm13 = vcmask 1044480  }
 0x263   : > { %17213 = vmatmul.mubr.f32.gmra.mrb[26].mxu0 %v1500_v37  ;;  %v25939_v37 = vld [vmem:[#allocation90_spill] sm:$0xff]  ;;  %vm4800_vm14 = vcmask 1045504   ;;  %vm4802_vm15 = vcmask 1046528   ;;  %vm3003_vm1 = vcmask 523266   ;;  %vm2951_vm0 = vcmask 521216  }
 0x264   : > { %17510 = vmatmul.mubr.f32.vlgmr.msra.gmra.mrb[4].mxu1 %v22798_v62  ;;  %17225 = vmatprep.mubr.f32.mxu0 %v22490_v9 }
 0x265   : > { %17512 = vmatprep.mubr.f32.mxu1 %v22820_v27  ;;  %19402 = vmatpush3.bf16.msra.mxu1 %v19399_v0  ;;  %v19419_v0 = vpack.c.bf16 %v25927_v45, %v25926_v54  ;;  %v4093_v54 = vld [vmem:[%s25935_s9 + $0x10] sm:$0xff]  ;;  %v4094_v45 = vld [vmem:[%s25935_s9 + $0x18] sm:$0xff] }
 0x266   : > { %19404 = vmatprep.subr.bf16.mxu1 %v19403_v7 }
 0x267   : > { %17226 = vmatmul.mubr.f32.vlgmr.msra.gmra.mrb[0].mxu0 %v22498_v15 }
 0x268   : > { %17513 = vmatmul.mubr.f32.gmra.mrb[6].mxu1 %v22844_v18  ;;  %19370 = vmatpush3.bf16.msra.mxu0 %v19367_v43  ;;  %v19415_v43 = vpack.c.bf16 %v25924_v3, %v25923_v23  ;;  %v21192_v23 = vld [vmem:[%s22446_s30] sm:$0xff]  }
 0x269   : > { %17515 = vmatprep.mubr.f32.mxu1 %v22866_v29  ;;  %19406 = vmatpush3.bf16.msra.mxu1 %v19403_v7  ;;  %v25938_v7 = vld [vmem:[#allocation88_spill] sm:$0xff] }
 0x26a   : > { %19408 = vmatprep.subr.bf16.mxu1 %v22707_v51  ;;  %17228 = vmatprep.mubr.f32.mxu0 %v22508_v20  ;;  %v25940_v3 = vld [vmem:[#allocation92_spill] sm:$0xff] }
 0x26b   : > { %19372 = vmatprep.subr.bf16.mxu0 %v22496_v14  ;;  %17229 = vmatmul.mubr.f32.gmra.mrb[2].mxu0 %v22510_v21 }
 0x26c   : > { %17516 = vmatmul.mubr.f32.gmra.mrb[8].mxu1 %v22884_v25  ;;  %17231 = vmatprep.mubr.f32.mxu0 %v22519_v26 }
 0x26d   : > { %17518 = vmatprep.mubr.f32.mxu1 %v22935_v61 }
 0x26f   : > { %17232 = vmatmul.mubr.f32.gmra.mrb[4].mxu0 %v22547_v38 }
 0x270   : > { %17519 = vmatmul.mubr.f32.gmra.mrb[10].mxu1 %v22957_v10  ;;  %17234 = vmatprep.mubr.f32.mxu0 %v22572_v59 }
 0x271   : > { %17529 = vmatprep.mubr.f32.mxu1 %v22796_v49  ;;  %v25930_v49 = vand.u32 4294901760, %v22855_v40 }
 0x273   : > { %17235 = vmatmul.mubr.f32.gmra.mrb[6].mxu0 %v22585_v4 }
 0x274   : > { %17530 = vmatmul.mubr.f32.vlgmr.msra.gmra.mrb[4].mxu1 %v22814_v55  ;;  %17237 = vmatprep.mubr.f32.mxu0 %v22587_v5  ;;  %v25933_v55 = vand.u32 4294901760, %v22943_v19 }
 0x275   : > { %17532 = vmatprep.mubr.f32.mxu1 %v22835_v22  ;;  %19410 = vmatpush3.bf16.msra.mxu1 %v22707_v51  ;;  %v25932_v22 = vand.u32 4294901760, %v22906_v63 }
 0x276   : > { %19412 = vmatprep.subr.bf16.mxu1 %v22766_v24 }
 0x277   : > { %17238 = vmatmul.mubr.f32.gmra.mrb[8].mxu0 %v22589_v6 }
 0x278   : > { %17533 = vmatmul.mubr.f32.gmra.mrb[6].mxu1 %v22855_v40  ;;  %17240 = vmatprep.mubr.f32.mxu0 %v22605_v32  ;;  %v25934_v40 = vld [vmem:[#allocation84_spill] sm:$0xff]  ;;  %v25987_v32 = vld [vmem:[#allocation74_spill] sm:$0xff] }
 0x279   : > { %17535 = vmatprep.mubr.f32.mxu1 %v22876_v28  ;;  %19414 = vmatpush3.bf16.msra.mxu1 %v22766_v24  ;;  %v4091_v28 = vld [vmem:[%s25935_s9] sm:$0xff] }
 0x27a   : > { %19416 = vmatprep.subr.bf16.mxu1 %v19415_v43 }
 0x27b   : > { %17241 = vmatmul.mubr.f32.gmra.mrb[10].mxu0 %v22607_v33 }
 0x27c   : > { %17536 = vmatmul.mubr.f32.gmra.mrb[8].mxu1 %v22906_v63  ;;  %17243 = vmatprep.mubr.f32.mxu0 %v22609_v35  ;;  %v25937_v63 = vld [vmem:[#allocation86_spill] sm:$0xff] }
 0x27d   : > { %17538 = vmatprep.mubr.f32.mxu1 %v22943_v19  ;;  %v4118_v19 = vand.u32 4294901760, %v4091_v28 }
 0x27f   : > { %17244 = vmatmul.mubr.f32.gmra.mrb[12].mxu0 %v22635_v53 }
 0x280   : > { %17539 = vmatmul.mubr.f32.gmra.mrb[10].mxu1 %v22970_v2  ;;  %17246 = vmatprep.mubr.f32.mxu0 %v22674_v56  ;;  %v23106_v2 = vpack.c.bf16 %v4121_v39, %v4118_v19  ;;  %v25984_v56 = vld [vmem:[#allocation69_spill] sm:$0xff] }
 0x281   : > { %17549 = vmatprep.mubr.f32.mxu1 %v25925_v41  ;;  %v25941_v41 = vld [vmem:[#allocation94_spill] sm:$0xff] }
 0x283   : > { %17247 = vmatmul.mubr.f32.gmra.mrb[14].mxu0 %v22697_v13  ;;  %v25983_v13 = vld [vmem:[#allocation66_spill] sm:$0xff] }
 0x284   : > { %17550 = vmatmul.mubr.f32.vlgmr.msra.gmra.mrb[4].mxu1 %v25928_v44  ;;  %17249 = vmatprep.mubr.f32.mxu0 %v22719_v36  ;;  %v23130_v44 = vsub.f32 %v4092_v12, %v4121_v39  ;;  %v4097_v12 = vld [vmem:[%s25935_s9 + $0x30] sm:$0xff]  ;;  %v25980_v36 = vld [vmem:[#allocation93_spill] sm:$0xff] }
 0x285   : > { %17552 = vmatprep.mubr.f32.mxu1 %v25929_v8  ;;  %19418 = vmatpush3.bf16.msra.mxu1 %v19415_v43  ;;  %v21193_v43 = vld [vmem:[%s22446_s30 + $0x8] sm:$0xff]   ;;  %s26079_s30 = sld [smem:[#allocation112_spill]] }
 0x286   : > { %19420 = vmatprep.subr.bf16.mxu1 %v19419_v0  ;;  %v4115_v8 = vsel %vm4112_vm2, %v21193_v43, 0 }
 0x287   : > { %17250 = vmatmul.mubr.f32.gmra.mrb[16].mxu0 %v22768_v57 }
 0x288   : > { %17553 = vmatmul.mubr.f32.gmra.mrb[6].mxu1 %v25930_v49  ;;  %17252 = vmatprep.mubr.f32.mxu0 %v22787_v52  ;;  %v4124_v49 = vand.u32 4294901760, %v4093_v54  ;;  %v25976_v52 = vld [vmem:[#allocation87_spill] sm:$0xff] }
 0x289   : > { %17555 = vmatprep.mubr.f32.mxu1 %v25931_v60  ;;  %19422 = vmatpush3.bf16.msra.mxu1 %v19419_v0  ;;  %v23128_v0 = vsub.f32 %v4091_v28, %v4118_v19  ;;  %v4127_v60 = vand.u32 4294901760, %v4094_v45  ;;  %v23142_v28 = vand.u32 4294901760, %v4115_v8  ;;  %v4098_v19 = vld [vmem:[%s25935_s9 + $0x38] sm:$0xff] }
 0x28a   : > { %19424 = vmatprep.subr.bf16.mxu1 %v22707_v51  ;;  %v23156_v31 = vsub.f32 %v4093_v54, %v4124_v49  ;;  %v25948_v54 = vld [vmem:[#allocation45_spill] sm:$0xff] }
 0x28b   : > { %17253 = vmatmul.mubr.f32.gmra.mrb[18].mxu0 %v22803_v46  ;;  %v25975_v46 = vld [vmem:[#allocation85_spill] sm:$0xff] }
 0x28c   : > { %17556 = vmatmul.mubr.f32.gmra.mrb[8].mxu1 %v25932_v22  ;;  %17255 = vmatprep.mubr.f32.mxu0 %v25934_v40  ;;  %v25942_v22 = vld [vmem:[#allocation64_spill] sm:$0xff]  ;;  %v25961_v40 = vld [vmem:[#allocation51_spill] sm:$0xff]  ;;  %v25985_v53 = vand.u32 4294901760, %v23156_v31 }
 0x28d   : > { %17558 = vmatprep.mubr.f32.mxu1 %v25933_v55  ;;  %v4095_v55 = vld [vmem:[%s25935_s9 + $0x20] sm:$0xff] }
 0x28e   : > { %v4130_v30 = vand.u32 4294901760, %v4095_v55 }
 0x28f   : > { %17256 = vmatmul.mubr.f32.gmra.mrb[20].mxu0 %v25937_v63 }
 0x290   : > { %17559 = vmatmul.mubr.f32.gmra.mrb[10].mxu1 %v25936_v34  ;;  %17258 = vmatprep.mubr.f32.mxu0 %v25938_v7  ;;  %v4096_v34 = vld [vmem:[%s25935_s9 + $0x28] sm:$0xff]  ;;  %v23168_v43 = vsub.f32 %v4095_v55, %v4130_v30 }
 0x291   : > { %17569 = vmatprep.mubr.f32.mxu1 %v22782_v48 }
 0x293   : > { %17259 = vmatmul.mubr.f32.gmra.mrb[22].mxu0 %v25939_v37  ;;  %v25953_v37 = vld [vmem:[#allocation46_spill] sm:$0xff] }
 0x294   : > { %17570 = vmatmul.mubr.f32.vlgmr.msra.gmra.mrb[4].mxu1 %v22798_v62  ;;  %17261 = vmatprep.mubr.f32.mxu0 %v25940_v3  ;;  %v25950_v3 = vand.u32 4294901760, %v22502_v17 }
 0x295   : > { %17572 = vmatprep.mubr.f32.mxu1 %v22820_v27  ;;  %19426 = vmatpush3.bf16.msra.mxu1 %v22707_v51  ;;  %v4113_v51 = vsel %vm4112_vm2, %v21192_v23, 0  ;;  %v23166_v23 = vsub.f32 %v4115_v8, %v23142_v28  ;;  %v25947_v8 = vld [vmem:[#allocation76_spill] sm:$0xff] }
 0x296   : > { %19428 = vmatprep.subr.bf16.mxu1 %v22766_v24 }
 0x297   : > { %17262 = vmatmul.mubr.f32.gmra.mrb[24].mxu0 %v25941_v41  ;;  %v4139_v41 = vand.u32 4294901760, %v4098_v19  ;;  %v25988_v6 = vand.u32 4294901760, %v23166_v23 }
 0x298   : > { %17573 = vmatmul.mubr.f32.gmra.mrb[6].mxu1 %v22844_v18  ;;  %17264 = vmatprep.mubr.f32.mxu0 %v22990_v42  ;;  %v25944_v42 = vld [vmem:[#allocation71_spill] sm:$0xff] }
 0x299   : > { %17575 = vmatprep.mubr.f32.mxu1 %v22866_v29  ;;  %19430 = vmatpush3.bf16.msra.mxu1 %v22766_v24  ;;  %v23126_v24 = vand.u32 4294901760, %v4113_v51 }
 0x29a   : > { %19432 = vmatprep.subr.bf16.mxu1 %v23106_v2 }
 0x29b   : > { %17265 = vmatmul.mubr.f32.gmra.mrb[26].mxu0 %v23003_v47  ;;  %v23152_v39 = vsub.f32 %v4113_v51, %v23126_v24  ;;  %v23161_v47 = vsub.f32 %v4094_v45, %v4127_v60  ;;  %v4136_v51 = vand.u32 4294901760, %v4097_v12  ;;  %v25945_v45 = vand.u32 4294901760, %v23128_v0 }
 0x29c   : > { %17576 = vmatmul.mubr.f32.gmra.mrb[8].mxu1 %v22884_v25  ;;  %17267 = vmatprep.mubr.f32.mxu0 %v25942_v22  ;;  %v4133_v22 = vand.u32 4294901760, %v4096_v34 }
 0x29d   : > { %17578 = vmatprep.mubr.f32.mxu1 %v22935_v61  ;;  %v25978_v57 = vand.u32 4294901760, %v23152_v39  ;;  %v25986_v35 = vand.u32 4294901760, %v23161_v47 }
 0x29e   : > { %v23182_v55 = vpack.c.bf16 %v4133_v22, %v4130_v30 }
 0x29f   : > { %17268 = vmatmul.mubr.f32.gmra.mrb[28].mxu0 %v25943_v11  ;;  %v23185_v11 = vsub.f32 %v4096_v34, %v4133_v22  ;;  %v25951_v22 = vand.u32 4294901760, %v23152_v39  ;;  %v19499_v33 = vpack.c.bf16 %v25986_v35, %v25985_v53  ;;  %v25993_v35 = vand.u32 4294901760, %v25953_v37 }
 0x2a0   : > { %17579 = vmatmul.mubr.f32.gmra.mrb[10].mxu1 %v22957_v10  ;;  %17270 = vmatprep.mubr.f32.mxu0 %v25944_v42 }
 0x2a1   : > { %17589 = vmatprep.mubr.f32.mxu1 %v22782_v48  ;;  %v23159_v48 = vpack.c.bf16 %v4127_v60, %v4124_v49  ;;  %v4214_v49 = vsub.f32 %v23128_v0, %v25945_v45  ;;  %v25946_v60 = vand.u32 4294901760, %v23130_v44  ;;  %v23189_v45 = vpack.c.bf16 %v4139_v41, %v4136_v51 }
 0x2a3   : > { %17271 = vmatmul.mubr.f32.gmra.mrb[30].mxu0 %v25947_v8  ;;  %v25949_v8 = vand.u32 4294901760, %v22500_v16  ;;  %v4215_v34 = vand.u32 4294901760, %v4214_v49  ;;  %v25954_v16 = vand.u32 4294901760, %v23161_v47  ;;  %v25955_v49 = vld [vmem:[#allocation47_spill] sm:$0xff] }
 0x2a4   : > { %17590 = vmatmul.mubr.f32.vlgmr.msra.gmra.mrb[4].mxu1 %v22798_v62  ;;  %v4221_v62 = vsub.f32 %v23130_v44, %v25946_v60  ;;  %17277 = vmatprep.mubr.f32.mxu0 %v25948_v54  ;;  %v25952_v60 = vand.u32 4294901760, %v23156_v31 }
 0x2a5   : > { %19434 = vmatpush3.bf16.msra.mxu1 %v23106_v2  ;;  %17592 = vmatprep.mubr.f32.mxu1 %v22820_v27  ;;  %v23197_v30 = vpack.c.bf16 %v25950_v3, %v25949_v8  ;;  %v4235_v17 = vsub.f32 %v23161_v47, %v25954_v16  ;;  %v23213_v3 = vsub.f32 %v4097_v12, %v4136_v51  ;;  %v25958_v16 = vld [vmem:[#allocation48_spill] sm:$0xff] }
 0x2a6   : > { %19436 = vmatprep.subr.bf16.mxu1 %v23159_v48  ;;  %v4222_v27 = vand.u32 4294901760, %v4221_v62  ;;  %v4228_v42 = vsub.f32 %v23156_v31, %v25952_v60  ;;  %v23215_v8 = vsub.f32 %v4098_v19, %v4139_v41  ;;  %v25956_v62 = vand.u32 4294901760, %v23166_v23 }
 0x2a7   : > { %17278 = vmatmul.mubr.f32.vlgmr.msra.gmra.mrb[0].mxu0 %v25953_v37  ;;  %v25957_v19 = vand.u32 4294901760, %v23168_v43  ;;  %v25739_v7 = vand.u32 4294901760, %v23213_v3 }
 0x2a8   : > { %17593 = vmatmul.mubr.f32.gmra.mrb[6].mxu1 %v22844_v18  ;;  %v4193_v18 = vsub.f32 %v23152_v39, %v25951_v22  ;;  %19374 = vmatpush3.bf16.msra.mxu0 %v22496_v14  ;;  %v4203_v60 = vsub.f32 %v23166_v23, %v25956_v62  ;;  %v19447_v51 = vpack.c.bf16 %v4222_v27, %v4215_v34  ;;  %v4229_v41 = vand.u32 4294901760, %v4228_v42  ;;  %v25960_v34 = vld [vmem:[#allocation50_spill] sm:$0xff] }
 0x2a9   : > { %19438 = vmatpush3.bf16.msra.mxu1 %v23159_v48  ;;  %17595 = vmatprep.mubr.f32.mxu1 %v22866_v29  ;;  %v25737_v29 = vand.u32 4294901760, %v23185_v11  ;;  %v4242_v22 = vsub.f32 %v23168_v43, %v25957_v19  ;;  %v25995_v53 = vand.u32 4294901760, %v23215_v8  ;;  %v25999_v37 = vand.u32 4294901760, %v25960_v34 }
 0x2aa   : > { %19440 = vmatprep.subr.bf16.mxu1 %v23182_v55  ;;  %17280 = vmatprep.mubr.f32.mxu0 %v25955_v49  ;;  %v4194_v12 = vand.u32 4294901760, %v4193_v18  ;;  %v25959_v18 = vld [vmem:[#allocation49_spill] sm:$0xff]  ;;  %v4204_v42 = vand.u32 4294901760, %v4203_v60 }
 0x2ab   : > { %19376 = vmatprep.subr.bf16.mxu0 %v23197_v30  ;;  %17281 = vmatmul.mubr.f32.gmra.mrb[2].mxu0 %v25958_v16  ;;  %v4249_v62 = vsub.f32 %v23185_v11, %v25737_v29  ;;  %v4243_v27 = vand.u32 4294901760, %v4242_v22  ;;  %v4256_v29 = vsub.f32 %v23213_v3, %v25739_v7  ;;  %v25963_v22 = vld [vmem:[#allocation54_spill] sm:$0xff]  ;;  %v25967_v7 = vld [vmem:[#allocation61_spill] sm:$0xff] }
 0x2ac   : > { %17596 = vmatmul.mubr.f32.gmra.mrb[8].mxu1 %v22884_v25  ;;  %v4236_v25 = vand.u32 4294901760, %v4235_v17  ;;  %17283 = vmatprep.mubr.f32.mxu0 %v25959_v18 }
 0x2ad   : > { %19442 = vmatpush3.bf16.msra.mxu1 %v23182_v55  ;;  %17598 = vmatprep.mubr.f32.mxu1 %v22935_v61  ;;  %v25738_v61 = vand.u32 4294901760, %v23215_v8  ;;  %v4250_v19 = vand.u32 4294901760, %v4249_v62 }
 0x2ae   : > { %19444 = vmatprep.subr.bf16.mxu1 %v23189_v45  ;;  %v19451_v17 = vpack.c.bf16 %v4236_v25, %v4229_v41  ;;  %v25964_v25 = vld [vmem:[#allocation55_spill] sm:$0xff] }
 0x2af   : > { %17284 = vmatmul.mubr.f32.gmra.mrb[4].mxu0 %v25960_v34  ;;  %v4263_v63 = vsub.f32 %v23215_v8, %v25738_v61  ;;  %v19455_v60 = vpack.c.bf16 %v4250_v19, %v4243_v27  ;;  %v25965_v61 = vld [vmem:[#allocation59_spill] sm:$0xff]  ;;  %v25969_v27 = vld [vmem:[#allocation68_spill] sm:$0xff]  ;;  %v19471_v19 = vpack.c.bf16 %v23185_v11, %v23168_v43 }
 0x2b0   : > { %17599 = vmatmul.mubr.f32.gmra.mrb[10].mxu1 %v22957_v10  ;;  %17286 = vmatprep.mubr.f32.mxu0 %v25961_v40  ;;  %v25962_v10 = vld [vmem:[#allocation53_spill] sm:$0xff] }
 0x2b1   : > { %19446 = vmatpush3.bf16.msra.mxu1 %v23189_v45  ;;  %17617 = vmatprep.mubr.f32.mxu1 %v4194_v12  ;;  %v4257_v12 = vand.u32 4294901760, %v4256_v29  ;;  %v4264_v41 = vand.u32 4294901760, %v4263_v63  ;;  %v25968_v63 = vld [vmem:[#allocation63_spill] sm:$0xff]  ;;  %v19467_v29 = vpack.c.bf16 %v23161_v47, %v23156_v31  ;;  %v25992_v31 = vand.u32 4294901760, %v25948_v54 }
 0x2b2   : > { %19448 = vmatprep.subr.bf16.mxu1 %v19447_v51  ;;  %v26001_v54 = vand.u32 4294901760, %v25962_v10 }
 0x2b3   : > { %17287 = vmatmul.mubr.f32.gmra.mrb[6].mxu0 %v25962_v10  ;;  %v19459_v62 = vpack.c.bf16 %v4264_v41, %v4257_v12  ;;  %v25972_v12 = vld [vmem:[#allocation79_spill] sm:$0xff]  ;;  %v19475_v41 = vpack.c.bf16 %v23215_v8, %v23213_v3  ;;  %v26008_v8 = vand.u32 4294901760, %v25969_v27  ;;  %v26018_v10 = vand.u32 4294901760, %v25980_v36 }
 0x2b4   : > { %17618 = vmatmul.mubr.f32.vlgmr.msra.gmra.mrb[12].mxu1 %v4204_v42  ;;  %17289 = vmatprep.mubr.f32.mxu0 %v25963_v22  ;;  %v25966_v42 = vld [vmem:[#allocation60_spill] sm:$0xff] }
 0x2b5   : > { %19450 = vmatpush3.bf16.msra.mxu1 %v19447_v51  ;;  %17636 = vmatprep.mubr.f32.mxu1 %v23126_v24  ;;  %v19463_v51 = vpack.c.bf16 %v23130_v44, %v23128_v0 }
 0x2b6   : > { %19452 = vmatprep.subr.bf16.mxu1 %v19451_v17 }
 0x2b7   : > { %17290 = vmatmul.mubr.f32.gmra.mrb[8].mxu0 %v25964_v25 }
 0x2b8   : > { %17292 = vmatprep.mubr.f32.mxu0 %v25965_v61 }
 0x2b9   : > { %19454 = vmatpush3.bf16.msra.mxu1 %v19451_v17  ;;  %v25970_v17 = vld [vmem:[#allocation72_spill] sm:$0xff] }
 0x2ba   : > { %19456 = vmatprep.subr.bf16.mxu1 %v19455_v60 }
 0x2bb   : > { %17293 = vmatmul.mubr.f32.gmra.mrb[10].mxu0 %v25966_v42 }
 0x2bc   : > { %17295 = vmatprep.mubr.f32.mxu0 %v25967_v7 }
 0x2bd   : > { %19458 = vmatpush3.bf16.msra.mxu1 %v19455_v60  ;;  %v25971_v60 = vld [vmem:[#allocation75_spill] sm:$0xff] }
 0x2be   : > { %19460 = vmatprep.subr.bf16.mxu1 %v19459_v62 }
 0x2bf   : > { %17296 = vmatmul.mubr.f32.gmra.mrb[12].mxu0 %v25968_v63 }
 0x2c0   : > { %17298 = vmatprep.mubr.f32.mxu0 %v25969_v27 }
 0x2c1   : > { %19462 = vmatpush3.bf16.msra.mxu1 %v19459_v62  ;;  %v25973_v62 = vld [vmem:[#allocation81_spill] sm:$0xff] }
 0x2c2   : > { %19464 = vmatprep.subr.bf16.mxu1 %v19463_v51 }
 0x2c3   : > { %17299 = vmatmul.mubr.f32.gmra.mrb[14].mxu0 %v25970_v17 }
 0x2c4   : > { %17637 = vmatmul.mubr.f32.vlgmr.msra.gmra.mrb[12].mxu1 %v23142_v28  ;;  %17301 = vmatprep.mubr.f32.mxu0 %v25971_v60 }
 0x2c5   : > { %19466 = vmatpush3.bf16.msra.mxu1 %v19463_v51  ;;  %17655 = vmatprep.mubr.f32.mxu1 %v23152_v39  ;;  %v25974_v51 = vld [vmem:[#allocation83_spill] sm:$0xff]  ;;  %v25982_v39 = vand.u32 4294901760, %v23130_v44  ;;  %v25990_v44 = vand.u32 4294901760, %v23168_v43  ;;  %v26000_v43 = vand.u32 4294901760, %v25961_v40  ;;  %v26004_v40 = vand.u32 4294901760, %v25965_v61 }
 0x2c6   : > { %19468 = vmatprep.subr.bf16.mxu1 %v19467_v29  ;;  %v26014_v61 = vand.u32 4294901760, %v25975_v46 }
 0x2c7   : > { %17302 = vmatmul.mubr.f32.gmra.mrb[16].mxu0 %v25972_v12 }
 0x2c8   : > { %17304 = vmatprep.mubr.f32.mxu0 %v25973_v62 }
 0x2c9   : > { %19470 = vmatpush3.bf16.msra.mxu1 %v19467_v29  ;;  %v25977_v29 = vld [vmem:[#allocation89_spill] sm:$0xff] }
 0x2ca   : > { %19472 = vmatprep.subr.bf16.mxu1 %v19471_v19 }
 0x2cb   : > { %17305 = vmatmul.mubr.f32.gmra.mrb[18].mxu0 %v25974_v51 }
 0x2cc   : > { %17307 = vmatprep.mubr.f32.mxu0 %v25975_v46  ;;  %v26021_v46 = vand.u32 4294901760, %v23012_v1 }
 0x2cd   : > { %19474 = vmatpush3.bf16.msra.mxu1 %v19471_v19  ;;  %v25979_v19 = vld [vmem:[#allocation91_spill] sm:$0xff] }
 0x2ce   : > { %19476 = vmatprep.subr.bf16.mxu1 %v19475_v41  ;;  %v26017_v34 = vand.u32 4294901760, %v25979_v19 }
 0x2cf   : > { %17308 = vmatmul.mubr.f32.gmra.mrb[20].mxu0 %v25976_v52 }
 0x2d0   : > { %17310 = vmatprep.mubr.f32.mxu0 %v25977_v29 }
 0x2d1   : > { %19478 = vmatpush3.bf16.msra.mxu1 %v19475_v41 }
 0x2d2   : > { %19480 = vmatprep.subr.bf16.mxu1 %v23106_v2 }
 0x2d3   : > { %17311 = vmatmul.mubr.f32.gmra.mrb[22].mxu0 %v25979_v19  ;;  %v26036_v19 = vld [vmem:[#allocation82_spill] sm:$0xff] }
 0x2d4   : > { %17656 = vmatmul.mubr.f32.vlgmr.msra.gmra.mrb[12].mxu1 %v23166_v23  ;;  %17313 = vmatprep.mubr.f32.mxu0 %v25980_v36  ;;  %v25996_v23 = vand.u32 4294901760, %v25955_v49  ;;  %v26010_v49 = vand.u32 4294901760, %v25971_v60  ;;  %v26031_v60 = vld [vmem:[#allocation65_spill] sm:$0xff] }
 0x2d5   : > { %19482 = vmatpush3.bf16.msra.mxu1 %v23106_v2  ;;  %17674 = vmatprep.mubr.f32.mxu1 %v25978_v57  ;;  %v25981_v57 = vand.u32 4294901760, %v23128_v0  ;;  %v25989_v0 = vld [vmem:[#allocation77_spill] sm:$0xff] }
 0x2d6   : > { %19484 = vmatprep.subr.bf16.mxu1 %v23159_v48  ;;  %v26025_v36 = vand.u32 4294901760, %v25989_v0 }
 0x2d7   : > { %17314 = vmatmul.mubr.f32.gmra.mrb[24].mxu0 %v22988_v58  ;;  %v19495_v41 = vpack.c.bf16 %v25982_v39, %v25981_v57  ;;  %v25991_v57 = vand.u32 4294901760, %v23185_v11  ;;  %v25997_v11 = vand.u32 4294901760, %v25958_v16  ;;  %v26011_v16 = vand.u32 4294901760, %v25972_v12  ;;  %v26032_v12 = vld [vmem:[#allocation70_spill] sm:$0xff] }
 0x2d8   : > { %17316 = vmatprep.mubr.f32.mxu0 %v23001_v50 }
 0x2d9   : > { %19486 = vmatpush3.bf16.msra.mxu1 %v23159_v48  ;;  %v19503_v39 = vpack.c.bf16 %v25991_v57, %v25990_v44  ;;  %v26039_v44 = vld [vmem:[#allocation88_spill] sm:$0xff]  ;;  %v26040_v57 = vld [vmem:[#allocation90_spill] sm:$0xff] }
 0x2da   : > { %19488 = vmatprep.subr.bf16.mxu1 %v23182_v55 }
 0x2db   : > { %17317 = vmatmul.mubr.f32.gmra.mrb[26].mxu0 %v23012_v1 }
 0x2dc   : > { %17319 = vmatprep.mubr.f32.mxu0 %v25983_v13 }
 0x2dd   : > { %19490 = vmatpush3.bf16.msra.mxu1 %v23182_v55 }
 0x2de   : > { %19492 = vmatprep.subr.bf16.mxu1 %v23189_v45 }
 0x2df   : > { %17320 = vmatmul.mubr.f32.gmra.mrb[28].mxu0 %v25984_v56 }
 0x2e0   : > { %17322 = vmatprep.mubr.f32.mxu0 %v25987_v32 }
 0x2e1   : > { %19494 = vmatpush3.bf16.msra.mxu1 %v23189_v45 }
 0x2e2   : > { %19496 = vmatprep.subr.bf16.mxu1 %v19495_v41 }
 0x2e3   : > { %17323 = vmatmul.mubr.f32.gmra.mrb[30].mxu0 %v25989_v0  ;;  %v26038_v0 = vld [vmem:[#allocation86_spill] sm:$0xff] }
 0x2e4   : > { %17675 = vmatmul.mubr.f32.vlgmr.msra.gmra.mrb[12].mxu1 %v25988_v6  ;;  %17329 = vmatprep.mubr.f32.mxu0 %v25992_v31  ;;  %v25994_v6 = vand.u32 4294901760, %v23213_v3  ;;  %v26003_v3 = vand.u32 4294901760, %v25964_v25  ;;  %v26020_v25 = vand.u32 4294901760, %v23001_v50  ;;  %v26042_v31 = vld [vmem:[#allocation94_spill] sm:$0xff] }
 0x2e5   : > { %19498 = vmatpush3.bf16.msra.mxu1 %v19495_v41  ;;  %17693 = vmatprep.mubr.f32.mxu1 %v23126_v24  ;;  %v26037_v41 = vld [vmem:[#allocation84_spill] sm:$0xff] }
 0x2e6   : > { %19500 = vmatprep.subr.bf16.mxu1 %v19499_v33  ;;  %v19507_v47 = vpack.c.bf16 %v25995_v53, %v25994_v6  ;;  %v26044_v6 = vld [vmem:[#allocation96_spill] sm:$0xff] }
 0x2e7   : > { %17330 = vmatmul.mubr.f32.vlgmr.msra.gmra.mrb[0].mxu0 %v25993_v35  ;;  %v26043_v35 = vld [vmem:[#allocation95_spill] sm:$0xff]  ;;  %v26045_v53 = vld [vmem:[#allocation64_spill] sm:$0xff] }
 0x2e8   : > { %19378 = vmatpush3.bf16.msra.mxu0 %v23197_v30  ;;  %17332 = vmatprep.mubr.f32.mxu0 %v25996_v23  ;;  %v26002_v30 = vand.u32 4294901760, %v25963_v22  ;;  %v26019_v22 = vand.u32 4294901760, %v22988_v58  ;;  %v26047_v23 = vld [vmem:[#allocation71_spill] sm:$0xff] }
 0x2e9   : > { %19502 = vmatpush3.bf16.msra.mxu1 %v19499_v33  ;;  %19380 = vmatprep.subr.bf16.mxu0 %v22496_v14  ;;  %v25998_v33 = vand.u32 4294901760, %v25959_v18  ;;  %v26016_v18 = vand.u32 4294901760, %v25977_v29  ;;  %v26035_v29 = vld [vmem:[#allocation80_spill] sm:$0xff] }
 0x2ea   : > { %19504 = vmatprep.subr.bf16.mxu1 %v19503_v39 }
 0x2eb   : > { %17333 = vmatmul.mubr.f32.gmra.mrb[2].mxu0 %v25997_v11  ;;  %v26048_v11 = vld [vmem:[#allocation76_spill] sm:$0xff] }
 0x2ec   : > { %17335 = vmatprep.mubr.f32.mxu0 %v25998_v33  ;;  %v6303_v33 = vld [vmem:[%s22455_s23] sm:$0xff] }
 0x2ed   : > { %19506 = vmatpush3.bf16.msra.mxu1 %v19503_v39  ;;  %v26041_v39 = vld [vmem:[#allocation92_spill] sm:$0xff]  ;;  %6304 = vadd.xlane.f32.xlu0 %v6303_v33 }
 0x2ee   : > { %19508 = vmatprep.subr.bf16.mxu1 %v19507_v47 }
 0x2ef   : > { %17336 = vmatmul.mubr.f32.gmra.mrb[4].mxu0 %v25999_v37  ;;  %v16034_v37 = vld [vmem:[#allocation13] ss:$0 sm:$0xff] }
 0x2f0   : > { %17338 = vmatprep.mubr.f32.mxu0 %v26000_v43 }
 0x2f1   : > { %19510 = vmatpush3.bf16.msra.mxu1 %v19507_v47  ;;  %v26046_v47 = vld [vmem:[#allocation67_spill] sm:$0xff] }
 0x2f2   : > { %19512 = vmatprep.subr.bf16.mxu1 %v23106_v2 }
 0x2f3   : > { %17339 = vmatmul.mubr.f32.gmra.mrb[6].mxu0 %v26001_v54 }
 0x2f4   : > { %17694 = vmatmul.mubr.f32.vlgmr.msra.gmra.mrb[12].mxu1 %v23142_v28  ;;  %17341 = vmatprep.mubr.f32.mxu0 %v26002_v30 }
 0x2f5   : > { %19514 = vmatpush3.bf16.msra.mxu1 %v23106_v2  ;;  %17712 = vmatprep.mubr.f32.mxu1 %v23126_v24  ;;  %v26005_v2 = vand.u32 4294901760, %v25966_v42  ;;  %v26006_v24 = vand.u32 4294901760, %v25967_v7  ;;  %v26012_v7 = vand.u32 4294901760, %v25973_v62  ;;  %v26023_v42 = vand.u32 4294901760, %v25984_v56  ;;  %v26028_v56 = vld [vmem:[#allocation57_spill] sm:$0xff] }
 0x2f6   : > { %19516 = vmatprep.subr.bf16.mxu1 %v23159_v48  ;;  %v26033_v62 = vld [vmem:[#allocation73_spill] sm:$0xff] }
 0x2f7   : > { %17342 = vmatmul.mubr.f32.gmra.mrb[8].mxu0 %v26003_v3 }
 0x2f8   : > { %17344 = vmatprep.mubr.f32.mxu0 %v26004_v40 }
 0x2f9   : > { %19518 = vmatpush3.bf16.msra.mxu1 %v23159_v48  ;;  %v26007_v48 = vand.u32 4294901760, %v25968_v63  ;;  %v26024_v63 = vand.u32 4294901760, %v25987_v32  ;;  %v26027_v32 = vld [vmem:[#allocation56_spill] sm:$0xff] }
 0x2fa   : > { %19520 = vmatprep.subr.bf16.mxu1 %v23182_v55 }
 0x2fb   : > { %17345 = vmatmul.mubr.f32.gmra.mrb[10].mxu0 %v26005_v2 }
 0x2fc   : > { %17347 = vmatprep.mubr.f32.mxu0 %v26006_v24 }
 0x2fd   : > { %19522 = vmatpush3.bf16.msra.mxu1 %v23182_v55  ;;  %v26009_v55 = vand.u32 4294901760, %v25970_v17  ;;  %v26030_v17 = vld [vmem:[#allocation62_spill] sm:$0xff] }
 0x2fe   : > { %19524 = vmatprep.subr.bf16.mxu1 %v23189_v45 }
 0x2ff   : > { %17348 = vmatmul.mubr.f32.gmra.mrb[12].mxu0 %v26007_v48 }
 0x300   : > { %17350 = vmatprep.mubr.f32.mxu0 %v26008_v8 }
 0x301   : > { %19526 = vmatpush3.bf16.msra.mxu1 %v23189_v45  ;;  %v26013_v45 = vand.u32 4294901760, %v25974_v51  ;;  %v26034_v51 = vld [vmem:[#allocation78_spill] sm:$0xff] }
 0x303   : > { %17351 = vmatmul.mubr.f32.gmra.mrb[14].mxu0 %v26009_v55 }
 0x304   : > { %17713 = vmatmul.mubr.f32.vlgmr.msra.gmra.mrb[12].mxu1 %v23142_v28  ;;  %17353 = vmatprep.mubr.f32.mxu0 %v26010_v49  ;;  %v26015_v28 = vand.u32 4294901760, %v25976_v52  ;;  %v26022_v52 = vand.u32 4294901760, %v25983_v13  ;;  %v26026_v13 = vld [vmem:[#allocation52_spill] sm:$0xff] }
 0x307   : > { %17354 = vmatmul.mubr.f32.gmra.mrb[16].mxu0 %v26011_v16 }
 0x308   : > { %17356 = vmatprep.mubr.f32.mxu0 %v26012_v7 }
 0x30b   : > { %17357 = vmatmul.mubr.f32.gmra.mrb[18].mxu0 %v26013_v45 }
 0x30c   : > { %17359 = vmatprep.mubr.f32.mxu0 %v26014_v61 }
 0x30d   : > { %v23390_v58 = vpop.f32.mrb[0].mxu1 }
 0x30e   : > { %v23393_v50 = vpop.f32.mrb[1].mxu1 }
 0x30f   : > { %17360 = vmatmul.mubr.f32.gmra.mrb[20].mxu0 %v26015_v28 }
 0x310   : > { %17362 = vmatprep.mubr.f32.mxu0 %v26016_v18 }
 0x313   : > { %17363 = vmatmul.mubr.f32.gmra.mrb[22].mxu0 %v26017_v34 }
 0x314   : > { %17365 = vmatprep.mubr.f32.mxu0 %v26018_v10  ;;  %v23395_v1 = vpop.f32.mrb[2].mxu1 }
 0x315   : > { %v23397_v27 = vpop.f32.mrb[3].mxu1 }
 0x317   : > { %17366 = vmatmul.mubr.f32.gmra.mrb[24].mxu0 %v26019_v22 }
 0x318   : > { %17368 = vmatprep.mubr.f32.mxu0 %v26020_v25 }
 0x31b   : > { %17369 = vmatmul.mubr.f32.gmra.mrb[26].mxu0 %v26021_v46 }
 0x31c   : > { %17371 = vmatprep.mubr.f32.mxu0 %v26022_v52 }
 0x31f   : > { %17372 = vmatmul.mubr.f32.gmra.mrb[28].mxu0 %v26023_v42 }
 0x320   : > { %17374 = vmatprep.mubr.f32.mxu0 %v26024_v63 }
 0x323   : > { %17375 = vmatmul.mubr.f32.gmra.mrb[30].mxu0 %v26025_v36 }
 0x324   : > { %17381 = vmatprep.mubr.f32.mxu0 %v22490_v9 }
 0x327   : > { %17382 = vmatmul.mubr.f32.vlgmr.msra.gmra.mrb[0].mxu0 %v22498_v15 }
 0x328   : > { %19382 = vmatpush3.bf16.msra.mxu0 %v22496_v14  ;;  %17384 = vmatprep.mubr.f32.mxu0 %v22508_v20  ;;  %v26029_v14 = vld [vmem:[#allocation58_spill] sm:$0xff] }
 0x32b   : > { %17385 = vmatmul.mubr.f32.gmra.mrb[2].mxu0 %v22510_v21 }
 0x32c   : > { %17387 = vmatprep.mubr.f32.mxu0 %v22519_v26 }
 0x32f   : > { %17388 = vmatmul.mubr.f32.gmra.mrb[4].mxu0 %v22547_v38 }
 0x330   : > { %17390 = vmatprep.mubr.f32.mxu0 %v22572_v59 }
 0x333   : > { %17391 = vmatmul.mubr.f32.gmra.mrb[6].mxu0 %v22585_v4 }
 0x334   : > { %17393 = vmatprep.mubr.f32.mxu0 %v22587_v5 }
 0x337   : > { %17394 = vmatmul.mubr.f32.gmra.mrb[8].mxu0 %v26026_v13 }
 0x338   : > { %17396 = vmatprep.mubr.f32.mxu0 %v26027_v32 }
 0x33b   : > { %17397 = vmatmul.mubr.f32.gmra.mrb[10].mxu0 %v26028_v56 }
 0x33c   : > { %17399 = vmatprep.mubr.f32.mxu0 %v26029_v14 }
 0x33f   : > { %17400 = vmatmul.mubr.f32.gmra.mrb[12].mxu0 %v26030_v17 }
 0x340   : > { %17402 = vmatprep.mubr.f32.mxu0 %v26031_v60 }
 0x343   : > { %17403 = vmatmul.mubr.f32.gmra.mrb[14].mxu0 %v26032_v12 }
 0x344   : > { %17405 = vmatprep.mubr.f32.mxu0 %v26033_v62 }
 0x347   : > { %17406 = vmatmul.mubr.f32.gmra.mrb[16].mxu0 %v26034_v51 }
 0x348   : > { %17408 = vmatprep.mubr.f32.mxu0 %v26035_v29 }
 0x34b   : > { %17409 = vmatmul.mubr.f32.gmra.mrb[18].mxu0 %v26036_v19 }
 0x34c   : > { %17411 = vmatprep.mubr.f32.mxu0 %v26037_v41 }
 0x34f   : > { %17412 = vmatmul.mubr.f32.gmra.mrb[20].mxu0 %v26038_v0 }
 0x350   : > { %17414 = vmatprep.mubr.f32.mxu0 %v26039_v44 }
 0x353   : > { %17415 = vmatmul.mubr.f32.gmra.mrb[22].mxu0 %v26040_v57 }
 0x354   : > { %17417 = vmatprep.mubr.f32.mxu0 %v26041_v39 }
 0x357   : > { %17418 = vmatmul.mubr.f32.gmra.mrb[24].mxu0 %v26042_v31 }
 0x358   : > { %17420 = vmatprep.mubr.f32.mxu0 %v26043_v35 }
 0x35b   : > { %17421 = vmatmul.mubr.f32.gmra.mrb[26].mxu0 %v26044_v6 }
 0x35c   : > { %17423 = vmatprep.mubr.f32.mxu0 %v26045_v53 }
 0x35f   : > { %17424 = vmatmul.mubr.f32.gmra.mrb[28].mxu0 %v26046_v47 }
 0x360   : > { %17426 = vmatprep.mubr.f32.mxu0 %v26047_v23 }
 0x363   : > { %17427 = vmatmul.mubr.f32.gmra.mrb[30].mxu0 %v26048_v11 }
 0x364   : > { %17433 = vmatprep.mubr.f32.mxu0 %v22490_v9 }
 0x367   : > { %17434 = vmatmul.mubr.f32.vlgmr.msra.gmra.mrb[0].mxu0 %v22498_v15 }
 0x368   : > { %17436 = vmatprep.mubr.f32.mxu0 %v22508_v20 }
 0x36b   : > { %17437 = vmatmul.mubr.f32.gmra.mrb[2].mxu0 %v22510_v21 }
 0x36c   : > { %17439 = vmatprep.mubr.f32.mxu0 %v22519_v26 }
 0x36f   : > { %17440 = vmatmul.mubr.f32.gmra.mrb[4].mxu0 %v22547_v38 }
 0x370   : > { %17442 = vmatprep.mubr.f32.mxu0 %v22572_v59 }
 0x373   : > { %17443 = vmatmul.mubr.f32.gmra.mrb[6].mxu0 %v22585_v4 }
 0x374   : > { %17445 = vmatprep.mubr.f32.mxu0 %v22587_v5 }
 0x377   : > { %v17591_v9 = vpop.f32.mrb[4].mxu1  ;;  %17446 = vmatmul.mubr.f32.gmra.mrb[8].mxu0 %v26026_v13 }
 0x378   : > { %v20549_v15 = vadd.f32 %v17591_v9, %v16034_v37  ;;  %v3932_v20 = vpop.f32.mrb[5].mxu1  ;;  %17448 = vmatprep.mubr.f32.mxu0 %v26027_v32 }
 0x379   : > { %v20550_v43 = vadd.f32 %v16034_v37, %v3932_v20 }
 0x37a   : > { %v3979_v21 = vsel %vm2982_vm4, %v20549_v15, -inf  ;;  %v3992_v26 = vsel %vm3990_vm5, %v20549_v15, -inf  ;;  %v4004_v38 = vsel %vm2970_vm3, %v20549_v15, -inf }
 0x37b   : > { %v3978_v59 = vsel %vm2982_vm4, %v20550_v43, -inf  ;;  %v3991_v4 = vsel %vm3990_vm5, %v20550_v43, -inf  ;;  %v4003_v5 = vsel %vm2970_vm3, %v20550_v43, -inf  ;;  %v17594_v54 = vpop.f32.mrb[6].mxu1  ;;  %17449 = vmatmul.mubr.f32.gmra.mrb[10].mxu0 %v26028_v56 }
 0x37c   : > { %v3981_v30 = vmax.f32 %v3978_v59, %v3979_v21  ;;  %v3994_v3 = vmax.f32 %v3991_v4, %v3992_v26  ;;  %v4006_v40 = vmax.f32 %v4003_v5, %v4004_v38  ;;  %v20551_v2 = vadd.f32 %v17594_v54, %v16034_v37  ;;  %v3944_v24 = vpop.f32.mrb[7].mxu1  ;;  %17451 = vmatprep.mubr.f32.mxu0 %v26029_v14 }
 0x37d   : > { %v20552_v48 = vadd.f32 %v16034_v37, %v3944_v24 }
 0x37e   : > { %v4015_v8 = vsel %vm2982_vm4, %v20551_v2, -inf  ;;  %v4028_v55 = vsel %vm3990_vm5, %v20551_v2, -inf  ;;  %v4041_v49 = vsel %vm2970_vm3, %v20551_v2, -inf }
 0x37f   : > { %v3980_v16 = vsel %vm2982_vm4, %v20552_v48, -inf  ;;  %v3993_v7 = vsel %vm3990_vm5, %v20552_v48, -inf  ;;  %v4005_v45 = vsel %vm2970_vm3, %v20552_v48, -inf  ;;  %v17597_v61 = vpop.f32.mrb[8].mxu1  ;;  %17452 = vmatmul.mubr.f32.gmra.mrb[12].mxu0 %v26030_v17 }
 0x380   : > { %v23457_v28 = vmax.f32 %v3981_v30, %v3980_v16  ;;  %v23459_v18 = vmax.f32 %v3994_v3, %v3993_v7  ;;  %v23461_v34 = vmax.f32 %v4006_v40, %v4005_v45  ;;  %v4018_v10 = vmax.f32 %v3980_v16, %v4015_v8  ;;  %v3956_v22 = vpop.f32.mrb[9].mxu1  ;;  %17454 = vmatprep.mubr.f32.mxu0 %v26031_v60 }
 0x381   : > { %v4031_v25 = vmax.f32 %v3993_v7, %v4028_v55  ;;  %v4044_v46 = vmax.f32 %v4005_v45, %v4041_v49  ;;  %v20553_v52 = vadd.f32 %v17597_v61, %v16034_v37  ;;  %v20554_v42 = vadd.f32 %v16034_v37, %v3956_v22 }
 0x383   : > { %v4017_v63 = vsel %vm2982_vm4, %v20553_v52, -inf  ;;  %v17600_v36 = vpop.f32.mrb[10].mxu1  ;;  %v4030_v13 = vsel %vm3990_vm5, %v20553_v52, -inf  ;;  %v4016_v32 = vsel %vm2982_vm4, %v20554_v42, -inf  ;;  %v4029_v56 = vsel %vm3990_vm5, %v20554_v42, -inf  ;;  %17455 = vmatmul.mubr.f32.gmra.mrb[14].mxu0 %v26032_v12 }
 0x384   : > { %v3968_v14 = vpop.f32.mrb[11].mxu1  ;;  %v4043_v33 = vsel %vm2970_vm3, %v20553_v52, -inf  ;;  %v4019_v9 = vmax.f32 %v4016_v32, %v4017_v63  ;;  %v4032_v15 = vmax.f32 %v4029_v56, %v4030_v13  ;;  %v4042_v17 = vsel %vm2970_vm3, %v20554_v42, -inf  ;;  %17457 = vmatprep.mubr.f32.mxu0 %v26033_v62 }
 0x385   : > { %v4045_v43 = vmax.f32 %v4042_v17, %v4043_v33  ;;  %v20556_v21 = vadd.f32 %v16034_v37, %v3968_v14  ;;  %v20555_v26 = vadd.f32 %v17600_v36, %v16034_v37 }
 0x386   : > { %v23473_v60 = vmax.f32 %v4018_v10, %v4019_v9  ;;  %v23475_v20 = vmax.f32 %v4031_v25, %v4032_v15 }
 0x387   : > { %17458 = vmatmul.mubr.f32.gmra.mrb[16].mxu0 %v26034_v51  ;;  %v23478_v38 = vmax.f32 %v4044_v46, %v4045_v43  ;;  %v4054_v12 = vsel %vm2982_vm4, %v20556_v21, -inf  ;;  %v4065_v59 = vsel %vm3990_vm5, %v20556_v21, -inf  ;;  %v4055_v4 = vsel %vm2982_vm4, %v20555_v26, -inf }
 0x388   : > { %17460 = vmatprep.mubr.f32.mxu0 %v26035_v29  ;;  %v4066_v62 = vsel %vm3990_vm5, %v20555_v26, -inf  ;;  %v4056_v5 = vmax.f32 %v4017_v63, %v4054_v12  ;;  %v4067_v54 = vmax.f32 %v4030_v13, %v4065_v59  ;;  %v4076_v51 = vsel %vm2970_vm3, %v20556_v21, -inf }
 0x389   : > { %v4077_v37 = vsel %vm2970_vm3, %v20555_v26, -inf  ;;  %v4078_v3 = vmax.f32 %v4043_v33, %v4076_v51 }
 0x38a   : > { %v23489_v30 = vmax.f32 %v4056_v5, %v4055_v4  ;;  %v4068_v29 = vmax.f32 %v4067_v54, %v4066_v62 }
 0x38b   : > { %17461 = vmatmul.mubr.f32.gmra.mrb[18].mxu0 %v26036_v19  ;;  %v4079_v19 = vmax.f32 %v4078_v3, %v4077_v37 }
 0x38c   : > { %17463 = vmatprep.mubr.f32.mxu0 %v26037_v41  ;;  %v4069_v40 = vsel %vm3990_vm5, %v4068_v29, -inf }
 0x38d   : > { %v4070_v2 = vrot.slane %v4069_v40, 4  ;;  %v4080_v48 = vsel %vm2970_vm3, %v4079_v19, -inf }
 0x38e   : > { %v4081_v41 = vrot.slane %v4080_v48, 4 }
 0x38f   : > { %17464 = vmatmul.mubr.f32.gmra.mrb[20].mxu0 %v26038_v0  ;;  %v4071_v24 = vmax.f32 %v4069_v40, %v4070_v2 }
 0x390   : > { %17466 = vmatprep.mubr.f32.mxu0 %v26039_v44  ;;  %v4082_v55 = vmax.f32 %v4080_v48, %v4081_v41 }
 0x391   : > { %v4072_v8 = vrot.slane %v4071_v24, 2 }
 0x392   : > { %v4083_v0 = vrot.slane %v4082_v55, 2 }
 0x393   : > { %17467 = vmatmul.mubr.f32.gmra.mrb[22].mxu0 %v26040_v57  ;;  %v4073_v49 = vmax.f32 %v4071_v24, %v4072_v8 }
 0x394   : > { %17469 = vmatprep.mubr.f32.mxu0 %v26041_v39  ;;  %v4084_v44 = vmax.f32 %v4082_v55, %v4083_v0 }
 0x395   : > { %v4074_v16 = vrot.slane %v4073_v49, 1 }
 0x396   : > { %v4085_v45 = vrot.slane %v4084_v44, 1 }
 0x397   : > { %17470 = vmatmul.mubr.f32.gmra.mrb[24].mxu0 %v26042_v31  ;;  %v4075_v7 = vmax.f32 %v4073_v49, %v4074_v16  ;;  %v16035_v31 = vld [vmem:[#allocation14] ss:$0 sm:$0xff] }
 0x398   : > { %17472 = vmatprep.mubr.f32.mxu0 %v26043_v35  ;;  %v4086_v57 = vmax.f32 %v4084_v44, %v4085_v45 }
 0x39a   : > { %v23503_v39 = vsel %vm4790_vm6, %v4075_v7, %v4086_v57 }
 0x39b   : > { %17473 = vmatmul.mubr.f32.gmra.mrb[26].mxu0 %v26044_v6 }
 0x39c   : > { %17475 = vmatprep.mubr.f32.mxu0 %v26045_v53 }
 0x39f   : > { %17476 = vmatmul.mubr.f32.gmra.mrb[28].mxu0 %v26046_v47 }
 0x3a0   : > { %17478 = vmatprep.mubr.f32.mxu0 %v26047_v23 }
 0x3a3   : > { %17479 = vmatmul.mubr.f32.gmra.mrb[30].mxu0 %v26048_v11 }
 0x3d7   : > { %v17714_v35 = vpop.f32.mrb[12].mxu1 }
 0x3d8   : > { %v23507_v61 = vadd.f32 %v17714_v35, %v16035_v31  ;;  %v4687_v6 = vpop.f32.mrb[13].mxu1 }
 0x3d9   : > { %v20558_v53 = vadd.f32 %v16035_v31, %v4687_v6 }
 0x3da   : > { %v23511_v10 = vsel %vm4703_vm7, %v23507_v61, -inf  ;;  %v23522_v36 = vsel %vm4714_vm8, %v23507_v61, -inf  ;;  %v23526_v13 = vsel %vm4725_vm9, %v23507_v61, -inf }
 0x3db   : > { %v4699_v47 = vcombine.high %v20558_v53, %v20558_v53  ;;  %v4704_v22 = vsel %vm4703_vm7, %v20558_v53, -inf  ;;  %v4715_v23 = vsel %vm4714_vm8, %v20558_v53, -inf  ;;  %v4726_v11 = vsel %vm4725_vm9, %v20558_v53, -inf }
 0x3dd   : > { %v4705_v25 = vsel %vm4703_vm7, %v4699_v47, -inf  ;;  %v4716_v52 = vsel %vm4714_vm8, %v4699_v47, -inf  ;;  %v4727_v42 = vsel %vm4725_vm9, %v4699_v47, -inf }
 0x3de   : > { %v4706_v46 = vmax.f32 %v4704_v22, %v4705_v25  ;;  %v4737_v63 = vmax.f32 %v4705_v25, %v23511_v10  ;;  %v4717_v32 = vmax.f32 %v4715_v23, %v4716_v52  ;;  %v4728_v56 = vmax.f32 %v4726_v11, %v4727_v42 }
 0x3df   : > { %v4746_v12 = vmax.f32 %v4716_v52, %v23522_v36  ;;  %v4755_v59 = vmax.f32 %v4727_v42, %v23526_v13 }
 0x3e0   : > { %v4707_v14 = vsel %vm4703_vm7, %v4706_v46, -inf  ;;  %v4738_v33 = vsel %vm4703_vm7, %v4737_v63, -inf  ;;  %v4718_v15 = vsel %vm4714_vm8, %v4717_v32, -inf  ;;  %v4729_v17 = vsel %vm4725_vm9, %v4728_v56, -inf }
 0x3e1   : > { %v4708_v9 = vrot.slane %v4707_v14, 4  ;;  %v4739_v43 = vrot.slane %v4738_v33, 4  ;;  %v4719_v21 = vrot.slane %v4718_v15, 4  ;;  %v4730_v26 = vrot.slane %v4729_v17, 4 }
 0x3e2   : > { %v4747_v51 = vsel %vm4714_vm8, %v4746_v12, -inf  ;;  %v4756_v37 = vsel %vm4725_vm9, %v4755_v59, -inf  ;;  %v3983_v12 = vsel %vm2982_vm4, %v23457_v28, -inf  ;;  %v4008_v28 = vsel %vm2970_vm3, %v23461_v34, -inf }
 0x3e3   : > { %v4709_v4 = vmax.f32 %v4707_v14, %v4708_v9  ;;  %v4740_v62 = vmax.f32 %v4738_v33, %v4739_v43  ;;  %v4720_v5 = vmax.f32 %v4718_v15, %v4719_v21  ;;  %v4731_v54 = vmax.f32 %v4729_v17, %v4730_v26  ;;  %v23545_v43 = vld [vmem:[#allocation10] ss:$0 sm:$0xff] }
 0x3e4   : > { %v4748_v40 = vrot.slane %v4747_v51, 4  ;;  %v4757_v2 = vrot.slane %v4756_v37, 4  ;;  %v23550_v26 = vadd.f32 %v23390_v58, %v23545_v43 }
 0x3e5   : > { %v4710_v29 = vrot.slane %v4709_v4, 2  ;;  %v4741_v3 = vrot.slane %v4740_v62, 2  ;;  %v4721_v19 = vrot.slane %v4720_v5, 2  ;;  %v4732_v24 = vrot.slane %v4731_v54, 2 }
 0x3e6   : > { %v4749_v8 = vmax.f32 %v4747_v51, %v4748_v40  ;;  %v4758_v55 = vmax.f32 %v4756_v37, %v4757_v2 }
 0x3e7   : > { %v4711_v48 = vmax.f32 %v4709_v4, %v4710_v29  ;;  %v4742_v41 = vmax.f32 %v4740_v62, %v4741_v3  ;;  %v4722_v49 = vmax.f32 %v4720_v5, %v4721_v19  ;;  %v4733_v0 = vmax.f32 %v4731_v54, %v4732_v24 }
 0x3e8   : > { %v4750_v7 = vrot.slane %v4749_v8, 2  ;;  %v4759_v45 = vrot.slane %v4758_v55, 2  ;;  %v23557_v62 = vadd.f32 %v23545_v43, %v23393_v50  ;;  %v23561_v5 = vadd.f32 %v23395_v1, %v23545_v43 }
 0x3e9   : > { %v4712_v16 = vrot.slane %v4711_v48, 1  ;;  %v4743_v44 = vrot.slane %v4742_v41, 1  ;;  %v4723_v57 = vrot.slane %v4722_v49, 1  ;;  %v4734_v31 = vrot.slane %v4733_v0, 1 }
 0x3ea   : > { %v4751_v6 = vmax.f32 %v4749_v8, %v4750_v7  ;;  %v4760_v53 = vmax.f32 %v4758_v55, %v4759_v45  ;;  %v3996_v54 = vsel %vm3990_vm5, %v23459_v18, -inf  ;;  %v23573_v3 = vadd.f32 %v23545_v43, %v23397_v27 }
 0x3eb   : > { %v4713_v35 = vmax.f32 %v4711_v48, %v4712_v16  ;;  %v4724_v47 = vmax.f32 %v4722_v49, %v4723_v57  ;;  %v4735_v22 = vmax.f32 %v4733_v0, %v4734_v31  ;;  %v4744_v23 = vmax.f32 %v4742_v41, %v4743_v44 }
 0x3ec   : > { %v4752_v11 = vrot.slane %v4751_v6, 1  ;;  %v4761_v25 = vrot.slane %v4760_v53, 1  ;;  %v3984_v1 = vrot.slane %v3983_v12, 4  ;;  %v3997_v2 = vrot.slane %v3996_v54, 4 }
 0x3ed   : > { %v4812_v46 = vsel %vm4792_vm10, %v23503_v39, %v4713_v35  ;;  %v4009_v41 = vrot.slane %v4008_v28, 4 }
 0x3ee   : > { %v4813_v52 = vsel %vm4794_vm11, %v4812_v46, %v4724_v47  ;;  %v4753_v42 = vmax.f32 %v4751_v6, %v4752_v11  ;;  %v4762_v63 = vmax.f32 %v4760_v53, %v4761_v25 }
 0x3ef   : > { %v4814_v32 = vsel %vm4796_vm12, %v4813_v52, %v4735_v22  ;;  %v3985_v22 = vmax.f32 %v3983_v12, %v3984_v1  ;;  %v23593_v52 = vmax.f32 %v3996_v54, %v3997_v2  ;;  %v4700_v1 = vcombine.high %v23507_v61, %v23507_v61 }
 0x3f0   : > { %v4815_v56 = vsel %vm4798_vm13, %v4814_v32, %v4744_v23 }
 0x3f1   : > { %v4816_v14 = vsel %vm4800_vm14, %v4815_v56, %v4753_v42  ;;  %v23595_v42 = vmax.f32 %v4008_v28, %v4009_v41 }
 0x3f2   : > { %v23543_v33 = vsel %vm4802_vm15, %v4816_v14, %v4762_v63  ;;  %v4021_v63 = vsel %vm2982_vm4, %v23473_v60, -inf }
 0x43a   : > { %v17435_v9 = vpop.f32.mrb[0].mxu0 }
 0x43b   : > { %v2761_v15 = vpop.f32.mrb[1].mxu0  ;;  %v20513_v21 = vadd.f32 %v17435_v9, %v23545_v43 }
 0x43c   : > { %v20514_v59 = vadd.f32 %v23545_v43, %v2761_v15 }
 0x43d   : > { %v2983_v40 = vsel %vm2982_vm4, %v20513_v21, -inf  ;;  %v3004_v56 = vsel %vm3003_vm1, %v20513_v21, -inf  ;;  %v4022_v21 = vrot.slane %v4021_v63, 4 }
 0x43e   : > { %v17438_v17 = vpop.f32.mrb[2].mxu0  ;;  %v2971_v19 = vsel %vm2970_vm3, %v20514_v59, -inf  ;;  %v2952_v14 = vsel %vm2951_vm0, %v20514_v59, -inf  ;;  %v23609_v59 = vsel %vm3990_vm5, %v23475_v20, -inf  ;;  %vm15160_vm5 = vcmask 195584  }
 0x43f   : > { %v2773_v39 = vpop.f32.mrb[3].mxu0  ;;  %v20515_v37 = vadd.f32 %v17438_v17, %v23545_v43 }
 0x440   : > { %v20516_v29 = vadd.f32 %v23545_v43, %v2773_v39 }
 0x441   : > { %v2984_v27 = vsel %vm2982_vm4, %v20515_v37, -inf }
 0x442   : > { %v17441_v4 = vpop.f32.mrb[4].mxu0  ;;  %v2972_v0 = vsel %vm2970_vm3, %v20516_v29, -inf  ;;  %v2953_v2 = vsel %vm2951_vm0, %v20516_v29, -inf  ;;  %v4011_v29 = vrot.slane %v23595_v42, 2 }
 0x443   : > { %v20517_v58 = vadd.f32 %v17441_v4, %v23545_v43  ;;  %v2785_v51 = vpop.f32.mrb[5].mxu0 }
 0x444   : > { %v20518_v50 = vadd.f32 %v23545_v43, %v2785_v51 }
 0x445   : > { %v2985_v18 = vsel %vm2982_vm4, %v20517_v58, -inf  ;;  %v3006_v44 = vsel %vm3003_vm1, %v20517_v58, -inf  ;;  %v3986_v58 = vrot.slane %v3985_v22, 2 }
 0x446   : > { %v2986_v24 = vmax.f32 %v2983_v40, %v2985_v18  ;;  %v2973_v34 = vsel %vm2970_vm3, %v20518_v50, -inf  ;;  %v17444_v48 = vpop.f32.mrb[6].mxu0  ;;  %v23585_v7 = vsel %vm2951_vm0, %v20518_v50, -inf  ;;  %v3005_v18 = vsel %vm3003_vm1, %v20515_v37, -inf }
 0x447   : > { %v2974_v8 = vmax.f32 %v2971_v19, %v2973_v34  ;;  %v20519_v55 = vadd.f32 %v17444_v48, %v23545_v43  ;;  %v2797_v49 = vpop.f32.mrb[7].mxu0  ;;  %v3999_v37 = vrot.slane %v23593_v52, 2 }
 0x448   : > { %v20520_v16 = vadd.f32 %v23545_v43, %v2797_v49 }
 0x449   : > { %v2987_v45 = vsel %vm2982_vm4, %v20519_v55, -inf  ;;  %v3007_v57 = vsel %vm3003_vm1, %v20519_v55, -inf }
 0x44a   : > { %v2988_v31 = vmax.f32 %v2984_v27, %v2987_v45  ;;  %v3013_v35 = vmax.f32 %v3006_v44, %v3007_v57  ;;  %v2955_v6 = vsel %vm2951_vm0, %v20520_v16, -inf  ;;  %v2975_v53 = vsel %vm2970_vm3, %v20520_v16, -inf  ;;  %v17447_v47 = vpop.f32.mrb[8].mxu0 }
 0x44b   : > { %v2961_v23 = vmax.f32 %v23585_v7, %v2955_v6  ;;  %v2976_v11 = vmax.f32 %v2972_v0, %v2975_v53  ;;  %v20521_v25 = vadd.f32 %v17447_v47, %v23545_v43  ;;  %v2809_v46 = vpop.f32.mrb[9].mxu0  ;;  %v23634_v27 = vmax.f32 %v3985_v22, %v3986_v58 }
 0x44c   : > { %v20522_v32 = vadd.f32 %v23545_v43, %v2809_v46  ;;  %v4035_v0 = vrot.slane %v23609_v59, 4  ;;  %v23637_v7 = vmax.f32 %v4021_v63, %v4022_v21  ;;  %v23641_v6 = vsel %vm4703_vm7, %v4700_v1, -inf }
 0x44d   : > { %v2989_v9 = vsel %vm2982_vm4, %v20521_v25, -inf  ;;  %v3008_v15 = vsel %vm3003_vm1, %v20521_v25, -inf  ;;  %v23648_v25 = vsel %vm4714_vm8, %v4700_v1, -inf }
 0x44e   : > { %v2990_v17 = vmax.f32 %v2986_v24, %v2989_v9  ;;  %v3009_v39 = vmax.f32 %v3004_v56, %v3008_v15  ;;  %v2956_v12 = vsel %vm2951_vm0, %v20522_v32, -inf  ;;  %v2977_v4 = vsel %vm2970_vm3, %v20522_v32, -inf  ;;  %v17450_v54 = vpop.f32.mrb[10].mxu0 }
 0x44f   : > { %v2957_v51 = vmax.f32 %v2952_v14, %v2956_v12  ;;  %v2978_v60 = vmax.f32 %v2974_v8, %v2977_v4  ;;  %v20523_v28 = vadd.f32 %v17450_v54, %v23545_v43  ;;  %v2821_v50 = vpop.f32.mrb[11].mxu0  ;;  %v23653_v14 = vsel %vm4725_vm9, %v4700_v1, -inf }
 0x450   : > { %v20524_v40 = vadd.f32 %v23545_v43, %v2821_v50 }
 0x451   : > { %v23617_v19 = vsel %vm2982_vm4, %v20523_v28, -inf  ;;  %v23620_v24 = vsel %vm3003_vm1, %v20523_v28, -inf }
 0x452   : > { %v2992_v34 = vmax.f32 %v2988_v31, %v23617_v19  ;;  %v3011_v20 = vmax.f32 %v3005_v18, %v23620_v24  ;;  %v23625_v48 = vsel %vm2951_vm0, %v20524_v40, -inf  ;;  %v23628_v61 = vsel %vm2970_vm3, %v20524_v40, -inf  ;;  %v17453_v41 = vpop.f32.mrb[12].mxu0 }
 0x453   : > { %v2959_v8 = vmax.f32 %v2953_v2, %v23625_v48  ;;  %v2980_v55 = vmax.f32 %v2976_v11, %v23628_v61  ;;  %v2833_v49 = vpop.f32.mrb[13].mxu0  ;;  %v20525_v31 = vadd.f32 %v17453_v41, %v23545_v43 }
 0x454   : > { %v2993_v16 = vmax.f32 %v2990_v17, %v2992_v34  ;;  %v3012_v44 = vmax.f32 %v3009_v39, %v3011_v20  ;;  %v23645_v11 = vadd.f32 %v23545_v43, %v2833_v49 }
 0x455   : > { %v2960_v45 = vmax.f32 %v2957_v51, %v2959_v8  ;;  %v2981_v57 = vmax.f32 %v2978_v60, %v2980_v55  ;;  %v3049_v12 = vsel %vm2982_vm4, %v20525_v31, -inf }
 0x456   : > { %v2995_v53 = vsel %vm2982_vm4, %v2993_v16, -inf  ;;  %v3014_v47 = vmax.f32 %v3012_v44, %v3013_v35  ;;  %v17456_v22 = vpop.f32.mrb[14].mxu0  ;;  %v23662_v58 = vsel %vm2970_vm3, %v23645_v11, -inf }
 0x457   : > { %v2962_v46 = vmax.f32 %v2960_v45, %v2961_v23  ;;  %v2994_v63 = vsel %vm2970_vm3, %v2981_v57, -inf  ;;  %v20527_v32 = vadd.f32 %v17456_v22, %v23545_v43  ;;  %v2845_v56 = vpop.f32.mrb[15].mxu0 }
 0x458   : > { %v3015_v9 = vsel %vm3003_vm1, %v3014_v47, -inf  ;;  %v2996_v15 = vmax.f32 %v2994_v63, %v2995_v53  ;;  %v20528_v35 = vadd.f32 %v23545_v43, %v2845_v56 }
 0x459   : > { %v3016_v17 = vrot.slane %v3015_v9, 4  ;;  %v2963_v39 = vsel %vm2951_vm0, %v2962_v46, -inf  ;;  %v3050_v23 = vsel %vm2982_vm4, %v20527_v32, -inf  ;;  %v23666_v50 = vsel %vm3003_vm1, %v20527_v32, -inf }
 0x45a   : > { %v2964_v4 = vrot.slane %v2963_v39, 4  ;;  %v2997_v54 = vrot.slane %v2996_v15, 4  ;;  %v3051_v51 = vmax.f32 %v23617_v19, %v3050_v23  ;;  %v17459_v60 = vpop.f32.mrb[16].mxu0  ;;  %v3040_v21 = vsel %vm2970_vm3, %v20528_v35, -inf }
 0x45b   : > { %v3017_v28 = vmax.f32 %v3015_v9, %v3016_v17  ;;  %v20529_v1 = vadd.f32 %v17459_v60, %v23545_v43  ;;  %v2857_v40 = vpop.f32.mrb[17].mxu0  ;;  %v3041_v34 = vmax.f32 %v23628_v61, %v3040_v21  ;;  %v23673_v8 = vsel %vm2951_vm0, %v20528_v35, -inf }
 0x45c   : > { %v2965_v18 = vmax.f32 %v2963_v39, %v2964_v4  ;;  %v2998_v2 = vmax.f32 %v2996_v15, %v2997_v54  ;;  %v20530_v20 = vadd.f32 %v23545_v43, %v2857_v40 }
 0x45d   : > { %v3018_v41 = vrot.slane %v3017_v28, 2  ;;  %v3052_v19 = vsel %vm2982_vm4, %v20529_v1, -inf  ;;  %v3070_v55 = vsel %vm3003_vm1, %v20529_v1, -inf }
 0x45e   : > { %v2966_v49 = vrot.slane %v2965_v18, 2  ;;  %v2999_v16 = vrot.slane %v2998_v2, 2  ;;  %v3053_v44 = vmax.f32 %v3049_v12, %v3052_v19  ;;  %v3076_v45 = vmax.f32 %v23666_v50, %v3070_v55  ;;  %v17462_v57 = vpop.f32.mrb[18].mxu0 }
 0x45f   : > { %v3019_v53 = vmax.f32 %v3017_v28, %v3018_v41  ;;  %v3024_v47 = vsel %vm2951_vm0, %v20530_v20, -inf  ;;  %v3042_v61 = vsel %vm2970_vm3, %v20530_v20, -inf  ;;  %v20531_v22 = vadd.f32 %v17462_v57, %v23545_v43  ;;  %v2869_v46 = vpop.f32.mrb[19].mxu0 }
 0x460   : > { %v2967_v63 = vmax.f32 %v2965_v18, %v2966_v49  ;;  %v3000_v32 = vmax.f32 %v2998_v2, %v2999_v16  ;;  %v3030_v56 = vmax.f32 %v23673_v8, %v3024_v47  ;;  %v3043_v9 = vmax.f32 %v23662_v58, %v3042_v61 }
 0x461   : > { %v3020_v15 = vrot.slane %v3019_v53, 1  ;;  %v3054_v35 = vsel %vm2982_vm4, %v20531_v22, -inf  ;;  %v3071_v17 = vsel %vm3003_vm1, %v20531_v22, -inf  ;;  %v20532_v39 = vadd.f32 %v23545_v43, %v2869_v46 }
 0x462   : > { %v2968_v12 = vrot.slane %v2967_v63, 1  ;;  %v3001_v23 = vrot.slane %v3000_v32, 1  ;;  %v3055_v4 = vmax.f32 %v3051_v51, %v3054_v35  ;;  %v3072_v54 = vmax.f32 %v23620_v24, %v3071_v17  ;;  %v17465_v60 = vpop.f32.mrb[20].mxu0 }
 0x463   : > { %v3068_v28 = vsel %vm3003_vm1, %v20525_v31, -inf  ;;  %v3025_v50 = vsel %vm2951_vm0, %v20532_v39, -inf  ;;  %v3044_v21 = vsel %vm2970_vm3, %v20532_v39, -inf  ;;  %v20533_v58 = vadd.f32 %v17465_v60, %v23545_v43  ;;  %v2881_v1 = vpop.f32.mrb[21].mxu0 }
 0x464   : > { %v2969_v40 = vmax.f32 %v2967_v63, %v2968_v12  ;;  %v3002_v18 = vmax.f32 %v3000_v32, %v3001_v23  ;;  %v3026_v2 = vmax.f32 %v23625_v48, %v3025_v50  ;;  %v3045_v20 = vmax.f32 %v3041_v34, %v3044_v21 }
 0x465   : > { %v3021_v41 = vmax.f32 %v3019_v53, %v3020_v15  ;;  %v23693_v51 = vsel %vm2982_vm4, %v20533_v58, -inf  ;;  %v23696_v24 = vsel %vm3003_vm1, %v20533_v58, -inf  ;;  %v20534_v31 = vadd.f32 %v23545_v43, %v2881_v1 }
 0x466   : > { %v4764_v8 = vmax.f32 %v23511_v10, %v23641_v6  ;;  %v3057_v19 = vmax.f32 %v3053_v44, %v23693_v51  ;;  %v3074_v55 = vmax.f32 %v3068_v28, %v23696_v24  ;;  %v17468_v49 = vpop.f32.mrb[22].mxu0  ;;  %v4791_v48 = vsel %vm4790_vm6, %v2969_v40, %v3002_v18 }
 0x467   : > { %v3022_v34 = vsel %vm2951_vm0, %v23645_v11, -inf  ;;  %v23707_v16 = vsel %vm2951_vm0, %v20534_v31, -inf  ;;  %v23710_v57 = vsel %vm2970_vm3, %v20534_v31, -inf  ;;  %v2893_v53 = vpop.f32.mrb[23].mxu0  ;;  %v23713_v47 = vsel %vm4792_vm10, %v4791_v48, %v3021_v41 }
 0x468   : > { %v3058_v10 = vmax.f32 %v3055_v4, %v3057_v19  ;;  %v3075_v6 = vmax.f32 %v3072_v54, %v3074_v55  ;;  %v3028_v44 = vmax.f32 %v3022_v34, %v23707_v16  ;;  %v3047_v61 = vmax.f32 %v3043_v9, %v23710_v57 }
 0x469   : > { %v23719_v22 = vsel %vm2970_vm3, %v23478_v38, -inf  ;;  %v23723_v11 = vsel %vm2982_vm4, %v23489_v30, -inf  ;;  %v4773_v46 = vmax.f32 %v23522_v36, %v23648_v25  ;;  %v20535_v63 = vadd.f32 %v17468_v49, %v23545_v43 }
 0x46a   : > { %v3060_v32 = vsel %vm2982_vm4, %v3058_v10, -inf  ;;  %v3077_v15 = vmax.f32 %v3075_v6, %v3076_v45  ;;  %v3029_v35 = vmax.f32 %v3026_v2, %v3028_v44  ;;  %v3048_v17 = vmax.f32 %v3045_v20, %v3047_v61  ;;  %v17471_v39 = vpop.f32.mrb[24].mxu0 }
 0x46b   : > { %v23730_v9 = vsel %vm4703_vm7, %v4764_v8, -inf  ;;  %v4782_v38 = vmax.f32 %v23526_v13, %v23653_v14  ;;  %v20536_v30 = vadd.f32 %v23545_v43, %v2893_v53  ;;  %v20537_v12 = vadd.f32 %v17471_v39, %v23545_v43  ;;  %v2905_v23 = vpop.f32.mrb[25].mxu0 }
 0x46c   : > { %v3078_v36 = vsel %vm3003_vm1, %v3077_v15, -inf  ;;  %v3031_v25 = vmax.f32 %v3029_v35, %v3030_v56  ;;  %v3059_v4 = vsel %vm2970_vm3, %v3048_v17, -inf  ;;  %v20538_v45 = vadd.f32 %v23545_v43, %v2905_v23 }
 0x46d   : > { %v23740_v54 = vsel %vm4714_vm8, %v4773_v46, -inf  ;;  %v3079_v60 = vrot.slane %v3078_v36, 4  ;;  %v3061_v28 = vmax.f32 %v3059_v4, %v3060_v32  ;;  %v3113_v50 = vsel %vm2982_vm4, %v20537_v12, -inf }
 0x46e   : > { %v3032_v21 = vsel %vm2951_vm0, %v3031_v25, -inf  ;;  %v3112_v58 = vsel %vm2982_vm4, %v20535_v63, -inf  ;;  %v3114_v1 = vmax.f32 %v23693_v51, %v3113_v50  ;;  %v3103_v40 = vsel %vm2970_vm3, %v20538_v45, -inf  ;;  %v17474_v56 = vpop.f32.mrb[26].mxu0 }
 0x46f   : > { %v3080_v18 = vmax.f32 %v3078_v36, %v3079_v60  ;;  %v3033_v2 = vrot.slane %v3032_v21, 4  ;;  %v3062_v20 = vrot.slane %v3061_v28, 4  ;;  %v3104_v41 = vmax.f32 %v23710_v57, %v3103_v40  ;;  %v2917_v31 = vpop.f32.mrb[27].mxu0 }
 0x470   : > { %v3102_v8 = vsel %vm2970_vm3, %v20536_v30, -inf  ;;  %v23750_v19 = vsel %vm3003_vm1, %v20537_v12, -inf  ;;  %v20539_v55 = vadd.f32 %v17474_v56, %v23545_v43  ;;  %v20540_v49 = vadd.f32 %v23545_v43, %v2917_v31 }
 0x471   : > { %v3081_v48 = vrot.slane %v3080_v18, 2  ;;  %v3034_v51 = vmax.f32 %v3032_v21, %v3033_v2  ;;  %v3063_v34 = vmax.f32 %v3061_v28, %v3062_v20  ;;  %v3086_v53 = vsel %vm2951_vm0, %v20538_v45, -inf }
 0x472   : > { %v3115_v10 = vsel %vm2982_vm4, %v20539_v55, -inf  ;;  %v3133_v6 = vsel %vm3003_vm1, %v20539_v55, -inf  ;;  %v3087_v57 = vsel %vm2951_vm0, %v20540_v49, -inf  ;;  %v3105_v44 = vsel %vm2970_vm3, %v20540_v49, -inf  ;;  %v17477_v61 = vpop.f32.mrb[28].mxu0 }
 0x473   : > { %v3035_v46 = vrot.slane %v3034_v51, 2  ;;  %v3064_v32 = vrot.slane %v3063_v34, 2  ;;  %v3116_v15 = vmax.f32 %v3112_v58, %v3115_v10  ;;  %v3139_v35 = vmax.f32 %v23750_v19, %v3133_v6  ;;  %v2929_v43 = vpop.f32.mrb[29].mxu0 }
 0x474   : > { %v3093_v17 = vmax.f32 %v3086_v53, %v3087_v57  ;;  %v3106_v39 = vmax.f32 %v3102_v8, %v3105_v44  ;;  %v20542_v12 = vadd.f32 %v17477_v61, %v23550_v26  ;;  %v20544_v23 = vadd.f32 %v2929_v43, %v23557_v62 }
 0x475   : > { %v3036_v36 = vmax.f32 %v3034_v51, %v3035_v46  ;;  %v3065_v25 = vmax.f32 %v3063_v34, %v3064_v32  ;;  %v3131_v4 = vsel %vm3003_vm1, %v20535_v63, -inf  ;;  %v3082_v45 = vmax.f32 %v3080_v18, %v3081_v48 }
 0x476   : > { %v3117_v60 = vsel %vm2982_vm4, %v20542_v12, -inf  ;;  %v3134_v28 = vsel %vm3003_vm1, %v20542_v12, -inf  ;;  %v3088_v50 = vsel %vm2951_vm0, %v20544_v23, -inf  ;;  %v3107_v21 = vsel %vm2970_vm3, %v20544_v23, -inf  ;;  %v17480_v58 = vpop.f32.mrb[30].mxu0 }
 0x477   : > { %v3037_v40 = vrot.slane %v3036_v36, 1  ;;  %v3066_v56 = vrot.slane %v3065_v25, 1  ;;  %v3118_v2 = vmax.f32 %v3114_v1, %v3117_v60  ;;  %v3135_v26 = vmax.f32 %v23696_v24, %v3134_v28  ;;  %v2941_v62 = vpop.f32.mrb[31].mxu0 }
 0x478   : > { %v3089_v20 = vmax.f32 %v23707_v16, %v3088_v50  ;;  %v3108_v31 = vmax.f32 %v3104_v41, %v3107_v21  ;;  %v20546_v63 = vadd.f32 %v17480_v58, %v23561_v5  ;;  %v20548_v18 = vadd.f32 %v2941_v62, %v23573_v3 }
 0x479   : > { %v3038_v8 = vmax.f32 %v3036_v36, %v3037_v40  ;;  %v3085_v19 = vsel %vm2951_vm0, %v20536_v30, -inf  ;;  %v3067_v55 = vmax.f32 %v3065_v25, %v3066_v56  ;;  %v3083_v49 = vrot.slane %v3082_v45, 1 }
 0x47a   : > { %v3119_v48 = vsel %vm2982_vm4, %v20546_v63, -inf  ;;  %v3136_v51 = vsel %vm3003_vm1, %v20546_v63, -inf  ;;  %v3090_v1 = vsel %vm2951_vm0, %v20548_v18, -inf  ;;  %v3109_v24 = vsel %vm2970_vm3, %v20548_v18, -inf }
 0x47b   : > { %v3120_v34 = vmax.f32 %v3116_v15, %v3119_v48  ;;  %v3137_v16 = vmax.f32 %v3131_v4, %v3136_v51  ;;  %v3091_v41 = vmax.f32 %v3085_v19, %v3090_v1  ;;  %v3110_v53 = vmax.f32 %v3106_v39, %v3109_v24 }
 0x47c   : > { %v4048_v5 = vrot.slane %v23719_v22, 4  ;;  %v4059_v3 = vrot.slane %v23723_v11, 4  ;;  %v4766_v30 = vrot.slane %v23730_v9, 4  ;;  %v4795_v10 = vsel %vm4794_vm11, %v23713_v47, %v3038_v8 }
 0x47d   : > { %v3121_v6 = vmax.f32 %v3118_v2, %v3120_v34  ;;  %v3138_v57 = vmax.f32 %v3135_v26, %v3137_v16  ;;  %v3092_v44 = vmax.f32 %v3089_v20, %v3091_v41  ;;  %v3111_v61 = vmax.f32 %v3108_v31, %v3110_v53 }
 0x47e   : > { %v4775_v46 = vrot.slane %v23740_v54, 4  ;;  %v3084_v32 = vmax.f32 %v3082_v45, %v3083_v49  ;;  %v4797_v15 = vsel %vm4796_vm12, %v4795_v10, %v3067_v55  ;;  %v4783_v43 = vsel %vm4725_vm9, %v4782_v38, -inf }
 0x47f   : > { %v3123_v39 = vsel %vm2982_vm4, %v3121_v6, -inf  ;;  %v3140_v12 = vmax.f32 %v3138_v57, %v3139_v35  ;;  %v3094_v23 = vmax.f32 %v3092_v44, %v3093_v17  ;;  %v3122_v47 = vsel %vm2970_vm3, %v3111_v61, -inf }
 0x480   : > { %v4024_v36 = vrot.slane %v23637_v7, 2  ;;  %v4036_v25 = vmax.f32 %v23609_v59, %v4035_v0  ;;  %v3124_v4 = vmax.f32 %v3122_v47, %v3123_v39  ;;  %v4799_v45 = vsel %vm4798_vm13, %v4797_v15, %v3084_v32 }
 0x481   : > { %v4049_v60 = vmax.f32 %v23719_v22, %v4048_v5  ;;  %v3141_v13 = vsel %vm3003_vm1, %v3140_v12, -inf  ;;  %v3095_v14 = vsel %vm2951_vm0, %v3094_v23, -inf  ;;  %v4060_v38 = vmax.f32 %v23723_v11, %v4059_v3 }
 0x482   : > { %v3142_v35 = vrot.slane %v3141_v13, 4  ;;  %v3096_v17 = vrot.slane %v3095_v14, 4  ;;  %v3125_v28 = vrot.slane %v3124_v4, 4  ;;  %v4784_v50 = vrot.slane %v4783_v43, 4 }
 0x483   : > { %v4000_v21 = vmax.f32 %v23593_v52, %v3999_v37  ;;  %v4012_v59 = vmax.f32 %v23595_v42, %v4011_v29  ;;  %v4767_v0 = vmax.f32 %v23730_v9, %v4766_v30  ;;  %v4776_v22 = vmax.f32 %v23740_v54, %v4775_v46  ;;  %v6305_v52 = vpop.xlane.xlu0 %6304  ;;  %v21236_v46 = vld [vmem:[%s22455_s23] sm:$0xff] }
 0x484   : > { %v4037_v58 = vrot.slane %v4036_v25, 2  ;;  %v3143_v40 = vmax.f32 %v3141_v13, %v3142_v35  ;;  %v3097_v56 = vmax.f32 %v3095_v14, %v3096_v17  ;;  %v3126_v11 = vmax.f32 %v3124_v4, %v3125_v28 }
 0x485   : > { %v3988_v2 = vrot.slane %v23634_v27, 1  ;;  %v4025_v26 = vmax.f32 %v23637_v7, %v4024_v36  ;;  %v4050_v62 = vrot.slane %v4049_v60, 2  ;;  %v4061_v20 = vrot.slane %v4060_v38, 2 }
 0x486   : > { %v3144_v31 = vrot.slane %v3143_v40, 2  ;;  %v3098_v37 = vrot.slane %v3097_v56, 2  ;;  %v3127_v63 = vrot.slane %v3126_v11, 2  ;;  %v4785_v18 = vmax.f32 %v4783_v43, %v4784_v50 }
 0x487   : > { %v4001_v42 = vrot.slane %v4000_v21, 1  ;;  %v4013_v29 = vrot.slane %v4012_v59, 1  ;;  %v4768_v9 = vrot.slane %v4767_v0, 2  ;;  %v4777_v8 = vrot.slane %v4776_v22, 2 }
 0x488   : > { %v3145_v54 = vmax.f32 %v3143_v40, %v3144_v31  ;;  %v3099_v19 = vmax.f32 %v3097_v56, %v3098_v37  ;;  %v3128_v55 = vmax.f32 %v3126_v11, %v3127_v63  ;;  %v4038_v49 = vmax.f32 %v4036_v25, %v4037_v58 }
 0x489   : > { %v6307_v48 = vmul.f32 0.0078125, %v6305_v52  ;;  %v4026_v51 = vrot.slane %v4025_v26, 1  ;;  %v4051_v1 = vmax.f32 %v4049_v60, %v4050_v62  ;;  %v4062_v7 = vmax.f32 %v4060_v38, %v4061_v20  ;;  %v6332_v62 = vld [vmem:[%s26049_s7] sm:$0xff]  ;;  %v6333_v20 = vld [vmem:[%s26049_s7 + $0x8] sm:$0xff] }
 0x48a   : > { %v3146_v24 = vrot.slane %v3145_v54, 1  ;;  %v3100_v34 = vrot.slane %v3099_v19, 1  ;;  %v3129_v16 = vrot.slane %v3128_v55, 1  ;;  %v4786_v41 = vrot.slane %v4785_v18, 2 }
 0x48b   : > { %v3989_v53 = vmax.f32 %v23634_v27, %v3988_v2  ;;  %v4002_v5 = vmax.f32 %v4000_v21, %v4001_v42  ;;  %v4769_v3 = vmax.f32 %v4767_v0, %v4768_v9  ;;  %v4778_v30 = vmax.f32 %v4776_v22, %v4777_v8  ;;  %v6335_v9 = vld [vmem:[%s26049_s7 + $0x18] sm:$0xff] }
 0x48c   : > { %v3147_v10 = vmax.f32 %v3145_v54, %v3146_v24  ;;  %v3101_v6 = vmax.f32 %v3099_v19, %v3100_v34  ;;  %v3130_v57 = vmax.f32 %v3128_v55, %v3129_v16  ;;  %v4039_v44 = vrot.slane %v4038_v49, 1  ;;  %v6336_v55 = vld [vmem:[%s26049_s7 + $0x20] sm:$0xff]  ;;  %v6339_v24 = vld [vmem:[%s26049_s7 + $0x38] sm:$0xff] }
 0x48d   : > { %v4014_v61 = vmax.f32 %v4012_v59, %v4013_v29  ;;  %v23810_v32 = vsub.f32 %v21236_v46, %v6307_v48  ;;  %v4027_v15 = vmax.f32 %v4025_v26, %v4026_v51  ;;  %v4052_v43 = vrot.slane %v4051_v1, 1  ;;  %v6334_v29 = vld [vmem:[%s26049_s7 + $0x10] sm:$0xff] }
 0x48e   : > { %v4801_v39 = vsel %vm4800_vm14, %v4799_v45, %v3101_v6  ;;  %v4063_v12 = vrot.slane %v4062_v7, 1  ;;  %v4804_v23 = vsel %vm4790_vm6, %v3147_v10, %v3989_v53  ;;  %v4787_v47 = vmax.f32 %v4785_v18, %v4786_v41  ;;  %v6340_v53 = vld [vmem:[%s26049_s7 + $0x40] sm:$0xff]  ;;  %v6342_v6 = vld [vmem:[%s26049_s7 + $0x50] sm:$0xff] }
 0x48f   : > { %v23815_v27 = vsel %vm4802_vm15, %v4801_v39, %v3130_v57  ;;  %v4805_v36 = vsel %vm4792_vm10, %v4804_v23, %v4002_v5  ;;  %v4770_v25 = vrot.slane %v4769_v3, 1  ;;  %v4779_v4 = vrot.slane %v4778_v30, 1  ;;  %v6341_v5 = vld [vmem:[%s26049_s7 + $0x48] sm:$0xff]  ;;  %v6343_v57 = vld [vmem:[%s26049_s7 + $0x58] sm:$0xff] }
 0x490   : > { %v4820_v60 = vsel %vm4112_vm2, %v23815_v27, 0.0  ;;  %v4040_v13 = vmax.f32 %v4038_v49, %v4039_v44  ;;  %v4806_v14 = vsel %vm4794_vm11, %v4805_v36, %v4014_v61  ;;  %v4053_v38 = vmax.f32 %v4051_v1, %v4052_v43  ;;  %v6337_v49 = vld [vmem:[%s26049_s7 + $0x28] sm:$0xff] }
 0x491   : > { %4821 = vadd.xlane.f32.xlu0 %v4820_v60  ;;  %v4807_v45 = vsel %vm4796_vm12, %v4806_v14, %v4027_v15  ;;  %v6309_v35 = vmul.f32 %v23810_v32, %v23810_v32  ;;  %v4064_v17 = vmax.f32 %v4062_v7, %v4063_v12  ;;  %v4788_v50 = vrot.slane %v4787_v47, 1  ;;  %v6338_v7 = vld [vmem:[%s26049_s7 + $0x30] sm:$0xff]  ;;  %v6344_v12 = vld [vmem:[%s26049_s7 + $0x60] sm:$0xff]  ;;  %v6345_v23 = vld [vmem:[%s26049_s7 + $0x68] sm:$0xff] }
 0x492   : > { %v4808_v28 = vsel %vm4798_vm13, %v4807_v45, %v4040_v13  ;;  %v4771_v59 = vmax.f32 %v4769_v3, %v4770_v25  ;;  %v4780_v0 = vmax.f32 %v4778_v30, %v4779_v4  ;;  %v4826_v11 = vsel %vm4112_vm2, %v23543_v33, 0.0  ;;  %v6347_v13 = vld [vmem:[%s26049_s7 + $0x78] sm:$0xff] }
 0x493   : > { %v4809_v21 = vsel %vm4800_vm14, %v4808_v28, %v4053_v38  ;;  %v4789_v40 = vmax.f32 %v4787_v47, %v4788_v50  ;;  %v21812_v31 = vmov 0.0|0.0   ;;  %v6356_v52 = vand.u32 4294901760, %v6332_v62  ;;  %v6346_v47 = vld [vmem:[%s26049_s7 + $0x70] sm:$0xff] }
 0x494   : > { %v23827_v22 = vsel %vm4802_vm15, %v4809_v21, %v4064_v17  ;;  %v4818_v56 = vsel %vm4790_vm6, %v4771_v59, %v4780_v0  ;;  %19719 = vmatprep.subr.bf16.mxu0 %v21812_v31  ;;  %v6359_v37 = vand.u32 4294901760, %v6333_v20  ;;  %v6362_v8 = vand.u32 4294901760, %v6334_v29 }
 0x495   : > { %v4823_v58 = vsel %vm4112_vm2, %v23827_v22, 0.0  ;;  %6310 = vadd.xlane.f32.xlu0 %v6309_v35  ;;  %v23835_v2 = vsel %vm4792_vm10, %v4818_v56, %v4789_v40  ;;  %v23848_v18 = vsub.f32 %v6332_v62, %v6356_v52  ;;  %v6365_v54 = vand.u32 4294901760, %v6335_v9 }
 0x496   : > { %4824 = vadd.xlane.f32.xlu1 %v4823_v58  ;;  %v4829_v26 = vsel %vm2982_vm4, %v23835_v2, 0.0  ;;  %v23846_v63 = vpack.c.bf16 %v6359_v37, %v6356_v52  ;;  %v23850_v42 = vsub.f32 %v6333_v20, %v6359_v37  ;;  %v6368_v48 = vand.u32 4294901760, %v6336_v55 }
 0x497   : > { %v23860_v19 = vpack.c.bf16 %v6365_v54, %v6362_v8  ;;  %v6371_v51 = vand.u32 4294901760, %v6337_v49  ;;  %v6374_v34 = vand.u32 4294901760, %v6338_v7  ;;  %v6377_v16 = vand.u32 4294901760, %v6339_v24 }
 0x498   : > { %19721 = vmatpush3.bf16.msra.mxu0 %v23846_v63  ;;  %v6380_v3 = vand.u32 4294901760, %v6340_v53  ;;  %v6383_v30 = vand.u32 4294901760, %v6341_v5  ;;  %v6386_v44 = vand.u32 4294901760, %v6342_v6  ;;  %v6389_v61 = vand.u32 4294901760, %v6343_v57 }
 0x499   : > { %19722 = vmatprep.subr.bf16.mxu0 %v21812_v31  ;;  %v23870_v1 = vpack.c.bf16 %v6371_v51, %v6368_v48  ;;  %v23880_v41 = vpack.c.bf16 %v6377_v16, %v6374_v34  ;;  %v23898_v46 = vsub.f32 %v6334_v29, %v6362_v8  ;;  %v23900_v15 = vsub.f32 %v6335_v9, %v6365_v54 }
 0x49a   : > { %4827 = vadd.xlane.f32.xlu1 %v4826_v11  ;;  %v23890_v10 = vpack.c.bf16 %v6383_v30, %v6380_v3  ;;  %v23902_v43 = vsub.f32 %v6336_v55, %v6368_v48  ;;  %v23904_v39 = vsub.f32 %v6337_v49, %v6371_v51  ;;  %v23916_v36 = vsub.f32 %v6338_v7, %v6374_v34 }
 0x49b   : > { %v23918_v25 = vsub.f32 %v6339_v24, %v6377_v16  ;;  %v23920_v4 = vsub.f32 %v6340_v53, %v6380_v3  ;;  %v23922_v60 = vsub.f32 %v6341_v5, %v6383_v30  ;;  %v23928_v14 = vpack.c.bf16 %v6389_v61, %v6386_v44 }
 0x49c   : > { %19724 = vmatpush3.bf16.msra.mxu0 %v23860_v19  ;;  %v23930_v38 = vsub.f32 %v6342_v6, %v6386_v44  ;;  %v23932_v45 = vsub.f32 %v6343_v57, %v6389_v61  ;;  %v6392_v35 = vand.u32 4294901760, %v6344_v12  ;;  %v6395_v17 = vand.u32 4294901760, %v6345_v23 }
 0x49d   : > { %19725 = vmatprep.subr.bf16.mxu0 %v21812_v31  ;;  %v6398_v28 = vand.u32 4294901760, %v6346_v47  ;;  %v6401_v21 = vand.u32 4294901760, %v6347_v13  ;;  %vm21813_vm0 = vmmov 0   ;;  %v25783_v56 = vmov 0.0  }
 0x49e   : > { %4830 = vadd.xlane.f32.xlu1 %v4829_v26  ;;  %v23935_v50 = vsub.f32 %v6344_v12, %v6392_v35  ;;  %v23938_v59 = vpack.c.bf16 %v6395_v17, %v6392_v35  ;;  %v23940_v0 = vsub.f32 %v6345_v23, %v6395_v17  ;;  %18011 = vmatprep.mubr.msk.f32.mxu0 %vm21813_vm0, %v25783_v56  ;;  %v25780_v11 = vand.u32 4294901760, %v23848_v18 }
 0x49f   : > { %v23942_v58 = vsub.f32 %v6346_v47, %v6398_v28  ;;  %v23944_v40 = vsub.f32 %v6347_v13, %v6401_v21  ;;  %v25779_v26 = vand.u32 4294901760, %v23850_v42  ;;  %v23951_v62 = vpack.c.bf16 %v6401_v21, %v6398_v28 }
 0x4a0   : > { %19727 = vmatpush3.bf16.msra.mxu0 %v23870_v1  ;;  %v6450_v20 = vsub.f32 %v23848_v18, %v25780_v11  ;;  %v25777_v9 = vand.u32 4294901760, %v23898_v46  ;;  %v25776_v8 = vand.u32 4294901760, %v23900_v15  ;;  %v25775_v7 = vand.u32 4294901760, %v23902_v43 }
 0x4a1   : > { %19728 = vmatprep.subr.bf16.mxu0 %v21812_v31  ;;  %v6457_v52 = vsub.f32 %v23850_v42, %v25779_v26  ;;  %v25774_v24 = vand.u32 4294901760, %v23904_v39  ;;  %v25773_v30 = vand.u32 4294901760, %v23916_v36  ;;  %v25772_v6 = vand.u32 4294901760, %v23918_v25  ;;  %v4923_v26 = vld [vmem:[#allocation23 + $0x30] sm:$0xff] }
 0x4a2   : > { %v6451_v37 = vand.u32 4294901760, %v6450_v20  ;;  %v6464_v55 = vsub.f32 %v23898_v46, %v25777_v9  ;;  %v6471_v49 = vsub.f32 %v23900_v15, %v25776_v8  ;;  %v6478_v16 = vsub.f32 %v23902_v43, %v25775_v7 }
 0x4a3   : > { %v6458_v29 = vand.u32 4294901760, %v6457_v52  ;;  %v6485_v53 = vsub.f32 %v23904_v39, %v25774_v24  ;;  %v6492_v44 = vsub.f32 %v23916_v36, %v25773_v30  ;;  %v6499_v61 = vsub.f32 %v23918_v25, %v25772_v6 }
 0x4a4   : > { %19730 = vmatpush3.bf16.msra.mxu0 %v23880_v41  ;;  %v6465_v48 = vand.u32 4294901760, %v6464_v55  ;;  %v6472_v51 = vand.u32 4294901760, %v6471_v49  ;;  %v6479_v5 = vand.u32 4294901760, %v6478_v16  ;;  %v25771_v47 = vand.u32 4294901760, %v23920_v4 }
 0x4a5   : > { %19731 = vmatprep.subr.bf16.mxu0 %v21812_v31  ;;  %v23964_v54 = vpack.c.bf16 %v6458_v29, %v6451_v37  ;;  %v6486_v3 = vand.u32 4294901760, %v6485_v53  ;;  %v6493_v12 = vand.u32 4294901760, %v6492_v44  ;;  %v6500_v23 = vand.u32 4294901760, %v6499_v61 }
 0x4a6   : > { %v23974_v34 = vpack.c.bf16 %v6472_v51, %v6465_v48  ;;  %v25770_v13 = vand.u32 4294901760, %v23922_v60  ;;  %v6506_v17 = vsub.f32 %v23920_v4, %v25771_v47  ;;  %v25769_v52 = vand.u32 4294901760, %v23930_v38 }
 0x4a7   : > { %v23984_v57 = vpack.c.bf16 %v6486_v3, %v6479_v5  ;;  %v23994_v35 = vpack.c.bf16 %v6500_v23, %v6493_v12  ;;  %v25768_v37 = vand.u32 4294901760, %v23932_v45  ;;  %v25767_v16 = vand.u32 4294901760, %v23935_v50 }
 0x4a8   : > { %19733 = vmatpush3.bf16.msra.mxu0 %v23890_v10  ;;  %v6513_v28 = vsub.f32 %v23922_v60, %v25770_v13  ;;  %v6507_v21 = vand.u32 4294901760, %v6506_v17  ;;  %v6520_v55 = vsub.f32 %v23930_v38, %v25769_v52  ;;  %v25766_v53 = vand.u32 4294901760, %v23940_v0 }
 0x4a9   : > { %19734 = vmatprep.subr.bf16.mxu0 %v21812_v31  ;;  %v6527_v49 = vsub.f32 %v23932_v45, %v25768_v37  ;;  %v6534_v3 = vsub.f32 %v23935_v50, %v25767_v16  ;;  %v25765_v23 = vand.u32 4294901760, %v23942_v58  ;;  %v25764_v17 = vand.u32 4294901760, %v23944_v40 }
 0x4aa   : > { %v6514_v20 = vand.u32 4294901760, %v6513_v28  ;;  %v6521_v48 = vand.u32 4294901760, %v6520_v55  ;;  %v6541_v44 = vsub.f32 %v23940_v0, %v25766_v53  ;;  %v4963_v11 = vand.u32 4294901760, %v4923_v26 }
 0x4ab   : > { %v6528_v51 = vand.u32 4294901760, %v6527_v49  ;;  %v6535_v61 = vand.u32 4294901760, %v6534_v3  ;;  %vm6996_vm1 = vcmask 64512   ;;  %vm7498_vm3 = vcmask 220160  }
 0x4ac   : > { %19736 = vmatpush3.bf16.msra.mxu0 %v23928_v14  ;;  %v24004_v29 = vpack.c.bf16 %v6514_v20, %v6507_v21  ;;  %v6542_v12 = vand.u32 4294901760, %v6541_v44  ;;  %v6548_v21 = vsub.f32 %v23942_v58, %v25765_v23  ;;  %v6555_v20 = vsub.f32 %v23944_v40, %v25764_v17 }
 0x4ad   : > { %19737 = vmatprep.subr.bf16.mxu0 %v21812_v31  ;;  %v24014_v5 = vpack.c.bf16 %v6528_v51, %v6521_v48  ;;  %vm26084_vm6 = vcmask 261120   ;;  %vm15163_vm7 = vcmask 326656   ;;  %vm15165_vm8 = vcmask 392192  }
 0x4ae   : > { %v24024_v28 = vpack.c.bf16 %v6542_v12, %v6535_v61  ;;  %v6549_v55 = vand.u32 4294901760, %v6548_v21  ;;  %v6556_v49 = vand.u32 4294901760, %v6555_v20  ;;  %vm15167_vm9 = vcmask 457728  }
 0x4b0   : > { %19739 = vmatpush3.bf16.msra.mxu0 %v23938_v59  ;;  %v24032_v48 = vpack.c.bf16 %v6556_v49, %v6549_v55 }
 0x4b1   : > { %19740 = vmatprep.subr.bf16.mxu0 %v21812_v31 }
 0x4b4   : > { %19742 = vmatpush3.bf16.msra.mxu0 %v23951_v62 }
 0x4b5   : > { %19743 = vmatprep.subr.bf16.mxu0 %v21812_v31 }
 0x51e   : > { %v4822_v49 = vpop.xlane.xlu0 %4821 }
 0x51f   : > { %v4833_v17 = vmul.f32 0.015625, %v4822_v49 }
 0x521   : > { %v24051_v23 = vsub.f32 %v23815_v27, %v4833_v17 }
 0x522   : > { %v6311_v53 = vpop.xlane.xlu0 %6310 }
 0x523   : > { %v4825_v16 = vpop.xlane.xlu1 %4824  ;;  %v6312_v37 = vmul.f32 0.0078125, %v6311_v53  ;;  %v4841_v52 = vmul.f32 %v24051_v23, %v24051_v23 }
 0x524   : > { %v4834_v13 = vmul.f32 0.015625, %v4825_v16 }
 0x525   : > { %v6313_v47 = vadd.f32 1e-05, %v6312_v37  ;;  %v4845_v6 = vsel %vm4112_vm2, %v4841_v52, 0.0 }
 0x526   : > { %v24057_v30 = vsub.f32 %v23827_v22, %v4834_v13  ;;  %4846 = vadd.xlane.f32.xlu0 %v4845_v6 }
 0x527   : > { %21194 = vrsqrt.f32 %v6313_v47  ;;  %v4828_v24 = vpop.xlane.xlu1 %4827 }
 0x528   : > { %v4835_v49 = vmul.f32 0.015625, %v4828_v24  ;;  %v4842_v27 = vmul.f32 %v24057_v30, %v24057_v30 }
 0x52a   : > { %v24062_v17 = vsub.f32 %v23543_v33, %v4835_v49  ;;  %v4848_v53 = vsel %vm4112_vm2, %v4842_v27, 0.0  ;;  %v16042_v33 = vld [vmem:[#allocation16] ss:$0 sm:$0xff]  ;;  %v16043_v27 = vld [vmem:[#allocation17] ss:$0 sm:$0xff] }
 0x52b   : > { %4849 = vadd.xlane.f32.xlu1 %v4848_v53  ;;  %v4831_v16 = vpop.xlane.xlu1 %4830 }
 0x52c   : > { %v4836_v37 = vmul.f32 0.015625, %v4831_v16  ;;  %v4843_v52 = vmul.f32 %v24062_v17, %v24062_v17 }
 0x52e   : > { %v24068_v22 = vsub.f32 %v23835_v2, %v4836_v37  ;;  %v4851_v6 = vsel %vm4112_vm2, %v4843_v52, 0.0 }
 0x52f   : > { %4852 = vadd.xlane.f32.xlu0 %v4851_v6 }
 0x530   : > { %v4844_v24 = vmul.f32 %v24068_v22, %v24068_v22 }
 0x531   : > { %v21195_v47 = vpop.eup %21194 }
 0x532   : > { %v6315_v13 = vmul.f32 %v21195_v47, %v23810_v32  ;;  %v4854_v49 = vsel %vm2982_vm4, %v4844_v24, 0.0  ;;  %v4917_v32 = vld [vmem:[#allocation23] sm:$0xff]  ;;  %v4918_v24 = vld [vmem:[#allocation23 + $0x8] sm:$0xff]  ;;  %vm26083_vm4 = vcmask 130048  }
 0x533   : > { %4855 = vadd.xlane.f32.xlu1 %v4854_v49  ;;  %v4945_v47 = vand.u32 4294901760, %v4917_v32  ;;  %v4919_v49 = vld [vmem:[#allocation23 + $0x10] sm:$0xff] }
 0x534   : > { %v6323_v53 = vmul.f32 %v16042_v33, %v6315_v13  ;;  %v4948_v33 = vand.u32 4294901760, %v4918_v24 }
 0x535   : > { %v24104_v9 = vsub.f32 %v4917_v32, %v4945_v47 }
 0x536   : > { %v6331_v16 = vadd.f32 %v16043_v27, %v6323_v53  ;;  %v24090_v13 = vpack.c.bf16 %v4948_v33, %v4945_v47  ;;  %v4920_v27 = vld [vmem:[#allocation23 + $0x18] sm:$0xff] }
 0x537   : > { %v4954_v53 = vand.u32 4294901760, %v4920_v27  ;;  %v25781_v20 = vand.u32 4294901760, %v24104_v9 }
 0x538   : > { %v24075_v7 = vand.u32 4294901760, %v6331_v16  ;;  %19528 = vmatprep.subr.bf16.mxu1 %v24090_v13 }
 0x539   : > { %19530 = vmatpush3.bf16.msra.mxu1 %v24090_v13 }
 0x53a   : > { %v24078_v2 = vsub.f32 %v6331_v16, %v24075_v7  ;;  %v4921_v16 = vld [vmem:[#allocation23 + $0x20] sm:$0xff] }
 0x53c   : > { %v25778_v37 = vand.u32 4294901760, %v24078_v2 }
 0x53e   : > { %v6439_v52 = vsub.f32 %v24078_v2, %v25778_v37  ;;  %v24106_v37 = vsub.f32 %v4918_v24, %v4948_v33  ;;  %v24125_v33 = vsub.f32 %v4920_v27, %v4954_v53 }
 0x540   : > { %v6440_v6 = vand.u32 4294901760, %v6439_v52  ;;  %v4922_v52 = vld [vmem:[#allocation23 + $0x28] sm:$0xff]  ;;  %v25782_v21 = vand.u32 4294901760, %v24106_v37 }
 0x542   : > { %18012 = vmatmul.mubr.f32.vlgmr.msra.gmra.mrb[32].mxu0 %v6440_v6  ;;  %v4960_v6 = vand.u32 4294901760, %v4922_v52  ;;  %v5068_v24 = vsub.f32 %v24106_v37, %v25782_v21 }
 0x543   : > { %19745 = vmatpush3.bf16.msra.mxu0 %v23964_v54  ;;  %18046 = vmatprep.mubr.msk.f32.mxu0 %vm21813_vm0, %v25783_v56  ;;  %v4951_v54 = vand.u32 4294901760, %v4919_v49  ;;  %v5101_v56 = vsub.f32 %v4923_v26, %v4963_v11  ;;  %v26051_v26 = vmov 0.0  }
 0x544   : > { %19746 = vmatprep.subr.bf16.mxu0 %v21812_v31  ;;  %v5069_v61 = vand.u32 4294901760, %v5068_v24  ;;  %v5094_v27 = vsub.f32 %v4922_v52, %v4960_v6 }
 0x545   : > { %v24122_v47 = vsub.f32 %v4919_v49, %v4951_v54 }
 0x546   : > { %v5095_v24 = vand.u32 4294901760, %v5094_v27 }
 0x547   : > { %19748 = vmatpush3.bf16.msra.mxu0 %v23974_v34  ;;  %v24096_v34 = vpack.c.bf16 %v4954_v53, %v4951_v54  ;;  %v25785_v44 = vand.u32 4294901760, %v24122_v47 }
 0x548   : > { %19749 = vmatprep.subr.bf16.mxu0 %v21812_v31 }
 0x549   : > { %19532 = vmatprep.subr.bf16.mxu1 %v24096_v34 }
 0x54a   : > { %19534 = vmatpush3.bf16.msra.mxu1 %v24096_v34 }
 0x54b   : > { %19751 = vmatpush3.bf16.msra.mxu0 %v23984_v57  ;;  %v4957_v57 = vand.u32 4294901760, %v4921_v16 }
 0x54c   : > { %19752 = vmatprep.subr.bf16.mxu0 %v21812_v31 }
 0x54d   : > { %v24102_v8 = vpack.c.bf16 %v4960_v6, %v4957_v57  ;;  %v5087_v49 = vsub.f32 %v4921_v16, %v4957_v57  ;;  %v5102_v57 = vand.u32 4294901760, %v5101_v56 }
 0x54f   : > { %19754 = vmatpush3.bf16.msra.mxu0 %v23994_v35  ;;  %v4924_v35 = vld [vmem:[#allocation23 + $0x38] sm:$0xff]  ;;  %19536 = vmatprep.subr.bf16.mxu1 %v24102_v8 }
 0x550   : > { %19755 = vmatprep.subr.bf16.mxu0 %v21812_v31  ;;  %v4966_v55 = vand.u32 4294901760, %v4924_v35  ;;  %19538 = vmatpush3.bf16.msra.mxu1 %v24102_v8 }
 0x552   : > { %v24114_v32 = vpack.c.bf16 %v4966_v55, %v4963_v11  ;;  %v5108_v51 = vsub.f32 %v4924_v35, %v4966_v55  ;;  %v26050_v11 = vpack.c.bf16 %v23850_v42, %v23848_v18  ;;  %v26052_v35 = vpack.c.bf16 %v23900_v15, %v23898_v46 }
 0x553   : > { %19757 = vmatpush3.bf16.msra.mxu0 %v24004_v29  ;;  %v5061_v29 = vsub.f32 %v24104_v9, %v25781_v20  ;;  %v5081_v20 = vand.u32 4294901760, %v24125_v33 }
 0x554   : > { %19758 = vmatprep.subr.bf16.mxu0 %v21812_v31  ;;  %19540 = vmatprep.subr.bf16.mxu1 %v24114_v32  ;;  %v5109_v6 = vand.u32 4294901760, %v5108_v51 }
 0x555   : > { %v5062_v12 = vand.u32 4294901760, %v5061_v29  ;;  %19542 = vmatpush3.bf16.msra.mxu1 %v24114_v32  ;;  %v5082_v54 = vsub.f32 %v24125_v33, %v5081_v20  ;;  %v5088_v29 = vand.u32 4294901760, %v5087_v49 }
 0x557   : > { %19760 = vmatpush3.bf16.msra.mxu0 %v24014_v5  ;;  %v24132_v3 = vpack.c.bf16 %v5069_v61, %v5062_v12  ;;  %v5075_v5 = vsub.f32 %v24122_v47, %v25785_v44  ;;  %v5083_v21 = vand.u32 4294901760, %v5082_v54  ;;  %v5089_v61 = vsub.f32 %v5087_v49, %v5088_v29 }
 0x558   : > { %19761 = vmatprep.subr.bf16.mxu0 %v21812_v31  ;;  %v5096_v12 = vsub.f32 %v5094_v27, %v5095_v24  ;;  %v5103_v44 = vsub.f32 %v5101_v56, %v5102_v57  ;;  %v5110_v54 = vsub.f32 %v5108_v51, %v5109_v6 }
 0x559   : > { %19544 = vmatprep.subr.bf16.mxu1 %v24132_v3  ;;  %v5076_v53 = vand.u32 4294901760, %v5075_v5 }
 0x55a   : > { %v5097_v52 = vand.u32 4294901760, %v5096_v12  ;;  %v24172_v12 = vpack.c.bf16 %v5094_v27, %v5087_v49  ;;  %v26057_v49 = vpack.c.bf16 %v23940_v0, %v23935_v50  ;;  %v26060_v27 = vand.u32 4294901760, %v24106_v37 }
 0x55b   : > { %19763 = vmatpush3.bf16.msra.mxu0 %v24024_v28  ;;  %v24142_v16 = vpack.c.bf16 %v5083_v21, %v5076_v53  ;;  %v5090_v28 = vand.u32 4294901760, %v5089_v61  ;;  %v5111_v21 = vand.u32 4294901760, %v5110_v54  ;;  %v24162_v53 = vpack.c.bf16 %v24106_v37, %v24104_v9 }
 0x55c   : > { %19764 = vmatprep.subr.bf16.mxu0 %v21812_v31  ;;  %v26053_v61 = vpack.c.bf16 %v23904_v39, %v23902_v43  ;;  %v26055_v54 = vpack.c.bf16 %v23922_v60, %v23920_v4 }
 0x55d   : > { %v24146_v5 = vpack.c.bf16 %v5097_v52, %v5090_v28  ;;  %v26054_v28 = vpack.c.bf16 %v23918_v25, %v23916_v36  ;;  %v24178_v52 = vpack.c.bf16 %v5108_v51, %v5101_v56  ;;  %v26058_v56 = vpack.c.bf16 %v23944_v40, %v23942_v58 }
 0x55e   : > { %v26059_v51 = vand.u32 4294901760, %v24104_v9  ;;  %v26062_v9 = vand.u32 4294901760, %v23848_v18  ;;  %v26067_v18 = vand.u32 4294901760, %v23902_v43 }
 0x55f   : > { %19766 = vmatpush3.bf16.msra.mxu0 %v24032_v48  ;;  %v5104_v48 = vand.u32 4294901760, %v5103_v44  ;;  %v24170_v44 = vpack.c.bf16 %v24125_v33, %v24122_v47  ;;  %v26056_v33 = vpack.c.bf16 %v23932_v45, %v23930_v38 }
 0x560   : > { %19767 = vmatprep.subr.bf16.mxu0 %v21812_v31 }
 0x561   : > { %v24154_v55 = vpack.c.bf16 %v5111_v21, %v5104_v48  ;;  %v26061_v48 = vand.u32 4294901760, %v24122_v47  ;;  %v26064_v47 = vand.u32 4294901760, %v24078_v2 }
 0x562   : > { %18047 = vmatmul.mubr.f32.vlgmr.msra.gmra.mrb[32].mxu0 %v24075_v7 }
 0x563   : > { %19769 = vmatpush3.bf16.msra.mxu0 %v26050_v11  ;;  %18081 = vmatprep.mubr.msk.f32.mxu0 %vm21813_vm0, %v26051_v26  ;;  %v24207_v11 = vpack.c.bf16 %v26060_v27, %v26059_v51  ;;  %v24213_v21 = vpack.c.bf16 %v5081_v20, %v26061_v48  ;;  %v26063_v20 = vand.u32 4294901760, %v23850_v42  ;;  %v26068_v42 = vand.u32 4294901760, %v23904_v39 }
 0x564   : > { %19770 = vmatprep.subr.bf16.mxu0 %v21812_v31  ;;  %v26073_v39 = vand.u32 4294901760, %v23930_v38  ;;  %v26075_v51 = vand.u32 4294901760, %v23935_v50  ;;  %v26077_v38 = vand.u32 4294901760, %v23942_v58 }
 0x565   : > { %v19816_v37 = vpack.c.bf16 %v26063_v20, %v26062_v9 }
 0x567   : > { %19772 = vmatpush3.bf16.msra.mxu0 %v26052_v35  ;;  %v24215_v35 = vpack.c.bf16 %v5095_v24, %v5088_v29  ;;  %v26065_v29 = vand.u32 4294901760, %v23898_v46  ;;  %v26066_v24 = vand.u32 4294901760, %v23900_v15  ;;  %v26070_v46 = vand.u32 4294901760, %v23918_v25 }
 0x568   : > { %19773 = vmatprep.subr.bf16.mxu0 %v21812_v31 }
 0x56b   : > { %19775 = vmatpush3.bf16.msra.mxu0 %v26053_v61  ;;  %v24219_v61 = vpack.c.bf16 %v5109_v6, %v5102_v57  ;;  %v19819_v57 = vpack.c.bf16 %v26066_v24, %v26065_v29  ;;  %v19822_v6 = vpack.c.bf16 %v26068_v42, %v26067_v18  ;;  %v16037_v18 = vld [vmem:[#allocation22] ss:$0 sm:$0xff] }
 0x56c   : > { %19776 = vmatprep.subr.bf16.mxu0 %v21812_v31 }
 0x56f   : > { %19778 = vmatpush3.bf16.msra.mxu0 %v26054_v28  ;;  %v26071_v28 = vand.u32 4294901760, %v23920_v4  ;;  %v26076_v4 = vand.u32 4294901760, %v23940_v0 }
 0x570   : > { %19779 = vmatprep.subr.bf16.mxu0 %v21812_v31 }
 0x573   : > { %19781 = vmatpush3.bf16.msra.mxu0 %v26055_v54  ;;  %v26072_v54 = vand.u32 4294901760, %v23922_v60  ;;  %v19834_v60 = vpack.c.bf16 %v26076_v4, %v26075_v51 }
 0x574   : > { %19782 = vmatprep.subr.bf16.mxu0 %v21812_v31 }
 0x577   : > { %19784 = vmatpush3.bf16.msra.mxu0 %v26056_v33  ;;  %v19828_v33 = vpack.c.bf16 %v26072_v54, %v26071_v28 }
 0x578   : > { %19785 = vmatprep.subr.bf16.mxu0 %v21812_v31 }
 0x57b   : > { %19787 = vmatpush3.bf16.msra.mxu0 %v26057_v49  ;;  %v26074_v49 = vand.u32 4294901760, %v23932_v45  ;;  %v26078_v45 = vand.u32 4294901760, %v23944_v40 }
 0x57c   : > { %19788 = vmatprep.subr.bf16.mxu0 %v21812_v31 }
 0x57d   : > { %v19837_v20 = vpack.c.bf16 %v26078_v45, %v26077_v38 }
 0x57f   : > { %19790 = vmatpush3.bf16.msra.mxu0 %v26058_v56 }
 0x580   : > { %19791 = vmatprep.subr.bf16.mxu0 %v21812_v31 }
 0x582   : > { %18082 = vmatmul.mubr.f32.vlgmr.msra.gmra.mrb[32].mxu0 %v24078_v2  ;;  %v26069_v2 = vand.u32 4294901760, %v23916_v36  ;;  %v19831_v36 = vpack.c.bf16 %v26074_v49, %v26073_v39 }
 0x583   : > { %19793 = vmatpush3.bf16.msra.mxu0 %v23846_v63  ;;  %18116 = vmatprep.mubr.msk.f32.mxu0 %vm21813_vm0, %v26051_v26 }
 0x584   : > { %19794 = vmatprep.subr.bf16.mxu0 %v21812_v31  ;;  %v19825_v15 = vpack.c.bf16 %v26070_v46, %v26069_v2 }
 0x587   : > { %19796 = vmatpush3.bf16.msra.mxu0 %v23860_v19 }
 0x588   : > { %19797 = vmatprep.subr.bf16.mxu0 %v21812_v31 }
 0x58b   : > { %19799 = vmatpush3.bf16.msra.mxu0 %v23870_v1 }
 0x58c   : > { %19800 = vmatprep.subr.bf16.mxu0 %v21812_v31 }
 0x58f   : > { %19802 = vmatpush3.bf16.msra.mxu0 %v23880_v41 }
 0x590   : > { %19803 = vmatprep.subr.bf16.mxu0 %v21812_v31 }
 0x593   : > { %19805 = vmatpush3.bf16.msra.mxu0 %v23890_v10 }
 0x594   : > { %19806 = vmatprep.subr.bf16.mxu0 %v21812_v31 }
 0x597   : > { %19808 = vmatpush3.bf16.msra.mxu0 %v23928_v14 }
 0x598   : > { %19809 = vmatprep.subr.bf16.mxu0 %v21812_v31 }
 0x59b   : > { %19811 = vmatpush3.bf16.msra.mxu0 %v23938_v59 }
 0x59c   : > { %19812 = vmatprep.subr.bf16.mxu0 %v21812_v31 }
 0x59f   : > { %19814 = vmatpush3.bf16.msra.mxu0 %v23951_v62 }
 0x5a0   : > { %19815 = vmatprep.subr.bf16.mxu0 %v21812_v31 }
 0x5a2   : > { %18117 = vmatmul.mubr.f32.vlgmr.msra.gmra.mrb[32].mxu0 %v26064_v47 }
 0x5a3   : > { %19817 = vmatpush3.bf16.msra.mxu0 %v19816_v37  ;;  %18151 = vmatprep.mubr.msk.f32.mxu0 %vm21813_vm0, %v26051_v26 }
 0x5a4   : > { %19818 = vmatprep.subr.bf16.mxu0 %v21812_v31 }
 0x5a7   : > { %19820 = vmatpush3.bf16.msra.mxu0 %v19819_v57  ;;  %v16036_v57 = vld [vmem:[#allocation20] ss:$0 sm:$0xff] }
 0x5a8   : > { %19821 = vmatprep.subr.bf16.mxu0 %v21812_v31 }
 0x5ab   : > { %19823 = vmatpush3.bf16.msra.mxu0 %v19822_v6 }
 0x5ac   : > { %19824 = vmatprep.subr.bf16.mxu0 %v21812_v31 }
 0x5af   : > { %19826 = vmatpush3.bf16.msra.mxu0 %v19825_v15 }
 0x5b0   : > { %19827 = vmatprep.subr.bf16.mxu0 %v21812_v31 }
 0x5b3   : > { %19829 = vmatpush3.bf16.msra.mxu0 %v19828_v33  ;;  %v4847_v43 = vpop.xlane.xlu0 %4846 }
 0x5b4   : > { %v4857_v56 = vmul.f32 0.015625, %v4847_v43  ;;  %19830 = vmatprep.subr.bf16.mxu0 %v21812_v31 }
 0x5b6   : > { %v4861_v25 = vadd.f32 1e-05, %v4857_v56 }
 0x5b7   : > { %19832 = vmatpush3.bf16.msra.mxu0 %v19831_v36 }
 0x5b8   : > { %21196 = vrsqrt.f32 %v4861_v25  ;;  %v4850_v27 = vpop.xlane.xlu1 %4849  ;;  %19833 = vmatprep.subr.bf16.mxu0 %v21812_v31 }
 0x5b9   : > { %v4858_v48 = vmul.f32 0.015625, %v4850_v27 }
 0x5bb   : > { %v4862_v9 = vadd.f32 1e-05, %v4858_v48  ;;  %19835 = vmatpush3.bf16.msra.mxu0 %v19834_v60 }
 0x5bc   : > { %v4853_v37 = vpop.xlane.xlu0 %4852  ;;  %19836 = vmatprep.subr.bf16.mxu0 %v21812_v31 }
 0x5bd   : > { %21198 = vrsqrt.f32 %v4862_v9  ;;  %v4859_v50 = vmul.f32 0.015625, %v4853_v37 }
 0x5bf   : > { %v4863_v47 = vadd.f32 1e-05, %v4859_v50  ;;  %19838 = vmatpush3.bf16.msra.mxu0 %v19837_v20 }
 0x5c0   : > { %v4856_v0 = vpop.xlane.xlu1 %4855  ;;  %19839 = vmatprep.subr.bf16.mxu0 %v21812_v31 }
 0x5c1   : > { %21200 = vrsqrt.f32 %v4863_v47  ;;  %v4860_v29 = vmul.f32 0.015625, %v4856_v0 }
 0x5c2   : > { %v21197_v24 = vpop.eup %21196  ;;  %18152 = vmatmul.mubr.f32.vlgmr.msra.gmra.mrb[32].mxu0 %v24075_v7 }
 0x5c3   : > { %v24275_v58 = vmul.f32 %v21197_v24, %v24051_v23  ;;  %v4864_v40 = vadd.f32 1e-05, %v4860_v29  ;;  %19841 = vmatpush3.bf16.msra.mxu0 %v23846_v63  ;;  %18186 = vmatprep.mubr.msk.f32.mxu0 %vm21813_vm0, %v26051_v26 }
 0x5c4   : > { %19842 = vmatprep.subr.bf16.mxu0 %v21812_v31 }
 0x5c5   : > { %21202 = vrsqrt.f32 %v4864_v40  ;;  %v4880_v42 = vmul.f32 %v16036_v57, %v24275_v58 }
 0x5c7   : > { %v21199_v6 = vpop.eup %21198  ;;  %19844 = vmatpush3.bf16.msra.mxu0 %v23860_v19  ;;  %v4891_v2 = vadd.f32 %v16037_v18, %v4880_v42 }
 0x5c8   : > { %v24284_v46 = vmul.f32 %v21199_v6, %v24057_v30  ;;  %19845 = vmatprep.subr.bf16.mxu0 %v21812_v31 }
 0x5c9   : > { %v4933_v63 = vsel %vm4112_vm2, %v4891_v2, 0  ;;  %v5614_v2 = vld [vmem:[%s26081_s22 + $0x20] sm:$0xff] }
 0x5ca   : > { %v4881_v23 = vmul.f32 %v16036_v57, %v24284_v46  ;;  %v24289_v15 = vand.u32 4294901760, %v4933_v63 }
 0x5cb   : > { %v21201_v28 = vpop.eup %21200  ;;  %19847 = vmatpush3.bf16.msra.mxu0 %v23870_v1 }
 0x5cc   : > { %v24293_v54 = vmul.f32 %v21201_v28, %v24062_v17  ;;  %19848 = vmatprep.subr.bf16.mxu0 %v21812_v31  ;;  %v24297_v19 = vsub.f32 %v4933_v63, %v24289_v15  ;;  %v4892_v30 = vadd.f32 %v16037_v18, %v4881_v23 }
 0x5ce   : > { %v5019_v33 = vand.u32 4294901760, %v24297_v19  ;;  %v4936_v43 = vsel %vm4112_vm2, %v4892_v30, 0  ;;  %v4882_v39 = vmul.f32 %v16036_v57, %v24293_v54 }
 0x5cf   : > { %v21203_v49 = vpop.eup %21202  ;;  %19850 = vmatpush3.bf16.msra.mxu0 %v23880_v41  ;;  %v24303_v36 = vand.u32 4294901760, %v4936_v43 }
 0x5d0   : > { %v24306_v1 = vmul.f32 %v21203_v49, %v24068_v22  ;;  %19851 = vmatprep.subr.bf16.mxu0 %v21812_v31  ;;  %v5020_v17 = vsub.f32 %v24297_v19, %v5019_v33  ;;  %v4893_v56 = vadd.f32 %v16037_v18, %v4882_v39  ;;  %v5650_v39 = vand.u32 4294901760, %v5614_v2 }
 0x5d1   : > { %v24313_v25 = vsub.f32 %v4936_v43, %v24303_v36 }
 0x5d2   : > { %v5021_v51 = vand.u32 4294901760, %v5020_v17  ;;  %v4939_v4 = vsel %vm4112_vm2, %v4893_v56, 0  ;;  %v4883_v41 = vmul.f32 %v16036_v57, %v24306_v1 }
 0x5d3   : > { %19853 = vmatpush3.bf16.msra.mxu0 %v23890_v10  ;;  %v5029_v22 = vand.u32 4294901760, %v24313_v25  ;;  %v24319_v60 = vand.u32 4294901760, %v4939_v4 }
 0x5d4   : > { %17731 = vmatprep.mubr.f32.mxu1 %v5021_v51  ;;  %19854 = vmatprep.subr.bf16.mxu0 %v21812_v31  ;;  %v4894_v27 = vadd.f32 %v16037_v18, %v4883_v41 }
 0x5d5   : > { %v5030_v48 = vsub.f32 %v24313_v25, %v5029_v22  ;;  %v5038_v9 = vsub.f32 %v4939_v4, %v24319_v60 }
 0x5d6   : > { %v4942_v38 = vsel %vm4112_vm2, %v4894_v27, 0 }
 0x5d7   : > { %19856 = vmatpush3.bf16.msra.mxu0 %v23928_v14  ;;  %v5031_v45 = vand.u32 4294901760, %v5030_v48  ;;  %v5039_v20 = vand.u32 4294901760, %v5038_v9  ;;  %v24326_v37 = vand.u32 4294901760, %v4942_v38  ;;  %v24466_v48 = vsub.f32 %v5614_v2, %v5650_v39 }
 0x5d8   : > { %19857 = vmatprep.subr.bf16.mxu0 %v21812_v31 }
 0x5d9   : > { %17732 = vmatmul.mubr.f32.vlgmr.msra.gmra.mrb[14].mxu1 %v5031_v45  ;;  %v5040_v10 = vsub.f32 %v5038_v9, %v5039_v20  ;;  %v5048_v50 = vsub.f32 %v4942_v38, %v24326_v37 }
 0x5da   : > { %19546 = vmatpush3.bf16.msra.mxu1 %v24132_v3 }
 0x5db   : > { %19859 = vmatpush3.bf16.msra.mxu0 %v23938_v59  ;;  %19548 = vmatprep.subr.bf16.mxu1 %v24142_v16  ;;  %v5041_v47 = vand.u32 4294901760, %v5040_v10  ;;  %v5049_v0 = vand.u32 4294901760, %v5048_v50  ;;  %v16038_v59 = vld [vmem:[%s26079_s30] ss:$0 sm:$0xff]  ;;  %s21818_s30 = smov 96  }
 0x5dc   : > { %19860 = vmatprep.subr.bf16.mxu0 %v21812_v31 }
 0x5dd   : > { %17734 = vmatprep.mubr.f32.mxu1 %v5041_v47  ;;  %v5050_v14 = vsub.f32 %v5048_v50, %v5049_v0 }
 0x5de   : > { %19550 = vmatpush3.bf16.msra.mxu1 %v24142_v16 }
 0x5df   : > { %19862 = vmatpush3.bf16.msra.mxu0 %v23951_v62  ;;  %19552 = vmatprep.subr.bf16.mxu1 %v24146_v5  ;;  %v5051_v29 = vand.u32 4294901760, %v5050_v14  ;;  %v4902_v62 = vmul.f32 %v16038_v59, %v24275_v58 }
 0x5e0   : > { %19971 = vmatprep.subr.bf16.mxu0 %v21812_v31 }
 0x5e1   : > { %17735 = vmatmul.mubr.f32.gmra.mrb[16].mxu1 %v5051_v29  ;;  %v5781_v29 = vand.u32 4294901760, %v24466_v48 }
 0x5e2   : > { %19554 = vmatpush3.bf16.msra.mxu1 %v24146_v5  ;;  %17753 = vmatprep.mubr.f32.mxu1 %v24289_v15  ;;  %v4903_v5 = vmul.f32 %v16038_v59, %v24284_v46  ;;  %v5615_v46 = vld [vmem:[%s26081_s22 + $0x28] sm:$0xff] }
 0x5e3   : > { %18187 = vmatmul.mubr.f32.vlgmr.msra.gmra.mrb[32].mxu0 %v24075_v7  ;;  %19556 = vmatprep.subr.bf16.mxu1 %v24154_v55  ;;  %v16039_v7 = vld [vmem:[%s26080_s6] ss:$0 sm:$0xff]  ;;  %v5653_v49 = vand.u32 4294901760, %v5615_v46  ;;  %s21821_s6 = smov 72  }
 0x5e4   : > { %18395 = vmatprep.mubr.msk.f32.mxu0 %vm21813_vm0, %v26051_v26  ;;  %v4913_v3 = vadd.f32 %v16039_v7, %v4902_v62 }
 0x5e6   : > { %19558 = vmatpush3.bf16.msra.mxu1 %v24154_v55  ;;  %v5626_v16 = vsel %vm4112_vm2, %v4913_v3, 0  ;;  %v5610_v55 = vld [vmem:[%s26081_s22] sm:$0xff] }
 0x5e7   : > { %19560 = vmatprep.subr.bf16.mxu1 %v24162_v53 }
 0x5e9   : > { %17754 = vmatmul.mubr.f32.vlgmr.msra.gmra.mrb[14].mxu1 %v24303_v36 }
 0x5ea   : > { %17756 = vmatprep.mubr.f32.mxu1 %v24319_v60  ;;  %19562 = vmatpush3.bf16.msra.mxu1 %v24162_v53  ;;  %v5611_v53 = vld [vmem:[%s26081_s22 + $0x8] sm:$0xff] }
 0x5eb   : > { %19564 = vmatprep.subr.bf16.mxu1 %v24170_v44 }
 0x5ed   : > { %17757 = vmatmul.mubr.f32.gmra.mrb[16].mxu1 %v24326_v37 }
 0x5ee   : > { %19566 = vmatpush3.bf16.msra.mxu1 %v24170_v44  ;;  %17775 = vmatprep.mubr.f32.mxu1 %v24297_v19  ;;  %v24397_v44 = vand.u32 4294901760, %v5626_v16  ;;  %v5617_v19 = vld [vmem:[%s26081_s22 + $0x38] sm:$0xff] }
 0x5ef   : > { %19568 = vmatprep.subr.bf16.mxu1 %v24172_v12  ;;  %v5659_v51 = vand.u32 4294901760, %v5617_v19 }
 0x5f1   : > { %v24500_v3 = vsub.f32 %v5617_v19, %v5659_v51 }
 0x5f2   : > { %19570 = vmatpush3.bf16.msra.mxu1 %v24172_v12  ;;  %v4904_v12 = vmul.f32 %v16038_v59, %v24293_v54  ;;  %v5616_v54 = vld [vmem:[%s26081_s22 + $0x30] sm:$0xff] }
 0x5f3   : > { %19572 = vmatprep.subr.bf16.mxu1 %v24178_v52 }
 0x5f4   : > { %v4915_v58 = vadd.f32 %v16039_v7, %v4904_v12  ;;  %v5782_v12 = vsub.f32 %v24466_v48, %v5781_v29 }
 0x5f6   : > { %19574 = vmatpush3.bf16.msra.mxu1 %v24178_v52  ;;  %v5641_v52 = vand.u32 4294901760, %v5611_v53  ;;  %v5632_v28 = vsel %vm4112_vm2, %v4915_v58, 0 }
 0x5f7   : > { %19576 = vmatprep.subr.bf16.mxu1 %v24090_v13  ;;  %v24452_v17 = vand.u32 4294901760, %v5632_v28 }
 0x5f8   : > { %v24416_v57 = vsub.f32 %v5611_v53, %v5641_v52 }
 0x5f9   : > { %17776 = vmatmul.mubr.f32.vlgmr.msra.gmra.mrb[14].mxu1 %v24313_v25  ;;  %v5656_v25 = vand.u32 4294901760, %v5616_v54 }
 0x5fa   : > { %17778 = vmatprep.mubr.f32.mxu1 %v5038_v9  ;;  %19578 = vmatpush3.bf16.msra.mxu1 %v24090_v13  ;;  %v24471_v9 = vpack.c.bf16 %v5653_v49, %v5650_v39 }
 0x5fb   : > { %19580 = vmatprep.subr.bf16.mxu1 %v24096_v34  ;;  %v24482_v10 = vpack.c.bf16 %v5659_v51, %v5656_v25 }
 0x5fd   : > { %17779 = vmatmul.mubr.f32.gmra.mrb[16].mxu1 %v5048_v50 }
 0x5fe   : > { %19582 = vmatpush3.bf16.msra.mxu1 %v24096_v34  ;;  %17797 = vmatprep.mubr.f32.mxu1 %v5019_v33 }
 0x5ff   : > { %19584 = vmatprep.subr.bf16.mxu1 %v24102_v8 }
 0x602   : > { %19586 = vmatpush3.bf16.msra.mxu1 %v24102_v8 }
 0x603   : > { %19588 = vmatprep.subr.bf16.mxu1 %v24114_v32 }
 0x606   : > { %19590 = vmatpush3.bf16.msra.mxu1 %v24114_v32 }
 0x607   : > { %19592 = vmatprep.subr.bf16.mxu1 %v24207_v11 }
 0x609   : > { %17798 = vmatmul.mubr.f32.vlgmr.msra.gmra.mrb[14].mxu1 %v5029_v22 }
 0x60a   : > { %17800 = vmatprep.mubr.f32.mxu1 %v5039_v20  ;;  %19594 = vmatpush3.bf16.msra.mxu1 %v24207_v11  ;;  %v5612_v11 = vld [vmem:[%s26081_s22 + $0x10] sm:$0xff]  ;;  %v24479_v20 = vsub.f32 %v5632_v28, %v24452_v17 }
 0x60b   : > { %19596 = vmatprep.subr.bf16.mxu1 %v24213_v21  ;;  %v5644_v18 = vand.u32 4294901760, %v5612_v11 }
 0x60d   : > { %17801 = vmatmul.mubr.f32.gmra.mrb[16].mxu1 %v5049_v0  ;;  %v24440_v30 = vsub.f32 %v5612_v11, %v5644_v18 }
 0x60e   : > { %19598 = vmatpush3.bf16.msra.mxu1 %v24213_v21  ;;  %17819 = vmatprep.mubr.f32.mxu1 %v24289_v15  ;;  %v5613_v21 = vld [vmem:[%s26081_s22 + $0x18] sm:$0xff] }
 0x60f   : > { %19600 = vmatprep.subr.bf16.mxu1 %v24215_v35  ;;  %v5647_v42 = vand.u32 4294901760, %v5613_v21  ;;  %v5767_v22 = vand.u32 4294901760, %v24440_v30 }
 0x611   : > { %v24442_v33 = vsub.f32 %v5613_v21, %v5647_v42  ;;  %v24445_v43 = vpack.c.bf16 %v5647_v42, %v5644_v18  ;;  %v5768_v0 = vsub.f32 %v24440_v30, %v5767_v22  ;;  %v5783_v18 = vand.u32 4294901760, %v5782_v12 }
 0x612   : > { %19602 = vmatpush3.bf16.msra.mxu1 %v24215_v35  ;;  %v24411_v35 = vsub.f32 %v5626_v16, %v24397_v44  ;;  %v5732_v16 = vand.u32 4294901760, %v24479_v20 }
 0x613   : > { %19604 = vmatprep.subr.bf16.mxu1 %v24219_v61  ;;  %v5774_v27 = vand.u32 4294901760, %v24442_v33 }
 0x614   : > { %v5712_v6 = vand.u32 4294901760, %v24411_v35 }
 0x615   : > { %v5775_v14 = vsub.f32 %v24442_v33, %v5774_v27 }
 0x616   : > { %19606 = vmatpush3.bf16.msra.mxu1 %v24219_v61  ;;  %v4914_v61 = vadd.f32 %v16039_v7, %v4903_v5 }
 0x617   : > { %19608 = vmatprep.subr.bf16.mxu1 %v24090_v13  ;;  %v5776_v53 = vand.u32 4294901760, %v5775_v14 }
 0x618   : > { %v5629_v63 = vsel %vm4112_vm2, %v4914_v61, 0  ;;  %v5802_v61 = vand.u32 4294901760, %v24500_v3 }
 0x619   : > { %17820 = vmatmul.mubr.f32.vlgmr.msra.gmra.mrb[14].mxu1 %v24303_v36 }
 0x61a   : > { %17822 = vmatprep.mubr.f32.mxu1 %v24319_v60  ;;  %19610 = vmatpush3.bf16.msra.mxu1 %v24090_v13  ;;  %v5638_v13 = vand.u32 4294901760, %v5610_v55 }
 0x61b   : > { %19612 = vmatprep.subr.bf16.mxu1 %v24096_v34 }
 0x61c   : > { %v24414_v24 = vsub.f32 %v5610_v55, %v5638_v13  ;;  %v24420_v40 = vpack.c.bf16 %v5641_v52, %v5638_v13  ;;  %v5769_v55 = vand.u32 4294901760, %v5768_v0 }
 0x61d   : > { %17823 = vmatmul.mubr.f32.gmra.mrb[16].mxu1 %v24326_v37 }
 0x61e   : > { %19614 = vmatpush3.bf16.msra.mxu1 %v24096_v34  ;;  %17841 = vmatprep.mubr.f32.mxu1 %v24289_v15  ;;  %v4905_v34 = vmul.f32 %v16038_v59, %v24306_v1  ;;  %v5760_v15 = vand.u32 4294901760, %v24416_v57  ;;  %v24447_v1 = vand.u32 4294901760, %v5629_v63  ;;  %v19643_v58 = vpack.c.bf16 %v5776_v53, %v5769_v55 }
 0x61f   : > { %19616 = vmatprep.subr.bf16.mxu1 %v24102_v8 }
 0x620   : > { %v4916_v23 = vadd.f32 %v16039_v7, %v4905_v34  ;;  %v5761_v41 = vsub.f32 %v24416_v57, %v5760_v15  ;;  %v24474_v38 = vsub.f32 %v5629_v63, %v24447_v1  ;;  %v24498_v7 = vsub.f32 %v5616_v54, %v5656_v25 }
 0x621   : > { %v5733_v34 = vsub.f32 %v24479_v20, %v5732_v16  ;;  %v19659_v25 = vpack.c.bf16 %v24442_v33, %v24440_v30 }
 0x622   : > { %19618 = vmatpush3.bf16.msra.mxu1 %v24102_v8  ;;  %v5753_v8 = vand.u32 4294901760, %v24414_v24  ;;  %v5635_v56 = vsel %vm4112_vm2, %v4916_v23, 0  ;;  %v5762_v47 = vand.u32 4294901760, %v5761_v41  ;;  %v5795_v21 = vand.u32 4294901760, %v24498_v7 }
 0x623   : > { %19620 = vmatprep.subr.bf16.mxu1 %v24114_v32  ;;  %v24476_v45 = vand.u32 4294901760, %v5635_v56  ;;  %v5803_v23 = vsub.f32 %v24500_v3, %v5802_v61  ;;  %v5734_v28 = vand.u32 4294901760, %v5733_v34 }
 0x624   : > { %v5754_v4 = vsub.f32 %v24414_v24, %v5753_v8  ;;  %v5796_v63 = vsub.f32 %v24498_v7, %v5795_v21  ;;  %v19687_v41 = vpack.c.bf16 %v5760_v15, %v5753_v8  ;;  %v16040_v8 = vld [vmem:[#allocation25] ss:$0 sm:$0xff] }
 0x625   : > { %v24496_v62 = vsub.f32 %v5635_v56, %v24476_v45  ;;  %v19655_v56 = vpack.c.bf16 %v24416_v57, %v24414_v24  ;;  %v19699_v57 = vpack.c.bf16 %v5802_v61, %v5795_v21 }
 0x626   : > { %19622 = vmatpush3.bf16.msra.mxu1 %v24114_v32  ;;  %v5713_v32 = vsub.f32 %v24411_v35, %v5712_v6  ;;  %v5755_v50 = vand.u32 4294901760, %v5754_v4  ;;  %v5797_v39 = vand.u32 4294901760, %v5796_v63  ;;  %v19667_v4 = vpack.c.bf16 %v24500_v3, %v24498_v7 }
 0x627   : > { %19624 = vmatprep.subr.bf16.mxu1 %v24420_v40  ;;  %v5742_v11 = vand.u32 4294901760, %v24496_v62 }
 0x628   : > { %v19639_v5 = vpack.c.bf16 %v5762_v47, %v5755_v50 }
 0x629   : > { %17842 = vmatmul.mubr.f32.vlgmr.msra.gmra.mrb[14].mxu1 %v24303_v36  ;;  %v24468_v36 = vsub.f32 %v5615_v46, %v5653_v49  ;;  %v5743_v46 = vsub.f32 %v24496_v62, %v5742_v11  ;;  %v5804_v49 = vand.u32 4294901760, %v5803_v23 }
 0x62a   : > { %17844 = vmatprep.mubr.f32.mxu1 %v24319_v60  ;;  %19626 = vmatpush3.bf16.msra.mxu1 %v24420_v40  ;;  %v5714_v60 = vand.u32 4294901760, %v5713_v32 }
 0x62b   : > { %19628 = vmatprep.subr.bf16.mxu1 %v24445_v43  ;;  %v5788_v59 = vand.u32 4294901760, %v24468_v36  ;;  %v5744_v54 = vand.u32 4294901760, %v5743_v46  ;;  %v19651_v32 = vpack.c.bf16 %v5804_v49, %v5797_v39  ;;  %v19663_v51 = vpack.c.bf16 %v24468_v36, %v24466_v48  ;;  %v16041_v39 = vld [vmem:[%s26082_s5] ss:$0 sm:$0xff]  ;;  %s21827_s5 = smov 48  }
 0x62d   : > { %17845 = vmatmul.mubr.f32.gmra.mrb[16].mxu1 %v24326_v37  ;;  %v5722_v37 = vand.u32 4294901760, %v24474_v38  ;;  %v5789_v13 = vsub.f32 %v24468_v36, %v5788_v59  ;;  %v19695_v24 = vpack.c.bf16 %v5788_v59, %v5781_v29 }
 0x62e   : > { %19630 = vmatpush3.bf16.msra.mxu1 %v24445_v43  ;;  %17863 = vmatprep.mubr.f32.mxu1 %v5714_v60 }
 0x62f   : > { %19632 = vmatprep.subr.bf16.mxu1 %v24471_v9  ;;  %v5723_v52 = vsub.f32 %v24474_v38, %v5722_v37  ;;  %v5790_v42 = vand.u32 4294901760, %v5789_v13 }
 0x631   : > { %v5724_v2 = vand.u32 4294901760, %v5723_v52  ;;  %v19647_v19 = vpack.c.bf16 %v5790_v42, %v5783_v18 }
 0x632   : > { %19634 = vmatpush3.bf16.msra.mxu1 %v24471_v9 }
 0x633   : > { %19636 = vmatprep.subr.bf16.mxu1 %v24482_v10 }
 0x636   : > { %19638 = vmatpush3.bf16.msra.mxu1 %v24482_v10 }
 0x637   : > { %19640 = vmatprep.subr.bf16.mxu1 %v19639_v5 }
 0x639   : > { %17864 = vmatmul.mubr.f32.vlgmr.msra.gmra.mrb[18].mxu1 %v5724_v2 }
 0x63a   : > { %17866 = vmatprep.mubr.f32.mxu1 %v5734_v28  ;;  %19642 = vmatpush3.bf16.msra.mxu1 %v19639_v5 }
 0x63b   : > { %19644 = vmatprep.subr.bf16.mxu1 %v19643_v58 }
 0x63d   : > { %17867 = vmatmul.mubr.f32.gmra.mrb[20].mxu1 %v5744_v54 }
 0x63e   : > { %19646 = vmatpush3.bf16.msra.mxu1 %v19643_v58  ;;  %17885 = vmatprep.mubr.f32.mxu1 %v24397_v44 }
 0x63f   : > { %19648 = vmatprep.subr.bf16.mxu1 %v19647_v19 }
 0x642   : > { %19650 = vmatpush3.bf16.msra.mxu1 %v19647_v19 }
 0x643   : > { %19652 = vmatprep.subr.bf16.mxu1 %v19651_v32 }
 0x646   : > { %19654 = vmatpush3.bf16.msra.mxu1 %v19651_v32 }
 0x647   : > { %19656 = vmatprep.subr.bf16.mxu1 %v19655_v56 }
 0x649   : > { %17886 = vmatmul.mubr.f32.vlgmr.msra.gmra.mrb[18].mxu1 %v24447_v1 }
 0x64a   : > { %17888 = vmatprep.mubr.f32.mxu1 %v24452_v17  ;;  %19658 = vmatpush3.bf16.msra.mxu1 %v19655_v56 }
 0x64b   : > { %19660 = vmatprep.subr.bf16.mxu1 %v19659_v25 }
 0x64d   : > { %17889 = vmatmul.mubr.f32.gmra.mrb[20].mxu1 %v24476_v45 }
 0x64e   : > { %19662 = vmatpush3.bf16.msra.mxu1 %v19659_v25  ;;  %17907 = vmatprep.mubr.f32.mxu1 %v24411_v35  ;;  %v19691_v35 = vpack.c.bf16 %v5774_v27, %v5767_v22 }
 0x64f   : > { %19664 = vmatprep.subr.bf16.mxu1 %v19663_v51 }
 0x652   : > { %19666 = vmatpush3.bf16.msra.mxu1 %v19663_v51 }
 0x653   : > { %19668 = vmatprep.subr.bf16.mxu1 %v19667_v4 }
 0x656   : > { %19670 = vmatpush3.bf16.msra.mxu1 %v19667_v4 }
 0x657   : > { %19672 = vmatprep.subr.bf16.mxu1 %v24420_v40 }
 0x659   : > { %17908 = vmatmul.mubr.f32.vlgmr.msra.gmra.mrb[18].mxu1 %v24474_v38 }
 0x65a   : > { %17910 = vmatprep.mubr.f32.mxu1 %v24479_v20  ;;  %19674 = vmatpush3.bf16.msra.mxu1 %v24420_v40 }
 0x65b   : > { %19676 = vmatprep.subr.bf16.mxu1 %v24445_v43 }
 0x65d   : > { %17911 = vmatmul.mubr.f32.gmra.mrb[20].mxu1 %v24496_v62 }
 0x65e   : > { %19678 = vmatpush3.bf16.msra.mxu1 %v24445_v43  ;;  %17929 = vmatprep.mubr.f32.mxu1 %v5712_v6  ;;  %v16044_v6 = vld [vmem:[#allocation19] ss:$0 sm:$0xff] }
 0x65f   : > { %19680 = vmatprep.subr.bf16.mxu1 %v24471_v9 }
 0x662   : > { %19682 = vmatpush3.bf16.msra.mxu1 %v24471_v9 }
 0x663   : > { %19684 = vmatprep.subr.bf16.mxu1 %v24482_v10 }
 0x666   : > { %19686 = vmatpush3.bf16.msra.mxu1 %v24482_v10 }
 0x667   : > { %19688 = vmatprep.subr.bf16.mxu1 %v19687_v41 }
 0x669   : > { %17930 = vmatmul.mubr.f32.vlgmr.msra.gmra.mrb[18].mxu1 %v5722_v37 }
 0x66a   : > { %17932 = vmatprep.mubr.f32.mxu1 %v5732_v16  ;;  %19690 = vmatpush3.bf16.msra.mxu1 %v19687_v41 }
 0x66b   : > { %19692 = vmatprep.subr.bf16.mxu1 %v19691_v35 }
 0x66d   : > { %17933 = vmatmul.mubr.f32.gmra.mrb[20].mxu1 %v5742_v11 }
 0x66e   : > { %19694 = vmatpush3.bf16.msra.mxu1 %v19691_v35  ;;  %17951 = vmatprep.mubr.f32.mxu1 %v24397_v44 }
 0x66f   : > { %19696 = vmatprep.subr.bf16.mxu1 %v19695_v24 }
 0x672   : > { %19698 = vmatpush3.bf16.msra.mxu1 %v19695_v24 }
 0x673   : > { %19700 = vmatprep.subr.bf16.mxu1 %v19699_v57 }
 0x676   : > { %19702 = vmatpush3.bf16.msra.mxu1 %v19699_v57 }
 0x677   : > { %19704 = vmatprep.subr.bf16.mxu1 %v24420_v40 }
 0x679   : > { %17952 = vmatmul.mubr.f32.vlgmr.msra.gmra.mrb[18].mxu1 %v24447_v1 }
 0x67a   : > { %17954 = vmatprep.mubr.f32.mxu1 %v24452_v17  ;;  %19706 = vmatpush3.bf16.msra.mxu1 %v24420_v40 }
 0x67b   : > { %19708 = vmatprep.subr.bf16.mxu1 %v24445_v43 }
 0x67d   : > { %17955 = vmatmul.mubr.f32.gmra.mrb[20].mxu1 %v24476_v45 }
 0x67e   : > { %19710 = vmatpush3.bf16.msra.mxu1 %v24445_v43  ;;  %17973 = vmatprep.mubr.f32.mxu1 %v24397_v44 }
 0x67f   : > { %19712 = vmatprep.subr.bf16.mxu1 %v24471_v9 }
 0x682   : > { %19714 = vmatpush3.bf16.msra.mxu1 %v24471_v9 }
 0x683   : > { %19716 = vmatprep.subr.bf16.mxu1 %v24482_v10 }
 0x686   : > { %19718 = vmatpush3.bf16.msra.mxu1 %v24482_v10 }
 0x687   : > { %19863 = vmatprep.subr.bf16.mxu1 %v21812_v31 }
 0x689   : > { %17974 = vmatmul.mubr.f32.vlgmr.msra.gmra.mrb[18].mxu1 %v24447_v1 }
 0x68a   : > { %17976 = vmatprep.mubr.f32.mxu1 %v24452_v17 }
 0x68d   : > { %17977 = vmatmul.mubr.f32.gmra.mrb[20].mxu1 %v24476_v45 }
 0x68e   : > { %18197 = vmatprep.mubr.msk.f32.mxu1 %vm21813_vm0, %v26051_v26 }
 0x6b6   : > { %v6992_v44 = vpop.f32.mrb[32].mxu0 }
 0x6b7   : > { %v18188_v40 = vpop.f32.mrb[33].mxu0  ;;  %v24597_v15 = vadd.f32 %v16044_v6, %v6992_v44 }
 0x6b9   : > { %v6998_v17 = vsel %vm6996_vm1, %v24597_v15, 0 }
 0x6ba   : > { %v24613_v20 = vand.u32 4294901760, %v6998_v17 }
 0x6bc   : > { %v7082_v59 = vsub.f32 %v6998_v17, %v24613_v20 }
 0x6be   : > { %v7083_v16 = vand.u32 4294901760, %v7082_v59 }
 0x6c0   : > { %v7084_v13 = vsub.f32 %v7082_v59, %v7083_v16 }
 0x6c2   : > { %v7085_v34 = vand.u32 4294901760, %v7084_v13 }
 0x6fc   : > { %v17843_v30 = vpop.f32.mrb[14].mxu1 }
 0x6fd   : > { %v24599_v33 = vadd.f32 %v17843_v30, %v16040_v8  ;;  %v5588_v43 = vpop.f32.mrb[15].mxu1 }
 0x6fe   : > { %v24601_v22 = vadd.f32 %v16040_v8, %v5588_v43 }
 0x6ff   : > { %v7004_v1 = vsel %vm6996_vm1, %v24599_v33, 0 }
 0x700   : > { %v17846_v27 = vpop.f32.mrb[16].mxu1  ;;  %v7001_v48 = vsel %vm6996_vm1, %v24601_v22, 0  ;;  %v7016_v36 = vand.u32 4294901760, %v7004_v1 }
 0x701   : > { %v24609_v9 = vadd.f32 %v17846_v27, %v16040_v8  ;;  %v5600_v38 = vpop.f32.mrb[17].mxu1  ;;  %v7013_v45 = vand.u32 4294901760, %v7001_v48 }
 0x702   : > { %v24611_v60 = vadd.f32 %v16040_v8, %v5600_v38  ;;  %v7100_v47 = vsub.f32 %v7004_v1, %v7016_v36 }
 0x703   : > { %v19864_v10 = vpack.c.bf16 %v7016_v36, %v7013_v45  ;;  %v7093_v50 = vsub.f32 %v7001_v48, %v7013_v45  ;;  %v7010_v0 = vsel %vm6996_vm1, %v24609_v9, 0 }
 0x704   : > { %v7007_v14 = vsel %vm6996_vm1, %v24611_v60, 0  ;;  %v7022_v29 = vand.u32 4294901760, %v7010_v0  ;;  %v7101_v7 = vand.u32 4294901760, %v7100_v47 }
 0x705   : > { %19865 = vmatpush3.bf16.xpose.msra.mxu1 %v19864_v10  ;;  %v7019_v37 = vand.u32 4294901760, %v7007_v14  ;;  %v7094_v62 = vand.u32 4294901760, %v7093_v50  ;;  %v19876_v23 = vpack.c.bf16 %v7100_v47, %v7093_v50 }
 0x706   : > { %19866 = vmatprep.subr.bf16.mxu1 %v21812_v31  ;;  %v7114_v3 = vsub.f32 %v7010_v0, %v7022_v29  ;;  %v7102_v12 = vsub.f32 %v7100_v47, %v7101_v7 }
 0x707   : > { %v19867_v5 = vpack.c.bf16 %v7022_v29, %v7019_v37  ;;  %v7107_v55 = vsub.f32 %v7007_v14, %v7019_v37  ;;  %v7095_v53 = vsub.f32 %v7093_v50, %v7094_v62  ;;  %v19888_v54 = vpack.c.bf16 %v7101_v7, %v7094_v62 }
 0x708   : > { %v7103_v11 = vand.u32 4294901760, %v7102_v12  ;;  %v7115_v61 = vand.u32 4294901760, %v7114_v3 }
 0x709   : > { %v7096_v52 = vand.u32 4294901760, %v7095_v53  ;;  %v7108_v21 = vand.u32 4294901760, %v7107_v55  ;;  %v19879_v28 = vpack.c.bf16 %v7114_v3, %v7107_v55 }
 0x70a   : > { %v7116_v42 = vsub.f32 %v7114_v3, %v7115_v61 }
 0x70b   : > { %v19870_v58 = vpack.c.bf16 %v7103_v11, %v7096_v52  ;;  %v7109_v18 = vsub.f32 %v7107_v55, %v7108_v21  ;;  %v19891_v19 = vpack.c.bf16 %v7115_v61, %v7108_v21 }
 0x70c   : > { %v7117_v46 = vand.u32 4294901760, %v7116_v42 }
 0x70d   : > { %19868 = vmatpush3.bf16.xpose.msra.mxu1 %v19867_v5  ;;  %v7110_v2 = vand.u32 4294901760, %v7109_v18 }
 0x70e   : > { %19869 = vmatprep.subr.bf16.mxu1 %v21812_v31 }
 0x70f   : > { %v19873_v63 = vpack.c.bf16 %v7117_v46, %v7110_v2 }
 0x714   : > { %18198 = vmatmul.mubr.f32.vlgmr.msra.gmra.mrb[22].mxu1 %v7085_v34 }
 0x715   : > { %19871 = vmatpush3.bf16.xpose.msra.mxu1 %v19870_v58  ;;  %18208 = vmatprep.mubr.msk.f32.mxu1 %vm21813_vm0, %v26051_v26 }
 0x716   : > { %19872 = vmatprep.subr.bf16.mxu1 %v21812_v31 }
 0x71d   : > { %19874 = vmatpush3.bf16.xpose.msra.mxu1 %v19873_v63 }
 0x71e   : > { %19875 = vmatprep.subr.bf16.mxu1 %v21812_v31 }
 0x724   : > { %18209 = vmatmul.mubr.f32.vlgmr.msra.gmra.mrb[22].mxu1 %v24613_v20 }
 0x725   : > { %19877 = vmatpush3.bf16.xpose.msra.mxu1 %v19876_v23  ;;  %18219 = vmatprep.mubr.msk.f32.mxu1 %vm21813_vm0, %v26051_v26 }
 0x726   : > { %19878 = vmatprep.subr.bf16.mxu1 %v21812_v31 }
 0x72d   : > { %19880 = vmatpush3.bf16.xpose.msra.mxu1 %v19879_v28 }
 0x72e   : > { %19881 = vmatprep.subr.bf16.mxu1 %v21812_v31 }
 0x734   : > { %18220 = vmatmul.mubr.f32.vlgmr.msra.gmra.mrb[22].mxu1 %v7082_v59 }
 0x735   : > { %19883 = vmatpush3.bf16.xpose.msra.mxu1 %v19864_v10  ;;  %18230 = vmatprep.mubr.msk.f32.mxu1 %vm21813_vm0, %v26051_v26 }
 0x736   : > { %19884 = vmatprep.subr.bf16.mxu1 %v21812_v31 }
 0x73d   : > { %19886 = vmatpush3.bf16.xpose.msra.mxu1 %v19867_v5 }
 0x73e   : > { %19887 = vmatprep.subr.bf16.mxu1 %v21812_v31 }
 0x744   : > { %18231 = vmatmul.mubr.f32.vlgmr.msra.gmra.mrb[22].mxu1 %v7083_v16 }
 0x745   : > { %19889 = vmatpush3.bf16.xpose.msra.mxu1 %v19888_v54  ;;  %18241 = vmatprep.mubr.msk.f32.mxu1 %vm21813_vm0, %v26051_v26 }
 0x746   : > { %19890 = vmatprep.subr.bf16.mxu1 %v21812_v31 }
 0x74d   : > { %19892 = vmatpush3.bf16.xpose.msra.mxu1 %v19891_v19 }
 0x74e   : > { %19893 = vmatprep.subr.bf16.mxu1 %v21812_v31 }
 0x754   : > { %18242 = vmatmul.mubr.f32.vlgmr.msra.gmra.mrb[22].mxu1 %v24613_v20 }
 0x755   : > { %19895 = vmatpush3.bf16.xpose.msra.mxu1 %v19864_v10  ;;  %18252 = vmatprep.mubr.msk.f32.mxu1 %vm21813_vm0, %v26051_v26 }
 0x756   : > { %19896 = vmatprep.subr.bf16.mxu1 %v21812_v31 }
 0x75c   : > { %v17975_v49 = vpop.f32.mrb[18].mxu1 }
 0x75d   : > { %v24646_v32 = vadd.f32 %v17975_v49, %v16041_v39  ;;  %v6281_v56 = vpop.f32.mrb[19].mxu1  ;;  %19898 = vmatpush3.bf16.xpose.msra.mxu1 %v19867_v5 }
 0x75e   : > { %v24648_v25 = vadd.f32 %v16041_v39, %v6281_v56  ;;  %19899 = vmatprep.subr.bf16.mxu1 %v21812_v31 }
 0x75f   : > { %v7520_v51 = vand.u32 4294901760, %v24646_v32 }
 0x760   : > { %v17978_v4 = vpop.f32.mrb[20].mxu1  ;;  %v7517_v41 = vand.u32 4294901760, %v24648_v25 }
 0x761   : > { %v24653_v35 = vadd.f32 %v17978_v4, %v16041_v39  ;;  %v6293_v24 = vpop.f32.mrb[21].mxu1  ;;  %v24656_v57 = vsub.f32 %v24646_v32, %v7520_v51 }
 0x762   : > { %v24658_v44 = vadd.f32 %v16041_v39, %v6293_v24  ;;  %v24660_v40 = vpack.c.bf16 %v7520_v51, %v7517_v41  ;;  %v24663_v6 = vsub.f32 %v24648_v25, %v7517_v41 }
 0x763   : > { %v7514_v8 = vsel %vm4794_vm11, %v24653_v35, 0  ;;  %v7605_v30 = vand.u32 4294901760, %v24656_v57 }
 0x764   : > { %18253 = vmatmul.mubr.f32.vlgmr.msra.gmra.mrb[22].mxu1 %v24613_v20  ;;  %v7523_v43 = vand.u32 4294901760, %v24658_v44  ;;  %v7526_v1 = vand.u32 4294901760, %v7514_v8  ;;  %v7598_v17 = vand.u32 4294901760, %v24663_v6  ;;  %v19912_v27 = vpack.c.bf16 %v24656_v57, %v24663_v6 }
 0x765   : > { %19901 = vmatpush3.bf16.msra.mxu1 %v24660_v40  ;;  %18263 = vmatprep.mubr.msk.f32.mxu1 %vm21813_vm0, %v26051_v26  ;;  %v7606_v48 = vsub.f32 %v24656_v57, %v7605_v30 }
 0x766   : > { %19902 = vmatprep.subr.bf16.mxu1 %v21812_v31  ;;  %v24678_v36 = vpack.c.bf16 %v7526_v1, %v7523_v43  ;;  %v7611_v38 = vsub.f32 %v24658_v44, %v7523_v43  ;;  %v7618_v45 = vsub.f32 %v7514_v8, %v7526_v1  ;;  %v7599_v20 = vsub.f32 %v24663_v6, %v7598_v17 }
 0x767   : > { %v7607_v10 = vand.u32 4294901760, %v7606_v48  ;;  %v19924_v50 = vpack.c.bf16 %v7605_v30, %v7598_v17 }
 0x768   : > { %v7600_v47 = vand.u32 4294901760, %v7599_v20  ;;  %v7612_v0 = vand.u32 4294901760, %v7611_v38  ;;  %v7619_v14 = vand.u32 4294901760, %v7618_v45  ;;  %v19915_v29 = vpack.c.bf16 %v7618_v45, %v7611_v38 }
 0x769   : > { %19904 = vmatpush3.bf16.msra.mxu1 %v24678_v36 }
 0x76a   : > { %19905 = vmatprep.subr.bf16.mxu1 %v21812_v31  ;;  %v19906_v59 = vpack.c.bf16 %v7607_v10, %v7600_v47  ;;  %v7613_v37 = vsub.f32 %v7611_v38, %v7612_v0  ;;  %v7620_v62 = vsub.f32 %v7618_v45, %v7619_v14  ;;  %v19927_v7 = vpack.c.bf16 %v7619_v14, %v7612_v0 }
 0x76c   : > { %v7614_v3 = vand.u32 4294901760, %v7613_v37  ;;  %v7621_v16 = vand.u32 4294901760, %v7620_v62 }
 0x76e   : > { %v19909_v5 = vpack.c.bf16 %v7621_v16, %v7614_v3 }
 0x837   : > { %v7493_v55 = vpop.f32.mrb[22].mxu1 }
 0x838   : > { %v7497_v53 = vmul.f32 0.35355338, %v7493_v55  ;;  %v18254_v12 = vpop.f32.mrb[23].mxu1 }
 0x83a   : > { %v7499_v13 = vsel %vm7498_vm3, %v7497_v53, -inf }
 0x83b   : > { %7500 = vmax.xlane.f32.xlu0 %v7499_v13 }
 0x851   : > { %8003 = vrot.lane.b32.xlu0 %v24601_v22, %s21815_s14 }
 0x855   : > { %8001 = vrot.lane.b32.xlu0 %v24597_v15, %s21815_s14 }
 0x859   : > { %8521 = vrot.lane.b32.xlu0 %v24648_v25, %s21815_s14 }
 0x8c8   : > { %v7501_v52 = vpop.xlane.xlu0 %7500 }
 0x8c9   : > { %v7502_v11 = vsub.f32 %v7497_v53, %v7501_v52 }
 0x8cb   : > { %v7503_v21 = vmul.f32 1.442695, %v7502_v11 }
 0x8cc   : > { %v8004_v39 = vpop.permute.xlu0 %8003 }
 0x8cd   : > { %21204 = vpow2.f32 %v7503_v21  ;;  %v8013_v4 = vsel %vm6996_vm1, %v8004_v39, 0 }
 0x8ce   : > { %v8022_v57 = vand.u32 4294901760, %v8013_v4 }
 0x8d0   : > { %v8002_v56 = vpop.permute.xlu0 %8001  ;;  %v8102_v1 = vsub.f32 %v8013_v4, %v8022_v57 }
 0x8d1   : > { %v8011_v41 = vsel %vm6996_vm1, %v8002_v56, 0 }
 0x8d2   : > { %v24728_v6 = vand.u32 4294901760, %v8011_v41  ;;  %v8103_v38 = vand.u32 4294901760, %v8102_v1 }
 0x8d4   : > { %v8091_v17 = vsub.f32 %v8011_v41, %v24728_v6  ;;  %v8104_v0 = vsub.f32 %v8102_v1, %v8103_v38 }
 0x8d6   : > { %v8092_v20 = vand.u32 4294901760, %v8091_v17  ;;  %v8105_v62 = vand.u32 4294901760, %v8104_v0 }
 0x8d7   : > { %v21205_v61 = vpop.eup %21204 }
 0x8d8   : > { %v7505_v34 = vsel %vm7498_vm3, %v21205_v61, 0.0 }
 0x8d9   : > { %7506 = vadd.xlane.f32.xlu1 %v7505_v34 }
 0x8ea   : > { %8005 = vrot.lane.b32.xlu1 %v24599_v33, %s21815_s14 }
 0x8ee   : > { %8007 = vrot.lane.b32.xlu1 %v24611_v60, %s21815_s14 }
 0x8f2   : > { %8009 = vrot.lane.b32.xlu1 %v24609_v9, %s21815_s14 }
 0x966   : > { %v7507_v58 = vpop.xlane.xlu1 %7506 }
 0x967   : > { %21206 = vrcp.f32 %v7507_v58 }
 0x96a   : > { %v8006_v19 = vpop.permute.xlu1 %8005 }
 0x96b   : > { %v8015_v51 = vsel %vm6996_vm1, %v8006_v19, 0 }
 0x96c   : > { %v8025_v24 = vand.u32 4294901760, %v8015_v51 }
 0x96e   : > { %v8008_v49 = vpop.permute.xlu1 %8007  ;;  %v19936_v8 = vpack.c.bf16 %v8025_v24, %v8022_v57  ;;  %v8109_v30 = vsub.f32 %v8015_v51, %v8025_v24 }
 0x970   : > { %v8110_v48 = vand.u32 4294901760, %v8109_v30  ;;  %v19948_v52 = vpack.c.bf16 %v8109_v30, %v8102_v1 }
 0x971   : > { %v21207_v18 = vpop.eup %21206 }
 0x972   : > { %v7509_v42 = vmul.f32 %v21207_v18, %v21205_v61  ;;  %v8111_v10 = vsub.f32 %v8109_v30, %v8110_v48  ;;  %v19960_v21 = vpack.c.bf16 %v8110_v48, %v8103_v38 }
 0x974   : > { %v7511_v2 = vsel %vm7498_vm3, %v7509_v42, 0 }
 0x975   : > { %v7585_v46 = vand.u32 4294901760, %v7511_v2 }
 0x977   : > { %v7586_v63 = vsub.f32 %v7511_v2, %v7585_v46 }
 0x979   : > { %v7587_v23 = vand.u32 4294901760, %v7586_v63 }
 0x97b   : > { %v7588_v28 = vsub.f32 %v7586_v63, %v7587_v23 }
 0x97d   : > { %v7589_v54 = vand.u32 4294901760, %v7588_v28  ;;  %v8522_v28 = vpop.permute.xlu0 %8521 }
 0x97e   : > { %v8538_v39 = vand.u32 4294901760, %v8522_v28 }
 0x97f   : > { %18264 = vmatmul.mubr.f32.vlgmr.msra.gmra.mrb[24].mxu1 %v7589_v54 }
 0x980   : > { %19907 = vmatpush3.bf16.msra.mxu1 %v19906_v59  ;;  %18274 = vmatprep.mubr.msk.f32.mxu1 %vm21813_vm0, %v26051_v26  ;;  %v8112_v59 = vand.u32 4294901760, %v8111_v10  ;;  %v8618_v1 = vsub.f32 %v8522_v28, %v8538_v39 }
 0x981   : > { %19908 = vmatprep.subr.bf16.mxu1 %v21812_v31 }
 0x982   : > { %v8619_v38 = vand.u32 4294901760, %v8618_v1 }
 0x984   : > { %19910 = vmatpush3.bf16.msra.mxu1 %v19909_v5  ;;  %v19942_v5 = vpack.c.bf16 %v8112_v59, %v8105_v62 }
 0x985   : > { %19911 = vmatprep.subr.bf16.mxu1 %v21812_v31 }
 0x987   : > { %18275 = vmatmul.mubr.f32.vlgmr.msra.gmra.mrb[24].mxu1 %v7585_v46 }
 0x988   : > { %19913 = vmatpush3.bf16.msra.mxu1 %v19912_v27  ;;  %18285 = vmatprep.mubr.msk.f32.mxu1 %vm21813_vm0, %v26051_v26  ;;  %v8017_v27 = vsel %vm6996_vm1, %v8008_v49, 0 }
 0x989   : > { %19914 = vmatprep.subr.bf16.mxu1 %v21812_v31  ;;  %v8028_v45 = vand.u32 4294901760, %v8017_v27 }
 0x98b   : > { %v8116_v14 = vsub.f32 %v8017_v27, %v8028_v45 }
 0x98c   : > { %19916 = vmatpush3.bf16.msra.mxu1 %v19915_v29  ;;  %v8093_v29 = vsub.f32 %v8091_v17, %v8092_v20 }
 0x98d   : > { %19917 = vmatprep.subr.bf16.mxu1 %v21812_v31 }
 0x98e   : > { %v8094_v3 = vand.u32 4294901760, %v8093_v29 }
 0x98f   : > { %18286 = vmatmul.mubr.f32.vlgmr.msra.gmra.mrb[24].mxu1 %v7586_v63 }
 0x990   : > { %19919 = vmatpush3.bf16.msra.mxu1 %v24660_v40  ;;  %18296 = vmatprep.mubr.msk.f32.mxu1 %vm21813_vm0, %v26051_v26 }
 0x991   : > { %19920 = vmatprep.subr.bf16.mxu1 %v21812_v31 }
 0x994   : > { %19922 = vmatpush3.bf16.msra.mxu1 %v24678_v36 }
 0x995   : > { %19923 = vmatprep.subr.bf16.mxu1 %v21812_v31 }
 0x997   : > { %18297 = vmatmul.mubr.f32.vlgmr.msra.gmra.mrb[24].mxu1 %v7587_v23 }
 0x998   : > { %19925 = vmatpush3.bf16.msra.mxu1 %v19924_v50  ;;  %18307 = vmatprep.mubr.msk.f32.mxu1 %vm21813_vm0, %v26051_v26 }
 0x999   : > { %19926 = vmatprep.subr.bf16.mxu1 %v21812_v31 }
 0x99c   : > { %19928 = vmatpush3.bf16.msra.mxu1 %v19927_v7  ;;  %v8117_v7 = vand.u32 4294901760, %v8116_v14 }
 0x99d   : > { %19929 = vmatprep.subr.bf16.mxu1 %v21812_v31 }
 0x99e   : > { %v8118_v55 = vsub.f32 %v8116_v14, %v8117_v7 }
 0x99f   : > { %18308 = vmatmul.mubr.f32.vlgmr.msra.gmra.mrb[24].mxu1 %v7585_v46 }
 0x9a0   : > { %19931 = vmatpush3.bf16.msra.mxu1 %v24660_v40  ;;  %18318 = vmatprep.mubr.msk.f32.mxu1 %vm21813_vm0, %v26051_v26  ;;  %v8010_v40 = vpop.permute.xlu1 %8009  ;;  %v8119_v12 = vand.u32 4294901760, %v8118_v55 }
 0x9a1   : > { %19932 = vmatprep.subr.bf16.mxu1 %v21812_v31  ;;  %v8019_v43 = vsel %vm6996_vm1, %v8010_v40, 0 }
 0x9a4   : > { %19934 = vmatpush3.bf16.msra.mxu1 %v24678_v36  ;;  %v8031_v36 = vand.u32 4294901760, %v8019_v43 }
 0x9a5   : > { %19935 = vmatprep.subr.bf16.mxu1 %v21812_v31 }
 0x9a6   : > { %v19939_v50 = vpack.c.bf16 %v8031_v36, %v8028_v45  ;;  %v8123_v47 = vsub.f32 %v8019_v43, %v8031_v36 }
 0x9a7   : > { %18319 = vmatmul.mubr.f32.vlgmr.msra.gmra.mrb[24].mxu1 %v7585_v46 }
 0x9a8   : > { %18329 = vmatprep.mubr.msk.f32.mxu1 %vm21813_vm0, %v26051_v26  ;;  %v8124_v37 = vand.u32 4294901760, %v8123_v47  ;;  %v19951_v11 = vpack.c.bf16 %v8123_v47, %v8116_v14  ;;  %v8620_v14 = vsub.f32 %v8618_v1, %v8619_v38 }
 0x9aa   : > { %v8125_v16 = vsub.f32 %v8123_v47, %v8124_v37  ;;  %v19963_v61 = vpack.c.bf16 %v8124_v37, %v8117_v7 }
 0x9ac   : > { %v8126_v53 = vand.u32 4294901760, %v8125_v16 }
 0x9ad   : > { %19937 = vmatpush3.bf16.xpose.msra.mxu1 %v19936_v8 }
 0x9ae   : > { %19938 = vmatprep.subr.bf16.mxu1 %v21812_v31  ;;  %v19945_v13 = vpack.c.bf16 %v8126_v53, %v8119_v12 }
 0x9b5   : > { %19940 = vmatpush3.bf16.xpose.msra.mxu1 %v19939_v50 }
 0x9b6   : > { %19941 = vmatprep.subr.bf16.mxu1 %v21812_v31 }
 0x9bc   : > { %18330 = vmatmul.mubr.f32.vlgmr.msra.gmra.mrb[26].mxu1 %v8094_v3  ;;  %v8621_v3 = vand.u32 4294901760, %v8620_v14 }
 0x9bd   : > { %19943 = vmatpush3.bf16.xpose.msra.mxu1 %v19942_v5  ;;  %18340 = vmatprep.mubr.msk.f32.mxu1 %vm21813_vm0, %v26051_v26 }
 0x9be   : > { %19944 = vmatprep.subr.bf16.mxu1 %v21812_v31 }
 0x9c5   : > { %19946 = vmatpush3.bf16.xpose.msra.mxu1 %v19945_v13 }
 0x9c6   : > { %19947 = vmatprep.subr.bf16.mxu1 %v21812_v31 }
 0x9cc   : > { %18341 = vmatmul.mubr.f32.vlgmr.msra.gmra.mrb[26].mxu1 %v24728_v6 }
 0x9cd   : > { %19949 = vmatpush3.bf16.xpose.msra.mxu1 %v19948_v52  ;;  %18351 = vmatprep.mubr.msk.f32.mxu1 %vm21813_vm0, %v26051_v26 }
 0x9ce   : > { %19950 = vmatprep.subr.bf16.mxu1 %v21812_v31 }
 0x9d5   : > { %19952 = vmatpush3.bf16.xpose.msra.mxu1 %v19951_v11 }
 0x9d6   : > { %19953 = vmatprep.subr.bf16.mxu1 %v21812_v31 }
 0x9dc   : > { %18352 = vmatmul.mubr.f32.vlgmr.msra.gmra.mrb[26].mxu1 %v8091_v17 }
 0x9dd   : > { %19955 = vmatpush3.bf16.xpose.msra.mxu1 %v19936_v8  ;;  %18362 = vmatprep.mubr.msk.f32.mxu1 %vm21813_vm0, %v26051_v26 }
 0x9de   : > { %19956 = vmatprep.subr.bf16.mxu1 %v21812_v31 }
 0x9e5   : > { %19958 = vmatpush3.bf16.xpose.msra.mxu1 %v19939_v50 }
 0x9e6   : > { %19959 = vmatprep.subr.bf16.mxu1 %v21812_v31 }
 0x9ec   : > { %18363 = vmatmul.mubr.f32.vlgmr.msra.gmra.mrb[26].mxu1 %v8092_v20 }
 0x9ed   : > { %19961 = vmatpush3.bf16.xpose.msra.mxu1 %v19960_v21  ;;  %18373 = vmatprep.mubr.msk.f32.mxu1 %vm21813_vm0, %v26051_v26 }
 0x9ee   : > { %19962 = vmatprep.subr.bf16.mxu1 %v21812_v31 }
 0x9f5   : > { %19964 = vmatpush3.bf16.xpose.msra.mxu1 %v19963_v61 }
 0x9f6   : > { %19965 = vmatprep.subr.bf16.mxu1 %v21812_v31 }
 0x9fc   : > { %18374 = vmatmul.mubr.f32.vlgmr.msra.gmra.mrb[26].mxu1 %v24728_v6 }
 0x9fd   : > { %19967 = vmatpush3.bf16.xpose.msra.mxu1 %v19936_v8  ;;  %18384 = vmatprep.mubr.msk.f32.mxu1 %vm21813_vm0, %v26051_v26 }
 0x9fe   : > { %19968 = vmatprep.subr.bf16.mxu1 %v21812_v31 }
 0xa05   : > { %19970 = vmatpush3.bf16.xpose.msra.mxu1 %v19939_v50 }
 0xa06   : > { %20043 = vmatprep.subr.bf16.mxu1 %v21812_v31 }
 0xa0c   : > { %18385 = vmatmul.mubr.f32.vlgmr.msra.gmra.mrb[26].mxu1 %v24728_v6 }
 0xa0d   : > { %18527 = vmatprep.mubr.msk.f32.mxu1 %vm21813_vm0, %v26051_v26 }
 0xa7a   : > { %v24760_v34 = vpop.f32.mrb[24].mxu1 }
 0xa7b   : > { %v18320_v58 = vpop.f32.mrb[25].mxu1 }
 0xadf   : > { %v8502_v18 = vpop.f32.mrb[26].mxu1 }
 0xae0   : > { %v8506_v42 = vmul.f32 0.35355338, %v8502_v18  ;;  %v18386_v2 = vpop.f32.mrb[27].mxu1 }
 0xae2   : > { %v8507_v46 = vsel %vm7498_vm3, %v8506_v42, -inf }
 0xae3   : > { %8508 = vmax.xlane.f32.xlu1 %v8507_v46 }
 0xaf4   : > { %8523 = vrot.lane.b32.xlu1 %v24646_v32, %s21815_s14 }
 0xaf8   : > { %8527 = vrot.lane.b32.xlu1 %v24653_v35, %s21815_s14 }
 0xafc   : > { %9024 = vrot.lane.b32.xlu1 %v24601_v22, %s21816_s4 }
 0xb00   : > { %9028 = vrot.lane.b32.xlu1 %v24611_v60, %s21816_s4 }
 0xb04   : > { %9022 = vrot.lane.b32.xlu1 %v24597_v15, %s21816_s4 }
 0xb08   : > { %9541 = vrot.lane.b32.xlu1 %v24646_v32, %s21816_s4 }
 0xb70   : > { %v8509_v63 = vpop.xlane.xlu1 %8508 }
 0xb71   : > { %v8510_v23 = vsub.f32 %v8506_v42, %v8509_v63 }
 0xb73   : > { %v8511_v54 = vmul.f32 1.442695, %v8510_v23 }
 0xb74   : > { %v8524_v19 = vpop.permute.xlu1 %8523 }
 0xb75   : > { %21208 = vpow2.f32 %v8511_v54  ;;  %v8541_v49 = vand.u32 4294901760, %v8524_v19 }
 0xb77   : > { %v24775_v56 = vpack.c.bf16 %v8541_v49, %v8538_v39  ;;  %v24777_v51 = vsub.f32 %v8524_v19, %v8541_v49 }
 0xb78   : > { %v8528_v24 = vpop.permute.xlu1 %8527 }
 0xb79   : > { %19973 = vmatpush3.bf16.msra.mxu0 %v24775_v56  ;;  %v8535_v40 = vsel %vm4794_vm11, %v8528_v24, 0  ;;  %v8626_v27 = vand.u32 4294901760, %v24777_v51  ;;  %v19984_v52 = vpack.c.bf16 %v24777_v51, %v8618_v1 }
 0xb7a   : > { %19974 = vmatprep.subr.bf16.mxu0 %v21812_v31  ;;  %v8547_v8 = vand.u32 4294901760, %v8535_v40 }
 0xb7b   : > { %v8627_v50 = vsub.f32 %v24777_v51, %v8626_v27  ;;  %v19996_v21 = vpack.c.bf16 %v8626_v27, %v8619_v38 }
 0xb7c   : > { %v8639_v45 = vsub.f32 %v8535_v40, %v8547_v8  ;;  %v9025_v61 = vpop.permute.xlu1 %9024 }
 0xb7d   : > { %v8628_v37 = vand.u32 4294901760, %v8627_v50  ;;  %v9034_v63 = vsel %vm6996_vm1, %v9025_v61, 0 }
 0xb7e   : > { %v8640_v29 = vand.u32 4294901760, %v8639_v45  ;;  %v9043_v54 = vand.u32 4294901760, %v9034_v63 }
 0xb7f   : > { %v21209_v4 = vpop.eup %21208  ;;  %v19978_v53 = vpack.c.bf16 %v8628_v37, %v8621_v3 }
 0xb80   : > { %v8513_v41 = vsel %vm7498_vm3, %v21209_v4, 0.0  ;;  %v8641_v16 = vsub.f32 %v8639_v45, %v8640_v29  ;;  %v9029_v18 = vpop.permute.xlu1 %9028 }
 0xb81   : > { %8514 = vadd.xlane.f32.xlu0 %v8513_v41  ;;  %v9038_v41 = vsel %vm6996_vm1, %v9029_v18, 0 }
 0xb82   : > { %v8642_v12 = vand.u32 4294901760, %v8641_v16 }
 0xb84   : > { %v9023_v2 = vpop.permute.xlu1 %9022 }
 0xb85   : > { %v9032_v23 = vsel %vm6996_vm1, %v9023_v2, 0 }
 0xb86   : > { %v24826_v39 = vand.u32 4294901760, %v9032_v23 }
 0xb88   : > { %v9112_v24 = vsub.f32 %v9032_v23, %v24826_v39  ;;  %v9542_v61 = vpop.permute.xlu1 %9541 }
 0xb97   : > { %8525 = vrot.lane.b32.xlu0 %v24658_v44, %s21815_s14  ;;  %s21828_s14 = smov 56  }
 0xb9b   : > { %9026 = vrot.lane.b32.xlu0 %v24599_v33, %s21816_s4 }
 0xb9f   : > { %9030 = vrot.lane.b32.xlu0 %v24609_v9, %s21816_s4 }
 0xc0e   : > { %v8515_v57 = vpop.xlane.xlu0 %8514 }
 0xc0f   : > { %21210 = vrcp.f32 %v8515_v57 }
 0xc12   : > { %v8526_v6 = vpop.permute.xlu0 %8525 }
 0xc13   : > { %v8544_v30 = vand.u32 4294901760, %v8526_v6 }
 0xc15   : > { %v24789_v43 = vpack.c.bf16 %v8547_v8, %v8544_v30  ;;  %v8632_v36 = vsub.f32 %v8526_v6, %v8544_v30  ;;  %v9049_v8 = vand.u32 4294901760, %v9038_v41  ;;  %v9113_v30 = vand.u32 4294901760, %v9112_v24 }
 0xc16   : > { %v9027_v42 = vpop.permute.xlu0 %9026 }
 0xc17   : > { %19976 = vmatpush3.bf16.msra.mxu0 %v24789_v43  ;;  %v8633_v47 = vand.u32 4294901760, %v8632_v36  ;;  %v19987_v11 = vpack.c.bf16 %v8639_v45, %v8632_v36  ;;  %v9036_v46 = vsel %vm6996_vm1, %v9027_v42, 0  ;;  %v9559_v42 = vand.u32 4294901760, %v9542_v61 }
 0xc18   : > { %19977 = vmatprep.subr.bf16.mxu0 %v21812_v31  ;;  %v9046_v28 = vand.u32 4294901760, %v9036_v46 }
 0xc19   : > { %v21211_v17 = vpop.eup %21210  ;;  %v8634_v62 = vsub.f32 %v8632_v36, %v8633_v47  ;;  %v19999_v58 = vpack.c.bf16 %v8640_v29, %v8633_v47  ;;  %v9114_v36 = vsub.f32 %v9112_v24, %v9113_v30 }
 0xc1a   : > { %v8517_v48 = vmul.f32 %v21211_v17, %v21209_v4  ;;  %v9031_v19 = vpop.permute.xlu0 %9030  ;;  %v20008_v49 = vpack.c.bf16 %v9046_v28, %v9043_v54  ;;  %v9123_v4 = vsub.f32 %v9034_v63, %v9043_v54 }
 0xc1b   : > { %v8635_v55 = vand.u32 4294901760, %v8634_v62  ;;  %v9040_v51 = vsel %vm6996_vm1, %v9031_v19, 0  ;;  %v9115_v50 = vand.u32 4294901760, %v9114_v36 }
 0xc1c   : > { %v8533_v20 = vsel %vm7498_vm3, %v8517_v48, 0  ;;  %v9052_v40 = vand.u32 4294901760, %v9040_v51  ;;  %v9124_v6 = vand.u32 4294901760, %v9123_v4  ;;  %v9137_v48 = vsub.f32 %v9038_v41, %v9049_v8 }
 0xc1d   : > { %v8606_v10 = vand.u32 4294901760, %v8533_v20  ;;  %v19981_v13 = vpack.c.bf16 %v8642_v12, %v8635_v55  ;;  %v9643_v41 = vsub.f32 %v9542_v61, %v9559_v42 }
 0xc1e   : > { %v20011_v1 = vpack.c.bf16 %v9052_v40, %v9049_v8  ;;  %v9144_v17 = vsub.f32 %v9040_v51, %v9052_v40  ;;  %v9125_v27 = vsub.f32 %v9123_v4, %v9124_v6 }
 0xc1f   : > { %v8607_v0 = vsub.f32 %v8533_v20, %v8606_v10  ;;  %v9644_v8 = vand.u32 4294901760, %v9643_v41 }
 0xc20   : > { %v9145_v45 = vand.u32 4294901760, %v9144_v17  ;;  %v9126_v20 = vand.u32 4294901760, %v9125_v27 }
 0xc21   : > { %v8608_v59 = vand.u32 4294901760, %v8607_v0  ;;  %v9645_v36 = vsub.f32 %v9643_v41, %v9644_v8 }
 0xc22   : > { %v9146_v47 = vsub.f32 %v9144_v17, %v9145_v45 }
 0xc23   : > { %v8609_v7 = vsub.f32 %v8607_v0, %v8608_v59 }
 0xc24   : > { %v9147_v29 = vand.u32 4294901760, %v9146_v47  ;;  %v9646_v47 = vand.u32 4294901760, %v9645_v36 }
 0xc25   : > { %v8610_v5 = vand.u32 4294901760, %v8609_v7  ;;  %v20023_v7 = vpack.c.bf16 %v9144_v17, %v9137_v48 }
 0xc27   : > { %18396 = vmatmul.mubr.f32.vlgmr.msra.gmra.mrb[34].mxu0 %v8610_v5 }
 0xc28   : > { %19979 = vmatpush3.bf16.msra.mxu0 %v19978_v53  ;;  %18406 = vmatprep.mubr.msk.f32.mxu0 %vm21813_vm0, %v26051_v26 }
 0xc29   : > { %19980 = vmatprep.subr.bf16.mxu0 %v21812_v31 }
 0xc2c   : > { %19982 = vmatpush3.bf16.msra.mxu0 %v19981_v13 }
 0xc2d   : > { %19983 = vmatprep.subr.bf16.mxu0 %v21812_v31 }
 0xc2f   : > { %18407 = vmatmul.mubr.f32.vlgmr.msra.gmra.mrb[34].mxu0 %v8606_v10 }
 0xc30   : > { %19985 = vmatpush3.bf16.msra.mxu0 %v19984_v52  ;;  %18417 = vmatprep.mubr.msk.f32.mxu0 %vm21813_vm0, %v26051_v26 }
 0xc31   : > { %19986 = vmatprep.subr.bf16.mxu0 %v21812_v31 }
 0xc34   : > { %19988 = vmatpush3.bf16.msra.mxu0 %v19987_v11 }
 0xc35   : > { %19989 = vmatprep.subr.bf16.mxu0 %v21812_v31 }
 0xc37   : > { %18418 = vmatmul.mubr.f32.vlgmr.msra.gmra.mrb[34].mxu0 %v8607_v0 }
 0xc38   : > { %19991 = vmatpush3.bf16.msra.mxu0 %v24775_v56  ;;  %18428 = vmatprep.mubr.msk.f32.mxu0 %vm21813_vm0, %v26051_v26 }
 0xc39   : > { %19992 = vmatprep.subr.bf16.mxu0 %v21812_v31 }
 0xc3c   : > { %19994 = vmatpush3.bf16.msra.mxu0 %v24789_v43 }
 0xc3d   : > { %19995 = vmatprep.subr.bf16.mxu0 %v21812_v31 }
 0xc3f   : > { %18429 = vmatmul.mubr.f32.vlgmr.msra.gmra.mrb[34].mxu0 %v8608_v59 }
 0xc40   : > { %19997 = vmatpush3.bf16.msra.mxu0 %v19996_v21  ;;  %18439 = vmatprep.mubr.msk.f32.mxu0 %vm21813_vm0, %v26051_v26 }
 0xc41   : > { %19998 = vmatprep.subr.bf16.mxu0 %v21812_v31 }
 0xc44   : > { %20000 = vmatpush3.bf16.msra.mxu0 %v19999_v58 }
 0xc45   : > { %20001 = vmatprep.subr.bf16.mxu0 %v21812_v31 }
 0xc47   : > { %18440 = vmatmul.mubr.f32.vlgmr.msra.gmra.mrb[34].mxu0 %v8606_v10 }
 0xc48   : > { %20003 = vmatpush3.bf16.msra.mxu0 %v24775_v56  ;;  %18450 = vmatprep.mubr.msk.f32.mxu0 %vm21813_vm0, %v26051_v26  ;;  %v9130_v56 = vsub.f32 %v9036_v46, %v9046_v28 }
 0xc49   : > { %20004 = vmatprep.subr.bf16.mxu0 %v21812_v31 }
 0xc4a   : > { %v9131_v57 = vand.u32 4294901760, %v9130_v56  ;;  %v20020_v62 = vpack.c.bf16 %v9130_v56, %v9123_v4 }
 0xc4c   : > { %20006 = vmatpush3.bf16.msra.mxu0 %v24789_v43  ;;  %v9132_v43 = vsub.f32 %v9130_v56, %v9131_v57  ;;  %v20032_v3 = vpack.c.bf16 %v9131_v57, %v9124_v6 }
 0xc4d   : > { %20007 = vmatprep.subr.bf16.mxu0 %v21812_v31 }
 0xc4e   : > { %v9133_v38 = vand.u32 4294901760, %v9132_v43 }
 0xc4f   : > { %18451 = vmatmul.mubr.f32.vlgmr.msra.gmra.mrb[34].mxu0 %v8606_v10  ;;  %v9138_v10 = vand.u32 4294901760, %v9137_v48 }
 0xc50   : > { %18461 = vmatprep.mubr.msk.f32.mxu0 %vm21813_vm0, %v26051_v26  ;;  %v20014_v0 = vpack.c.bf16 %v9133_v38, %v9126_v20 }
 0xc51   : > { %v9139_v14 = vsub.f32 %v9137_v48, %v9138_v10  ;;  %v20035_v16 = vpack.c.bf16 %v9145_v45, %v9138_v10 }
 0xc53   : > { %v9140_v59 = vand.u32 4294901760, %v9139_v14 }
 0xc55   : > { %20009 = vmatpush3.bf16.xpose.msra.mxu0 %v20008_v49  ;;  %v20017_v37 = vpack.c.bf16 %v9147_v29, %v9140_v59 }
 0xc56   : > { %20010 = vmatprep.subr.bf16.mxu0 %v21812_v31 }
 0xc5d   : > { %20012 = vmatpush3.bf16.xpose.msra.mxu0 %v20011_v1 }
 0xc5e   : > { %20013 = vmatprep.subr.bf16.mxu0 %v21812_v31 }
 0xc64   : > { %18462 = vmatmul.mubr.f32.vlgmr.msra.gmra.mrb[36].mxu0 %v9115_v50 }
 0xc65   : > { %20015 = vmatpush3.bf16.xpose.msra.mxu0 %v20014_v0  ;;  %18472 = vmatprep.mubr.msk.f32.mxu0 %vm21813_vm0, %v26051_v26 }
 0xc66   : > { %20016 = vmatprep.subr.bf16.mxu0 %v21812_v31 }
 0xc6d   : > { %20018 = vmatpush3.bf16.xpose.msra.mxu0 %v20017_v37 }
 0xc6e   : > { %20019 = vmatprep.subr.bf16.mxu0 %v21812_v31 }
 0xc74   : > { %18473 = vmatmul.mubr.f32.vlgmr.msra.gmra.mrb[36].mxu0 %v24826_v39 }
 0xc75   : > { %20021 = vmatpush3.bf16.xpose.msra.mxu0 %v20020_v62  ;;  %18483 = vmatprep.mubr.msk.f32.mxu0 %vm21813_vm0, %v26051_v26 }
 0xc76   : > { %20022 = vmatprep.subr.bf16.mxu0 %v21812_v31 }
 0xc7d   : > { %20024 = vmatpush3.bf16.xpose.msra.mxu0 %v20023_v7 }
 0xc7e   : > { %20025 = vmatprep.subr.bf16.mxu0 %v21812_v31 }
 0xc84   : > { %18484 = vmatmul.mubr.f32.vlgmr.msra.gmra.mrb[36].mxu0 %v9112_v24 }
 0xc85   : > { %20027 = vmatpush3.bf16.xpose.msra.mxu0 %v20008_v49  ;;  %18494 = vmatprep.mubr.msk.f32.mxu0 %vm21813_vm0, %v26051_v26 }
 0xc86   : > { %20028 = vmatprep.subr.bf16.mxu0 %v21812_v31 }
 0xc8d   : > { %20030 = vmatpush3.bf16.xpose.msra.mxu0 %v20011_v1 }
 0xc8e   : > { %20031 = vmatprep.subr.bf16.mxu0 %v21812_v31 }
 0xc94   : > { %18495 = vmatmul.mubr.f32.vlgmr.msra.gmra.mrb[36].mxu0 %v9113_v30 }
 0xc95   : > { %20033 = vmatpush3.bf16.xpose.msra.mxu0 %v20032_v3  ;;  %18505 = vmatprep.mubr.msk.f32.mxu0 %vm21813_vm0, %v26051_v26 }
 0xc96   : > { %20034 = vmatprep.subr.bf16.mxu0 %v21812_v31 }
 0xc9d   : > { %20036 = vmatpush3.bf16.xpose.msra.mxu0 %v20035_v16 }
 0xc9e   : > { %20037 = vmatprep.subr.bf16.mxu0 %v21812_v31 }
 0xca4   : > { %18506 = vmatmul.mubr.f32.vlgmr.msra.gmra.mrb[36].mxu0 %v24826_v39 }
 0xca5   : > { %20039 = vmatpush3.bf16.xpose.msra.mxu0 %v20008_v49  ;;  %18516 = vmatprep.mubr.msk.f32.mxu0 %vm21813_vm0, %v26051_v26 }
 0xca6   : > { %20040 = vmatprep.subr.bf16.mxu0 %v21812_v31 }
 0xcad   : > { %20042 = vmatpush3.bf16.xpose.msra.mxu0 %v20011_v1 }
 0xcae   : > { %20115 = vmatprep.subr.bf16.mxu0 %v21812_v31 }
 0xcb4   : > { %18517 = vmatmul.mubr.f32.vlgmr.msra.gmra.mrb[36].mxu0 %v24826_v39 }
 0xcb5   : > { %18659 = vmatprep.mubr.msk.f32.mxu0 %vm21813_vm0, %v26051_v26 }
 0xd22   : > { %v24858_v5 = vpop.f32.mrb[34].mxu0 }
 0xd23   : > { %v18452_v55 = vpop.f32.mrb[35].mxu0 }
 0xd87   : > { %v9523_v53 = vpop.f32.mrb[36].mxu0 }
 0xd88   : > { %v9527_v12 = vmul.f32 0.35355338, %v9523_v53  ;;  %v18518_v13 = vpop.f32.mrb[37].mxu0 }
 0xd8a   : > { %v9528_v52 = vsel %vm7498_vm3, %v9527_v12, -inf }
 0xd8b   : > { %9529 = vmax.xlane.f32.xlu0 %v9528_v52 }
 0xda1   : > { %9539 = vrot.lane.b32.xlu0 %v24648_v25, %s21816_s4 }
 0xda5   : > { %9545 = vrot.lane.b32.xlu0 %v24653_v35, %s21816_s4 }
 0xda9   : > { %10042 = vrot.lane.b32.xlu0 %v24601_v22, %s21817_s18 }
 0xdad   : > { %10046 = vrot.lane.b32.xlu0 %v24611_v60, %s21817_s18 }
 0xdb1   : > { %10040 = vrot.lane.b32.xlu0 %v24597_v15, %s21817_s18 }
 0xdb5   : > { %10557 = vrot.lane.b32.xlu0 %v24648_v25, %s21817_s18 }
 0xe18   : > { %v9530_v11 = vpop.xlane.xlu0 %9529 }
 0xe19   : > { %v9531_v21 = vsub.f32 %v9527_v12, %v9530_v11 }
 0xe1b   : > { %v9532_v58 = vmul.f32 1.442695, %v9531_v21 }
 0xe1c   : > { %v9540_v18 = vpop.permute.xlu0 %9539 }
 0xe1d   : > { %21212 = vpow2.f32 %v9532_v58  ;;  %v9556_v2 = vand.u32 4294901760, %v9540_v18 }
 0xe1f   : > { %v24873_v46 = vpack.c.bf16 %v9559_v42, %v9556_v2  ;;  %v24875_v63 = vsub.f32 %v9540_v18, %v9556_v2 }
 0xe20   : > { %v9546_v54 = vpop.permute.xlu0 %9545 }
 0xe21   : > { %20045 = vmatpush3.bf16.msra.mxu1 %v24873_v46  ;;  %v9553_v39 = vsel %vm4794_vm11, %v9546_v54, 0  ;;  %v9637_v57 = vand.u32 4294901760, %v24875_v63  ;;  %v20056_v7 = vpack.c.bf16 %v9643_v41, %v24875_v63 }
 0xe22   : > { %20046 = vmatprep.subr.bf16.mxu1 %v21812_v31  ;;  %v9565_v56 = vand.u32 4294901760, %v9553_v39 }
 0xe23   : > { %v9638_v17 = vsub.f32 %v24875_v63, %v9637_v57  ;;  %v20068_v16 = vpack.c.bf16 %v9644_v8, %v9637_v57 }
 0xe24   : > { %v9657_v30 = vsub.f32 %v9553_v39, %v9565_v56  ;;  %v10043_v55 = vpop.permute.xlu0 %10042 }
 0xe25   : > { %v9639_v20 = vand.u32 4294901760, %v9638_v17  ;;  %v10052_v21 = vsel %vm6996_vm1, %v10043_v55, 0 }
 0xe26   : > { %v9658_v38 = vand.u32 4294901760, %v9657_v30  ;;  %v10061_v18 = vand.u32 4294901760, %v10052_v21 }
 0xe27   : > { %v21213_v23 = vpop.eup %21212  ;;  %v20050_v59 = vpack.c.bf16 %v9646_v47, %v9639_v20 }
 0xe28   : > { %v9534_v28 = vsel %vm7498_vm3, %v21213_v23, 0.0  ;;  %v9659_v0 = vsub.f32 %v9657_v30, %v9658_v38  ;;  %v10047_v12 = vpop.permute.xlu0 %10046 }
 0xe29   : > { %9535 = vadd.xlane.f32.xlu1 %v9534_v28  ;;  %v10141_v28 = vsub.f32 %v10052_v21, %v10061_v18  ;;  %v10056_v54 = vsel %vm6996_vm1, %v10047_v12, 0 }
 0xe2a   : > { %v9660_v37 = vand.u32 4294901760, %v9659_v0 }
 0xe2c   : > { %v10041_v52 = vpop.permute.xlu0 %10040 }
 0xe2d   : > { %v10050_v61 = vsel %vm6996_vm1, %v10041_v52, 0 }
 0xe2e   : > { %v24924_v2 = vand.u32 4294901760, %v10050_v61 }
 0xe3a   : > { %9543 = vrot.lane.b32.xlu1 %v24658_v44, %s21816_s4 }
 0xe3e   : > { %10044 = vrot.lane.b32.xlu1 %v24599_v33, %s21817_s18 }
 0xe42   : > { %10048 = vrot.lane.b32.xlu1 %v24609_v9, %s21817_s18 }
 0xeb6   : > { %v9536_v19 = vpop.xlane.xlu1 %9535 }
 0xeb7   : > { %21214 = vrcp.f32 %v9536_v19  ;;  %v10130_v19 = vsub.f32 %v10050_v61, %v24924_v2 }
 0xeba   : > { %v9544_v49 = vpop.permute.xlu1 %9543 }
 0xebb   : > { %v9562_v51 = vand.u32 4294901760, %v9544_v49 }
 0xebd   : > { %v24887_v4 = vpack.c.bf16 %v9565_v56, %v9562_v51  ;;  %v9650_v6 = vsub.f32 %v9544_v49, %v9562_v51  ;;  %v10142_v56 = vand.u32 4294901760, %v10141_v28  ;;  %v10067_v51 = vand.u32 4294901760, %v10056_v54 }
 0xebe   : > { %v10045_v13 = vpop.permute.xlu1 %10044 }
 0xebf   : > { %20048 = vmatpush3.bf16.msra.mxu1 %v24887_v4  ;;  %v9651_v27 = vand.u32 4294901760, %v9650_v6  ;;  %v20059_v3 = vpack.c.bf16 %v9657_v30, %v9650_v6  ;;  %v10054_v11 = vsel %vm6996_vm1, %v10045_v13, 0 }
 0xec0   : > { %20049 = vmatprep.subr.bf16.mxu1 %v21812_v31  ;;  %v10064_v58 = vand.u32 4294901760, %v10054_v11 }
 0xec1   : > { %v21215_v24 = vpop.eup %21214  ;;  %v9652_v10 = vsub.f32 %v9650_v6, %v9651_v27  ;;  %v20071_v53 = vpack.c.bf16 %v9658_v38, %v9651_v27  ;;  %v10155_v6 = vsub.f32 %v10056_v54, %v10067_v51 }
 0xec2   : > { %v9538_v40 = vmul.f32 %v21215_v24, %v21213_v23  ;;  %v10049_v42 = vpop.permute.xlu1 %10048  ;;  %v10148_v63 = vsub.f32 %v10054_v11, %v10064_v58 }
 0xec3   : > { %v9653_v29 = vand.u32 4294901760, %v9652_v10  ;;  %v10058_v23 = vsel %vm6996_vm1, %v10049_v42, 0  ;;  %v10156_v17 = vand.u32 4294901760, %v10155_v6 }
 0xec4   : > { %v9551_v43 = vsel %vm7498_vm3, %v9538_v40, 0  ;;  %v10149_v39 = vand.u32 4294901760, %v10148_v63  ;;  %v10070_v49 = vand.u32 4294901760, %v10058_v23  ;;  %v10143_v40 = vsub.f32 %v10141_v28, %v10142_v56 }
 0xec5   : > { %v9624_v1 = vand.u32 4294901760, %v9551_v43  ;;  %v20053_v62 = vpack.c.bf16 %v9660_v37, %v9653_v29  ;;  %v10157_v38 = vsub.f32 %v10155_v6, %v10156_v17 }
 0xec6   : > { %v10150_v41 = vsub.f32 %v10148_v63, %v10149_v39  ;;  %v20083_v24 = vpack.c.bf16 %v10070_v49, %v10067_v51  ;;  %v10162_v57 = vsub.f32 %v10058_v23, %v10070_v49  ;;  %v20104_v0 = vpack.c.bf16 %v10149_v39, %v10142_v56 }
 0xec7   : > { %v9625_v48 = vsub.f32 %v9551_v43, %v9624_v1  ;;  %v10158_v20 = vand.u32 4294901760, %v10157_v38 }
 0xec8   : > { %v10151_v30 = vand.u32 4294901760, %v10150_v41  ;;  %v10163_v43 = vand.u32 4294901760, %v10162_v57  ;;  %v20095_v47 = vpack.c.bf16 %v10162_v57, %v10155_v6 }
 0xec9   : > { %v9626_v45 = vand.u32 4294901760, %v9625_v48 }
 0xecb   : > { %v9627_v50 = vsub.f32 %v9625_v48, %v9626_v45 }
 0xecd   : > { %v9628_v14 = vand.u32 4294901760, %v9627_v50  ;;  %v20092_v50 = vpack.c.bf16 %v10148_v63, %v10141_v28 }
 0xecf   : > { %18528 = vmatmul.mubr.f32.vlgmr.msra.gmra.mrb[28].mxu1 %v9628_v14  ;;  %v20107_v14 = vpack.c.bf16 %v10163_v43, %v10156_v17 }
 0xed0   : > { %20051 = vmatpush3.bf16.msra.mxu1 %v20050_v59  ;;  %18538 = vmatprep.mubr.msk.f32.mxu1 %vm21813_vm0, %v26051_v26 }
 0xed1   : > { %20052 = vmatprep.subr.bf16.mxu1 %v21812_v31 }
 0xed4   : > { %20054 = vmatpush3.bf16.msra.mxu1 %v20053_v62 }
 0xed5   : > { %20055 = vmatprep.subr.bf16.mxu1 %v21812_v31 }
 0xed7   : > { %18539 = vmatmul.mubr.f32.vlgmr.msra.gmra.mrb[28].mxu1 %v9624_v1 }
 0xed8   : > { %20057 = vmatpush3.bf16.msra.mxu1 %v20056_v7  ;;  %18549 = vmatprep.mubr.msk.f32.mxu1 %vm21813_vm0, %v26051_v26 }
 0xed9   : > { %20058 = vmatprep.subr.bf16.mxu1 %v21812_v31 }
 0xedc   : > { %20060 = vmatpush3.bf16.msra.mxu1 %v20059_v3 }
 0xedd   : > { %20061 = vmatprep.subr.bf16.mxu1 %v21812_v31 }
 0xedf   : > { %18550 = vmatmul.mubr.f32.vlgmr.msra.gmra.mrb[28].mxu1 %v9625_v48  ;;  %v10164_v48 = vsub.f32 %v10162_v57, %v10163_v43 }
 0xee0   : > { %20063 = vmatpush3.bf16.msra.mxu1 %v24873_v46  ;;  %18560 = vmatprep.mubr.msk.f32.mxu1 %vm21813_vm0, %v26051_v26 }
 0xee1   : > { %20064 = vmatprep.subr.bf16.mxu1 %v21812_v31 }
 0xee4   : > { %20066 = vmatpush3.bf16.msra.mxu1 %v24887_v4 }
 0xee5   : > { %20067 = vmatprep.subr.bf16.mxu1 %v21812_v31 }
 0xee7   : > { %18561 = vmatmul.mubr.f32.vlgmr.msra.gmra.mrb[28].mxu1 %v9626_v45  ;;  %v10165_v45 = vand.u32 4294901760, %v10164_v48 }
 0xee8   : > { %20069 = vmatpush3.bf16.msra.mxu1 %v20068_v16  ;;  %18571 = vmatprep.mubr.msk.f32.mxu1 %vm21813_vm0, %v26051_v26 }
 0xee9   : > { %20070 = vmatprep.subr.bf16.mxu1 %v21812_v31  ;;  %v20089_v10 = vpack.c.bf16 %v10165_v45, %v10158_v20 }
 0xeec   : > { %20072 = vmatpush3.bf16.msra.mxu1 %v20071_v53  ;;  %v10558_v53 = vpop.permute.xlu0 %10557 }
 0xeed   : > { %20073 = vmatprep.subr.bf16.mxu1 %v21812_v31  ;;  %v10574_v52 = vand.u32 4294901760, %v10558_v53 }
 0xeef   : > { %18572 = vmatmul.mubr.f32.vlgmr.msra.gmra.mrb[28].mxu1 %v9624_v1 }
 0xef0   : > { %20075 = vmatpush3.bf16.msra.mxu1 %v24873_v46  ;;  %18582 = vmatprep.mubr.msk.f32.mxu1 %vm21813_vm0, %v26051_v26  ;;  %v20080_v46 = vpack.c.bf16 %v10064_v58, %v10061_v18 }
 0xef1   : > { %20076 = vmatprep.subr.bf16.mxu1 %v21812_v31 }
 0xef4   : > { %20078 = vmatpush3.bf16.msra.mxu1 %v24887_v4  ;;  %v10131_v4 = vand.u32 4294901760, %v10130_v19 }
 0xef5   : > { %20079 = vmatprep.subr.bf16.mxu1 %v21812_v31 }
 0xef6   : > { %v10132_v8 = vsub.f32 %v10130_v19, %v10131_v4 }
 0xef7   : > { %18583 = vmatmul.mubr.f32.vlgmr.msra.gmra.mrb[28].mxu1 %v9624_v1  ;;  %v10144_v1 = vand.u32 4294901760, %v10143_v40 }
 0xef8   : > { %18593 = vmatprep.mubr.msk.f32.mxu1 %vm21813_vm0, %v26051_v26  ;;  %v10133_v27 = vand.u32 4294901760, %v10132_v8 }
 0xef9   : > { %v20086_v36 = vpack.c.bf16 %v10151_v30, %v10144_v1 }
 0xefd   : > { %20081 = vmatpush3.bf16.xpose.msra.mxu1 %v20080_v46 }
 0xefe   : > { %20082 = vmatprep.subr.bf16.mxu1 %v21812_v31 }
 0xf05   : > { %20084 = vmatpush3.bf16.xpose.msra.mxu1 %v20083_v24 }
 0xf06   : > { %20085 = vmatprep.subr.bf16.mxu1 %v21812_v31 }
 0xf0c   : > { %18594 = vmatmul.mubr.f32.vlgmr.msra.gmra.mrb[30].mxu1 %v10133_v27 }
 0xf0d   : > { %20087 = vmatpush3.bf16.xpose.msra.mxu1 %v20086_v36  ;;  %18604 = vmatprep.mubr.msk.f32.mxu1 %vm21813_vm0, %v26051_v26 }
 0xf0e   : > { %20088 = vmatprep.subr.bf16.mxu1 %v21812_v31 }
 0xf15   : > { %20090 = vmatpush3.bf16.xpose.msra.mxu1 %v20089_v10 }
 0xf16   : > { %20091 = vmatprep.subr.bf16.mxu1 %v21812_v31 }
 0xf1c   : > { %18605 = vmatmul.mubr.f32.vlgmr.msra.gmra.mrb[30].mxu1 %v24924_v2 }
 0xf1d   : > { %20093 = vmatpush3.bf16.xpose.msra.mxu1 %v20092_v50  ;;  %18615 = vmatprep.mubr.msk.f32.mxu1 %vm21813_vm0, %v26051_v26 }
 0xf1e   : > { %20094 = vmatprep.subr.bf16.mxu1 %v21812_v31 }
 0xf25   : > { %20096 = vmatpush3.bf16.xpose.msra.mxu1 %v20095_v47 }
 0xf26   : > { %20097 = vmatprep.subr.bf16.mxu1 %v21812_v31 }
 0xf2c   : > { %18616 = vmatmul.mubr.f32.vlgmr.msra.gmra.mrb[30].mxu1 %v10130_v19  ;;  %v10654_v19 = vsub.f32 %v10558_v53, %v10574_v52 }
 0xf2d   : > { %20099 = vmatpush3.bf16.xpose.msra.mxu1 %v20080_v46  ;;  %18626 = vmatprep.mubr.msk.f32.mxu1 %vm21813_vm0, %v26051_v26 }
 0xf2e   : > { %20100 = vmatprep.subr.bf16.mxu1 %v21812_v31 }
 0xf35   : > { %20102 = vmatpush3.bf16.xpose.msra.mxu1 %v20083_v24 }
 0xf36   : > { %20103 = vmatprep.subr.bf16.mxu1 %v21812_v31 }
 0xf3c   : > { %18627 = vmatmul.mubr.f32.vlgmr.msra.gmra.mrb[30].mxu1 %v10131_v4  ;;  %v10655_v4 = vand.u32 4294901760, %v10654_v19 }
 0xf3d   : > { %20105 = vmatpush3.bf16.xpose.msra.mxu1 %v20104_v0  ;;  %18637 = vmatprep.mubr.msk.f32.mxu1 %vm21813_vm0, %v26051_v26 }
 0xf3e   : > { %20106 = vmatprep.subr.bf16.mxu1 %v21812_v31  ;;  %v10656_v30 = vsub.f32 %v10654_v19, %v10655_v4 }
 0xf40   : > { %v10657_v36 = vand.u32 4294901760, %v10656_v30 }
 0xf45   : > { %20108 = vmatpush3.bf16.xpose.msra.mxu1 %v20107_v14 }
 0xf46   : > { %20109 = vmatprep.subr.bf16.mxu1 %v21812_v31 }
 0xf4c   : > { %18638 = vmatmul.mubr.f32.vlgmr.msra.gmra.mrb[30].mxu1 %v24924_v2 }
 0xf4d   : > { %20111 = vmatpush3.bf16.xpose.msra.mxu1 %v20080_v46  ;;  %18648 = vmatprep.mubr.msk.f32.mxu1 %vm21813_vm0, %v26051_v26 }
 0xf4e   : > { %20112 = vmatprep.subr.bf16.mxu1 %v21812_v31 }
 0xf55   : > { %20114 = vmatpush3.bf16.xpose.msra.mxu1 %v20083_v24 }
 0xf56   : > { %20187 = vmatprep.subr.bf16.mxu1 %v21812_v31 }
 0xf5c   : > { %18649 = vmatmul.mubr.f32.vlgmr.msra.gmra.mrb[30].mxu1 %v24924_v2 }
 0xf5d   : > { %18791 = vmatprep.mubr.msk.f32.mxu1 %vm21813_vm0, %v26051_v26 }
 0xfca   : > { %v24956_v29 = vpop.f32.mrb[28].mxu1 }
 0xfcb   : > { %v18584_v59 = vpop.f32.mrb[29].mxu1 }
0x102f   : > { %v10541_v37 = vpop.f32.mrb[30].mxu1 }
0x1030   : > { %v10545_v62 = vmul.f32 0.35355338, %v10541_v37  ;;  %v18650_v7 = vpop.f32.mrb[31].mxu1 }
0x1032   : > { %v10546_v3 = vsel %vm7498_vm3, %v10545_v62, -inf }
0x1033   : > { %10547 = vmax.xlane.f32.xlu1 %v10546_v3 }
0x1044   : > { %10559 = vrot.lane.b32.xlu1 %v24646_v32, %s21817_s18 }
0x1048   : > { %10563 = vrot.lane.b32.xlu1 %v24653_v35, %s21817_s18 }
0x104c   : > { %11060 = vrot.lane.b32.xlu1 %v24601_v22, %s21818_s30 }
0x1050   : > { %11064 = vrot.lane.b32.xlu1 %v24611_v60, %s21818_s30 }
0x1054   : > { %11058 = vrot.lane.b32.xlu1 %v24597_v15, %s21818_s30 }
0x1058   : > { %11577 = vrot.lane.b32.xlu1 %v24646_v32, %s21818_s30 }
0x10c0   : > { %v10548_v16 = vpop.xlane.xlu1 %10547 }
0x10c1   : > { %v10549_v55 = vsub.f32 %v10545_v62, %v10548_v16 }
0x10c3   : > { %v10550_v12 = vmul.f32 1.442695, %v10549_v55 }
0x10c4   : > { %v10560_v13 = vpop.permute.xlu1 %10559 }
0x10c5   : > { %21216 = vpow2.f32 %v10550_v12  ;;  %v10577_v11 = vand.u32 4294901760, %v10560_v13 }
0x10c7   : > { %v24971_v21 = vpack.c.bf16 %v10577_v11, %v10574_v52  ;;  %v24973_v61 = vsub.f32 %v10560_v13, %v10577_v11 }
0x10c8   : > { %v10564_v42 = vpop.permute.xlu1 %10563 }
0x10c9   : > { %20117 = vmatpush3.bf16.msra.mxu0 %v24971_v21  ;;  %v10571_v46 = vsel %vm4794_vm11, %v10564_v42, 0  ;;  %v10662_v49 = vand.u32 4294901760, %v24973_v61  ;;  %v20128_v0 = vpack.c.bf16 %v24973_v61, %v10654_v19 }
0x10ca   : > { %20118 = vmatprep.subr.bf16.mxu0 %v21812_v31  ;;  %v10583_v23 = vand.u32 4294901760, %v10571_v46 }
0x10cb   : > { %v10663_v40 = vsub.f32 %v24973_v61, %v10662_v49  ;;  %v20140_v59 = vpack.c.bf16 %v10662_v49, %v10655_v4 }
0x10cc   : > { %v10675_v41 = vsub.f32 %v10571_v46, %v10583_v23  ;;  %v11061_v37 = vpop.permute.xlu1 %11060 }
0x10cd   : > { %v10664_v17 = vand.u32 4294901760, %v10663_v40  ;;  %v11070_v53 = vsel %vm6996_vm1, %v11061_v37, 0 }
0x10ce   : > { %v10676_v43 = vand.u32 4294901760, %v10675_v41  ;;  %v11079_v52 = vand.u32 4294901760, %v11070_v53 }
0x10cf   : > { %v21217_v58 = vpop.eup %21216  ;;  %v20122_v10 = vpack.c.bf16 %v10664_v17, %v10657_v36 }
0x10d0   : > { %v10552_v18 = vsel %vm7498_vm3, %v21217_v58, 0.0  ;;  %v10677_v38 = vsub.f32 %v10675_v41, %v10676_v43  ;;  %v11065_v7 = vpop.permute.xlu1 %11064  ;;  %v11159_v42 = vsub.f32 %v11070_v53, %v11079_v52 }
0x10d1   : > { %10553 = vadd.xlane.f32.xlu0 %v10552_v18 }
0x10d2   : > { %v10678_v50 = vand.u32 4294901760, %v10677_v38 }
0x10d4   : > { %v11059_v16 = vpop.permute.xlu1 %11058 }
0x10d5   : > { %v11068_v12 = vsel %vm6996_vm1, %v11059_v16, 0 }
0x10e7   : > { %10561 = vrot.lane.b32.xlu0 %v24658_v44, %s21817_s18 }
0x10eb   : > { %11062 = vrot.lane.b32.xlu0 %v24599_v33, %s21818_s30 }
0x10ef   : > { %11066 = vrot.lane.b32.xlu0 %v24609_v9, %s21818_s30 }
0x115e   : > { %v10554_v2 = vpop.xlane.xlu0 %10553 }
0x115f   : > { %21218 = vrcp.f32 %v10554_v2  ;;  %v11074_v2 = vsel %vm6996_vm1, %v11065_v7, 0  ;;  %v11578_v7 = vpop.permute.xlu1 %11577 }
0x1162   : > { %v10562_v63 = vpop.permute.xlu0 %10561 }
0x1163   : > { %v10580_v28 = vand.u32 4294901760, %v10562_v63 }
0x1165   : > { %v24985_v54 = vpack.c.bf16 %v10583_v23, %v10580_v28  ;;  %v10668_v51 = vsub.f32 %v10562_v63, %v10580_v28  ;;  %v11160_v28 = vand.u32 4294901760, %v11159_v42 }
0x1166   : > { %v11063_v3 = vpop.permute.xlu0 %11062 }
0x1167   : > { %20120 = vmatpush3.bf16.msra.mxu0 %v24985_v54  ;;  %v10669_v6 = vand.u32 4294901760, %v10668_v51  ;;  %v20131_v14 = vpack.c.bf16 %v10675_v41, %v10668_v51  ;;  %v11072_v55 = vsel %vm6996_vm1, %v11063_v3, 0 }
0x1168   : > { %20121 = vmatprep.subr.bf16.mxu0 %v21812_v31  ;;  %v11082_v13 = vand.u32 4294901760, %v11072_v55 }
0x1169   : > { %v21219_v39 = vpop.eup %21218  ;;  %v10670_v27 = vsub.f32 %v10668_v51, %v10669_v6  ;;  %v20143_v62 = vpack.c.bf16 %v10676_v43, %v10669_v6  ;;  %v11161_v51 = vsub.f32 %v11159_v42, %v11160_v28 }
0x116a   : > { %v10556_v56 = vmul.f32 %v21219_v39, %v21217_v58  ;;  %v11067_v11 = vpop.permute.xlu0 %11066  ;;  %v20152_v61 = vpack.c.bf16 %v11082_v13, %v11079_v52  ;;  %v11166_v58 = vsub.f32 %v11072_v55, %v11082_v13  ;;  %v11595_v55 = vand.u32 4294901760, %v11578_v7 }
0x116b   : > { %v10671_v20 = vand.u32 4294901760, %v10670_v27  ;;  %v11076_v18 = vsel %vm6996_vm1, %v11067_v11, 0  ;;  %v11162_v40 = vand.u32 4294901760, %v11161_v51 }
0x116c   : > { %v10569_v24 = vsel %vm7498_vm3, %v10556_v56, 0  ;;  %v11167_v63 = vand.u32 4294901760, %v11166_v58  ;;  %v11088_v23 = vand.u32 4294901760, %v11076_v18  ;;  %v20164_v36 = vpack.c.bf16 %v11166_v58, %v11159_v42 }
0x116d   : > { %v10642_v57 = vand.u32 4294901760, %v10569_v24  ;;  %v20125_v47 = vpack.c.bf16 %v10678_v50, %v10671_v20 }
0x116e   : > { %v11168_v39 = vsub.f32 %v11166_v58, %v11167_v63  ;;  %v11180_v56 = vsub.f32 %v11076_v18, %v11088_v23 }
0x116f   : > { %v10643_v8 = vsub.f32 %v10569_v24, %v10642_v57 }
0x1170   : > { %v11169_v24 = vand.u32 4294901760, %v11168_v39 }
0x1171   : > { %v10644_v1 = vand.u32 4294901760, %v10643_v8 }
0x1172   : > { %v20158_v43 = vpack.c.bf16 %v11169_v24, %v11162_v40 }
0x1173   : > { %v10645_v48 = vsub.f32 %v10643_v8, %v10644_v1 }
0x1175   : > { %v10646_v45 = vand.u32 4294901760, %v10645_v48 }
0x1177   : > { %18660 = vmatmul.mubr.f32.vlgmr.msra.gmra.mrb[38].mxu0 %v10646_v45  ;;  %v20176_v45 = vpack.c.bf16 %v11167_v63, %v11160_v28  ;;  %v11679_v63 = vsub.f32 %v11578_v7, %v11595_v55 }
0x1178   : > { %20123 = vmatpush3.bf16.msra.mxu0 %v20122_v10  ;;  %18670 = vmatprep.mubr.msk.f32.mxu0 %vm21813_vm0, %v26051_v26 }
0x1179   : > { %20124 = vmatprep.subr.bf16.mxu0 %v21812_v31  ;;  %v11680_v39 = vand.u32 4294901760, %v11679_v63 }
0x117c   : > { %20126 = vmatpush3.bf16.msra.mxu0 %v20125_v47 }
0x117d   : > { %20127 = vmatprep.subr.bf16.mxu0 %v21812_v31 }
0x117f   : > { %18671 = vmatmul.mubr.f32.vlgmr.msra.gmra.mrb[38].mxu0 %v10642_v57 }
0x1180   : > { %20129 = vmatpush3.bf16.msra.mxu0 %v20128_v0  ;;  %18681 = vmatprep.mubr.msk.f32.mxu0 %vm21813_vm0, %v26051_v26 }
0x1181   : > { %20130 = vmatprep.subr.bf16.mxu0 %v21812_v31 }
0x1184   : > { %20132 = vmatpush3.bf16.msra.mxu0 %v20131_v14 }
0x1185   : > { %20133 = vmatprep.subr.bf16.mxu0 %v21812_v31 }
0x1187   : > { %18682 = vmatmul.mubr.f32.vlgmr.msra.gmra.mrb[38].mxu0 %v10643_v8 }
0x1188   : > { %20135 = vmatpush3.bf16.msra.mxu0 %v24971_v21  ;;  %18692 = vmatprep.mubr.msk.f32.mxu0 %vm21813_vm0, %v26051_v26 }
0x1189   : > { %20136 = vmatprep.subr.bf16.mxu0 %v21812_v31 }
0x118c   : > { %20138 = vmatpush3.bf16.msra.mxu0 %v24985_v54 }
0x118d   : > { %20139 = vmatprep.subr.bf16.mxu0 %v21812_v31 }
0x118f   : > { %18693 = vmatmul.mubr.f32.vlgmr.msra.gmra.mrb[38].mxu0 %v10644_v1 }
0x1190   : > { %20141 = vmatpush3.bf16.msra.mxu0 %v20140_v59  ;;  %18703 = vmatprep.mubr.msk.f32.mxu0 %vm21813_vm0, %v26051_v26 }
0x1191   : > { %20142 = vmatprep.subr.bf16.mxu0 %v21812_v31 }
0x1194   : > { %20144 = vmatpush3.bf16.msra.mxu0 %v20143_v62 }
0x1195   : > { %20145 = vmatprep.subr.bf16.mxu0 %v21812_v31 }
0x1197   : > { %18704 = vmatmul.mubr.f32.vlgmr.msra.gmra.mrb[38].mxu0 %v10642_v57 }
0x1198   : > { %20147 = vmatpush3.bf16.msra.mxu0 %v24971_v21  ;;  %18714 = vmatprep.mubr.msk.f32.mxu0 %vm21813_vm0, %v26051_v26  ;;  %v25022_v21 = vand.u32 4294901760, %v11068_v12 }
0x1199   : > { %20148 = vmatprep.subr.bf16.mxu0 %v21812_v31 }
0x119a   : > { %v11148_v46 = vsub.f32 %v11068_v12, %v25022_v21 }
0x119c   : > { %20150 = vmatpush3.bf16.msra.mxu0 %v24985_v54  ;;  %v11085_v54 = vand.u32 4294901760, %v11074_v2  ;;  %v11149_v19 = vand.u32 4294901760, %v11148_v46 }
0x119d   : > { %20151 = vmatprep.subr.bf16.mxu0 %v21812_v31 }
0x119e   : > { %v20155_v49 = vpack.c.bf16 %v11088_v23, %v11085_v54  ;;  %v11173_v4 = vsub.f32 %v11074_v2, %v11085_v54  ;;  %v11150_v41 = vsub.f32 %v11148_v46, %v11149_v19 }
0x119f   : > { %18715 = vmatmul.mubr.f32.vlgmr.msra.gmra.mrb[38].mxu0 %v10642_v57  ;;  %v11181_v57 = vand.u32 4294901760, %v11180_v56 }
0x11a0   : > { %18725 = vmatprep.mubr.msk.f32.mxu0 %vm21813_vm0, %v26051_v26  ;;  %v11174_v6 = vand.u32 4294901760, %v11173_v4  ;;  %v11151_v8 = vand.u32 4294901760, %v11150_v41  ;;  %v20167_v38 = vpack.c.bf16 %v11180_v56, %v11173_v4 }
0x11a1   : > { %v11182_v30 = vsub.f32 %v11180_v56, %v11181_v57 }
0x11a2   : > { %v11175_v1 = vsub.f32 %v11173_v4, %v11174_v6  ;;  %v20179_v20 = vpack.c.bf16 %v11181_v57, %v11174_v6  ;;  %v11681_v57 = vsub.f32 %v11679_v63, %v11680_v39 }
0x11a3   : > { %v11183_v17 = vand.u32 4294901760, %v11182_v30 }
0x11a4   : > { %v11176_v27 = vand.u32 4294901760, %v11175_v1  ;;  %v11682_v1 = vand.u32 4294901760, %v11681_v57 }
0x11a5   : > { %20153 = vmatpush3.bf16.xpose.msra.mxu0 %v20152_v61 }
0x11a6   : > { %20154 = vmatprep.subr.bf16.mxu0 %v21812_v31  ;;  %v20161_v48 = vpack.c.bf16 %v11183_v17, %v11176_v27 }
0x11ad   : > { %20156 = vmatpush3.bf16.xpose.msra.mxu0 %v20155_v49 }
0x11ae   : > { %20157 = vmatprep.subr.bf16.mxu0 %v21812_v31 }
0x11b4   : > { %18726 = vmatmul.mubr.f32.vlgmr.msra.gmra.mrb[40].mxu0 %v11151_v8 }
0x11b5   : > { %20159 = vmatpush3.bf16.xpose.msra.mxu0 %v20158_v43  ;;  %18736 = vmatprep.mubr.msk.f32.mxu0 %vm21813_vm0, %v26051_v26 }
0x11b6   : > { %20160 = vmatprep.subr.bf16.mxu0 %v21812_v31 }
0x11bd   : > { %20162 = vmatpush3.bf16.xpose.msra.mxu0 %v20161_v48 }
0x11be   : > { %20163 = vmatprep.subr.bf16.mxu0 %v21812_v31 }
0x11c4   : > { %18737 = vmatmul.mubr.f32.vlgmr.msra.gmra.mrb[40].mxu0 %v25022_v21 }
0x11c5   : > { %20165 = vmatpush3.bf16.xpose.msra.mxu0 %v20164_v36  ;;  %18747 = vmatprep.mubr.msk.f32.mxu0 %vm21813_vm0, %v26051_v26 }
0x11c6   : > { %20166 = vmatprep.subr.bf16.mxu0 %v21812_v31 }
0x11cd   : > { %20168 = vmatpush3.bf16.xpose.msra.mxu0 %v20167_v38 }
0x11ce   : > { %20169 = vmatprep.subr.bf16.mxu0 %v21812_v31 }
0x11d4   : > { %18748 = vmatmul.mubr.f32.vlgmr.msra.gmra.mrb[40].mxu0 %v11148_v46 }
0x11d5   : > { %20171 = vmatpush3.bf16.xpose.msra.mxu0 %v20152_v61  ;;  %18758 = vmatprep.mubr.msk.f32.mxu0 %vm21813_vm0, %v26051_v26 }
0x11d6   : > { %20172 = vmatprep.subr.bf16.mxu0 %v21812_v31 }
0x11dd   : > { %20174 = vmatpush3.bf16.xpose.msra.mxu0 %v20155_v49 }
0x11de   : > { %20175 = vmatprep.subr.bf16.mxu0 %v21812_v31 }
0x11e4   : > { %18759 = vmatmul.mubr.f32.vlgmr.msra.gmra.mrb[40].mxu0 %v11149_v19 }
0x11e5   : > { %20177 = vmatpush3.bf16.xpose.msra.mxu0 %v20176_v45  ;;  %18769 = vmatprep.mubr.msk.f32.mxu0 %vm21813_vm0, %v26051_v26 }
0x11e6   : > { %20178 = vmatprep.subr.bf16.mxu0 %v21812_v31 }
0x11ed   : > { %20180 = vmatpush3.bf16.xpose.msra.mxu0 %v20179_v20 }
0x11ee   : > { %20181 = vmatprep.subr.bf16.mxu0 %v21812_v31 }
0x11f4   : > { %18770 = vmatmul.mubr.f32.vlgmr.msra.gmra.mrb[40].mxu0 %v25022_v21 }
0x11f5   : > { %20183 = vmatpush3.bf16.xpose.msra.mxu0 %v20152_v61  ;;  %18780 = vmatprep.mubr.msk.f32.mxu0 %vm21813_vm0, %v26051_v26 }
0x11f6   : > { %20184 = vmatprep.subr.bf16.mxu0 %v21812_v31 }
0x11fd   : > { %20186 = vmatpush3.bf16.xpose.msra.mxu0 %v20155_v49 }
0x11fe   : > { %20259 = vmatprep.subr.bf16.mxu0 %v21812_v31 }
0x1204   : > { %18781 = vmatmul.mubr.f32.vlgmr.msra.gmra.mrb[40].mxu0 %v25022_v21 }
0x1205   : > { %18923 = vmatprep.mubr.msk.f32.mxu0 %vm21813_vm0, %v26051_v26 }
0x1272   : > { %v25054_v10 = vpop.f32.mrb[38].mxu0 }
0x1273   : > { %v18716_v50 = vpop.f32.mrb[39].mxu0 }
0x12d7   : > { %v11559_v47 = vpop.f32.mrb[40].mxu0 }
0x12d8   : > { %v11563_v0 = vmul.f32 0.35355338, %v11559_v47  ;;  %v18782_v14 = vpop.f32.mrb[41].mxu0 }
0x12da   : > { %v11564_v59 = vsel %vm7498_vm3, %v11563_v0, -inf }
0x12db   : > { %11565 = vmax.xlane.f32.xlu0 %v11564_v59 }
0x12f1   : > { %11575 = vrot.lane.b32.xlu0 %v24648_v25, %s21818_s30 }
0x12f5   : > { %11581 = vrot.lane.b32.xlu0 %v24653_v35, %s21818_s30 }
0x12f9   : > { %12078 = vrot.lane.b32.xlu0 %v24601_v22, %s21819_s2 }
0x12fd   : > { %12082 = vrot.lane.b32.xlu0 %v24611_v60, %s21819_s2 }
0x1301   : > { %12076 = vrot.lane.b32.xlu0 %v24597_v15, %s21819_s2 }
0x1305   : > { %12593 = vrot.lane.b32.xlu0 %v24648_v25, %s21819_s2 }
0x1368   : > { %v11566_v37 = vpop.xlane.xlu0 %11565 }
0x1369   : > { %v11567_v62 = vsub.f32 %v11563_v0, %v11566_v37 }
0x136b   : > { %v11568_v3 = vmul.f32 1.442695, %v11567_v62 }
0x136c   : > { %v11576_v16 = vpop.permute.xlu0 %11575 }
0x136d   : > { %21220 = vpow2.f32 %v11568_v3  ;;  %v11592_v53 = vand.u32 4294901760, %v11576_v16 }
0x136f   : > { %v25069_v12 = vpack.c.bf16 %v11595_v55, %v11592_v53  ;;  %v25071_v13 = vsub.f32 %v11576_v16, %v11592_v53 }
0x1370   : > { %v11582_v21 = vpop.permute.xlu0 %11581 }
0x1371   : > { %20189 = vmatpush3.bf16.msra.mxu1 %v25069_v12  ;;  %v11589_v58 = vsel %vm4794_vm11, %v11582_v21, 0  ;;  %v11673_v28 = vand.u32 4294901760, %v25071_v13  ;;  %v20200_v20 = vpack.c.bf16 %v11679_v63, %v25071_v13 }
0x1372   : > { %20190 = vmatprep.subr.bf16.mxu1 %v21812_v31  ;;  %v11601_v42 = vand.u32 4294901760, %v11589_v58 }
0x1373   : > { %v11674_v4 = vsub.f32 %v25071_v13, %v11673_v28  ;;  %v20212_v47 = vpack.c.bf16 %v11680_v39, %v11673_v28 }
0x1374   : > { %v11693_v49 = vsub.f32 %v11589_v58, %v11601_v42  ;;  %v12079_v0 = vpop.permute.xlu0 %12078 }
0x1375   : > { %v11675_v8 = vand.u32 4294901760, %v11674_v4  ;;  %v12088_v3 = vsel %vm6996_vm1, %v12079_v0, 0 }
0x1376   : > { %v11694_v40 = vand.u32 4294901760, %v11693_v49  ;;  %v12097_v53 = vand.u32 4294901760, %v12088_v3 }
0x1377   : > { %v21221_v52 = vpop.eup %21220  ;;  %v20194_v36 = vpack.c.bf16 %v11682_v1, %v11675_v8 }
0x1378   : > { %v11570_v11 = vsel %vm7498_vm3, %v21221_v52, 0.0  ;;  %v11695_v17 = vsub.f32 %v11693_v49, %v11694_v40  ;;  %v12083_v59 = vpop.permute.xlu0 %12082 }
0x1379   : > { %11571 = vadd.xlane.f32.xlu1 %v11570_v11  ;;  %v12092_v58 = vsel %vm6996_vm1, %v12083_v59, 0 }
0x137a   : > { %v11696_v38 = vand.u32 4294901760, %v11695_v17  ;;  %v12103_v63 = vand.u32 4294901760, %v12092_v58 }
0x137c   : > { %v12077_v62 = vpop.permute.xlu0 %12076 }
0x137d   : > { %v12086_v16 = vsel %vm6996_vm1, %v12077_v62, 0 }
0x137e   : > { %v25120_v13 = vand.u32 4294901760, %v12086_v16 }
0x138a   : > { %11579 = vrot.lane.b32.xlu1 %v24658_v44, %s21818_s30  ;;  %s26085_s30 = sld [smem:[#allocation117_spill]] }
0x138e   : > { %12080 = vrot.lane.b32.xlu1 %v24599_v33, %s21819_s2 }
0x1392   : > { %12084 = vrot.lane.b32.xlu1 %v24609_v9, %s21819_s2 }
0x1406   : > { %v11572_v61 = vpop.xlane.xlu1 %11571 }
0x1407   : > { %21222 = vrcp.f32 %v11572_v61  ;;  %v12177_v61 = vsub.f32 %v12088_v3, %v12097_v53 }
0x140a   : > { %v11580_v18 = vpop.permute.xlu1 %11579 }
0x140b   : > { %v11598_v2 = vand.u32 4294901760, %v11580_v18 }
0x140d   : > { %v25083_v46 = vpack.c.bf16 %v11601_v42, %v11598_v2  ;;  %v11686_v19 = vsub.f32 %v11580_v18, %v11598_v2  ;;  %v12166_v18 = vsub.f32 %v12086_v16, %v25120_v13 }
0x140e   : > { %v12081_v37 = vpop.permute.xlu1 %12080 }
0x140f   : > { %20192 = vmatpush3.bf16.msra.mxu1 %v25083_v46  ;;  %v11687_v41 = vand.u32 4294901760, %v11686_v19  ;;  %v20203_v50 = vpack.c.bf16 %v11693_v49, %v11686_v19  ;;  %v12090_v7 = vsel %vm6996_vm1, %v12081_v37, 0  ;;  %v12191_v49 = vsub.f32 %v12092_v58, %v12103_v63  ;;  %v12594_v37 = vpop.permute.xlu0 %12593 }
0x1410   : > { %20193 = vmatprep.subr.bf16.mxu1 %v21812_v31  ;;  %v12100_v55 = vand.u32 4294901760, %v12090_v7  ;;  %v12610_v3 = vand.u32 4294901760, %v12594_v37 }
0x1411   : > { %v21223_v23 = vpop.eup %21222  ;;  %v11688_v30 = vsub.f32 %v11686_v19, %v11687_v41  ;;  %v20215_v14 = vpack.c.bf16 %v11694_v40, %v11687_v41 }
0x1412   : > { %v11574_v54 = vmul.f32 %v21223_v23, %v21221_v52  ;;  %v20224_v52 = vpack.c.bf16 %v12100_v55, %v12097_v53  ;;  %v12184_v11 = vsub.f32 %v12090_v7, %v12100_v55  ;;  %v12167_v23 = vand.u32 4294901760, %v12166_v18 }
0x1413   : > { %v11689_v48 = vand.u32 4294901760, %v11688_v30 }
0x1414   : > { %v11587_v56 = vsel %vm7498_vm3, %v11574_v54, 0  ;;  %v12185_v42 = vand.u32 4294901760, %v12184_v11  ;;  %v20236_v17 = vpack.c.bf16 %v12184_v11, %v12177_v61 }
0x1415   : > { %v11660_v51 = vand.u32 4294901760, %v11587_v56  ;;  %v20197_v45 = vpack.c.bf16 %v11696_v38, %v11689_v48 }
0x1416   : > { %v12186_v28 = vsub.f32 %v12184_v11, %v12185_v42 }
0x1417   : > { %v11661_v24 = vsub.f32 %v11587_v56, %v11660_v51  ;;  %v12168_v56 = vsub.f32 %v12166_v18, %v12167_v23 }
0x1419   : > { %v11662_v6 = vand.u32 4294901760, %v11661_v24  ;;  %v12169_v57 = vand.u32 4294901760, %v12168_v56 }
0x141b   : > { %v11663_v43 = vsub.f32 %v11661_v24, %v11662_v6 }
0x141d   : > { %v11664_v27 = vand.u32 4294901760, %v11663_v43 }
0x141f   : > { %18792 = vmatmul.mubr.f32.vlgmr.msra.gmra.mrb[32].mxu1 %v11664_v27 }
0x1420   : > { %20195 = vmatpush3.bf16.msra.mxu1 %v20194_v36  ;;  %18802 = vmatprep.mubr.msk.f32.mxu1 %vm21813_vm0, %v26051_v26 }
0x1421   : > { %20196 = vmatprep.subr.bf16.mxu1 %v21812_v31 }
0x1424   : > { %20198 = vmatpush3.bf16.msra.mxu1 %v20197_v45 }
0x1425   : > { %20199 = vmatprep.subr.bf16.mxu1 %v21812_v31 }
0x1427   : > { %18803 = vmatmul.mubr.f32.vlgmr.msra.gmra.mrb[32].mxu1 %v11660_v51 }
0x1428   : > { %20201 = vmatpush3.bf16.msra.mxu1 %v20200_v20  ;;  %18813 = vmatprep.mubr.msk.f32.mxu1 %vm21813_vm0, %v26051_v26 }
0x1429   : > { %20202 = vmatprep.subr.bf16.mxu1 %v21812_v31 }
0x142c   : > { %20204 = vmatpush3.bf16.msra.mxu1 %v20203_v50 }
0x142d   : > { %20205 = vmatprep.subr.bf16.mxu1 %v21812_v31 }
0x142f   : > { %18814 = vmatmul.mubr.f32.vlgmr.msra.gmra.mrb[32].mxu1 %v11661_v24  ;;  %v12192_v24 = vand.u32 4294901760, %v12191_v49 }
0x1430   : > { %20207 = vmatpush3.bf16.msra.mxu1 %v25069_v12  ;;  %18824 = vmatprep.mubr.msk.f32.mxu1 %vm21813_vm0, %v26051_v26 }
0x1431   : > { %20208 = vmatprep.subr.bf16.mxu1 %v21812_v31  ;;  %v12193_v8 = vsub.f32 %v12191_v49, %v12192_v24 }
0x1433   : > { %v12194_v43 = vand.u32 4294901760, %v12193_v8 }
0x1434   : > { %20210 = vmatpush3.bf16.msra.mxu1 %v25083_v46 }
0x1435   : > { %20211 = vmatprep.subr.bf16.mxu1 %v21812_v31 }
0x1437   : > { %18825 = vmatmul.mubr.f32.vlgmr.msra.gmra.mrb[32].mxu1 %v11662_v6 }
0x1438   : > { %20213 = vmatpush3.bf16.msra.mxu1 %v20212_v47  ;;  %18835 = vmatprep.mubr.msk.f32.mxu1 %vm21813_vm0, %v26051_v26 }
0x1439   : > { %20214 = vmatprep.subr.bf16.mxu1 %v21812_v31 }
0x143c   : > { %20216 = vmatpush3.bf16.msra.mxu1 %v20215_v14 }
0x143d   : > { %20217 = vmatprep.subr.bf16.mxu1 %v21812_v31 }
0x143f   : > { %18836 = vmatmul.mubr.f32.vlgmr.msra.gmra.mrb[32].mxu1 %v11660_v51 }
0x1440   : > { %20219 = vmatpush3.bf16.msra.mxu1 %v25069_v12  ;;  %18846 = vmatprep.mubr.msk.f32.mxu1 %vm21813_vm0, %v26051_v26  ;;  %v12085_v12 = vpop.permute.xlu1 %12084 }
0x1441   : > { %20220 = vmatprep.subr.bf16.mxu1 %v21812_v31  ;;  %v12094_v21 = vsel %vm6996_vm1, %v12085_v12, 0 }
0x1442   : > { %v12106_v2 = vand.u32 4294901760, %v12094_v21 }
0x1444   : > { %20222 = vmatpush3.bf16.msra.mxu1 %v25083_v46  ;;  %v12178_v46 = vand.u32 4294901760, %v12177_v61  ;;  %v20227_v54 = vpack.c.bf16 %v12106_v2, %v12103_v63  ;;  %v12198_v19 = vsub.f32 %v12094_v21, %v12106_v2  ;;  %v12690_v2 = vsub.f32 %v12594_v37, %v12610_v3 }
0x1445   : > { %20223 = vmatprep.subr.bf16.mxu1 %v21812_v31 }
0x1446   : > { %v12179_v39 = vsub.f32 %v12177_v61, %v12178_v46  ;;  %v12199_v4 = vand.u32 4294901760, %v12198_v19  ;;  %v20239_v27 = vpack.c.bf16 %v12198_v19, %v12191_v49  ;;  %v20248_v48 = vpack.c.bf16 %v12185_v42, %v12178_v46 }
0x1447   : > { %18847 = vmatmul.mubr.f32.vlgmr.msra.gmra.mrb[32].mxu1 %v11660_v51  ;;  %v12187_v51 = vand.u32 4294901760, %v12186_v28 }
0x1448   : > { %18857 = vmatprep.mubr.msk.f32.mxu1 %vm21813_vm0, %v26051_v26  ;;  %v12180_v41 = vand.u32 4294901760, %v12179_v39  ;;  %v12200_v40 = vsub.f32 %v12198_v19, %v12199_v4  ;;  %v20251_v36 = vpack.c.bf16 %v12199_v4, %v12192_v24 }
0x144a   : > { %v20230_v6 = vpack.c.bf16 %v12187_v51, %v12180_v41  ;;  %v12201_v30 = vand.u32 4294901760, %v12200_v40 }
0x144c   : > { %v20233_v1 = vpack.c.bf16 %v12201_v30, %v12194_v43 }
0x144d   : > { %20225 = vmatpush3.bf16.xpose.msra.mxu1 %v20224_v52 }
0x144e   : > { %20226 = vmatprep.subr.bf16.mxu1 %v21812_v31 }
0x1455   : > { %20228 = vmatpush3.bf16.xpose.msra.mxu1 %v20227_v54 }
0x1456   : > { %20229 = vmatprep.subr.bf16.mxu1 %v21812_v31 }
0x145c   : > { %18858 = vmatmul.mubr.f32.vlgmr.msra.gmra.mrb[34].mxu1 %v12169_v57 }
0x145d   : > { %20231 = vmatpush3.bf16.xpose.msra.mxu1 %v20230_v6  ;;  %18868 = vmatprep.mubr.msk.f32.mxu1 %vm21813_vm0, %v26051_v26 }
0x145e   : > { %20232 = vmatprep.subr.bf16.mxu1 %v21812_v31 }
0x1465   : > { %20234 = vmatpush3.bf16.xpose.msra.mxu1 %v20233_v1 }
0x1466   : > { %20235 = vmatprep.subr.bf16.mxu1 %v21812_v31 }
0x146c   : > { %18869 = vmatmul.mubr.f32.vlgmr.msra.gmra.mrb[34].mxu1 %v25120_v13 }
0x146d   : > { %20237 = vmatpush3.bf16.xpose.msra.mxu1 %v20236_v17  ;;  %18879 = vmatprep.mubr.msk.f32.mxu1 %vm21813_vm0, %v26051_v26 }
0x146e   : > { %20238 = vmatprep.subr.bf16.mxu1 %v21812_v31 }
0x1475   : > { %20240 = vmatpush3.bf16.xpose.msra.mxu1 %v20239_v27 }
0x1476   : > { %20241 = vmatprep.subr.bf16.mxu1 %v21812_v31 }
0x147c   : > { %18880 = vmatmul.mubr.f32.vlgmr.msra.gmra.mrb[34].mxu1 %v12166_v18 }
0x147d   : > { %20243 = vmatpush3.bf16.xpose.msra.mxu1 %v20224_v52  ;;  %18890 = vmatprep.mubr.msk.f32.mxu1 %vm21813_vm0, %v26051_v26 }
0x147e   : > { %20244 = vmatprep.subr.bf16.mxu1 %v21812_v31 }
0x1485   : > { %20246 = vmatpush3.bf16.xpose.msra.mxu1 %v20227_v54 }
0x1486   : > { %20247 = vmatprep.subr.bf16.mxu1 %v21812_v31 }
0x148c   : > { %18891 = vmatmul.mubr.f32.vlgmr.msra.gmra.mrb[34].mxu1 %v12167_v23 }
0x148d   : > { %20249 = vmatpush3.bf16.xpose.msra.mxu1 %v20248_v48  ;;  %18901 = vmatprep.mubr.msk.f32.mxu1 %vm21813_vm0, %v26051_v26 }
0x148e   : > { %20250 = vmatprep.subr.bf16.mxu1 %v21812_v31 }
0x1495   : > { %20252 = vmatpush3.bf16.xpose.msra.mxu1 %v20251_v36 }
0x1496   : > { %20253 = vmatprep.subr.bf16.mxu1 %v21812_v31 }
0x149c   : > { %18902 = vmatmul.mubr.f32.vlgmr.msra.gmra.mrb[34].mxu1 %v25120_v13 }
0x149d   : > { %20255 = vmatpush3.bf16.xpose.msra.mxu1 %v20224_v52  ;;  %18912 = vmatprep.mubr.msk.f32.mxu1 %vm21813_vm0, %v26051_v26 }
0x149e   : > { %20256 = vmatprep.subr.bf16.mxu1 %v21812_v31 }
0x14a5   : > { %20258 = vmatpush3.bf16.xpose.msra.mxu1 %v20227_v54  ;;  %v12691_v54 = vand.u32 4294901760, %v12690_v2 }
0x14a6   : > { %20331 = vmatprep.subr.bf16.mxu1 %v21812_v31 }
0x14a7   : > { %v12692_v41 = vsub.f32 %v12690_v2, %v12691_v54 }
0x14a9   : > { %v12693_v30 = vand.u32 4294901760, %v12692_v41 }
0x14ac   : > { %18913 = vmatmul.mubr.f32.vlgmr.msra.gmra.mrb[34].mxu1 %v25120_v13 }
0x14ad   : > { %19055 = vmatprep.mubr.msk.f32.mxu1 %vm21813_vm0, %v26051_v26 }
0x151a   : > { %v25152_v38 = vpop.f32.mrb[32].mxu1 }
0x151b   : > { %v18848_v45 = vpop.f32.mrb[33].mxu1 }
0x157f   : > { %v12577_v20 = vpop.f32.mrb[34].mxu1 }
0x1580   : > { %v12581_v50 = vmul.f32 0.35355338, %v12577_v20  ;;  %v18914_v47 = vpop.f32.mrb[35].mxu1 }
0x1582   : > { %v12582_v0 = vsel %vm7498_vm3, %v12581_v50, -inf }
0x1583   : > { %12583 = vmax.xlane.f32.xlu1 %v12582_v0 }
0x1594   : > { %12595 = vrot.lane.b32.xlu1 %v24646_v32, %s21819_s2 }
0x1598   : > { %12599 = vrot.lane.b32.xlu1 %v24653_v35, %s21819_s2 }
0x159c   : > { %13096 = vrot.lane.b32.xlu1 %v24601_v22, %s21820_s27 }
0x15a0   : > { %13100 = vrot.lane.b32.xlu1 %v24611_v60, %s21820_s27 }
0x15a4   : > { %13094 = vrot.lane.b32.xlu1 %v24597_v15, %s21820_s27 }
0x15a8   : > { %13613 = vrot.lane.b32.xlu1 %v24646_v32, %s21820_s27 }
0x1610   : > { %v12584_v14 = vpop.xlane.xlu1 %12583 }
0x1611   : > { %v12585_v59 = vsub.f32 %v12581_v50, %v12584_v14 }
0x1613   : > { %v12586_v62 = vmul.f32 1.442695, %v12585_v59 }
0x1614   : > { %v12596_v7 = vpop.permute.xlu1 %12595 }
0x1615   : > { %21224 = vpow2.f32 %v12586_v62  ;;  %v12613_v16 = vand.u32 4294901760, %v12596_v7 }
0x1617   : > { %v25167_v55 = vpack.c.bf16 %v12613_v16, %v12610_v3  ;;  %v25169_v53 = vsub.f32 %v12596_v7, %v12613_v16 }
0x1618   : > { %v12600_v52 = vpop.permute.xlu1 %12599 }
0x1619   : > { %20261 = vmatpush3.bf16.msra.mxu0 %v25167_v55  ;;  %v12607_v21 = vsel %vm4794_vm11, %v12600_v52, 0  ;;  %v12698_v63 = vand.u32 4294901760, %v25169_v53  ;;  %v20272_v45 = vpack.c.bf16 %v25169_v53, %v12690_v2 }
0x161a   : > { %20262 = vmatprep.subr.bf16.mxu0 %v21812_v31  ;;  %v12619_v58 = vand.u32 4294901760, %v12607_v21 }
0x161b   : > { %v12699_v56 = vsub.f32 %v25169_v53, %v12698_v63  ;;  %v20284_v50 = vpack.c.bf16 %v12698_v63, %v12691_v54 }
0x161c   : > { %v12711_v19 = vsub.f32 %v12607_v21, %v12619_v58  ;;  %v13097_v47 = vpop.permute.xlu1 %13096 }
0x161d   : > { %v12700_v40 = vand.u32 4294901760, %v12699_v56  ;;  %v13106_v7 = vsel %vm6996_vm1, %v13097_v47, 0 }
0x161e   : > { %v12712_v24 = vand.u32 4294901760, %v12711_v19 }
0x161f   : > { %v21225_v12 = vpop.eup %21224  ;;  %v20266_v27 = vpack.c.bf16 %v12700_v40, %v12693_v30 }
0x1620   : > { %v12588_v13 = vsel %vm7498_vm3, %v21225_v12, 0.0  ;;  %v12713_v43 = vsub.f32 %v12711_v19, %v12712_v24  ;;  %v13101_v14 = vpop.permute.xlu1 %13100 }
0x1621   : > { %12589 = vadd.xlane.f32.xlu0 %v12588_v13 }
0x1622   : > { %v12714_v48 = vand.u32 4294901760, %v12713_v43 }
0x1624   : > { %v13095_v37 = vpop.permute.xlu1 %13094 }
0x1625   : > { %v13104_v3 = vsel %vm6996_vm1, %v13095_v37, 0 }
0x1628   : > { %v13614_v37 = vpop.permute.xlu1 %13613 }
0x1637   : > { %12597 = vrot.lane.b32.xlu0 %v24658_v44, %s21819_s2  ;;  %s16047_s2 = sshll.u32 %s21976_s29, 7 }
0x163b   : > { %13098 = vrot.lane.b32.xlu0 %v24599_v33, %s21820_s27 }
0x163f   : > { %13102 = vrot.lane.b32.xlu0 %v24609_v9, %s21820_s27 }
0x16ae   : > { %v12590_v11 = vpop.xlane.xlu0 %12589 }
0x16af   : > { %21226 = vrcp.f32 %v12590_v11 }
0x16b2   : > { %v12598_v61 = vpop.permute.xlu0 %12597 }
0x16b3   : > { %v12616_v18 = vand.u32 4294901760, %v12598_v61 }
0x16b5   : > { %v25181_v42 = vpack.c.bf16 %v12619_v58, %v12616_v18  ;;  %v12704_v28 = vsub.f32 %v12598_v61, %v12616_v18  ;;  %v13110_v61 = vsel %vm6996_vm1, %v13101_v14, 0 }
0x16b6   : > { %v13099_v59 = vpop.permute.xlu0 %13098 }
0x16b7   : > { %20264 = vmatpush3.bf16.msra.mxu0 %v25181_v42  ;;  %v12705_v51 = vand.u32 4294901760, %v12704_v28  ;;  %v20275_v20 = vpack.c.bf16 %v12711_v19, %v12704_v28  ;;  %v13108_v62 = vsel %vm6996_vm1, %v13099_v59, 0 }
0x16b8   : > { %20265 = vmatprep.subr.bf16.mxu0 %v21812_v31  ;;  %v13118_v16 = vand.u32 4294901760, %v13108_v62 }
0x16b9   : > { %v21227_v46 = vpop.eup %21226  ;;  %v12706_v6 = vsub.f32 %v12704_v28, %v12705_v51  ;;  %v20287_v0 = vpack.c.bf16 %v12712_v24, %v12705_v51 }
0x16ba   : > { %v12592_v23 = vmul.f32 %v21227_v46, %v21225_v12  ;;  %v13103_v53 = vpop.permute.xlu0 %13102  ;;  %v25218_v12 = vand.u32 4294901760, %v13104_v3  ;;  %v13202_v52 = vsub.f32 %v13108_v62, %v13118_v16  ;;  %v13121_v46 = vand.u32 4294901760, %v13110_v61 }
0x16bb   : > { %v12707_v17 = vand.u32 4294901760, %v12706_v6  ;;  %v13112_v11 = vsel %vm6996_vm1, %v13103_v53, 0 }
0x16bc   : > { %v12605_v39 = vsel %vm7498_vm3, %v12592_v23, 0  ;;  %v13184_v58 = vsub.f32 %v13104_v3, %v25218_v12  ;;  %v13203_v18 = vand.u32 4294901760, %v13202_v52  ;;  %v13631_v3 = vand.u32 4294901760, %v13614_v37 }
0x16bd   : > { %v12678_v49 = vand.u32 4294901760, %v12605_v39  ;;  %v20269_v36 = vpack.c.bf16 %v12714_v48, %v12707_v17 }
0x16be   : > { %v13185_v63 = vand.u32 4294901760, %v13184_v58  ;;  %v13204_v23 = vsub.f32 %v13202_v52, %v13203_v18 }
0x16bf   : > { %v12679_v4 = vsub.f32 %v12605_v39, %v12678_v49  ;;  %v13209_v39 = vsub.f32 %v13110_v61, %v13121_v46  ;;  %v13715_v61 = vsub.f32 %v13614_v37, %v13631_v3 }
0x16c0   : > { %v13205_v56 = vand.u32 4294901760, %v13204_v23 }
0x16c1   : > { %v12680_v57 = vand.u32 4294901760, %v12679_v4  ;;  %v13210_v41 = vand.u32 4294901760, %v13209_v39 }
0x16c3   : > { %v12681_v8 = vsub.f32 %v12679_v4, %v12680_v57  ;;  %v13211_v6 = vsub.f32 %v13209_v39, %v13210_v41 }
0x16c5   : > { %v12682_v1 = vand.u32 4294901760, %v12681_v8  ;;  %v13212_v30 = vand.u32 4294901760, %v13211_v6 }
0x16c7   : > { %18924 = vmatmul.mubr.f32.vlgmr.msra.gmra.mrb[42].mxu0 %v12682_v1 }
0x16c8   : > { %20267 = vmatpush3.bf16.msra.mxu0 %v20266_v27  ;;  %18934 = vmatprep.mubr.msk.f32.mxu0 %vm21813_vm0, %v26051_v26 }
0x16c9   : > { %20268 = vmatprep.subr.bf16.mxu0 %v21812_v31 }
0x16cc   : > { %20270 = vmatpush3.bf16.msra.mxu0 %v20269_v36 }
0x16cd   : > { %20271 = vmatprep.subr.bf16.mxu0 %v21812_v31 }
0x16cf   : > { %18935 = vmatmul.mubr.f32.vlgmr.msra.gmra.mrb[42].mxu0 %v12678_v49 }
0x16d0   : > { %20273 = vmatpush3.bf16.msra.mxu0 %v20272_v45  ;;  %18945 = vmatprep.mubr.msk.f32.mxu0 %vm21813_vm0, %v26051_v26 }
0x16d1   : > { %20274 = vmatprep.subr.bf16.mxu0 %v21812_v31 }
0x16d4   : > { %20276 = vmatpush3.bf16.msra.mxu0 %v20275_v20 }
0x16d5   : > { %20277 = vmatprep.subr.bf16.mxu0 %v21812_v31 }
0x16d7   : > { %18946 = vmatmul.mubr.f32.vlgmr.msra.gmra.mrb[42].mxu0 %v12679_v4 }
0x16d8   : > { %20279 = vmatpush3.bf16.msra.mxu0 %v25167_v55  ;;  %18956 = vmatprep.mubr.msk.f32.mxu0 %vm21813_vm0, %v26051_v26 }
0x16d9   : > { %20280 = vmatprep.subr.bf16.mxu0 %v21812_v31 }
0x16dc   : > { %20282 = vmatpush3.bf16.msra.mxu0 %v25181_v42 }
0x16dd   : > { %20283 = vmatprep.subr.bf16.mxu0 %v21812_v31 }
0x16df   : > { %18957 = vmatmul.mubr.f32.vlgmr.msra.gmra.mrb[42].mxu0 %v12680_v57 }
0x16e0   : > { %20285 = vmatpush3.bf16.msra.mxu0 %v20284_v50  ;;  %18967 = vmatprep.mubr.msk.f32.mxu0 %vm21813_vm0, %v26051_v26 }
0x16e1   : > { %20286 = vmatprep.subr.bf16.mxu0 %v21812_v31 }
0x16e4   : > { %20288 = vmatpush3.bf16.msra.mxu0 %v20287_v0 }
0x16e5   : > { %20289 = vmatprep.subr.bf16.mxu0 %v21812_v31 }
0x16e7   : > { %18968 = vmatmul.mubr.f32.vlgmr.msra.gmra.mrb[42].mxu0 %v12678_v49 }
0x16e8   : > { %20291 = vmatpush3.bf16.msra.mxu0 %v25167_v55  ;;  %18978 = vmatprep.mubr.msk.f32.mxu0 %vm21813_vm0, %v26051_v26  ;;  %v13115_v55 = vand.u32 4294901760, %v13106_v7 }
0x16e9   : > { %20292 = vmatprep.subr.bf16.mxu0 %v21812_v31 }
0x16ea   : > { %v20296_v13 = vpack.c.bf16 %v13118_v16, %v13115_v55  ;;  %v13195_v21 = vsub.f32 %v13106_v7, %v13115_v55 }
0x16ec   : > { %20294 = vmatpush3.bf16.msra.mxu0 %v25181_v42  ;;  %v13124_v42 = vand.u32 4294901760, %v13112_v11  ;;  %v13196_v2 = vand.u32 4294901760, %v13195_v21  ;;  %v20308_v1 = vpack.c.bf16 %v13202_v52, %v13195_v21 }
0x16ed   : > { %20295 = vmatprep.subr.bf16.mxu0 %v21812_v31 }
0x16ee   : > { %v20299_v28 = vpack.c.bf16 %v13124_v42, %v13121_v46  ;;  %v13216_v54 = vsub.f32 %v13112_v11, %v13124_v42  ;;  %v13197_v19 = vsub.f32 %v13195_v21, %v13196_v2  ;;  %v20320_v27 = vpack.c.bf16 %v13203_v18, %v13196_v2 }
0x16ef   : > { %18979 = vmatmul.mubr.f32.vlgmr.msra.gmra.mrb[42].mxu0 %v12678_v49  ;;  %v13186_v49 = vsub.f32 %v13184_v58, %v13185_v63  ;;  %v13716_v42 = vand.u32 4294901760, %v13715_v61 }
0x16f0   : > { %18989 = vmatprep.mubr.msk.f32.mxu0 %vm21813_vm0, %v26051_v26  ;;  %v13217_v51 = vand.u32 4294901760, %v13216_v54  ;;  %v13198_v4 = vand.u32 4294901760, %v13197_v19  ;;  %v20311_v17 = vpack.c.bf16 %v13216_v54, %v13209_v39 }
0x16f1   : > { %v13187_v24 = vand.u32 4294901760, %v13186_v49  ;;  %v13717_v19 = vsub.f32 %v13715_v61, %v13716_v42 }
0x16f2   : > { %v13218_v57 = vsub.f32 %v13216_v54, %v13217_v51  ;;  %v20302_v40 = vpack.c.bf16 %v13205_v56, %v13198_v4  ;;  %v20323_v48 = vpack.c.bf16 %v13217_v51, %v13210_v41 }
0x16f3   : > { %v13718_v41 = vand.u32 4294901760, %v13717_v19 }
0x16f4   : > { %v13219_v8 = vand.u32 4294901760, %v13218_v57 }
0x16f5   : > { %20297 = vmatpush3.bf16.xpose.msra.mxu0 %v20296_v13 }
0x16f6   : > { %20298 = vmatprep.subr.bf16.mxu0 %v21812_v31  ;;  %v20305_v43 = vpack.c.bf16 %v13219_v8, %v13212_v30 }
0x16fd   : > { %20300 = vmatpush3.bf16.xpose.msra.mxu0 %v20299_v28 }
0x16fe   : > { %20301 = vmatprep.subr.bf16.mxu0 %v21812_v31 }
0x1704   : > { %18990 = vmatmul.mubr.f32.vlgmr.msra.gmra.mrb[44].mxu0 %v13187_v24 }
0x1705   : > { %20303 = vmatpush3.bf16.xpose.msra.mxu0 %v20302_v40  ;;  %19000 = vmatprep.mubr.msk.f32.mxu0 %vm21813_vm0, %v26051_v26 }
0x1706   : > { %20304 = vmatprep.subr.bf16.mxu0 %v21812_v31 }
0x170d   : > { %20306 = vmatpush3.bf16.xpose.msra.mxu0 %v20305_v43 }
0x170e   : > { %20307 = vmatprep.subr.bf16.mxu0 %v21812_v31 }
0x1714   : > { %19001 = vmatmul.mubr.f32.vlgmr.msra.gmra.mrb[44].mxu0 %v25218_v12 }
0x1715   : > { %20309 = vmatpush3.bf16.xpose.msra.mxu0 %v20308_v1  ;;  %19011 = vmatprep.mubr.msk.f32.mxu0 %vm21813_vm0, %v26051_v26 }
0x1716   : > { %20310 = vmatprep.subr.bf16.mxu0 %v21812_v31 }
0x171d   : > { %20312 = vmatpush3.bf16.xpose.msra.mxu0 %v20311_v17 }
0x171e   : > { %20313 = vmatprep.subr.bf16.mxu0 %v21812_v31 }
0x1724   : > { %19012 = vmatmul.mubr.f32.vlgmr.msra.gmra.mrb[44].mxu0 %v13184_v58 }
0x1725   : > { %20315 = vmatpush3.bf16.xpose.msra.mxu0 %v20296_v13  ;;  %19022 = vmatprep.mubr.msk.f32.mxu0 %vm21813_vm0, %v26051_v26 }
0x1726   : > { %20316 = vmatprep.subr.bf16.mxu0 %v21812_v31 }
0x172d   : > { %20318 = vmatpush3.bf16.xpose.msra.mxu0 %v20299_v28 }
0x172e   : > { %20319 = vmatprep.subr.bf16.mxu0 %v21812_v31 }
0x1734   : > { %19023 = vmatmul.mubr.f32.vlgmr.msra.gmra.mrb[44].mxu0 %v13185_v63 }
0x1735   : > { %20321 = vmatpush3.bf16.xpose.msra.mxu0 %v20320_v27  ;;  %19033 = vmatprep.mubr.msk.f32.mxu0 %vm21813_vm0, %v26051_v26 }
0x1736   : > { %20322 = vmatprep.subr.bf16.mxu0 %v21812_v31 }
0x173d   : > { %20324 = vmatpush3.bf16.xpose.msra.mxu0 %v20323_v48 }
0x173e   : > { %20325 = vmatprep.subr.bf16.mxu0 %v21812_v31 }
0x1744   : > { %19034 = vmatmul.mubr.f32.vlgmr.msra.gmra.mrb[44].mxu0 %v25218_v12 }
0x1745   : > { %20327 = vmatpush3.bf16.xpose.msra.mxu0 %v20296_v13  ;;  %19044 = vmatprep.mubr.msk.f32.mxu0 %vm21813_vm0, %v26051_v26 }
0x1746   : > { %20328 = vmatprep.subr.bf16.mxu0 %v21812_v31 }
0x174d   : > { %20330 = vmatpush3.bf16.xpose.msra.mxu0 %v20299_v28 }
0x174e   : > { %20403 = vmatprep.subr.bf16.mxu0 %v21812_v31 }
0x1754   : > { %19045 = vmatmul.mubr.f32.vlgmr.msra.gmra.mrb[44].mxu0 %v25218_v12 }
0x1755   : > { %19187 = vmatprep.mubr.msk.f32.mxu0 %vm21813_vm0, %v26051_v26 }
0x17c2   : > { %v25250_v36 = vpop.f32.mrb[42].mxu0 }
0x17c3   : > { %v18980_v45 = vpop.f32.mrb[43].mxu0 }
0x1827   : > { %v13595_v20 = vpop.f32.mrb[44].mxu0 }
0x1828   : > { %v13599_v50 = vmul.f32 0.35355338, %v13595_v20  ;;  %v19046_v47 = vpop.f32.mrb[45].mxu0 }
0x182a   : > { %v13600_v0 = vsel %vm7498_vm3, %v13599_v50, -inf }
0x182b   : > { %13601 = vmax.xlane.f32.xlu0 %v13600_v0 }
0x1841   : > { %13611 = vrot.lane.b32.xlu0 %v24648_v25, %s21820_s27 }
0x1845   : > { %13617 = vrot.lane.b32.xlu0 %v24653_v35, %s21820_s27 }
0x1849   : > { %14114 = vrot.lane.b32.xlu0 %v24601_v22, %s21821_s6 }
0x184d   : > { %14118 = vrot.lane.b32.xlu0 %v24611_v60, %s21821_s6 }
0x1851   : > { %14112 = vrot.lane.b32.xlu0 %v24597_v15, %s21821_s6 }
0x1855   : > { %14629 = vrot.lane.b32.xlu0 %v24648_v25, %s21821_s6 }
0x18b8   : > { %v13602_v14 = vpop.xlane.xlu0 %13601 }
0x18b9   : > { %v13603_v59 = vsub.f32 %v13599_v50, %v13602_v14 }
0x18bb   : > { %v13604_v62 = vmul.f32 1.442695, %v13603_v59 }
0x18bc   : > { %v13612_v7 = vpop.permute.xlu0 %13611 }
0x18bd   : > { %21228 = vpow2.f32 %v13604_v62  ;;  %v13628_v16 = vand.u32 4294901760, %v13612_v7 }
0x18bf   : > { %v25265_v55 = vpack.c.bf16 %v13631_v3, %v13628_v16  ;;  %v25267_v22 = vsub.f32 %v13612_v7, %v13628_v16 }
0x18c0   : > { %v13618_v25 = vpop.permute.xlu0 %13617 }
0x18c1   : > { %20333 = vmatpush3.bf16.msra.mxu1 %v25265_v55  ;;  %v13625_v12 = vsel %vm4794_vm11, %v13618_v25, 0  ;;  %v20344_v43 = vpack.c.bf16 %v13715_v61, %v25267_v22 }
0x18c2   : > { %20334 = vmatprep.subr.bf16.mxu1 %v21812_v31  ;;  %v13637_v52 = vand.u32 4294901760, %v13625_v12 }
0x18c4   : > { %v13729_v2 = vsub.f32 %v13625_v12, %v13637_v52  ;;  %v14115_v27 = vpop.permute.xlu0 %14114 }
0x18c5   : > { %v14124_v0 = vsel %vm6996_vm1, %v14115_v27, 0 }
0x18c6   : > { %v13730_v39 = vand.u32 4294901760, %v13729_v2  ;;  %v14133_v37 = vand.u32 4294901760, %v14124_v0 }
0x18c7   : > { %v21229_v15 = vpop.eup %21228 }
0x18c8   : > { %v13606_v60 = vsel %vm7498_vm3, %v21229_v15, 0.0  ;;  %v13731_v24 = vsub.f32 %v13729_v2, %v13730_v39  ;;  %v14119_v45 = vpop.permute.xlu0 %14118 }
0x18c9   : > { %13607 = vadd.xlane.f32.xlu1 %v13606_v60 }
0x18ca   : > { %v13732_v8 = vand.u32 4294901760, %v13731_v24 }
0x18cc   : > { %v14113_v50 = vpop.permute.xlu0 %14112 }
0x18cd   : > { %v14122_v14 = vsel %vm6996_vm1, %v14113_v50, 0 }
0x18ce   : > { %v25316_v7 = vand.u32 4294901760, %v14122_v14 }
0x18d0   : > { %v14202_v60 = vsub.f32 %v14122_v14, %v25316_v7 }
0x18da   : > { %13615 = vrot.lane.b32.xlu1 %v24658_v44, %s21820_s27  ;;  %s1015_s27 = scalar_lea.vmem [#allocation28], %s16016_s0  ;;  %s21829_s0 = smov [#allocation28]  }
0x18de   : > { %14116 = vrot.lane.b32.xlu1 %v24599_v33, %s21821_s6  ;;  %v13709_v33 = vand.u32 4294901760, %v25267_v22 }
0x18e0   : > { %v13710_v23 = vsub.f32 %v25267_v22, %v13709_v33  ;;  %v20356_v17 = vpack.c.bf16 %v13716_v42, %v13709_v33  ;;  %v14213_v22 = vsub.f32 %v14124_v0, %v14133_v37 }
0x18e2   : > { %14120 = vrot.lane.b32.xlu1 %v24609_v9, %s21821_s6  ;;  %v13711_v56 = vand.u32 4294901760, %v13710_v23  ;;  %v14214_v12 = vand.u32 4294901760, %v14213_v22 }
0x18e4   : > { %v20338_v6 = vpack.c.bf16 %v13718_v41, %v13711_v56 }
0x1956   : > { %v13608_v53 = vpop.xlane.xlu1 %13607 }
0x1957   : > { %21230 = vrcp.f32 %v13608_v53 }
0x195a   : > { %v13616_v13 = vpop.permute.xlu1 %13615 }
0x195b   : > { %v13634_v11 = vand.u32 4294901760, %v13616_v13 }
0x195d   : > { %v25279_v21 = vpack.c.bf16 %v13637_v52, %v13634_v11  ;;  %v13722_v9 = vsub.f32 %v13616_v13, %v13634_v11  ;;  %v14203_v52 = vand.u32 4294901760, %v14202_v60 }
0x195e   : > { %v14117_v20 = vpop.permute.xlu1 %14116 }
0x195f   : > { %20336 = vmatpush3.bf16.msra.mxu1 %v25279_v21  ;;  %v13723_v28 = vand.u32 4294901760, %v13722_v9  ;;  %v20347_v1 = vpack.c.bf16 %v13729_v2, %v13722_v9  ;;  %v14126_v47 = vsel %vm6996_vm1, %v14117_v20, 0 }
0x1960   : > { %20337 = vmatprep.subr.bf16.mxu1 %v21812_v31  ;;  %v14136_v59 = vand.u32 4294901760, %v14126_v47 }
0x1961   : > { %v21231_v58 = vpop.eup %21230  ;;  %v13724_v51 = vsub.f32 %v13722_v9, %v13723_v28  ;;  %v20359_v48 = vpack.c.bf16 %v13730_v39, %v13723_v28 }
0x1962   : > { %v13610_v18 = vmul.f32 %v21231_v58, %v21229_v15  ;;  %v14121_v62 = vpop.permute.xlu1 %14120  ;;  %v20368_v3 = vpack.c.bf16 %v14136_v59, %v14133_v37  ;;  %v14220_v16 = vsub.f32 %v14126_v47, %v14136_v59  ;;  %v14128_v15 = vsel %vm6996_vm1, %v14119_v45, 0 }
0x1963   : > { %v13725_v40 = vand.u32 4294901760, %v13724_v51  ;;  %v14139_v13 = vand.u32 4294901760, %v14128_v15  ;;  %v14215_v58 = vsub.f32 %v14213_v22, %v14214_v12 }
0x1964   : > { %v13623_v46 = vsel %vm7498_vm3, %v13610_v18, 0  ;;  %v14221_v25 = vand.u32 4294901760, %v14220_v16  ;;  %v14204_v18 = vsub.f32 %v14202_v60, %v14203_v52  ;;  %v20380_v56 = vpack.c.bf16 %v14220_v16, %v14213_v22 }
0x1965   : > { %v13696_v63 = vand.u32 4294901760, %v13623_v46  ;;  %v20341_v30 = vpack.c.bf16 %v13732_v8, %v13725_v40  ;;  %v14227_v33 = vsub.f32 %v14128_v15, %v14139_v13  ;;  %v14216_v2 = vand.u32 4294901760, %v14215_v58 }
0x1966   : > { %v14222_v11 = vsub.f32 %v14220_v16, %v14221_v25 }
0x1967   : > { %v13697_v54 = vsub.f32 %v13623_v46, %v13696_v63  ;;  %v14228_v46 = vand.u32 4294901760, %v14227_v33 }
0x1968   : > { %v14223_v9 = vand.u32 4294901760, %v14222_v11 }
0x1969   : > { %v13698_v49 = vand.u32 4294901760, %v13697_v54 }
0x196a   : > { %v20374_v28 = vpack.c.bf16 %v14223_v9, %v14216_v2 }
0x196b   : > { %v13699_v4 = vsub.f32 %v13697_v54, %v13698_v49 }
0x196d   : > { %v13700_v57 = vand.u32 4294901760, %v13699_v4  ;;  %v20392_v4 = vpack.c.bf16 %v14221_v25, %v14214_v12 }
0x196f   : > { %19056 = vmatmul.mubr.f32.vlgmr.msra.gmra.mrb[36].mxu1 %v13700_v57 }
0x1970   : > { %20339 = vmatpush3.bf16.msra.mxu1 %v20338_v6  ;;  %19066 = vmatprep.mubr.msk.f32.mxu1 %vm21813_vm0, %v26051_v26 }
0x1971   : > { %20340 = vmatprep.subr.bf16.mxu1 %v21812_v31 }
0x1974   : > { %20342 = vmatpush3.bf16.msra.mxu1 %v20341_v30 }
0x1975   : > { %20343 = vmatprep.subr.bf16.mxu1 %v21812_v31 }
0x1977   : > { %19067 = vmatmul.mubr.f32.vlgmr.msra.gmra.mrb[36].mxu1 %v13696_v63 }
0x1978   : > { %20345 = vmatpush3.bf16.msra.mxu1 %v20344_v43  ;;  %19077 = vmatprep.mubr.msk.f32.mxu1 %vm21813_vm0, %v26051_v26 }
0x1979   : > { %20346 = vmatprep.subr.bf16.mxu1 %v21812_v31 }
0x197c   : > { %20348 = vmatpush3.bf16.msra.mxu1 %v20347_v1 }
0x197d   : > { %20349 = vmatprep.subr.bf16.mxu1 %v21812_v31 }
0x197f   : > { %19078 = vmatmul.mubr.f32.vlgmr.msra.gmra.mrb[36].mxu1 %v13697_v54  ;;  %v14229_v54 = vsub.f32 %v14227_v33, %v14228_v46 }
0x1980   : > { %20351 = vmatpush3.bf16.msra.mxu1 %v25265_v55  ;;  %19088 = vmatprep.mubr.msk.f32.mxu1 %vm21813_vm0, %v26051_v26 }
0x1981   : > { %20352 = vmatprep.subr.bf16.mxu1 %v21812_v31  ;;  %v14230_v39 = vand.u32 4294901760, %v14229_v54  ;;  %v15169_v54 = vld [vmem:[#allocation26] sm:$0xff] }
0x1984   : > { %20354 = vmatpush3.bf16.msra.mxu1 %v25279_v21 }
0x1985   : > { %20355 = vmatprep.subr.bf16.mxu1 %v21812_v31 }
0x1987   : > { %19089 = vmatmul.mubr.f32.vlgmr.msra.gmra.mrb[36].mxu1 %v13698_v49 }
0x1988   : > { %20357 = vmatpush3.bf16.msra.mxu1 %v20356_v17  ;;  %19099 = vmatprep.mubr.msk.f32.mxu1 %vm21813_vm0, %v26051_v26  ;;  %v14630_v17 = vpop.permute.xlu0 %14629 }
0x1989   : > { %20358 = vmatprep.subr.bf16.mxu1 %v21812_v31  ;;  %v14646_v45 = vand.u32 4294901760, %v14630_v17 }
0x198c   : > { %20360 = vmatpush3.bf16.msra.mxu1 %v20359_v48 }
0x198d   : > { %20361 = vmatprep.subr.bf16.mxu1 %v21812_v31 }
0x198f   : > { %19100 = vmatmul.mubr.f32.vlgmr.msra.gmra.mrb[36].mxu1 %v13696_v63 }
0x1990   : > { %20363 = vmatpush3.bf16.msra.mxu1 %v25265_v55  ;;  %19110 = vmatprep.mubr.msk.f32.mxu1 %vm21813_vm0, %v26051_v26  ;;  %v14130_v55 = vsel %vm6996_vm1, %v14121_v62, 0  ;;  %v14726_v62 = vsub.f32 %v14630_v17, %v14646_v45 }
0x1991   : > { %20364 = vmatprep.subr.bf16.mxu1 %v21812_v31  ;;  %v14142_v53 = vand.u32 4294901760, %v14130_v55 }
0x1993   : > { %v14234_v61 = vsub.f32 %v14130_v55, %v14142_v53 }
0x1994   : > { %20366 = vmatpush3.bf16.msra.mxu1 %v25279_v21  ;;  %v20371_v21 = vpack.c.bf16 %v14142_v53, %v14139_v13 }
0x1995   : > { %20367 = vmatprep.subr.bf16.mxu1 %v21812_v31  ;;  %v14235_v42 = vand.u32 4294901760, %v14234_v61  ;;  %v20383_v51 = vpack.c.bf16 %v14234_v61, %v14227_v33 }
0x1997   : > { %19111 = vmatmul.mubr.f32.vlgmr.msra.gmra.mrb[36].mxu1 %v13696_v63  ;;  %v14205_v63 = vand.u32 4294901760, %v14204_v18  ;;  %v14236_v23 = vsub.f32 %v14234_v61, %v14235_v42  ;;  %v20395_v41 = vpack.c.bf16 %v14235_v42, %v14228_v46 }
0x1998   : > { %19121 = vmatprep.mubr.msk.f32.mxu1 %vm21813_vm0, %v26051_v26 }
0x1999   : > { %v14237_v19 = vand.u32 4294901760, %v14236_v23 }
0x199b   : > { %v20377_v49 = vpack.c.bf16 %v14237_v19, %v14230_v39  ;;  %v15170_v19 = vld [vmem:[#allocation26 + $0x8] sm:$0xff]  ;;  %v15171_v39 = vld [vmem:[#allocation26 + $0x10] sm:$0xff] }
0x199d   : > { %20369 = vmatpush3.bf16.xpose.msra.mxu1 %v20368_v3 }
0x199e   : > { %20370 = vmatprep.subr.bf16.mxu1 %v21812_v31 }
0x19a5   : > { %20372 = vmatpush3.bf16.xpose.msra.mxu1 %v20371_v21 }
0x19a6   : > { %20373 = vmatprep.subr.bf16.mxu1 %v21812_v31 }
0x19ac   : > { %19122 = vmatmul.mubr.f32.vlgmr.msra.gmra.mrb[38].mxu1 %v14205_v63 }
0x19ad   : > { %20375 = vmatpush3.bf16.xpose.msra.mxu1 %v20374_v28  ;;  %19132 = vmatprep.mubr.msk.f32.mxu1 %vm21813_vm0, %v26051_v26 }
0x19ae   : > { %20376 = vmatprep.subr.bf16.mxu1 %v21812_v31 }
0x19b5   : > { %20378 = vmatpush3.bf16.xpose.msra.mxu1 %v20377_v49  ;;  %v15188_v49 = vand.u32 4294901760, %v15169_v54 }
0x19b6   : > { %20379 = vmatprep.subr.bf16.mxu1 %v21812_v31 }
0x19bc   : > { %19133 = vmatmul.mubr.f32.vlgmr.msra.gmra.mrb[38].mxu1 %v25316_v7 }
0x19bd   : > { %20381 = vmatpush3.bf16.xpose.msra.mxu1 %v20380_v56  ;;  %19143 = vmatprep.mubr.msk.f32.mxu1 %vm21813_vm0, %v26051_v26  ;;  %v15191_v56 = vand.u32 4294901760, %v15170_v19 }
0x19be   : > { %20382 = vmatprep.subr.bf16.mxu1 %v21812_v31 }
0x19c5   : > { %20384 = vmatpush3.bf16.xpose.msra.mxu1 %v20383_v51  ;;  %v15172_v51 = vld [vmem:[#allocation26 + $0x18] sm:$0xff] }
0x19c6   : > { %20385 = vmatprep.subr.bf16.mxu1 %v21812_v31 }
0x19cc   : > { %19144 = vmatmul.mubr.f32.vlgmr.msra.gmra.mrb[38].mxu1 %v14202_v60 }
0x19cd   : > { %20387 = vmatpush3.bf16.xpose.msra.mxu1 %v20368_v3  ;;  %19154 = vmatprep.mubr.msk.f32.mxu1 %vm21813_vm0, %v26051_v26 }
0x19ce   : > { %20388 = vmatprep.subr.bf16.mxu1 %v21812_v31 }
0x19d5   : > { %20390 = vmatpush3.bf16.xpose.msra.mxu1 %v20371_v21 }
0x19d6   : > { %20391 = vmatprep.subr.bf16.mxu1 %v21812_v31 }
0x19dc   : > { %19155 = vmatmul.mubr.f32.vlgmr.msra.gmra.mrb[38].mxu1 %v14203_v52 }
0x19dd   : > { %20393 = vmatpush3.bf16.xpose.msra.mxu1 %v20392_v4  ;;  %19165 = vmatprep.mubr.msk.f32.mxu1 %vm21813_vm0, %v26051_v26  ;;  %v15194_v4 = vand.u32 4294901760, %v15171_v39 }
0x19de   : > { %20394 = vmatprep.subr.bf16.mxu1 %v21812_v31 }
0x19e5   : > { %20396 = vmatpush3.bf16.xpose.msra.mxu1 %v20395_v41  ;;  %v15173_v41 = vld [vmem:[#allocation26 + $0x20] sm:$0xff] }
0x19e6   : > { %20397 = vmatprep.subr.bf16.mxu1 %v21812_v31 }
0x19ec   : > { %19166 = vmatmul.mubr.f32.vlgmr.msra.gmra.mrb[38].mxu1 %v25316_v7 }
0x19ed   : > { %20399 = vmatpush3.bf16.xpose.msra.mxu1 %v20368_v3  ;;  %19176 = vmatprep.mubr.msk.f32.mxu1 %vm21813_vm0, %v26051_v26  ;;  %v14727_v3 = vand.u32 4294901760, %v14726_v62 }
0x19ee   : > { %20400 = vmatprep.subr.bf16.mxu1 %v21812_v31 }
0x19ef   : > { %v14728_v53 = vsub.f32 %v14726_v62, %v14727_v3 }
0x19f1   : > { %v14729_v61 = vand.u32 4294901760, %v14728_v53 }
0x19f5   : > { %20402 = vmatpush3.bf16.xpose.msra.mxu1 %v20371_v21 }
0x19f6   : > { %20463 = vmatprep.subr.bf16.mxu1 %v21812_v31 }
0x19fc   : > { %19177 = vmatmul.mubr.f32.vlgmr.msra.gmra.mrb[38].mxu1 %v25316_v7 }
0x19fd   : > { %19299 = vmatprep.mubr.msk.f32.mxu1 %vm21813_vm0, %v26051_v26 }
0x1a6a   : > { %v14108_v24 = vpop.f32.mrb[36].mxu1 }
0x1a6b   : > { %v19112_v57 = vpop.f32.mrb[37].mxu1 }
0x1a6c   : > { %v15197_v57 = vand.u32 4294901760, %v15172_v51 }
0x1a6e   : > { %v25405_v17 = vsub.f32 %v15172_v51, %v15197_v57 }
0x1acf   : > { %v14613_v40 = vpop.f32.mrb[38].mxu1 }
0x1ad0   : > { %v14617_v6 = vmul.f32 0.35355338, %v14613_v40  ;;  %v19178_v8 = vpop.f32.mrb[39].mxu1  ;;  %v15200_v40 = vand.u32 4294901760, %v15173_v41 }
0x1ad1   : > { %v25397_v8 = vsub.f32 %v15169_v54, %v15188_v49 }
0x1ad2   : > { %v14618_v30 = vsel %vm7498_vm3, %v14617_v6, -inf }
0x1ad3   : > { %14619 = vmax.xlane.f32.xlu1 %v14618_v30  ;;  %v25399_v30 = vsub.f32 %v15170_v19, %v15191_v56 }
0x1ae4   : > { %14631 = vrot.lane.b32.xlu1 %v24646_v32, %s21821_s6 }
0x1ae8   : > { %14635 = vrot.lane.b32.xlu1 %v24653_v35, %s21821_s6 }
0x1aec   : > { %15131 = vrot.lane.b32.xlu1 %v24858_v5, %s21822_s1 }
0x1af0   : > { %15139 = vrot.lane.b32.xlu1 %v25054_v10, %s21823_s3 }
0x1af4   : > { %15147 = vrot.lane.b32.xlu1 %v25250_v36, %s21824_s8  ;;  %s26086_s8 = sld [smem:[#allocation118_spill]] }
0x1b60   : > { %v14620_v43 = vpop.xlane.xlu1 %14619 }
0x1b61   : > { %v14621_v1 = vsub.f32 %v14617_v6, %v14620_v43  ;;  %v25401_v43 = vsub.f32 %v15171_v39, %v15194_v4  ;;  %v15294_v39 = vand.u32 4294901760, %v25405_v17 }
0x1b63   : > { %v14622_v27 = vmul.f32 1.442695, %v14621_v1  ;;  %v25403_v1 = vpack.c.bf16 %v15191_v56, %v15188_v49  ;;  %v15287_v19 = vand.u32 4294901760, %v25401_v43 }
0x1b64   : > { %v14632_v48 = vpop.permute.xlu1 %14631 }
0x1b65   : > { %21232 = vpow2.f32 %v14622_v27  ;;  %v14649_v32 = vand.u32 4294901760, %v14632_v48  ;;  %v20464_v27 = vpack.c.bf16 %v25399_v30, %v25397_v8 }
0x1b67   : > { %v25356_v20 = vpack.c.bf16 %v14649_v32, %v14646_v45  ;;  %v25358_v35 = vsub.f32 %v14632_v48, %v14649_v32  ;;  %20465 = vmatpush3.bf16.msra.mxu1 %v20464_v27  ;;  %v20467_v48 = vpack.c.bf16 %v25405_v17, %v25401_v43  ;;  %v25413_v45 = vsub.f32 %v15173_v41, %v15200_v40 }
0x1b68   : > { %v14636_v36 = vpop.permute.xlu1 %14635  ;;  %20466 = vmatprep.subr.bf16.mxu1 %v21812_v31  ;;  %v15295_v41 = vsub.f32 %v25405_v17, %v15294_v39 }
0x1b69   : > { %20405 = vmatpush3.bf16.msra.mxu0 %v25356_v20  ;;  %v14643_v47 = vsel %vm4794_vm11, %v14636_v36, 0  ;;  %v20416_v46 = vpack.c.bf16 %v25358_v35, %v14726_v62 }
0x1b6a   : > { %20406 = vmatprep.subr.bf16.mxu0 %v21812_v31  ;;  %v14655_v14 = vand.u32 4294901760, %v14643_v47 }
0x1b6b   : > { %20468 = vmatpush3.bf16.msra.mxu1 %v20467_v48  ;;  %v15296_v48 = vand.u32 4294901760, %v15295_v41 }
0x1b6c   : > { %v14747_v16 = vsub.f32 %v14643_v47, %v14655_v14  ;;  %20469 = vmatprep.subr.bf16.mxu1 %v21812_v31 }
0x1b6e   : > { %v14748_v12 = vand.u32 4294901760, %v14747_v16 }
0x1b6f   : > { %v21233_v5 = vpop.eup %21232 }
0x1b70   : > { %v14624_v10 = vsel %vm7498_vm3, %v21233_v5, 0.0  ;;  %v14749_v58 = vsub.f32 %v14747_v16, %v14748_v12 }
0x1b71   : > { %14625 = vadd.xlane.f32.xlu0 %v14624_v10 }
0x1b72   : > { %v14750_v42 = vand.u32 4294901760, %v14749_v58 }
0x1b87   : > { %14633 = vrot.lane.b32.xlu0 %v24658_v44, %s21821_s6  ;;  %s15740_s6 = sshll.u32 %s1015_s27, 4  ;;  %s25506_s6 = int_to_ptr.vmem [resolvable:$true] %s15740_s6 }
0x1b88   : > { %s21692_s29 = scalar_lea.vmem %s25506_s6, 128 }
0x1b89   : > { %p21693_p3 = scmp.ne.s32.totalorder %s25506_s6, %s21692_s29 }
0x1b8b   : > { %15135 = vrot.lane.b32.xlu0 %v24956_v29, %s21825_s11  ;;  %v14734_v29 = vand.u32 4294901760, %v25358_v35  ;;  %s25504_s11 = scalar_lea.hbm %s26086_s8, %s16047_s2  ;;  %p21694_p9 = pnand %p21693_p3, %p26087_p5 }
0x1b8d   : > { %v14735_v15 = vsub.f32 %v25358_v35, %v14734_v29  ;;  %v20428_v23 = vpack.c.bf16 %v14734_v29, %v14727_v3  ;;  %v15175_v35 = vld [vmem:[#allocation26 + $0x30] sm:$0xff]  ;;  %p21695_p7 = pneg %p21694_p9 }
0x1b8e   : > { %v15206_v10 = vand.u32 4294901760, %v15175_v35 }
0x1b8f   : > { %15143 = vrot.lane.b32.xlu0 %v25152_v38, %s21826_s20  ;;  %v14736_v52 = vand.u32 4294901760, %v14735_v15  ;;  %s15727_s20 = scalar_lea.sflag [#allocation4], %s22434_s19 }
0x1b90   : > { %v15314_v47 = vsub.f32 %v15175_v35, %v15206_v10 }
0x1b91   : > { %v20410_v9 = vpack.c.bf16 %v14736_v52, %v14729_v61 }
0x1b92   : > { %v15315_v29 = vand.u32 4294901760, %v15314_v47 }
0x1b93   : > { %15151 = vrot.lane.b32.xlu0 %v14108_v24, %s21827_s5  ;;  %v15174_v24 = vld [vmem:[#allocation26 + $0x28] sm:$0xff] }
0x1b94   : > { %v15203_v6 = vand.u32 4294901760, %v15174_v24  ;;  %v15316_v3 = vsub.f32 %v15314_v47, %v15315_v29 }
0x1b96   : > { %v25415_v32 = vsub.f32 %v15174_v24, %v15203_v6 }
0x1bfe   : > { %v14626_v50 = vpop.xlane.xlu0 %14625 }
0x1bff   : > { %21234 = vrcp.f32 %v14626_v50  ;;  %v25422_v50 = vpack.c.bf16 %v15197_v57, %v15194_v4  ;;  %v15288_v4 = vsub.f32 %v25401_v43, %v15287_v19  ;;  %v20491_v57 = vpack.c.bf16 %v15294_v39, %v15287_v19 }
0x1c01   : > { %v15289_v27 = vand.u32 4294901760, %v15288_v4 }
0x1c02   : > { %v14634_v0 = vpop.permute.xlu0 %14633 }
0x1c03   : > { %v14652_v59 = vand.u32 4294901760, %v14634_v0 }
0x1c05   : > { %v20407_v37 = vpack.c.bf16 %v14655_v14, %v14652_v59  ;;  %v14740_v38 = vsub.f32 %v14634_v0, %v14652_v59  ;;  %v25426_v59 = vpack.c.bf16 %v15203_v6, %v15200_v40  ;;  %v15301_v40 = vand.u32 4294901760, %v25413_v45 }
0x1c06   : > { %v15308_v6 = vand.u32 4294901760, %v25415_v32 }
0x1c07   : > { %20408 = vmatpush3.bf16.msra.mxu0 %v20407_v37  ;;  %v14741_v60 = vand.u32 4294901760, %v14740_v38  ;;  %v20419_v63 = vpack.c.bf16 %v14747_v16, %v14740_v38  ;;  %v15302_v43 = vsub.f32 %v25413_v45, %v15301_v40 }
0x1c08   : > { %20409 = vmatprep.subr.bf16.mxu0 %v21812_v31  ;;  %v15309_v17 = vsub.f32 %v25415_v32, %v15308_v6  ;;  %v20494_v35 = vpack.c.bf16 %v15308_v6, %v15301_v40 }
0x1c09   : > { %v21235_v44 = vpop.eup %21234  ;;  %v14742_v11 = vsub.f32 %v14740_v38, %v14741_v60  ;;  %v20431_v28 = vpack.c.bf16 %v14748_v12, %v14741_v60  ;;  %v15132_v60 = vpop.permute.xlu1 %15131 }
0x1c0a   : > { %v14628_v7 = vmul.f32 %v21235_v44, %v21233_v5  ;;  %v15176_v5 = vld [vmem:[#allocation26 + $0x38] sm:$0xff]  ;;  %v15158_v12 = vsel %vm6996_vm1, %v24760_v34, %v15132_v60 }
0x1c0b   : > { %v14743_v18 = vand.u32 4294901760, %v14742_v11  ;;  %v15209_v36 = vand.u32 4294901760, %v15176_v5 }
0x1c0c   : > { %v14641_v55 = vsel %vm7498_vm3, %v14628_v7, 0 }
0x1c0d   : > { %v14714_v22 = vand.u32 4294901760, %v14641_v55  ;;  %v20413_v2 = vpack.c.bf16 %v14750_v42, %v14743_v18  ;;  %v15321_v0 = vsub.f32 %v15176_v5, %v15209_v36  ;;  %v15140_v53 = vpop.permute.xlu1 %15139  ;;  %v15273_v18 = vand.u32 4294901760, %v25397_v8 }
0x1c0e   : > { %v20455_v5 = vpack.c.bf16 %v15296_v48, %v15289_v27 }
0x1c0f   : > { %v14715_v25 = vsub.f32 %v14641_v55, %v14714_v22  ;;  %v20473_v14 = vpack.c.bf16 %v15321_v0, %v15314_v47  ;;  %v15322_v7 = vand.u32 4294901760, %v15321_v0  ;;  %v15317_v55 = vand.u32 4294901760, %v15316_v3 }
0x1c11   : > { %v14716_v13 = vand.u32 4294901760, %v14715_v25  ;;  %v25435_v38 = vpack.c.bf16 %v15322_v7, %v15315_v29  ;;  %v15323_v16 = vsub.f32 %v15321_v0, %v15322_v7 }
0x1c13   : > { %v14717_v21 = vsub.f32 %v14715_v25, %v14716_v13 }
0x1c15   : > { %v14718_v33 = vand.u32 4294901760, %v14717_v21  ;;  %v15148_v21 = vpop.permute.xlu1 %15147 }
0x1c17   : > { %19188 = vmatmul.mubr.f32.vlgmr.msra.gmra.mrb[46].mxu0 %v14718_v33 }
0x1c18   : > { %20411 = vmatpush3.bf16.msra.mxu0 %v20410_v9  ;;  %19198 = vmatprep.mubr.msk.f32.mxu0 %vm21813_vm0, %v26051_v26  ;;  %v15280_v9 = vand.u32 4294901760, %v25399_v30 }
0x1c19   : > { %20412 = vmatprep.subr.bf16.mxu0 %v21812_v31 }
0x1c1a   : > { %v20488_v54 = vpack.c.bf16 %v15280_v9, %v15273_v18 }
0x1c1c   : > { %20414 = vmatpush3.bf16.msra.mxu0 %v20413_v2 }
0x1c1d   : > { %20415 = vmatprep.subr.bf16.mxu0 %v21812_v31 }
0x1c1f   : > { %19199 = vmatmul.mubr.f32.vlgmr.msra.gmra.mrb[46].mxu0 %v14714_v22 }
0x1c20   : > { %20417 = vmatpush3.bf16.msra.mxu0 %v20416_v46  ;;  %19209 = vmatprep.mubr.msk.f32.mxu0 %vm21813_vm0, %v26051_v26  ;;  %v15274_v46 = vsub.f32 %v25397_v8, %v15273_v18 }
0x1c21   : > { %20418 = vmatprep.subr.bf16.mxu0 %v21812_v31 }
0x1c22   : > { %v15275_v56 = vand.u32 4294901760, %v15274_v46 }
0x1c24   : > { %20420 = vmatpush3.bf16.msra.mxu0 %v20419_v63  ;;  %v15281_v63 = vsub.f32 %v25399_v30, %v15280_v9 }
0x1c25   : > { %20421 = vmatprep.subr.bf16.mxu0 %v21812_v31 }
0x1c26   : > { %v15282_v51 = vand.u32 4294901760, %v15281_v63 }
0x1c27   : > { %19210 = vmatmul.mubr.f32.vlgmr.msra.gmra.mrb[46].mxu0 %v14715_v25  ;;  %v15136_v25 = vpop.permute.xlu0 %15135 }
0x1c28   : > { %20423 = vmatpush3.bf16.msra.mxu0 %v25356_v20  ;;  %19220 = vmatprep.mubr.msk.f32.mxu0 %vm21813_vm0, %v26051_v26  ;;  %v15159_v52 = vsel %vm26083_vm4, %v15158_v12, %v15136_v25  ;;  %v20452_v30 = vpack.c.bf16 %v15282_v51, %v15275_v56 }
0x1c29   : > { %20424 = vmatprep.subr.bf16.mxu0 %v21812_v31  ;;  %v15161_v11 = vsel %vm15160_vm5, %v15159_v52, %v15140_v53 }
0x1c2c   : > { %20426 = vmatpush3.bf16.msra.mxu0 %v20407_v37 }
0x1c2d   : > { %20427 = vmatprep.subr.bf16.mxu0 %v21812_v31 }
0x1c2f   : > { %19221 = vmatmul.mubr.f32.vlgmr.msra.gmra.mrb[46].mxu0 %v14716_v13  ;;  %v15144_v13 = vpop.permute.xlu0 %15143 }
0x1c30   : > { %20429 = vmatpush3.bf16.msra.mxu0 %v20428_v23  ;;  %19231 = vmatprep.mubr.msk.f32.mxu0 %vm21813_vm0, %v26051_v26  ;;  %v15162_v61 = vsel %vm26084_vm6, %v15161_v11, %v15144_v13 }
0x1c31   : > { %20430 = vmatprep.subr.bf16.mxu0 %v21812_v31  ;;  %v15164_v33 = vsel %vm15163_vm7, %v15162_v61, %v15148_v21 }
0x1c33   : > { %v15152_v58 = vpop.permute.xlu0 %15151 }
0x1c34   : > { %20432 = vmatpush3.bf16.msra.mxu0 %v20431_v28  ;;  %v15166_v42 = vsel %vm15165_vm8, %v15164_v33, %v15152_v58 }
0x1c35   : > { %20433 = vmatprep.subr.bf16.mxu0 %v21812_v31 }
0x1c37   : > { %19232 = vmatmul.mubr.f32.vlgmr.msra.gmra.mrb[46].mxu0 %v14714_v22 }
0x1c38   : > { %20435 = vmatpush3.bf16.msra.mxu0 %v25356_v20  ;;  %19242 = vmatprep.mubr.msk.f32.mxu0 %vm21813_vm0, %v26051_v26  ;;  %v20470_v20 = vpack.c.bf16 %v25415_v32, %v25413_v45 }
0x1c39   : > { %20436 = vmatprep.subr.bf16.mxu0 %v21812_v31 }
0x1c3a   : > { %20471 = vmatpush3.bf16.msra.mxu1 %v20470_v20 }
0x1c3b   : > { %20472 = vmatprep.subr.bf16.mxu1 %v21812_v31 }
0x1c3c   : > { %20438 = vmatpush3.bf16.msra.mxu0 %v20407_v37  ;;  %v25431_v37 = vpack.c.bf16 %v15209_v36, %v15206_v10  ;;  %v15303_v10 = vand.u32 4294901760, %v15302_v43  ;;  %v15310_v36 = vand.u32 4294901760, %v15309_v17 }
0x1c3d   : > { %20439 = vmatprep.subr.bf16.mxu0 %v21812_v31 }
0x1c3e   : > { %20474 = vmatpush3.bf16.msra.mxu1 %v20473_v14  ;;  %v20458_v45 = vpack.c.bf16 %v15310_v36, %v15303_v10 }
0x1c3f   : > { %19243 = vmatmul.mubr.f32.vlgmr.msra.gmra.mrb[46].mxu0 %v14714_v22  ;;  %20487 = vmatprep.subr.bf16.mxu1 %v21812_v31  ;;  %v15324_v22 = vand.u32 4294901760, %v15323_v16 }
0x1c40   : > { %19261 = vmatprep.mubr.msk.f32.mxu0 %vm21813_vm0, %v26051_v26  ;;  %20441 = vmatpush3.bf16.msra.mxu0 %v25403_v1 }
0x1c41   : > { %20442 = vmatprep.subr.bf16.mxu0 %v21812_v31  ;;  %v25437_v15 = vpack.c.bf16 %v15324_v22, %v15317_v55 }
0x1c44   : > { %20444 = vmatpush3.bf16.msra.mxu0 %v25422_v50 }
0x1c45   : > { %20445 = vmatprep.subr.bf16.mxu0 %v21812_v31 }
0x1c48   : > { %20447 = vmatpush3.bf16.msra.mxu0 %v25426_v59 }
0x1c49   : > { %20448 = vmatprep.subr.bf16.mxu0 %v21812_v31 }
0x1c4c   : > { %20450 = vmatpush3.bf16.msra.mxu0 %v25431_v37 }
0x1c4d   : > { %20451 = vmatprep.subr.bf16.mxu0 %v21812_v31 }
0x1d12   : > { %v15126_v62 = vpop.f32.mrb[46].mxu0 }
0x1d13   : > { %15155 = vrot.lane.b32.xlu1 %v15126_v62, %s21828_s14  ;;  %v19244_v44 = vpop.f32.mrb[47].mxu0 }
0x1d85   : > { %v15156_v2 = vpop.permute.xlu1 %15155 }
0x1d86   : > { %v15168_v34 = vsel %vm15167_vm9, %v15166_v42, %v15156_v2 }
0x1d87   : > { %v15185_v23 = vsel %vm4112_vm2, %v15168_v34, 0 }
0x1d88   : > { %v25448_v28 = vand.u32 4294901760, %v15185_v23 }
0x1d8a   : > { %v15261_v49 = vsub.f32 %v15185_v23, %v25448_v28 }
0x1d8c   : > { %v15262_v24 = vand.u32 4294901760, %v15261_v49  ;;  %19300 = vmatmul.mubr.f32.vlgmr.msra.gmra.mrb[40].mxu1 %v15261_v49 }
0x1d8d   : > { %20489 = vmatpush3.bf16.msra.mxu1 %v20488_v54  ;;  %19337 = vmatprep.mubr.msk.f32.mxu1 %vm21813_vm0, %v26051_v26 }
0x1d8e   : > { %20490 = vmatprep.subr.bf16.mxu1 %v21812_v31  ;;  %v15263_v8 = vsub.f32 %v15261_v49, %v15262_v24 }
0x1d90   : > { %v15264_v20 = vand.u32 4294901760, %v15263_v8 }
0x1d91   : > { %20492 = vmatpush3.bf16.msra.mxu1 %v20491_v57 }
0x1d92   : > { %19262 = vmatmul.mubr.f32.vlgmr.msra.gmra.mrb[48].mxu0 %v15264_v20  ;;  %20493 = vmatprep.subr.bf16.mxu1 %v21812_v31 }
0x1d93   : > { %20453 = vmatpush3.bf16.msra.mxu0 %v20452_v30  ;;  %19280 = vmatprep.mubr.msk.f32.mxu0 %vm21813_vm0, %v26051_v26 }
0x1d94   : > { %20454 = vmatprep.subr.bf16.mxu0 %v21812_v31 }
0x1d95   : > { %20495 = vmatpush3.bf16.msra.mxu1 %v20494_v35 }
0x1d96   : > { %20496 = vmatprep.subr.bf16.mxu1 %v21812_v31 }
0x1d97   : > { %20456 = vmatpush3.bf16.msra.mxu0 %v20455_v5 }
0x1d98   : > { %20457 = vmatprep.subr.bf16.mxu0 %v21812_v31 }
0x1d99   : > { %20498 = vmatpush3.bf16.msra.mxu1 %v25435_v38 }
0x1d9b   : > { %20459 = vmatpush3.bf16.msra.mxu0 %v20458_v45 }
0x1d9c   : > { %19338 = vmatmul.mubr.f32.vlgmr.msra.gmra.mrb[42].mxu1 %v25448_v28  ;;  %20460 = vmatprep.subr.bf16.mxu0 %v21812_v31 }
0x1d9f   : > { %20462 = vmatpush3.bf16.msra.mxu0 %v25437_v15  ;;  %v21237_v15 = vld [vmem:[%s22455_s23] sm:$0xff]  ;;  %s21696_s23 = sshll.u32 %s21829_s0, 4  ;;  %s21697_s23 = int_to_ptr.vmem [resolvable:$false] %s21696_s23 }
0x1da0   : > { %20475 = vmatprep.subr.bf16.mxu0 %v21812_v31  ;;  %s21698_s5 = scalar_lea.vmem %s21697_s23, 256  ;;  %p21699_p8 = scmp.lt.s32.totalorder %s25506_s6, %s21697_s23 }
0x1da1   : > { %p21700_p12 = scmp.lt.s32.totalorder %s21698_s5, %s21692_s29 }
0x1da2   : > { %19281 = vmatmul.mubr.f32.vlgmr.msra.gmra.mrb[50].mxu0 %v25448_v28 }
0x1da3   : > { %20477 = vmatpush3.bf16.msra.mxu0 %v25403_v1  ;;  %19318 = vmatprep.mubr.msk.f32.mxu0 %vm21813_vm0, %v26051_v26  ;;  %p21701_p13 = por %p21700_p12, %p21699_p8 }
0x1da4   : > { %20478 = vmatprep.subr.bf16.mxu0 %v21812_v31 }
0x1da5   : > { %p21702_p1 = pnand %p21701_p13, %p21695_p7 }
0x1da7   : > { %20480 = vmatpush3.bf16.msra.mxu0 %v25422_v50 }
0x1da8   : > { %20481 = vmatprep.subr.bf16.mxu0 %v21812_v31 }
0x1dab   : > { %20483 = vmatpush3.bf16.msra.mxu0 %v25426_v59 }
0x1dac   : > { %20484 = vmatprep.subr.bf16.mxu0 %v21812_v31 }
0x1daf   : > { %20486 = vmatpush3.bf16.msra.mxu0 %v25431_v37 }
0x1db0   : > { %20499 = vmatprep.subr.bf16.mxu0 %v21812_v31 }
0x1db2   : > { %19319 = vmatmul.mubr.f32.vlgmr.msra.gmra.mrb[52].mxu0 %v15262_v24 }
0x1db3   : > { %20501 = vmatpush3.bf16.msra.mxu0 %v25403_v1  ;;  %19356 = vmatprep.mubr.msk.f32.mxu0 %vm21813_vm0, %v26051_v26 }
0x1db4   : > { %20502 = vmatprep.subr.bf16.mxu0 %v21812_v31 }
0x1db7   : > { %20504 = vmatpush3.bf16.msra.mxu0 %v25422_v50  ;;  %v16045_v50 = vld [vmem:[%s26085_s30] ss:$0 sm:$0xff] }
0x1db8   : > { %20505 = vmatprep.subr.bf16.mxu0 %v21812_v31 }
0x1dbb   : > { %20507 = vmatpush3.bf16.msra.mxu0 %v25426_v59 }
0x1dbc   : > { %20508 = vmatprep.subr.bf16.mxu0 %v21812_v31 }
0x1dbf   : > { %20510 = vmatpush3.bf16.msra.mxu0 %v25431_v37 }
0x1dc2   : > { %19357 = vmatmul.mubr.f32.vlgmr.msra.gmra.mrb[54].mxu0 %v25448_v28 }
0x1e5f   : > { %v15465_v32 = vpop.f32.mrb[40].mxu1 }
0x1e60   : > { %v19301_v47 = vpop.f32.mrb[41].mxu1 }
0x1e65   : > { %v15266_v1 = vpop.f32.mrb[48].mxu0 }
0x1e66   : > { %v19263_v26 = vpop.f32.mrb[49].mxu0  ;;  %v15267_v59 = vadd.f32 %v16045_v50, %v15266_v1 }
0x1e6f   : > { %v15641_v0 = vpop.f32.mrb[42].mxu1 }
0x1e70   : > { %v19339_v14 = vpop.f32.mrb[43].mxu1 }
0x1e75   : > { %v15377_v62 = vpop.f32.mrb[50].mxu0 }
0x1e76   : > { %v15378_v31 = vadd.f32 %v15377_v62, %v15267_v59  ;;  %v19282_v44 = vpop.f32.mrb[51].mxu0 }
0x1e78   : > { %v15466_v37 = vadd.f32 %v15465_v32, %v15378_v31 }
0x1e85   : > { %v15546_v29 = vpop.f32.mrb[52].mxu0 }
0x1e86   : > { %v15547_v7 = vadd.f32 %v15546_v29, %v15466_v37  ;;  %v19320_v38 = vpop.f32.mrb[53].mxu0 }
0x1e88   : > { %v15642_v3 = vadd.f32 %v15641_v0, %v15547_v7 }
0x1e95   : > { %v15720_v16 = vpop.f32.mrb[54].mxu0 }
0x1e96   : > { %v15721_v55 = vadd.f32 %v15720_v16, %v15642_v3  ;;  %v19358_v22 = vpop.f32.mrb[55].mxu0 }
0x1e98   : > { %v15724_v60 = vadd.f32 %v21237_v15, %v15721_v55 }
0x1e9a   : > { %15725 = vst [vmem:[%s1015_s27] sm:$0xff] %v15724_v60 }
0x1e9b   : > { %21705 = shalt.err (!%p21702_p1)
}
0x1e9c   : > { %s21706_s19 = scalar_lea.hbm %s25504_s11, 128  ;;  %s21710_s18 = scalar_lea.hbm %s26086_s8, 256 }
0x1e9d   : > { %p21707_p2 = scmp.ne.s32.totalorder %s25504_s11, %s21706_s19  ;;  %p21711_p4 = scmp.lt.u32.totalorder %s25504_s11, %s26086_s8 }
0x1e9e   : > { %p21712_p11 = scmp.lt.u32.totalorder %s21710_s18, %s21706_s19  ;;  %p21714_p3 = scmp.lt.u32.totalorder %s21706_s19, %s25504_s11 }
0x1e9f   : > { %p21708_p0 = pnand %p21707_p2, %p26087_p5 }
0x1ea0   : > { %p21713_p6 = por %p21712_p11, %p21711_p4 }
0x1ea1   : > { %p21709_p10 = pneg %p21708_p0 }
0x1ea2   : > { %p21715_p9 = por %p21714_p3, %p21713_p6 }
0x1ea4   : > { %p21716_p7 = pnand %p21715_p9, %p21709_p10 }
0x1ea6   : > { %21719 = shalt.err (!%p21716_p7)
}
0x1ea7   : > { %21042 = dma.vmem_to_hbm [thread:$0]  (%p26087_p5), %s25506_s6, 128, %s25504_s11, %s15727_s20  }
0x1ea8 PF: > { %s26088_s27 = sld [smem:[#allocation39_spill]]  ;;  %s26089_s1 = sld [smem:[#allocation44_spill]] }
0x1ea9   : > { %p26091_p12 = scmp.ge.s32.totalorder %s21790_s28, 2 }
0x1eae   : > { %s15752_s3 = sand.u32 1, %s26088_s27   ;;  %p26090_p8 = scmp.ne.s32.totalorder %s26089_s1, 0 }
0x1eaf   : > { %s15753_s29 = scalar_lea.sflag [#allocation4], %s15752_s3 }
0x1eb0   : > { %p21095_p13 = pnand %p26091_p12, %p26090_p8 }
0x1eb2   : > { %21773 = dma.done.wait (!%p21095_p13), %s15753_s29, 128  }
0x1eb3   : > { %21775 = vsyncadd (!%p21095_p13), %s15753_s29, 4294967168  ;;  %s26092_s28 = sld [smem:[#allocation42_spill]]  ;;  %s26093_s0 = sld [smem:[#allocation40_spill]] }
0x1eb4   : > { %s26094_s27 = sld [smem:[#allocation43_spill]]  ;;  %s26095_s5 = smov %s21782_s26 }
0x1eb9   : > { %p47_p1 = scmp.ge.s32.totalorder %s26092_s28, 4   ;;  %s26096_s26 = smov %s26093_s0 }
0x1ebb   :  { %49 = sbr.rel (!%p47_p1) target bundleno = 37 (0x25), region = 240 }
0x1ec2   :  { %15758 = vsyncpa [#allocation3], 1 }
0x1ec3   :  { %15760 = vsyncpa [#allocation3 + $0x1], 1 }
0x1ec4   :  { %15761 = vsyncpa [#allocation6], 1 }
0x1ec5   :  { %15763 = vsyncpa [#allocation6 + $0x1], 1 }
0x1ec6   :  { %15764 = vsyncpa [#allocation9], 1 }
0x1ec7   :  { %15765 = vsyncpa [#allocation12], 1 }
0x1ec8   :  { %15766 = vsyncpa [#allocation15], 1 }
0x1ec9   :  { %15767 = vsyncpa [#allocation18], 1 }
0x1eca   :  { %15768 = vsyncpa [#allocation21], 1 }
0x1ecb   :  { %15769 = vsyncpa [#allocation24], 1 }
0x1ecc   :  { %15770 = vsyncpa [#allocation27], 1 }
0x1ecd   :  { %15771 = vsyncpa [#allocation4], 1 }
0x1ece   :  { %15773 = vsyncpa [#allocation4 + $0x1], 1 }

</bundles_post_ra>
